<compile_context>
chip_gen: v6e
topology: v6e:2x2x1
jax: 0.10.0
libtpu: 0.0.40
codegen_flags: <defaults>
</compile_context>

<pallas_src>
import jax
import jax.numpy as jnp
from jax.experimental import pallas as pl
from jax.experimental.pallas import tpu as pltpu

H = W = 8
NPIX = H * W            # 64 pixels / image
C3 = 64                 # conv bottleneck channels
LATENT = 64
FLAT = C3 * NPIX        # 4096

# 3x3 taps in (kh, kw) order; shift = lane offset of the tap's source pixel.
_TAPS = [((kh - 1) * W + (kw - 1), kh, kw) for kh in range(3) for kw in range(3)]


# ----------------------------------------------------------------------------
# In-kernel helpers
# ----------------------------------------------------------------------------
def _lane_masks(n):
    """Per-tap validity masks (1, n) for pixels stacked on the lane axis (n = TB*64).

    Lane l = sample*64 + h*8 + w.  A tap (dh, dw) is valid iff (h+dh, w+dw) stays inside the
    8x8 image; this also guarantees the lane roll never mixes two stacked images.
    """
    lane = jax.lax.broadcasted_iota(jnp.int32, (1, n), 1)
    p = jnp.bitwise_and(lane, NPIX - 1)
    hh = jnp.right_shift(p, 3)
    ww = jnp.bitwise_and(p, 7)
    masks = []
    for _, kh, kw in _TAPS:
        dh, dw = kh - 1, kw - 1
        masks.append((hh + dh >= 0) & (hh + dh < H) & (ww + dw >= 0) & (ww + dw < W))
    return masks


def _conv3x3(act, w_ref, b_ref, masks, *, relu):
    """3x3 / stride-1 / pad-1 conv; channels on sublanes, TB*64 pixels on lanes.

    act : (Cin, N) float ; w_ref : (9, Cout, Cin) bf16 ; b_ref : (Cout, 1) f32.
    Tap-by-tap: bf16 roll+mask feeding a (Cout,Cin)@(Cin,N) MXU dot, f32 accumulate.
    """
    cout = w_ref.shape[1]
    n = act.shape[1]
    a = act.astype(jnp.bfloat16)
    acc = jnp.zeros((cout, n), jnp.float32)
    for t, (shift, _, _) in enumerate(_TAPS):
        if shift == 0:
            tap = a                                              # centre tap is always valid
        else:
            tap = jnp.where(masks[t], jnp.roll(a, -shift, axis=1), 0.0)
        acc = acc + jnp.dot(w_ref[t], tap, preferred_element_type=jnp.float32)
    acc = acc + b_ref[...]
    return jnp.maximum(acc, 0.0) if relu else acc


def _conv3x3_cin1(x, w_ref, b_ref, masks, *, relu):
    """First conv (Cin=1) as 9 VPU broadcast multiply-adds (avoids K=1 MXU passes).

    x : (1, N) f32 ; w_ref : (9, Cout, 1) f32 ; b_ref : (Cout, 1) f32.
    """
    cout = w_ref.shape[1]
    n = x.shape[1]
    acc = jnp.zeros((cout, n), jnp.float32)
    for t, (shift, _, _) in enumerate(_TAPS):
        if shift == 0:
            tap = x
        else:
            tap = jnp.where(masks[t], jnp.roll(x, -shift, axis=1), 0.0)
        acc = acc + w_ref[t] * tap                               # (Cout,1)*(1,N) -> (Cout,N)
    acc = acc + b_ref[...]
    return jnp.maximum(acc, 0.0) if relu else acc


# ----------------------------------------------------------------------------
# Pallas kernels
# ----------------------------------------------------------------------------
def _encoder_kernel(x_ref, w1_ref, b1_ref, w2_ref, b2_ref, w3_ref, b3_ref, o_ref):
    n = x_ref.shape[2]
    tb = o_ref.shape[1]
    masks = _lane_masks(n)                                       # built once, shared by all layers
    x = x_ref[0]                                                 # (1, N) f32, N = TB*64 lanes
    a1 = _conv3x3_cin1(x, w1_ref, b1_ref, masks, relu=True)      # (16, N)
    a2 = _conv3x3(a1, w2_ref, b2_ref, masks, relu=True)          # (32, N)
    a3 = _conv3x3(a2, w3_ref, b3_ref, masks, relu=True)          # (64, N)
    # Per-sample (c, p) blocks so the NCHW Flatten order (c*64+p) is a free reshape outside.
    for b in range(tb):
        o_ref[0, b] = a3[:, b * NPIX:(b + 1) * NPIX].astype(o_ref.dtype)


def _fc_kernel(x_ref, w1_ref, b1_ref, w2_ref, b2_ref, o_ref):
    x = x_ref[0]                                                 # (TB, 4096) bf16
    enc = jnp.dot(x, w1_ref[...], preferred_element_type=jnp.float32) + b1_ref[...]
    dec = jnp.dot(enc.astype(jnp.bfloat16), w2_ref[...],
                  preferred_element_type=jnp.float32) + b2_ref[...]
    o_ref[0] = jnp.maximum(dec, 0.0).astype(o_ref.dtype)         # (TB, 4096), 4096-lane dense


def _decoder_kernel(d_ref, w1_ref, b1_ref, w2_ref, b2_ref, w3_ref, b3_ref, o_ref):
    tb = d_ref.shape[1]
    n = tb * NPIX
    masks = _lane_masks(n)
    # Reassemble (64 channels, TB*64 pixels) from the per-sample (c, p) blocks.
    d0 = jnp.concatenate([d_ref[0, b] for b in range(tb)], axis=1)   # (64, N) bf16
    h1 = _conv3x3(d0, w1_ref, b1_ref, masks, relu=True)              # (32, N)
    h2 = _conv3x3(h1, w2_ref, b2_ref, masks, relu=True)              # (16, N)
    h3 = _conv3x3(h2, w3_ref, b3_ref, masks, relu=False)             # (1, N) f32
    o_ref[0] = h3                                                    # lane-dense final store


# ----------------------------------------------------------------------------
# pallas_call wrappers
# ----------------------------------------------------------------------------
def _full_spec(a):
    idx = (0,) * a.ndim
    return pl.BlockSpec(a.shape, lambda *_: idx)


_PARALLEL = pltpu.CompilerParams(dimension_semantics=("parallel",))


def _encoder(x2d, enc_w, tb):
    (w1, b1), (w2, b2), (w3, b3) = enc_w
    g, _, n = x2d.shape
    return pl.pallas_call(
        _encoder_kernel,
        out_shape=jax.ShapeDtypeStruct((g, tb, C3, NPIX), jnp.bfloat16),
        grid=(g,),
        in_specs=[pl.BlockSpec((1, 1, n), lambda i: (i, 0, 0)),
                  _full_spec(w1), _full_spec(b1),
                  _full_spec(w2), _full_spec(b2),
                  _full_spec(w3), _full_spec(b3)],
        out_specs=pl.BlockSpec((1, tb, C3, NPIX), lambda i: (i, 0, 0, 0)),
        compiler_params=_PARALLEL,
    )(x2d, w1, b1, w2, b2, w3, b3)


def _fc(xf, fc_w, tb):
    (w1, b1), (w2, b2) = fc_w
    g = xf.shape[0]
    return pl.pallas_call(
        _fc_kernel,
        out_shape=jax.ShapeDtypeStruct((g, tb, FLAT), jnp.bfloat16),
        grid=(g,),
        in_specs=[pl.BlockSpec((1, tb, FLAT), lambda i: (i, 0, 0)),
                  _full_spec(w1), _full_spec(b1),
                  _full_spec(w2), _full_spec(b2)],
        out_specs=pl.BlockSpec((1, tb, FLAT), lambda i: (i, 0, 0)),
        compiler_params=_PARALLEL,
    )(xf, w1, b1, w2, b2)


def _decoder(d0, dec_w, tb):
    (w1, b1), (w2, b2), (w3, b3) = dec_w
    g = d0.shape[0]
    n = tb * NPIX
    return pl.pallas_call(
        _decoder_kernel,
        out_shape=jax.ShapeDtypeStruct((g, 1, n), jnp.float32),
        grid=(g,),
        in_specs=[pl.BlockSpec((1, tb, C3, NPIX), lambda i: (i, 0, 0, 0)),
                  _full_spec(w1), _full_spec(b1),
                  _full_spec(w2), _full_spec(b2),
                  _full_spec(w3), _full_spec(b3)],
        out_specs=pl.BlockSpec((1, 1, n), lambda i: (i, 0, 0)),
        compiler_params=_PARALLEL,
    )(d0, w1, b1, w2, b2, w3, b3)


# ----------------------------------------------------------------------------
# Parameters: raw (PyTorch-layout) init + one-time prepacking.
# ----------------------------------------------------------------------------
def init_raw_params(key):
    ks = jax.random.split(key, 16)
    s = 0.05
    rnd = jax.random.normal
    return {
        "c1_w": s * rnd(ks[0], (16, 1, 3, 3), jnp.float32),
        "c1_b": s * rnd(ks[1], (16,), jnp.float32),
        "c2_w": s * rnd(ks[2], (32, 16, 3, 3), jnp.float32),
        "c2_b": s * rnd(ks[3], (32,), jnp.float32),
        "c3_w": s * rnd(ks[4], (64, 32, 3, 3), jnp.float32),
        "c3_b": s * rnd(ks[5], (64,), jnp.float32),
        "fc1_w": s * rnd(ks[6], (LATENT, FLAT), jnp.float32),
        "fc1_b": s * rnd(ks[7], (LATENT,), jnp.float32),
        "fc2_w": s * rnd(ks[8], (FLAT, LATENT), jnp.float32),
        "fc2_b": s * rnd(ks[9], (FLAT,), jnp.float32),
        "d1_w": s * rnd(ks[10], (64, 32, 3, 3), jnp.float32),
        "d1_b": s * rnd(ks[11], (32,), jnp.float32),
        "d2_w": s * rnd(ks[12], (32, 16, 3, 3), jnp.float32),
        "d2_b": s * rnd(ks[13], (16,), jnp.float32),
        "d3_w": s * rnd(ks[14], (16, 1, 3, 3), jnp.float32),
        "d3_b": s * rnd(ks[15], (1,), jnp.float32),
    }


def _pack_conv_w(w_oihw, dtype):
    o, i, kh, kw = w_oihw.shape
    return jnp.transpose(w_oihw, (2, 3, 0, 1)).reshape(kh * kw, o, i).astype(dtype)


def _pack_convT_w(w_iohw, dtype):
    # ConvTranspose2d(k=3, s=1, p=1) == Conv2d(pad=1) with spatially flipped, in/out-swapped W.
    i, o, kh, kw = w_iohw.shape
    wf = w_iohw[:, :, ::-1, ::-1]
    return jnp.transpose(wf, (2, 3, 1, 0)).reshape(kh * kw, o, i).astype(dtype)


def prepack_params(raw, mxu_dtype=jnp.bfloat16):
    enc = (
        (_pack_conv_w(raw["c1_w"], jnp.float32), raw["c1_b"].reshape(-1, 1)),   # VPU layer: f32
        (_pack_conv_w(raw["c2_w"], mxu_dtype), raw["c2_b"].reshape(-1, 1)),
        (_pack_conv_w(raw["c3_w"], mxu_dtype), raw["c3_b"].reshape(-1, 1)),
    )
    fc = (
        (jnp.transpose(raw["fc1_w"]).astype(mxu_dtype), raw["fc1_b"].reshape(1, -1)),  # (4096, 64)
        (jnp.transpose(raw["fc2_w"]).astype(mxu_dtype), raw["fc2_b"].reshape(1, -1)),  # (64, 4096)
    )
    dec = (
        (_pack_convT_w(raw["d1_w"], mxu_dtype), raw["d1_b"].reshape(-1, 1)),
        (_pack_convT_w(raw["d2_w"], mxu_dtype), raw["d2_b"].reshape(-1, 1)),
        (_pack_convT_w(raw["d3_w"], mxu_dtype), raw["d3_b"].reshape(-1, 1)),
    )
    return {"enc": enc, "fc": fc, "dec": dec}


# ----------------------------------------------------------------------------
# Full forward pass (matches PyTorch Autoencoder.forward semantics).
# ----------------------------------------------------------------------------
def _pick_tb(batch):
    for tb in (4, 2, 1):          # 4 is a good default on v5e/v6e/v7x; keeps the grid multi-step
        if batch % tb == 0:
            return tb
    return 1


@jax.jit
def autoencoder_forward(x_nchw, packed):
    """(B, 1, 8, 8) f32 -> (B, 1, 8, 8) f32."""
    b = x_nchw.shape[0]
    tb = _pick_tb(b)
    g = b // tb
    n = tb * NPIX
    # TB images per grid step, pixels stacked on the lane axis (lane-dense, free reshape).
    x2d = x_nchw.reshape(g, 1, n)
    a3 = _encoder(x2d, packed["enc"], tb)            # (g, tb, 64, 64) bf16   [sample, c, p]
    xf = a3.reshape(g, tb, FLAT)                     # free: NCHW Flatten order is c*64+p
    df = _fc(xf, packed["fc"], tb)                   # (g, tb, 4096) bf16
    d0 = df.reshape(g, tb, C3, NPIX)                 # free: Unflatten back to (c, p) blocks
    y = _decoder(d0, packed["dec"], tb)              # (g, 1, tb*64) f32
    return y.reshape(b, 1, H, W)


if __name__ == "__main__":
    key = jax.random.PRNGKey(0)
    k_params, k_x = jax.random.split(key)
    raw = init_raw_params(k_params)
    packed = prepack_params(raw)   # one-time weight packing (tap-major conv / convT flip / bf16)

    # Input implied by the module: (B, 1, 8, 8) so that Flatten -> 64*8*8.  B=8 -> TB=4, grid=2.
    x = jax.random.normal(k_x, (8, 1, 8, 8), jnp.float32)

    out = autoencoder_forward(x, packed)
    out = jax.block_until_ready(out)
    assert out.shape == (8, 1, 8, 8), out.shape
    assert out.dtype == jnp.float32
    assert bool(jnp.all(jnp.isfinite(out)))
    print("KERNEL_OK")
</pallas_src>

<mosaic_0001>
module attributes {stable_mosaic.version = 11 : i64} {
  func.func @_encoder_kernel(%arg0: i32, %arg1: memref<1x1x256xf32, #tpu.memory_space<vmem>>, %arg2: memref<9x16x1xf32, #tpu.memory_space<vmem>>, %arg3: memref<16x1xf32, #tpu.memory_space<vmem>>, %arg4: memref<9x32x16xbf16, #tpu.memory_space<vmem>>, %arg5: memref<32x1xf32, #tpu.memory_space<vmem>>, %arg6: memref<9x64x32xbf16, #tpu.memory_space<vmem>>, %arg7: memref<64x1xf32, #tpu.memory_space<vmem>>, %arg8: memref<1x4x64x64xbf16, #tpu.memory_space<vmem>>) attributes {dimension_semantics = [#tpu.dimension_semantics<parallel>], iteration_bounds = array<i64: 2>, scalar_prefetch = 0 : i64, scratch_operands = 0 : i64, tpu.core_type = #tpu.core_type<tc>, window_params = [{transform_indices = @transform_0, window_bounds = array<i64: 1, 1, 256>}, {pipeline_mode = #tpu.pipeline_mode<synchronous>, transform_indices = @transform_1, window_bounds = array<i64: 9, 16, 1>}, {pipeline_mode = #tpu.pipeline_mode<synchronous>, transform_indices = @transform_2, window_bounds = array<i64: 16, 1>}, {pipeline_mode = #tpu.pipeline_mode<synchronous>, transform_indices = @transform_3, window_bounds = array<i64: 9, 32, 16>}, {pipeline_mode = #tpu.pipeline_mode<synchronous>, transform_indices = @transform_4, window_bounds = array<i64: 32, 1>}, {pipeline_mode = #tpu.pipeline_mode<synchronous>, transform_indices = @transform_5, window_bounds = array<i64: 9, 64, 32>}, {pipeline_mode = #tpu.pipeline_mode<synchronous>, transform_indices = @transform_6, window_bounds = array<i64: 64, 1>}, {transform_indices = @transform_7, window_bounds = array<i64: 1, 4, 64, 64>}]} {
    %0 = tpu.iota {dimensions = array<i32: 1>} : vector<1x256xi32>
    %c63_i32 = arith.constant 63 : i32
    %1 = vector.broadcast %c63_i32 : i32 to vector<1x256xi32>
    %2 = arith.andi %0, %1 : vector<1x256xi32>
    %c3_i32 = arith.constant 3 : i32
    %3 = vector.broadcast %c3_i32 : i32 to vector<1x256xi32>
    %4 = arith.shrsi %2, %3 : vector<1x256xi32>
    %c7_i32 = arith.constant 7 : i32
    %5 = vector.broadcast %c7_i32 : i32 to vector<1x256xi32>
    %6 = arith.andi %2, %5 : vector<1x256xi32>
    %c-1_i32 = arith.constant -1 : i32
    %7 = vector.broadcast %c-1_i32 : i32 to vector<1x256xi32>
    %8 = arith.addi %4, %7 : vector<1x256xi32>
    %c0_i32 = arith.constant 0 : i32
    %9 = vector.broadcast %c0_i32 : i32 to vector<1x256xi32>
    %10 = arith.cmpi sge, %8, %9 : vector<1x256xi32>
    %c-1_i32_0 = arith.constant -1 : i32
    %11 = vector.broadcast %c-1_i32_0 : i32 to vector<1x256xi32>
    %12 = arith.addi %4, %11 : vector<1x256xi32>
    %c8_i32 = arith.constant 8 : i32
    %13 = vector.broadcast %c8_i32 : i32 to vector<1x256xi32>
    %14 = arith.cmpi slt, %12, %13 : vector<1x256xi32>
    %15 = arith.andi %10, %14 : vector<1x256xi1>
    %c-1_i32_1 = arith.constant -1 : i32
    %16 = vector.broadcast %c-1_i32_1 : i32 to vector<1x256xi32>
    %17 = arith.addi %6, %16 : vector<1x256xi32>
    %c0_i32_2 = arith.constant 0 : i32
    %18 = vector.broadcast %c0_i32_2 : i32 to vector<1x256xi32>
    %19 = arith.cmpi sge, %17, %18 : vector<1x256xi32>
    %20 = arith.andi %15, %19 : vector<1x256xi1>
    %c-1_i32_3 = arith.constant -1 : i32
    %21 = vector.broadcast %c-1_i32_3 : i32 to vector<1x256xi32>
    %22 = arith.addi %6, %21 : vector<1x256xi32>
    %c8_i32_4 = arith.constant 8 : i32
    %23 = vector.broadcast %c8_i32_4 : i32 to vector<1x256xi32>
    %24 = arith.cmpi slt, %22, %23 : vector<1x256xi32>
    %25 = arith.andi %20, %24 : vector<1x256xi1>
    %c-1_i32_5 = arith.constant -1 : i32
    %26 = vector.broadcast %c-1_i32_5 : i32 to vector<1x256xi32>
    %27 = arith.addi %4, %26 : vector<1x256xi32>
    %c0_i32_6 = arith.constant 0 : i32
    %28 = vector.broadcast %c0_i32_6 : i32 to vector<1x256xi32>
    %29 = arith.cmpi sge, %27, %28 : vector<1x256xi32>
    %c-1_i32_7 = arith.constant -1 : i32
    %30 = vector.broadcast %c-1_i32_7 : i32 to vector<1x256xi32>
    %31 = arith.addi %4, %30 : vector<1x256xi32>
    %c8_i32_8 = arith.constant 8 : i32
    %32 = vector.broadcast %c8_i32_8 : i32 to vector<1x256xi32>
    %33 = arith.cmpi slt, %31, %32 : vector<1x256xi32>
    %34 = arith.andi %29, %33 : vector<1x256xi1>
    %c0_i32_9 = arith.constant 0 : i32
    %35 = vector.broadcast %c0_i32_9 : i32 to vector<1x256xi32>
    %36 = arith.addi %6, %35 : vector<1x256xi32>
    %c0_i32_10 = arith.constant 0 : i32
    %37 = vector.broadcast %c0_i32_10 : i32 to vector<1x256xi32>
    %38 = arith.cmpi sge, %36, %37 : vector<1x256xi32>
    %39 = arith.andi %34, %38 : vector<1x256xi1>
    %c0_i32_11 = arith.constant 0 : i32
    %40 = vector.broadcast %c0_i32_11 : i32 to vector<1x256xi32>
    %41 = arith.addi %6, %40 : vector<1x256xi32>
    %c8_i32_12 = arith.constant 8 : i32
    %42 = vector.broadcast %c8_i32_12 : i32 to vector<1x256xi32>
    %43 = arith.cmpi slt, %41, %42 : vector<1x256xi32>
    %44 = arith.andi %39, %43 : vector<1x256xi1>
    %c-1_i32_13 = arith.constant -1 : i32
    %45 = vector.broadcast %c-1_i32_13 : i32 to vector<1x256xi32>
    %46 = arith.addi %4, %45 : vector<1x256xi32>
    %c0_i32_14 = arith.constant 0 : i32
    %47 = vector.broadcast %c0_i32_14 : i32 to vector<1x256xi32>
    %48 = arith.cmpi sge, %46, %47 : vector<1x256xi32>
    %c-1_i32_15 = arith.constant -1 : i32
    %49 = vector.broadcast %c-1_i32_15 : i32 to vector<1x256xi32>
    %50 = arith.addi %4, %49 : vector<1x256xi32>
    %c8_i32_16 = arith.constant 8 : i32
    %51 = vector.broadcast %c8_i32_16 : i32 to vector<1x256xi32>
    %52 = arith.cmpi slt, %50, %51 : vector<1x256xi32>
    %53 = arith.andi %48, %52 : vector<1x256xi1>
    %c1_i32 = arith.constant 1 : i32
    %54 = vector.broadcast %c1_i32 : i32 to vector<1x256xi32>
    %55 = arith.addi %6, %54 : vector<1x256xi32>
    %c0_i32_17 = arith.constant 0 : i32
    %56 = vector.broadcast %c0_i32_17 : i32 to vector<1x256xi32>
    %57 = arith.cmpi sge, %55, %56 : vector<1x256xi32>
    %58 = arith.andi %53, %57 : vector<1x256xi1>
    %c1_i32_18 = arith.constant 1 : i32
    %59 = vector.broadcast %c1_i32_18 : i32 to vector<1x256xi32>
    %60 = arith.addi %6, %59 : vector<1x256xi32>
    %c8_i32_19 = arith.constant 8 : i32
    %61 = vector.broadcast %c8_i32_19 : i32 to vector<1x256xi32>
    %62 = arith.cmpi slt, %60, %61 : vector<1x256xi32>
    %63 = arith.andi %58, %62 : vector<1x256xi1>
    %c0_i32_20 = arith.constant 0 : i32
    %64 = vector.broadcast %c0_i32_20 : i32 to vector<1x256xi32>
    %65 = arith.addi %4, %64 : vector<1x256xi32>
    %c0_i32_21 = arith.constant 0 : i32
    %66 = vector.broadcast %c0_i32_21 : i32 to vector<1x256xi32>
    %67 = arith.cmpi sge, %65, %66 : vector<1x256xi32>
    %c0_i32_22 = arith.constant 0 : i32
    %68 = vector.broadcast %c0_i32_22 : i32 to vector<1x256xi32>
    %69 = arith.addi %4, %68 : vector<1x256xi32>
    %c8_i32_23 = arith.constant 8 : i32
    %70 = vector.broadcast %c8_i32_23 : i32 to vector<1x256xi32>
    %71 = arith.cmpi slt, %69, %70 : vector<1x256xi32>
    %72 = arith.andi %67, %71 : vector<1x256xi1>
    %c-1_i32_24 = arith.constant -1 : i32
    %73 = vector.broadcast %c-1_i32_24 : i32 to vector<1x256xi32>
    %74 = arith.addi %6, %73 : vector<1x256xi32>
    %c0_i32_25 = arith.constant 0 : i32
    %75 = vector.broadcast %c0_i32_25 : i32 to vector<1x256xi32>
    %76 = arith.cmpi sge, %74, %75 : vector<1x256xi32>
    %77 = arith.andi %72, %76 : vector<1x256xi1>
    %c-1_i32_26 = arith.constant -1 : i32
    %78 = vector.broadcast %c-1_i32_26 : i32 to vector<1x256xi32>
    %79 = arith.addi %6, %78 : vector<1x256xi32>
    %c8_i32_27 = arith.constant 8 : i32
    %80 = vector.broadcast %c8_i32_27 : i32 to vector<1x256xi32>
    %81 = arith.cmpi slt, %79, %80 : vector<1x256xi32>
    %82 = arith.andi %77, %81 : vector<1x256xi1>
    %c0_i32_28 = arith.constant 0 : i32
    %83 = vector.broadcast %c0_i32_28 : i32 to vector<1x256xi32>
    %84 = arith.addi %4, %83 : vector<1x256xi32>
    %c0_i32_29 = arith.constant 0 : i32
    %85 = vector.broadcast %c0_i32_29 : i32 to vector<1x256xi32>
    %86 = arith.cmpi sge, %84, %85 : vector<1x256xi32>
    %c0_i32_30 = arith.constant 0 : i32
    %87 = vector.broadcast %c0_i32_30 : i32 to vector<1x256xi32>
    %88 = arith.addi %4, %87 : vector<1x256xi32>
    %c8_i32_31 = arith.constant 8 : i32
    %89 = vector.broadcast %c8_i32_31 : i32 to vector<1x256xi32>
    %90 = arith.cmpi slt, %88, %89 : vector<1x256xi32>
    %91 = arith.andi %86, %90 : vector<1x256xi1>
    %c1_i32_32 = arith.constant 1 : i32
    %92 = vector.broadcast %c1_i32_32 : i32 to vector<1x256xi32>
    %93 = arith.addi %6, %92 : vector<1x256xi32>
    %c0_i32_33 = arith.constant 0 : i32
    %94 = vector.broadcast %c0_i32_33 : i32 to vector<1x256xi32>
    %95 = arith.cmpi sge, %93, %94 : vector<1x256xi32>
    %96 = arith.andi %91, %95 : vector<1x256xi1>
    %c1_i32_34 = arith.constant 1 : i32
    %97 = vector.broadcast %c1_i32_34 : i32 to vector<1x256xi32>
    %98 = arith.addi %6, %97 : vector<1x256xi32>
    %c8_i32_35 = arith.constant 8 : i32
    %99 = vector.broadcast %c8_i32_35 : i32 to vector<1x256xi32>
    %100 = arith.cmpi slt, %98, %99 : vector<1x256xi32>
    %101 = arith.andi %96, %100 : vector<1x256xi1>
    %c1_i32_36 = arith.constant 1 : i32
    %102 = vector.broadcast %c1_i32_36 : i32 to vector<1x256xi32>
    %103 = arith.addi %4, %102 : vector<1x256xi32>
    %c0_i32_37 = arith.constant 0 : i32
    %104 = vector.broadcast %c0_i32_37 : i32 to vector<1x256xi32>
    %105 = arith.cmpi sge, %103, %104 : vector<1x256xi32>
    %c1_i32_38 = arith.constant 1 : i32
    %106 = vector.broadcast %c1_i32_38 : i32 to vector<1x256xi32>
    %107 = arith.addi %4, %106 : vector<1x256xi32>
    %c8_i32_39 = arith.constant 8 : i32
    %108 = vector.broadcast %c8_i32_39 : i32 to vector<1x256xi32>
    %109 = arith.cmpi slt, %107, %108 : vector<1x256xi32>
    %110 = arith.andi %105, %109 : vector<1x256xi1>
    %c-1_i32_40 = arith.constant -1 : i32
    %111 = vector.broadcast %c-1_i32_40 : i32 to vector<1x256xi32>
    %112 = arith.addi %6, %111 : vector<1x256xi32>
    %c0_i32_41 = arith.constant 0 : i32
    %113 = vector.broadcast %c0_i32_41 : i32 to vector<1x256xi32>
    %114 = arith.cmpi sge, %112, %113 : vector<1x256xi32>
    %115 = arith.andi %110, %114 : vector<1x256xi1>
    %c-1_i32_42 = arith.constant -1 : i32
    %116 = vector.broadcast %c-1_i32_42 : i32 to vector<1x256xi32>
    %117 = arith.addi %6, %116 : vector<1x256xi32>
    %c8_i32_43 = arith.constant 8 : i32
    %118 = vector.broadcast %c8_i32_43 : i32 to vector<1x256xi32>
    %119 = arith.cmpi slt, %117, %118 : vector<1x256xi32>
    %120 = arith.andi %115, %119 : vector<1x256xi1>
    %c1_i32_44 = arith.constant 1 : i32
    %121 = vector.broadcast %c1_i32_44 : i32 to vector<1x256xi32>
    %122 = arith.addi %4, %121 : vector<1x256xi32>
    %c0_i32_45 = arith.constant 0 : i32
    %123 = vector.broadcast %c0_i32_45 : i32 to vector<1x256xi32>
    %124 = arith.cmpi sge, %122, %123 : vector<1x256xi32>
    %c1_i32_46 = arith.constant 1 : i32
    %125 = vector.broadcast %c1_i32_46 : i32 to vector<1x256xi32>
    %126 = arith.addi %4, %125 : vector<1x256xi32>
    %c8_i32_47 = arith.constant 8 : i32
    %127 = vector.broadcast %c8_i32_47 : i32 to vector<1x256xi32>
    %128 = arith.cmpi slt, %126, %127 : vector<1x256xi32>
    %129 = arith.andi %124, %128 : vector<1x256xi1>
    %c0_i32_48 = arith.constant 0 : i32
    %130 = vector.broadcast %c0_i32_48 : i32 to vector<1x256xi32>
    %131 = arith.addi %6, %130 : vector<1x256xi32>
    %c0_i32_49 = arith.constant 0 : i32
    %132 = vector.broadcast %c0_i32_49 : i32 to vector<1x256xi32>
    %133 = arith.cmpi sge, %131, %132 : vector<1x256xi32>
    %134 = arith.andi %129, %133 : vector<1x256xi1>
    %c0_i32_50 = arith.constant 0 : i32
    %135 = vector.broadcast %c0_i32_50 : i32 to vector<1x256xi32>
    %136 = arith.addi %6, %135 : vector<1x256xi32>
    %c8_i32_51 = arith.constant 8 : i32
    %137 = vector.broadcast %c8_i32_51 : i32 to vector<1x256xi32>
    %138 = arith.cmpi slt, %136, %137 : vector<1x256xi32>
    %139 = arith.andi %134, %138 : vector<1x256xi1>
    %c1_i32_52 = arith.constant 1 : i32
    %140 = vector.broadcast %c1_i32_52 : i32 to vector<1x256xi32>
    %141 = arith.addi %4, %140 : vector<1x256xi32>
    %c0_i32_53 = arith.constant 0 : i32
    %142 = vector.broadcast %c0_i32_53 : i32 to vector<1x256xi32>
    %143 = arith.cmpi sge, %141, %142 : vector<1x256xi32>
    %c1_i32_54 = arith.constant 1 : i32
    %144 = vector.broadcast %c1_i32_54 : i32 to vector<1x256xi32>
    %145 = arith.addi %4, %144 : vector<1x256xi32>
    %c8_i32_55 = arith.constant 8 : i32
    %146 = vector.broadcast %c8_i32_55 : i32 to vector<1x256xi32>
    %147 = arith.cmpi slt, %145, %146 : vector<1x256xi32>
    %148 = arith.andi %143, %147 : vector<1x256xi1>
    %c1_i32_56 = arith.constant 1 : i32
    %149 = vector.broadcast %c1_i32_56 : i32 to vector<1x256xi32>
    %150 = arith.addi %6, %149 : vector<1x256xi32>
    %c0_i32_57 = arith.constant 0 : i32
    %151 = vector.broadcast %c0_i32_57 : i32 to vector<1x256xi32>
    %152 = arith.cmpi sge, %150, %151 : vector<1x256xi32>
    %153 = arith.andi %148, %152 : vector<1x256xi1>
    %c1_i32_58 = arith.constant 1 : i32
    %154 = vector.broadcast %c1_i32_58 : i32 to vector<1x256xi32>
    %155 = arith.addi %6, %154 : vector<1x256xi32>
    %c8_i32_59 = arith.constant 8 : i32
    %156 = vector.broadcast %c8_i32_59 : i32 to vector<1x256xi32>
    %157 = arith.cmpi slt, %155, %156 : vector<1x256xi32>
    %158 = arith.andi %153, %157 : vector<1x256xi1>
    %c0 = arith.constant 0 : index
    %c0_60 = arith.constant 0 : index
    %c0_61 = arith.constant 0 : index
    %159 = vector.load %arg1[%c0, %c0_60, %c0_61] : memref<1x1x256xf32, #tpu.memory_space<vmem>>, vector<1x1x256xf32>
    %160 = vector.shape_cast %159 : vector<1x1x256xf32> to vector<1x256xf32>
    %cst = arith.constant 0.000000e+00 : f32
    %161 = vector.broadcast %cst : f32 to vector<16x256xf32>
    %162 = vector.extract_strided_slice %160 {offsets = [0, 247], sizes = [1, 9], strides = [1, 1]} : vector<1x256xf32> to vector<1x9xf32>
    %163 = vector.extract_strided_slice %160 {offsets = [0, 0], sizes = [1, 247], strides = [1, 1]} : vector<1x256xf32> to vector<1x247xf32>
    %164 = tpu.concatenate %162, %163 in 1 : vector<1x9xf32>, vector<1x247xf32> -> vector<1x256xf32>
    %cst_62 = arith.constant 0.000000e+00 : f32
    %165 = vector.broadcast %cst_62 : f32 to vector<1x256xf32>
    %166 = arith.select %25, %164, %165 : vector<1x256xi1>, vector<1x256xf32>
    %c0_63 = arith.constant 0 : index
    %c0_64 = arith.constant 0 : index
    %c0_65 = arith.constant 0 : index
    %167 = vector.load %arg2[%c0_63, %c0_64, %c0_65] : memref<9x16x1xf32, #tpu.memory_space<vmem>>, vector<1x16x1xf32>
    %168 = vector.shape_cast %167 : vector<1x16x1xf32> to vector<16x1xf32>
    %169 = vector.broadcast %168 : vector<16x1xf32> to vector<16x256xf32>
    %170 = vector.broadcast %166 : vector<1x256xf32> to vector<16x256xf32>
    %171 = arith.mulf %169, %170 : vector<16x256xf32>
    %172 = arith.addf %161, %171 : vector<16x256xf32>
    %173 = vector.extract_strided_slice %160 {offsets = [0, 248], sizes = [1, 8], strides = [1, 1]} : vector<1x256xf32> to vector<1x8xf32>
    %174 = vector.extract_strided_slice %160 {offsets = [0, 0], sizes = [1, 248], strides = [1, 1]} : vector<1x256xf32> to vector<1x248xf32>
    %175 = tpu.concatenate %173, %174 in 1 : vector<1x8xf32>, vector<1x248xf32> -> vector<1x256xf32>
    %cst_66 = arith.constant 0.000000e+00 : f32
    %176 = vector.broadcast %cst_66 : f32 to vector<1x256xf32>
    %177 = arith.select %44, %175, %176 : vector<1x256xi1>, vector<1x256xf32>
    %c1 = arith.constant 1 : index
    %c0_67 = arith.constant 0 : index
    %c0_68 = arith.constant 0 : index
    %178 = vector.load %arg2[%c1, %c0_67, %c0_68] : memref<9x16x1xf32, #tpu.memory_space<vmem>>, vector<1x16x1xf32>
    %179 = vector.shape_cast %178 : vector<1x16x1xf32> to vector<16x1xf32>
    %180 = vector.broadcast %179 : vector<16x1xf32> to vector<16x256xf32>
    %181 = vector.broadcast %177 : vector<1x256xf32> to vector<16x256xf32>
    %182 = arith.mulf %180, %181 : vector<16x256xf32>
    %183 = arith.addf %172, %182 : vector<16x256xf32>
    %184 = vector.extract_strided_slice %160 {offsets = [0, 249], sizes = [1, 7], strides = [1, 1]} : vector<1x256xf32> to vector<1x7xf32>
    %185 = vector.extract_strided_slice %160 {offsets = [0, 0], sizes = [1, 249], strides = [1, 1]} : vector<1x256xf32> to vector<1x249xf32>
    %186 = tpu.concatenate %184, %185 in 1 : vector<1x7xf32>, vector<1x249xf32> -> vector<1x256xf32>
    %cst_69 = arith.constant 0.000000e+00 : f32
    %187 = vector.broadcast %cst_69 : f32 to vector<1x256xf32>
    %188 = arith.select %63, %186, %187 : vector<1x256xi1>, vector<1x256xf32>
    %c2 = arith.constant 2 : index
    %c0_70 = arith.constant 0 : index
    %c0_71 = arith.constant 0 : index
    %189 = vector.load %arg2[%c2, %c0_70, %c0_71] : memref<9x16x1xf32, #tpu.memory_space<vmem>>, vector<1x16x1xf32>
    %190 = vector.shape_cast %189 : vector<1x16x1xf32> to vector<16x1xf32>
    %191 = vector.broadcast %190 : vector<16x1xf32> to vector<16x256xf32>
    %192 = vector.broadcast %188 : vector<1x256xf32> to vector<16x256xf32>
    %193 = arith.mulf %191, %192 : vector<16x256xf32>
    %194 = arith.addf %183, %193 : vector<16x256xf32>
    %195 = vector.extract_strided_slice %160 {offsets = [0, 255], sizes = [1, 1], strides = [1, 1]} : vector<1x256xf32> to vector<1x1xf32>
    %196 = vector.extract_strided_slice %160 {offsets = [0, 0], sizes = [1, 255], strides = [1, 1]} : vector<1x256xf32> to vector<1x255xf32>
    %197 = tpu.concatenate %195, %196 in 1 : vector<1x1xf32>, vector<1x255xf32> -> vector<1x256xf32>
    %cst_72 = arith.constant 0.000000e+00 : f32
    %198 = vector.broadcast %cst_72 : f32 to vector<1x256xf32>
    %199 = arith.select %82, %197, %198 : vector<1x256xi1>, vector<1x256xf32>
    %c3 = arith.constant 3 : index
    %c0_73 = arith.constant 0 : index
    %c0_74 = arith.constant 0 : index
    %200 = vector.load %arg2[%c3, %c0_73, %c0_74] : memref<9x16x1xf32, #tpu.memory_space<vmem>>, vector<1x16x1xf32>
    %201 = vector.shape_cast %200 : vector<1x16x1xf32> to vector<16x1xf32>
    %202 = vector.broadcast %201 : vector<16x1xf32> to vector<16x256xf32>
    %203 = vector.broadcast %199 : vector<1x256xf32> to vector<16x256xf32>
    %204 = arith.mulf %202, %203 : vector<16x256xf32>
    %205 = arith.addf %194, %204 : vector<16x256xf32>
    %c4 = arith.constant 4 : index
    %c0_75 = arith.constant 0 : index
    %c0_76 = arith.constant 0 : index
    %206 = vector.load %arg2[%c4, %c0_75, %c0_76] : memref<9x16x1xf32, #tpu.memory_space<vmem>>, vector<1x16x1xf32>
    %207 = vector.shape_cast %206 : vector<1x16x1xf32> to vector<16x1xf32>
    %208 = vector.broadcast %207 : vector<16x1xf32> to vector<16x256xf32>
    %209 = vector.broadcast %160 : vector<1x256xf32> to vector<16x256xf32>
    %210 = arith.mulf %208, %209 : vector<16x256xf32>
    %211 = arith.addf %205, %210 : vector<16x256xf32>
    %212 = vector.extract_strided_slice %160 {offsets = [0, 1], sizes = [1, 255], strides = [1, 1]} : vector<1x256xf32> to vector<1x255xf32>
    %213 = vector.extract_strided_slice %160 {offsets = [0, 0], sizes = [1, 1], strides = [1, 1]} : vector<1x256xf32> to vector<1x1xf32>
    %214 = tpu.concatenate %212, %213 in 1 : vector<1x255xf32>, vector<1x1xf32> -> vector<1x256xf32>
    %cst_77 = arith.constant 0.000000e+00 : f32
    %215 = vector.broadcast %cst_77 : f32 to vector<1x256xf32>
    %216 = arith.select %101, %214, %215 : vector<1x256xi1>, vector<1x256xf32>
    %c5 = arith.constant 5 : index
    %c0_78 = arith.constant 0 : index
    %c0_79 = arith.constant 0 : index
    %217 = vector.load %arg2[%c5, %c0_78, %c0_79] : memref<9x16x1xf32, #tpu.memory_space<vmem>>, vector<1x16x1xf32>
    %218 = vector.shape_cast %217 : vector<1x16x1xf32> to vector<16x1xf32>
    %219 = vector.broadcast %218 : vector<16x1xf32> to vector<16x256xf32>
    %220 = vector.broadcast %216 : vector<1x256xf32> to vector<16x256xf32>
    %221 = arith.mulf %219, %220 : vector<16x256xf32>
    %222 = arith.addf %211, %221 : vector<16x256xf32>
    %223 = vector.extract_strided_slice %160 {offsets = [0, 7], sizes = [1, 249], strides = [1, 1]} : vector<1x256xf32> to vector<1x249xf32>
    %224 = vector.extract_strided_slice %160 {offsets = [0, 0], sizes = [1, 7], strides = [1, 1]} : vector<1x256xf32> to vector<1x7xf32>
    %225 = tpu.concatenate %223, %224 in 1 : vector<1x249xf32>, vector<1x7xf32> -> vector<1x256xf32>
    %cst_80 = arith.constant 0.000000e+00 : f32
    %226 = vector.broadcast %cst_80 : f32 to vector<1x256xf32>
    %227 = arith.select %120, %225, %226 : vector<1x256xi1>, vector<1x256xf32>
    %c6 = arith.constant 6 : index
    %c0_81 = arith.constant 0 : index
    %c0_82 = arith.constant 0 : index
    %228 = vector.load %arg2[%c6, %c0_81, %c0_82] : memref<9x16x1xf32, #tpu.memory_space<vmem>>, vector<1x16x1xf32>
    %229 = vector.shape_cast %228 : vector<1x16x1xf32> to vector<16x1xf32>
    %230 = vector.broadcast %229 : vector<16x1xf32> to vector<16x256xf32>
    %231 = vector.broadcast %227 : vector<1x256xf32> to vector<16x256xf32>
    %232 = arith.mulf %230, %231 : vector<16x256xf32>
    %233 = arith.addf %222, %232 : vector<16x256xf32>
    %234 = vector.extract_strided_slice %160 {offsets = [0, 8], sizes = [1, 248], strides = [1, 1]} : vector<1x256xf32> to vector<1x248xf32>
    %235 = vector.extract_strided_slice %160 {offsets = [0, 0], sizes = [1, 8], strides = [1, 1]} : vector<1x256xf32> to vector<1x8xf32>
    %236 = tpu.concatenate %234, %235 in 1 : vector<1x248xf32>, vector<1x8xf32> -> vector<1x256xf32>
    %cst_83 = arith.constant 0.000000e+00 : f32
    %237 = vector.broadcast %cst_83 : f32 to vector<1x256xf32>
    %238 = arith.select %139, %236, %237 : vector<1x256xi1>, vector<1x256xf32>
    %c7 = arith.constant 7 : index
    %c0_84 = arith.constant 0 : index
    %c0_85 = arith.constant 0 : index
    %239 = vector.load %arg2[%c7, %c0_84, %c0_85] : memref<9x16x1xf32, #tpu.memory_space<vmem>>, vector<1x16x1xf32>
    %240 = vector.shape_cast %239 : vector<1x16x1xf32> to vector<16x1xf32>
    %241 = vector.broadcast %240 : vector<16x1xf32> to vector<16x256xf32>
    %242 = vector.broadcast %238 : vector<1x256xf32> to vector<16x256xf32>
    %243 = arith.mulf %241, %242 : vector<16x256xf32>
    %244 = arith.addf %233, %243 : vector<16x256xf32>
    %245 = vector.extract_strided_slice %160 {offsets = [0, 9], sizes = [1, 247], strides = [1, 1]} : vector<1x256xf32> to vector<1x247xf32>
    %246 = vector.extract_strided_slice %160 {offsets = [0, 0], sizes = [1, 9], strides = [1, 1]} : vector<1x256xf32> to vector<1x9xf32>
    %247 = tpu.concatenate %245, %246 in 1 : vector<1x247xf32>, vector<1x9xf32> -> vector<1x256xf32>
    %cst_86 = arith.constant 0.000000e+00 : f32
    %248 = vector.broadcast %cst_86 : f32 to vector<1x256xf32>
    %249 = arith.select %158, %247, %248 : vector<1x256xi1>, vector<1x256xf32>
    %c8 = arith.constant 8 : index
    %c0_87 = arith.constant 0 : index
    %c0_88 = arith.constant 0 : index
    %250 = vector.load %arg2[%c8, %c0_87, %c0_88] : memref<9x16x1xf32, #tpu.memory_space<vmem>>, vector<1x16x1xf32>
    %251 = vector.shape_cast %250 : vector<1x16x1xf32> to vector<16x1xf32>
    %252 = vector.broadcast %251 : vector<16x1xf32> to vector<16x256xf32>
    %253 = vector.broadcast %249 : vector<1x256xf32> to vector<16x256xf32>
    %254 = arith.mulf %252, %253 : vector<16x256xf32>
    %255 = arith.addf %244, %254 : vector<16x256xf32>
    %c0_89 = arith.constant 0 : index
    %c0_90 = arith.constant 0 : index
    %256 = vector.load %arg3[%c0_89, %c0_90] : memref<16x1xf32, #tpu.memory_space<vmem>>, vector<16x1xf32>
    %257 = vector.broadcast %256 : vector<16x1xf32> to vector<16x256xf32>
    %258 = arith.addf %255, %257 : vector<16x256xf32>
    %cst_91 = arith.constant 0.000000e+00 : f32
    %259 = vector.broadcast %cst_91 : f32 to vector<16x256xf32>
    %260 = arith.maximumf %258, %259 : vector<16x256xf32>
    %261 = arith.truncf %260 : vector<16x256xf32> to vector<16x256xbf16>
    %cst_92 = arith.constant 0.000000e+00 : f32
    %262 = vector.broadcast %cst_92 : f32 to vector<32x256xf32>
    %263 = vector.extract_strided_slice %261 {offsets = [0, 247], sizes = [16, 9], strides = [1, 1]} : vector<16x256xbf16> to vector<16x9xbf16>
    %264 = vector.extract_strided_slice %261 {offsets = [0, 0], sizes = [16, 247], strides = [1, 1]} : vector<16x256xbf16> to vector<16x247xbf16>
    %265 = tpu.concatenate %263, %264 in 1 : vector<16x9xbf16>, vector<16x247xbf16> -> vector<16x256xbf16>
    %cst_93 = arith.constant 0.000000e+00 : f32
    %266 = arith.truncf %cst_93 : f32 to bf16
    %267 = vector.shape_cast %25 : vector<1x256xi1> to vector<1x256xi1>
    %268 = vector.broadcast %267 : vector<1x256xi1> to vector<16x256xi1>
    %269 = vector.broadcast %266 : bf16 to vector<16x256xbf16>
    %270 = arith.select %268, %265, %269 : vector<16x256xi1>, vector<16x256xbf16>
    %c0_94 = arith.constant 0 : index
    %c0_95 = arith.constant 0 : index
    %c0_96 = arith.constant 0 : index
    %271 = vector.load %arg4[%c0_94, %c0_95, %c0_96] : memref<9x32x16xbf16, #tpu.memory_space<vmem>>, vector<1x32x16xbf16>
    %272 = vector.shape_cast %271 : vector<1x32x16xbf16> to vector<32x16xbf16>
    %cst_97 = arith.constant dense<0.000000e+00> : vector<32x256xf32>
    %273 = tpu.matmul %272, %270, %cst_97 {dimension_numbers = #tpu.dot_dimension_numbers<[1], [0], [0], [1], [0, 0, 1, 1], [], []>} : vector<32x16xbf16>, vector<16x256xbf16>, vector<32x256xf32> -> vector<32x256xf32>
    %274 = arith.addf %262, %273 : vector<32x256xf32>
    %275 = vector.extract_strided_slice %261 {offsets = [0, 248], sizes = [16, 8], strides = [1, 1]} : vector<16x256xbf16> to vector<16x8xbf16>
    %276 = vector.extract_strided_slice %261 {offsets = [0, 0], sizes = [16, 248], strides = [1, 1]} : vector<16x256xbf16> to vector<16x248xbf16>
    %277 = tpu.concatenate %275, %276 in 1 : vector<16x8xbf16>, vector<16x248xbf16> -> vector<16x256xbf16>
    %cst_98 = arith.constant 0.000000e+00 : f32
    %278 = arith.truncf %cst_98 : f32 to bf16
    %279 = vector.shape_cast %44 : vector<1x256xi1> to vector<1x256xi1>
    %280 = vector.broadcast %279 : vector<1x256xi1> to vector<16x256xi1>
    %281 = vector.broadcast %278 : bf16 to vector<16x256xbf16>
    %282 = arith.select %280, %277, %281 : vector<16x256xi1>, vector<16x256xbf16>
    %c1_99 = arith.constant 1 : index
    %c0_100 = arith.constant 0 : index
    %c0_101 = arith.constant 0 : index
    %283 = vector.load %arg4[%c1_99, %c0_100, %c0_101] : memref<9x32x16xbf16, #tpu.memory_space<vmem>>, vector<1x32x16xbf16>
    %284 = vector.shape_cast %283 : vector<1x32x16xbf16> to vector<32x16xbf16>
    %cst_102 = arith.constant dense<0.000000e+00> : vector<32x256xf32>
    %285 = tpu.matmul %284, %282, %cst_102 {dimension_numbers = #tpu.dot_dimension_numbers<[1], [0], [0], [1], [0, 0, 1, 1], [], []>} : vector<32x16xbf16>, vector<16x256xbf16>, vector<32x256xf32> -> vector<32x256xf32>
    %286 = arith.addf %274, %285 : vector<32x256xf32>
    %287 = vector.extract_strided_slice %261 {offsets = [0, 249], sizes = [16, 7], strides = [1, 1]} : vector<16x256xbf16> to vector<16x7xbf16>
    %288 = vector.extract_strided_slice %261 {offsets = [0, 0], sizes = [16, 249], strides = [1, 1]} : vector<16x256xbf16> to vector<16x249xbf16>
    %289 = tpu.concatenate %287, %288 in 1 : vector<16x7xbf16>, vector<16x249xbf16> -> vector<16x256xbf16>
    %cst_103 = arith.constant 0.000000e+00 : f32
    %290 = arith.truncf %cst_103 : f32 to bf16
    %291 = vector.shape_cast %63 : vector<1x256xi1> to vector<1x256xi1>
    %292 = vector.broadcast %291 : vector<1x256xi1> to vector<16x256xi1>
    %293 = vector.broadcast %290 : bf16 to vector<16x256xbf16>
    %294 = arith.select %292, %289, %293 : vector<16x256xi1>, vector<16x256xbf16>
    %c2_104 = arith.constant 2 : index
    %c0_105 = arith.constant 0 : index
    %c0_106 = arith.constant 0 : index
    %295 = vector.load %arg4[%c2_104, %c0_105, %c0_106] : memref<9x32x16xbf16, #tpu.memory_space<vmem>>, vector<1x32x16xbf16>
    %296 = vector.shape_cast %295 : vector<1x32x16xbf16> to vector<32x16xbf16>
    %cst_107 = arith.constant dense<0.000000e+00> : vector<32x256xf32>
    %297 = tpu.matmul %296, %294, %cst_107 {dimension_numbers = #tpu.dot_dimension_numbers<[1], [0], [0], [1], [0, 0, 1, 1], [], []>} : vector<32x16xbf16>, vector<16x256xbf16>, vector<32x256xf32> -> vector<32x256xf32>
    %298 = arith.addf %286, %297 : vector<32x256xf32>
    %299 = vector.extract_strided_slice %261 {offsets = [0, 255], sizes = [16, 1], strides = [1, 1]} : vector<16x256xbf16> to vector<16x1xbf16>
    %300 = vector.extract_strided_slice %261 {offsets = [0, 0], sizes = [16, 255], strides = [1, 1]} : vector<16x256xbf16> to vector<16x255xbf16>
    %301 = tpu.concatenate %299, %300 in 1 : vector<16x1xbf16>, vector<16x255xbf16> -> vector<16x256xbf16>
    %cst_108 = arith.constant 0.000000e+00 : f32
    %302 = arith.truncf %cst_108 : f32 to bf16
    %303 = vector.shape_cast %82 : vector<1x256xi1> to vector<1x256xi1>
    %304 = vector.broadcast %303 : vector<1x256xi1> to vector<16x256xi1>
    %305 = vector.broadcast %302 : bf16 to vector<16x256xbf16>
    %306 = arith.select %304, %301, %305 : vector<16x256xi1>, vector<16x256xbf16>
    %c3_109 = arith.constant 3 : index
    %c0_110 = arith.constant 0 : index
    %c0_111 = arith.constant 0 : index
    %307 = vector.load %arg4[%c3_109, %c0_110, %c0_111] : memref<9x32x16xbf16, #tpu.memory_space<vmem>>, vector<1x32x16xbf16>
    %308 = vector.shape_cast %307 : vector<1x32x16xbf16> to vector<32x16xbf16>
    %cst_112 = arith.constant dense<0.000000e+00> : vector<32x256xf32>
    %309 = tpu.matmul %308, %306, %cst_112 {dimension_numbers = #tpu.dot_dimension_numbers<[1], [0], [0], [1], [0, 0, 1, 1], [], []>} : vector<32x16xbf16>, vector<16x256xbf16>, vector<32x256xf32> -> vector<32x256xf32>
    %310 = arith.addf %298, %309 : vector<32x256xf32>
    %c4_113 = arith.constant 4 : index
    %c0_114 = arith.constant 0 : index
    %c0_115 = arith.constant 0 : index
    %311 = vector.load %arg4[%c4_113, %c0_114, %c0_115] : memref<9x32x16xbf16, #tpu.memory_space<vmem>>, vector<1x32x16xbf16>
    %312 = vector.shape_cast %311 : vector<1x32x16xbf16> to vector<32x16xbf16>
    %cst_116 = arith.constant dense<0.000000e+00> : vector<32x256xf32>
    %313 = tpu.matmul %312, %261, %cst_116 {dimension_numbers = #tpu.dot_dimension_numbers<[1], [0], [0], [1], [0, 0, 1, 1], [], []>} : vector<32x16xbf16>, vector<16x256xbf16>, vector<32x256xf32> -> vector<32x256xf32>
    %314 = arith.addf %310, %313 : vector<32x256xf32>
    %315 = vector.extract_strided_slice %261 {offsets = [0, 1], sizes = [16, 255], strides = [1, 1]} : vector<16x256xbf16> to vector<16x255xbf16>
    %316 = vector.extract_strided_slice %261 {offsets = [0, 0], sizes = [16, 1], strides = [1, 1]} : vector<16x256xbf16> to vector<16x1xbf16>
    %317 = tpu.concatenate %315, %316 in 1 : vector<16x255xbf16>, vector<16x1xbf16> -> vector<16x256xbf16>
    %cst_117 = arith.constant 0.000000e+00 : f32
    %318 = arith.truncf %cst_117 : f32 to bf16
    %319 = vector.shape_cast %101 : vector<1x256xi1> to vector<1x256xi1>
    %320 = vector.broadcast %319 : vector<1x256xi1> to vector<16x256xi1>
    %321 = vector.broadcast %318 : bf16 to vector<16x256xbf16>
    %322 = arith.select %320, %317, %321 : vector<16x256xi1>, vector<16x256xbf16>
    %c5_118 = arith.constant 5 : index
    %c0_119 = arith.constant 0 : index
    %c0_120 = arith.constant 0 : index
    %323 = vector.load %arg4[%c5_118, %c0_119, %c0_120] : memref<9x32x16xbf16, #tpu.memory_space<vmem>>, vector<1x32x16xbf16>
    %324 = vector.shape_cast %323 : vector<1x32x16xbf16> to vector<32x16xbf16>
    %cst_121 = arith.constant dense<0.000000e+00> : vector<32x256xf32>
    %325 = tpu.matmul %324, %322, %cst_121 {dimension_numbers = #tpu.dot_dimension_numbers<[1], [0], [0], [1], [0, 0, 1, 1], [], []>} : vector<32x16xbf16>, vector<16x256xbf16>, vector<32x256xf32> -> vector<32x256xf32>
    %326 = arith.addf %314, %325 : vector<32x256xf32>
    %327 = vector.extract_strided_slice %261 {offsets = [0, 7], sizes = [16, 249], strides = [1, 1]} : vector<16x256xbf16> to vector<16x249xbf16>
    %328 = vector.extract_strided_slice %261 {offsets = [0, 0], sizes = [16, 7], strides = [1, 1]} : vector<16x256xbf16> to vector<16x7xbf16>
    %329 = tpu.concatenate %327, %328 in 1 : vector<16x249xbf16>, vector<16x7xbf16> -> vector<16x256xbf16>
    %cst_122 = arith.constant 0.000000e+00 : f32
    %330 = arith.truncf %cst_122 : f32 to bf16
    %331 = vector.shape_cast %120 : vector<1x256xi1> to vector<1x256xi1>
    %332 = vector.broadcast %331 : vector<1x256xi1> to vector<16x256xi1>
    %333 = vector.broadcast %330 : bf16 to vector<16x256xbf16>
    %334 = arith.select %332, %329, %333 : vector<16x256xi1>, vector<16x256xbf16>
    %c6_123 = arith.constant 6 : index
    %c0_124 = arith.constant 0 : index
    %c0_125 = arith.constant 0 : index
    %335 = vector.load %arg4[%c6_123, %c0_124, %c0_125] : memref<9x32x16xbf16, #tpu.memory_space<vmem>>, vector<1x32x16xbf16>
    %336 = vector.shape_cast %335 : vector<1x32x16xbf16> to vector<32x16xbf16>
    %cst_126 = arith.constant dense<0.000000e+00> : vector<32x256xf32>
    %337 = tpu.matmul %336, %334, %cst_126 {dimension_numbers = #tpu.dot_dimension_numbers<[1], [0], [0], [1], [0, 0, 1, 1], [], []>} : vector<32x16xbf16>, vector<16x256xbf16>, vector<32x256xf32> -> vector<32x256xf32>
    %338 = arith.addf %326, %337 : vector<32x256xf32>
    %339 = vector.extract_strided_slice %261 {offsets = [0, 8], sizes = [16, 248], strides = [1, 1]} : vector<16x256xbf16> to vector<16x248xbf16>
    %340 = vector.extract_strided_slice %261 {offsets = [0, 0], sizes = [16, 8], strides = [1, 1]} : vector<16x256xbf16> to vector<16x8xbf16>
    %341 = tpu.concatenate %339, %340 in 1 : vector<16x248xbf16>, vector<16x8xbf16> -> vector<16x256xbf16>
    %cst_127 = arith.constant 0.000000e+00 : f32
    %342 = arith.truncf %cst_127 : f32 to bf16
    %343 = vector.shape_cast %139 : vector<1x256xi1> to vector<1x256xi1>
    %344 = vector.broadcast %343 : vector<1x256xi1> to vector<16x256xi1>
    %345 = vector.broadcast %342 : bf16 to vector<16x256xbf16>
    %346 = arith.select %344, %341, %345 : vector<16x256xi1>, vector<16x256xbf16>
    %c7_128 = arith.constant 7 : index
    %c0_129 = arith.constant 0 : index
    %c0_130 = arith.constant 0 : index
    %347 = vector.load %arg4[%c7_128, %c0_129, %c0_130] : memref<9x32x16xbf16, #tpu.memory_space<vmem>>, vector<1x32x16xbf16>
    %348 = vector.shape_cast %347 : vector<1x32x16xbf16> to vector<32x16xbf16>
    %cst_131 = arith.constant dense<0.000000e+00> : vector<32x256xf32>
    %349 = tpu.matmul %348, %346, %cst_131 {dimension_numbers = #tpu.dot_dimension_numbers<[1], [0], [0], [1], [0, 0, 1, 1], [], []>} : vector<32x16xbf16>, vector<16x256xbf16>, vector<32x256xf32> -> vector<32x256xf32>
    %350 = arith.addf %338, %349 : vector<32x256xf32>
    %351 = vector.extract_strided_slice %261 {offsets = [0, 9], sizes = [16, 247], strides = [1, 1]} : vector<16x256xbf16> to vector<16x247xbf16>
    %352 = vector.extract_strided_slice %261 {offsets = [0, 0], sizes = [16, 9], strides = [1, 1]} : vector<16x256xbf16> to vector<16x9xbf16>
    %353 = tpu.concatenate %351, %352 in 1 : vector<16x247xbf16>, vector<16x9xbf16> -> vector<16x256xbf16>
    %cst_132 = arith.constant 0.000000e+00 : f32
    %354 = arith.truncf %cst_132 : f32 to bf16
    %355 = vector.shape_cast %158 : vector<1x256xi1> to vector<1x256xi1>
    %356 = vector.broadcast %355 : vector<1x256xi1> to vector<16x256xi1>
    %357 = vector.broadcast %354 : bf16 to vector<16x256xbf16>
    %358 = arith.select %356, %353, %357 : vector<16x256xi1>, vector<16x256xbf16>
    %c8_133 = arith.constant 8 : index
    %c0_134 = arith.constant 0 : index
    %c0_135 = arith.constant 0 : index
    %359 = vector.load %arg4[%c8_133, %c0_134, %c0_135] : memref<9x32x16xbf16, #tpu.memory_space<vmem>>, vector<1x32x16xbf16>
    %360 = vector.shape_cast %359 : vector<1x32x16xbf16> to vector<32x16xbf16>
    %cst_136 = arith.constant dense<0.000000e+00> : vector<32x256xf32>
    %361 = tpu.matmul %360, %358, %cst_136 {dimension_numbers = #tpu.dot_dimension_numbers<[1], [0], [0], [1], [0, 0, 1, 1], [], []>} : vector<32x16xbf16>, vector<16x256xbf16>, vector<32x256xf32> -> vector<32x256xf32>
    %362 = arith.addf %350, %361 : vector<32x256xf32>
    %c0_137 = arith.constant 0 : index
    %c0_138 = arith.constant 0 : index
    %363 = vector.load %arg5[%c0_137, %c0_138] : memref<32x1xf32, #tpu.memory_space<vmem>>, vector<32x1xf32>
    %364 = vector.broadcast %363 : vector<32x1xf32> to vector<32x256xf32>
    %365 = arith.addf %362, %364 : vector<32x256xf32>
    %cst_139 = arith.constant 0.000000e+00 : f32
    %366 = vector.broadcast %cst_139 : f32 to vector<32x256xf32>
    %367 = arith.maximumf %365, %366 : vector<32x256xf32>
    %368 = arith.truncf %367 : vector<32x256xf32> to vector<32x256xbf16>
    %cst_140 = arith.constant 0.000000e+00 : f32
    %369 = vector.broadcast %cst_140 : f32 to vector<64x256xf32>
    %370 = vector.extract_strided_slice %368 {offsets = [0, 247], sizes = [32, 9], strides = [1, 1]} : vector<32x256xbf16> to vector<32x9xbf16>
    %371 = vector.extract_strided_slice %368 {offsets = [0, 0], sizes = [32, 247], strides = [1, 1]} : vector<32x256xbf16> to vector<32x247xbf16>
    %372 = tpu.concatenate %370, %371 in 1 : vector<32x9xbf16>, vector<32x247xbf16> -> vector<32x256xbf16>
    %cst_141 = arith.constant 0.000000e+00 : f32
    %373 = arith.truncf %cst_141 : f32 to bf16
    %374 = vector.shape_cast %25 : vector<1x256xi1> to vector<1x256xi1>
    %375 = vector.broadcast %374 : vector<1x256xi1> to vector<32x256xi1>
    %376 = vector.broadcast %373 : bf16 to vector<32x256xbf16>
    %377 = arith.select %375, %372, %376 : vector<32x256xi1>, vector<32x256xbf16>
    %c0_142 = arith.constant 0 : index
    %c0_143 = arith.constant 0 : index
    %c0_144 = arith.constant 0 : index
    %378 = vector.load %arg6[%c0_142, %c0_143, %c0_144] : memref<9x64x32xbf16, #tpu.memory_space<vmem>>, vector<1x64x32xbf16>
    %379 = vector.shape_cast %378 : vector<1x64x32xbf16> to vector<64x32xbf16>
    %cst_145 = arith.constant dense<0.000000e+00> : vector<64x256xf32>
    %380 = tpu.matmul %379, %377, %cst_145 {dimension_numbers = #tpu.dot_dimension_numbers<[1], [0], [0], [1], [0, 0, 1, 1], [], []>} : vector<64x32xbf16>, vector<32x256xbf16>, vector<64x256xf32> -> vector<64x256xf32>
    %381 = arith.addf %369, %380 : vector<64x256xf32>
    %382 = vector.extract_strided_slice %368 {offsets = [0, 248], sizes = [32, 8], strides = [1, 1]} : vector<32x256xbf16> to vector<32x8xbf16>
    %383 = vector.extract_strided_slice %368 {offsets = [0, 0], sizes = [32, 248], strides = [1, 1]} : vector<32x256xbf16> to vector<32x248xbf16>
    %384 = tpu.concatenate %382, %383 in 1 : vector<32x8xbf16>, vector<32x248xbf16> -> vector<32x256xbf16>
    %cst_146 = arith.constant 0.000000e+00 : f32
    %385 = arith.truncf %cst_146 : f32 to bf16
    %386 = vector.shape_cast %44 : vector<1x256xi1> to vector<1x256xi1>
    %387 = vector.broadcast %386 : vector<1x256xi1> to vector<32x256xi1>
    %388 = vector.broadcast %385 : bf16 to vector<32x256xbf16>
    %389 = arith.select %387, %384, %388 : vector<32x256xi1>, vector<32x256xbf16>
    %c1_147 = arith.constant 1 : index
    %c0_148 = arith.constant 0 : index
    %c0_149 = arith.constant 0 : index
    %390 = vector.load %arg6[%c1_147, %c0_148, %c0_149] : memref<9x64x32xbf16, #tpu.memory_space<vmem>>, vector<1x64x32xbf16>
    %391 = vector.shape_cast %390 : vector<1x64x32xbf16> to vector<64x32xbf16>
    %cst_150 = arith.constant dense<0.000000e+00> : vector<64x256xf32>
    %392 = tpu.matmul %391, %389, %cst_150 {dimension_numbers = #tpu.dot_dimension_numbers<[1], [0], [0], [1], [0, 0, 1, 1], [], []>} : vector<64x32xbf16>, vector<32x256xbf16>, vector<64x256xf32> -> vector<64x256xf32>
    %393 = arith.addf %381, %392 : vector<64x256xf32>
    %394 = vector.extract_strided_slice %368 {offsets = [0, 249], sizes = [32, 7], strides = [1, 1]} : vector<32x256xbf16> to vector<32x7xbf16>
    %395 = vector.extract_strided_slice %368 {offsets = [0, 0], sizes = [32, 249], strides = [1, 1]} : vector<32x256xbf16> to vector<32x249xbf16>
    %396 = tpu.concatenate %394, %395 in 1 : vector<32x7xbf16>, vector<32x249xbf16> -> vector<32x256xbf16>
    %cst_151 = arith.constant 0.000000e+00 : f32
    %397 = arith.truncf %cst_151 : f32 to bf16
    %398 = vector.shape_cast %63 : vector<1x256xi1> to vector<1x256xi1>
    %399 = vector.broadcast %398 : vector<1x256xi1> to vector<32x256xi1>
    %400 = vector.broadcast %397 : bf16 to vector<32x256xbf16>
    %401 = arith.select %399, %396, %400 : vector<32x256xi1>, vector<32x256xbf16>
    %c2_152 = arith.constant 2 : index
    %c0_153 = arith.constant 0 : index
    %c0_154 = arith.constant 0 : index
    %402 = vector.load %arg6[%c2_152, %c0_153, %c0_154] : memref<9x64x32xbf16, #tpu.memory_space<vmem>>, vector<1x64x32xbf16>
    %403 = vector.shape_cast %402 : vector<1x64x32xbf16> to vector<64x32xbf16>
    %cst_155 = arith.constant dense<0.000000e+00> : vector<64x256xf32>
    %404 = tpu.matmul %403, %401, %cst_155 {dimension_numbers = #tpu.dot_dimension_numbers<[1], [0], [0], [1], [0, 0, 1, 1], [], []>} : vector<64x32xbf16>, vector<32x256xbf16>, vector<64x256xf32> -> vector<64x256xf32>
    %405 = arith.addf %393, %404 : vector<64x256xf32>
    %406 = vector.extract_strided_slice %368 {offsets = [0, 255], sizes = [32, 1], strides = [1, 1]} : vector<32x256xbf16> to vector<32x1xbf16>
    %407 = vector.extract_strided_slice %368 {offsets = [0, 0], sizes = [32, 255], strides = [1, 1]} : vector<32x256xbf16> to vector<32x255xbf16>
    %408 = tpu.concatenate %406, %407 in 1 : vector<32x1xbf16>, vector<32x255xbf16> -> vector<32x256xbf16>
    %cst_156 = arith.constant 0.000000e+00 : f32
    %409 = arith.truncf %cst_156 : f32 to bf16
    %410 = vector.shape_cast %82 : vector<1x256xi1> to vector<1x256xi1>
    %411 = vector.broadcast %410 : vector<1x256xi1> to vector<32x256xi1>
    %412 = vector.broadcast %409 : bf16 to vector<32x256xbf16>
    %413 = arith.select %411, %408, %412 : vector<32x256xi1>, vector<32x256xbf16>
    %c3_157 = arith.constant 3 : index
    %c0_158 = arith.constant 0 : index
    %c0_159 = arith.constant 0 : index
    %414 = vector.load %arg6[%c3_157, %c0_158, %c0_159] : memref<9x64x32xbf16, #tpu.memory_space<vmem>>, vector<1x64x32xbf16>
    %415 = vector.shape_cast %414 : vector<1x64x32xbf16> to vector<64x32xbf16>
    %cst_160 = arith.constant dense<0.000000e+00> : vector<64x256xf32>
    %416 = tpu.matmul %415, %413, %cst_160 {dimension_numbers = #tpu.dot_dimension_numbers<[1], [0], [0], [1], [0, 0, 1, 1], [], []>} : vector<64x32xbf16>, vector<32x256xbf16>, vector<64x256xf32> -> vector<64x256xf32>
    %417 = arith.addf %405, %416 : vector<64x256xf32>
    %c4_161 = arith.constant 4 : index
    %c0_162 = arith.constant 0 : index
    %c0_163 = arith.constant 0 : index
    %418 = vector.load %arg6[%c4_161, %c0_162, %c0_163] : memref<9x64x32xbf16, #tpu.memory_space<vmem>>, vector<1x64x32xbf16>
    %419 = vector.shape_cast %418 : vector<1x64x32xbf16> to vector<64x32xbf16>
    %cst_164 = arith.constant dense<0.000000e+00> : vector<64x256xf32>
    %420 = tpu.matmul %419, %368, %cst_164 {dimension_numbers = #tpu.dot_dimension_numbers<[1], [0], [0], [1], [0, 0, 1, 1], [], []>} : vector<64x32xbf16>, vector<32x256xbf16>, vector<64x256xf32> -> vector<64x256xf32>
    %421 = arith.addf %417, %420 : vector<64x256xf32>
    %422 = vector.extract_strided_slice %368 {offsets = [0, 1], sizes = [32, 255], strides = [1, 1]} : vector<32x256xbf16> to vector<32x255xbf16>
    %423 = vector.extract_strided_slice %368 {offsets = [0, 0], sizes = [32, 1], strides = [1, 1]} : vector<32x256xbf16> to vector<32x1xbf16>
    %424 = tpu.concatenate %422, %423 in 1 : vector<32x255xbf16>, vector<32x1xbf16> -> vector<32x256xbf16>
    %cst_165 = arith.constant 0.000000e+00 : f32
    %425 = arith.truncf %cst_165 : f32 to bf16
    %426 = vector.shape_cast %101 : vector<1x256xi1> to vector<1x256xi1>
    %427 = vector.broadcast %426 : vector<1x256xi1> to vector<32x256xi1>
    %428 = vector.broadcast %425 : bf16 to vector<32x256xbf16>
    %429 = arith.select %427, %424, %428 : vector<32x256xi1>, vector<32x256xbf16>
    %c5_166 = arith.constant 5 : index
    %c0_167 = arith.constant 0 : index
    %c0_168 = arith.constant 0 : index
    %430 = vector.load %arg6[%c5_166, %c0_167, %c0_168] : memref<9x64x32xbf16, #tpu.memory_space<vmem>>, vector<1x64x32xbf16>
    %431 = vector.shape_cast %430 : vector<1x64x32xbf16> to vector<64x32xbf16>
    %cst_169 = arith.constant dense<0.000000e+00> : vector<64x256xf32>
    %432 = tpu.matmul %431, %429, %cst_169 {dimension_numbers = #tpu.dot_dimension_numbers<[1], [0], [0], [1], [0, 0, 1, 1], [], []>} : vector<64x32xbf16>, vector<32x256xbf16>, vector<64x256xf32> -> vector<64x256xf32>
    %433 = arith.addf %421, %432 : vector<64x256xf32>
    %434 = vector.extract_strided_slice %368 {offsets = [0, 7], sizes = [32, 249], strides = [1, 1]} : vector<32x256xbf16> to vector<32x249xbf16>
    %435 = vector.extract_strided_slice %368 {offsets = [0, 0], sizes = [32, 7], strides = [1, 1]} : vector<32x256xbf16> to vector<32x7xbf16>
    %436 = tpu.concatenate %434, %435 in 1 : vector<32x249xbf16>, vector<32x7xbf16> -> vector<32x256xbf16>
    %cst_170 = arith.constant 0.000000e+00 : f32
    %437 = arith.truncf %cst_170 : f32 to bf16
    %438 = vector.shape_cast %120 : vector<1x256xi1> to vector<1x256xi1>
    %439 = vector.broadcast %438 : vector<1x256xi1> to vector<32x256xi1>
    %440 = vector.broadcast %437 : bf16 to vector<32x256xbf16>
    %441 = arith.select %439, %436, %440 : vector<32x256xi1>, vector<32x256xbf16>
    %c6_171 = arith.constant 6 : index
    %c0_172 = arith.constant 0 : index
    %c0_173 = arith.constant 0 : index
    %442 = vector.load %arg6[%c6_171, %c0_172, %c0_173] : memref<9x64x32xbf16, #tpu.memory_space<vmem>>, vector<1x64x32xbf16>
    %443 = vector.shape_cast %442 : vector<1x64x32xbf16> to vector<64x32xbf16>
    %cst_174 = arith.constant dense<0.000000e+00> : vector<64x256xf32>
    %444 = tpu.matmul %443, %441, %cst_174 {dimension_numbers = #tpu.dot_dimension_numbers<[1], [0], [0], [1], [0, 0, 1, 1], [], []>} : vector<64x32xbf16>, vector<32x256xbf16>, vector<64x256xf32> -> vector<64x256xf32>
    %445 = arith.addf %433, %444 : vector<64x256xf32>
    %446 = vector.extract_strided_slice %368 {offsets = [0, 8], sizes = [32, 248], strides = [1, 1]} : vector<32x256xbf16> to vector<32x248xbf16>
    %447 = vector.extract_strided_slice %368 {offsets = [0, 0], sizes = [32, 8], strides = [1, 1]} : vector<32x256xbf16> to vector<32x8xbf16>
    %448 = tpu.concatenate %446, %447 in 1 : vector<32x248xbf16>, vector<32x8xbf16> -> vector<32x256xbf16>
    %cst_175 = arith.constant 0.000000e+00 : f32
    %449 = arith.truncf %cst_175 : f32 to bf16
    %450 = vector.shape_cast %139 : vector<1x256xi1> to vector<1x256xi1>
    %451 = vector.broadcast %450 : vector<1x256xi1> to vector<32x256xi1>
    %452 = vector.broadcast %449 : bf16 to vector<32x256xbf16>
    %453 = arith.select %451, %448, %452 : vector<32x256xi1>, vector<32x256xbf16>
    %c7_176 = arith.constant 7 : index
    %c0_177 = arith.constant 0 : index
    %c0_178 = arith.constant 0 : index
    %454 = vector.load %arg6[%c7_176, %c0_177, %c0_178] : memref<9x64x32xbf16, #tpu.memory_space<vmem>>, vector<1x64x32xbf16>
    %455 = vector.shape_cast %454 : vector<1x64x32xbf16> to vector<64x32xbf16>
    %cst_179 = arith.constant dense<0.000000e+00> : vector<64x256xf32>
    %456 = tpu.matmul %455, %453, %cst_179 {dimension_numbers = #tpu.dot_dimension_numbers<[1], [0], [0], [1], [0, 0, 1, 1], [], []>} : vector<64x32xbf16>, vector<32x256xbf16>, vector<64x256xf32> -> vector<64x256xf32>
    %457 = arith.addf %445, %456 : vector<64x256xf32>
    %458 = vector.extract_strided_slice %368 {offsets = [0, 9], sizes = [32, 247], strides = [1, 1]} : vector<32x256xbf16> to vector<32x247xbf16>
    %459 = vector.extract_strided_slice %368 {offsets = [0, 0], sizes = [32, 9], strides = [1, 1]} : vector<32x256xbf16> to vector<32x9xbf16>
    %460 = tpu.concatenate %458, %459 in 1 : vector<32x247xbf16>, vector<32x9xbf16> -> vector<32x256xbf16>
    %cst_180 = arith.constant 0.000000e+00 : f32
    %461 = arith.truncf %cst_180 : f32 to bf16
    %462 = vector.shape_cast %158 : vector<1x256xi1> to vector<1x256xi1>
    %463 = vector.broadcast %462 : vector<1x256xi1> to vector<32x256xi1>
    %464 = vector.broadcast %461 : bf16 to vector<32x256xbf16>
    %465 = arith.select %463, %460, %464 : vector<32x256xi1>, vector<32x256xbf16>
    %c8_181 = arith.constant 8 : index
    %c0_182 = arith.constant 0 : index
    %c0_183 = arith.constant 0 : index
    %466 = vector.load %arg6[%c8_181, %c0_182, %c0_183] : memref<9x64x32xbf16, #tpu.memory_space<vmem>>, vector<1x64x32xbf16>
    %467 = vector.shape_cast %466 : vector<1x64x32xbf16> to vector<64x32xbf16>
    %cst_184 = arith.constant dense<0.000000e+00> : vector<64x256xf32>
    %468 = tpu.matmul %467, %465, %cst_184 {dimension_numbers = #tpu.dot_dimension_numbers<[1], [0], [0], [1], [0, 0, 1, 1], [], []>} : vector<64x32xbf16>, vector<32x256xbf16>, vector<64x256xf32> -> vector<64x256xf32>
    %469 = arith.addf %457, %468 : vector<64x256xf32>
    %c0_185 = arith.constant 0 : index
    %c0_186 = arith.constant 0 : index
    %470 = vector.load %arg7[%c0_185, %c0_186] : memref<64x1xf32, #tpu.memory_space<vmem>>, vector<64x1xf32>
    %471 = vector.broadcast %470 : vector<64x1xf32> to vector<64x256xf32>
    %472 = arith.addf %469, %471 : vector<64x256xf32>
    %cst_187 = arith.constant 0.000000e+00 : f32
    %473 = vector.broadcast %cst_187 : f32 to vector<64x256xf32>
    %474 = arith.maximumf %472, %473 : vector<64x256xf32>
    %475 = vector.extract_strided_slice %474 {offsets = [0, 0], sizes = [64, 64], strides = [1, 1]} : vector<64x256xf32> to vector<64x64xf32>
    %476 = arith.truncf %475 : vector<64x64xf32> to vector<64x64xbf16>
    %c0_188 = arith.constant 0 : index
    %c0_189 = arith.constant 0 : index
    %c0_190 = arith.constant 0 : index
    %c0_191 = arith.constant 0 : index
    %477 = vector.load %arg8[%c0_188, %c0_189, %c0_190, %c0_191] : memref<1x4x64x64xbf16, #tpu.memory_space<vmem>>, vector<1x1x64x64xbf16>
    %478 = vector.shape_cast %477 : vector<1x1x64x64xbf16> to vector<64x64xbf16>
    %479 = vector.shape_cast %476 : vector<64x64xbf16> to vector<1x1x64x64xbf16>
    tpu.vector_store %arg8[%c0_188, %c0_189, %c0_190, %c0_191], %479 {strides = array<i32>} : memref<1x4x64x64xbf16, #tpu.memory_space<vmem>>, vector<1x1x64x64xbf16>,
    %480 = vector.extract_strided_slice %474 {offsets = [0, 64], sizes = [64, 64], strides = [1, 1]} : vector<64x256xf32> to vector<64x64xf32>
    %481 = arith.truncf %480 : vector<64x64xf32> to vector<64x64xbf16>
    %c0_192 = arith.constant 0 : index
    %c1_193 = arith.constant 1 : index
    %c0_194 = arith.constant 0 : index
    %c0_195 = arith.constant 0 : index
    %482 = vector.load %arg8[%c0_192, %c1_193, %c0_194, %c0_195] : memref<1x4x64x64xbf16, #tpu.memory_space<vmem>>, vector<1x1x64x64xbf16>
    %483 = vector.shape_cast %482 : vector<1x1x64x64xbf16> to vector<64x64xbf16>
    %484 = vector.shape_cast %481 : vector<64x64xbf16> to vector<1x1x64x64xbf16>
    tpu.vector_store %arg8[%c0_192, %c1_193, %c0_194, %c0_195], %484 {strides = array<i32>} : memref<1x4x64x64xbf16, #tpu.memory_space<vmem>>, vector<1x1x64x64xbf16>,
    %485 = vector.extract_strided_slice %474 {offsets = [0, 128], sizes = [64, 64], strides = [1, 1]} : vector<64x256xf32> to vector<64x64xf32>
    %486 = arith.truncf %485 : vector<64x64xf32> to vector<64x64xbf16>
    %c0_196 = arith.constant 0 : index
    %c2_197 = arith.constant 2 : index
    %c0_198 = arith.constant 0 : index
    %c0_199 = arith.constant 0 : index
    %487 = vector.load %arg8[%c0_196, %c2_197, %c0_198, %c0_199] : memref<1x4x64x64xbf16, #tpu.memory_space<vmem>>, vector<1x1x64x64xbf16>
    %488 = vector.shape_cast %487 : vector<1x1x64x64xbf16> to vector<64x64xbf16>
    %489 = vector.shape_cast %486 : vector<64x64xbf16> to vector<1x1x64x64xbf16>
    tpu.vector_store %arg8[%c0_196, %c2_197, %c0_198, %c0_199], %489 {strides = array<i32>} : memref<1x4x64x64xbf16, #tpu.memory_space<vmem>>, vector<1x1x64x64xbf16>,
    %490 = vector.extract_strided_slice %474 {offsets = [0, 192], sizes = [64, 64], strides = [1, 1]} : vector<64x256xf32> to vector<64x64xf32>
    %491 = arith.truncf %490 : vector<64x64xf32> to vector<64x64xbf16>
    %c0_200 = arith.constant 0 : index
    %c3_201 = arith.constant 3 : index
    %c0_202 = arith.constant 0 : index
    %c0_203 = arith.constant 0 : index
    %492 = vector.load %arg8[%c0_200, %c3_201, %c0_202, %c0_203] : memref<1x4x64x64xbf16, #tpu.memory_space<vmem>>, vector<1x1x64x64xbf16>
    %493 = vector.shape_cast %492 : vector<1x1x64x64xbf16> to vector<64x64xbf16>
    %494 = vector.shape_cast %491 : vector<64x64xbf16> to vector<1x1x64x64xbf16>
    tpu.vector_store %arg8[%c0_200, %c3_201, %c0_202, %c0_203], %494 {strides = array<i32>} : memref<1x4x64x64xbf16, #tpu.memory_space<vmem>>, vector<1x1x64x64xbf16>,
    return
  }
  func.func @transform_0(%arg0: i32) -> (i32, i32, i32) {
    %c0_i32 = arith.constant 0 : i32
    %c0_i32_0 = arith.constant 0 : i32
    %c0_i32_1 = arith.constant 0 : i32
    return %arg0, %c0_i32, %c0_i32_0 : i32, i32, i32
  }
  func.func @transform_1(%arg0: i32) -> (i32, i32, i32) {
    %c0_i32 = arith.constant 0 : i32
    %c0_i32_0 = arith.constant 0 : i32
    %c0_i32_1 = arith.constant 0 : i32
    %c0_i32_2 = arith.constant 0 : i32
    return %c0_i32, %c0_i32_0, %c0_i32_1 : i32, i32, i32
  }
  func.func @transform_2(%arg0: i32) -> (i32, i32) {
    %c0_i32 = arith.constant 0 : i32
    %c0_i32_0 = arith.constant 0 : i32
    %c0_i32_1 = arith.constant 0 : i32
    return %c0_i32, %c0_i32_0 : i32, i32
  }
  func.func @transform_3(%arg0: i32) -> (i32, i32, i32) {
    %c0_i32 = arith.constant 0 : i32
    %c0_i32_0 = arith.constant 0 : i32
    %c0_i32_1 = arith.constant 0 : i32
    %c0_i32_2 = arith.constant 0 : i32
    return %c0_i32, %c0_i32_0, %c0_i32_1 : i32, i32, i32
  }
  func.func @transform_4(%arg0: i32) -> (i32, i32) {
    %c0_i32 = arith.constant 0 : i32
    %c0_i32_0 = arith.constant 0 : i32
    %c0_i32_1 = arith.constant 0 : i32
    return %c0_i32, %c0_i32_0 : i32, i32
  }
  func.func @transform_5(%arg0: i32) -> (i32, i32, i32) {
    %c0_i32 = arith.constant 0 : i32
    %c0_i32_0 = arith.constant 0 : i32
    %c0_i32_1 = arith.constant 0 : i32
    %c0_i32_2 = arith.constant 0 : i32
    return %c0_i32, %c0_i32_0, %c0_i32_1 : i32, i32, i32
  }
  func.func @transform_6(%arg0: i32) -> (i32, i32) {
    %c0_i32 = arith.constant 0 : i32
    %c0_i32_0 = arith.constant 0 : i32
    %c0_i32_1 = arith.constant 0 : i32
    return %c0_i32, %c0_i32_0 : i32, i32
  }
  func.func @transform_7(%arg0: i32) -> (i32, i32, i32, i32) {
    %c0_i32 = arith.constant 0 : i32
    %c0_i32_0 = arith.constant 0 : i32
    %c0_i32_1 = arith.constant 0 : i32
    %c0_i32_2 = arith.constant 0 : i32
    return %arg0, %c0_i32, %c0_i32_0, %c0_i32_1 : i32, i32, i32, i32
  }
}

module attributes {stable_mosaic.version = 11 : i64} {
  func.func @_fc_kernel(%arg0: i32, %arg1: memref<1x4x4096xbf16, #tpu.memory_space<vmem>>, %arg2: memref<4096x64xbf16, #tpu.memory_space<vmem>>, %arg3: memref<1x64xf32, #tpu.memory_space<vmem>>, %arg4: memref<64x4096xbf16, #tpu.memory_space<vmem>>, %arg5: memref<1x4096xf32, #tpu.memory_space<vmem>>, %arg6: memref<1x4x4096xbf16, #tpu.memory_space<vmem>>) attributes {dimension_semantics = [#tpu.dimension_semantics<parallel>], iteration_bounds = array<i64: 2>, scalar_prefetch = 0 : i64, scratch_operands = 0 : i64, tpu.core_type = #tpu.core_type<tc>, window_params = [{transform_indices = @transform_0, window_bounds = array<i64: 1, 4, 4096>}, {pipeline_mode = #tpu.pipeline_mode<synchronous>, transform_indices = @transform_1, window_bounds = array<i64: 4096, 64>}, {pipeline_mode = #tpu.pipeline_mode<synchronous>, transform_indices = @transform_2, window_bounds = array<i64: 1, 64>}, {pipeline_mode = #tpu.pipeline_mode<synchronous>, transform_indices = @transform_3, window_bounds = array<i64: 64, 4096>}, {pipeline_mode = #tpu.pipeline_mode<synchronous>, transform_indices = @transform_4, window_bounds = array<i64: 1, 4096>}, {transform_indices = @transform_5, window_bounds = array<i64: 1, 4, 4096>}]} {
    %c0 = arith.constant 0 : index
    %c0_0 = arith.constant 0 : index
    %c0_1 = arith.constant 0 : index
    %0 = vector.load %arg1[%c0, %c0_0, %c0_1] : memref<1x4x4096xbf16, #tpu.memory_space<vmem>>, vector<1x4x4096xbf16>
    %1 = vector.shape_cast %0 : vector<1x4x4096xbf16> to vector<4x4096xbf16>
    %c0_2 = arith.constant 0 : index
    %c0_3 = arith.constant 0 : index
    %2 = vector.load %arg2[%c0_2, %c0_3] : memref<4096x64xbf16, #tpu.memory_space<vmem>>, vector<4096x64xbf16>
    %cst = arith.constant dense<0.000000e+00> : vector<4x64xf32>
    %3 = tpu.matmul %1, %2, %cst {dimension_numbers = #tpu.dot_dimension_numbers<[1], [0], [0], [1], [0, 0, 1, 1], [], []>} : vector<4x4096xbf16>, vector<4096x64xbf16>, vector<4x64xf32> -> vector<4x64xf32>
    %c0_4 = arith.constant 0 : index
    %c0_5 = arith.constant 0 : index
    %4 = vector.load %arg3[%c0_4, %c0_5] : memref<1x64xf32, #tpu.memory_space<vmem>>, vector<1x64xf32>
    %5 = vector.broadcast %4 : vector<1x64xf32> to vector<4x64xf32>
    %6 = arith.addf %3, %5 : vector<4x64xf32>
    %7 = arith.truncf %6 : vector<4x64xf32> to vector<4x64xbf16>
    %c0_6 = arith.constant 0 : index
    %c0_7 = arith.constant 0 : index
    %8 = vector.load %arg4[%c0_6, %c0_7] : memref<64x4096xbf16, #tpu.memory_space<vmem>>, vector<64x4096xbf16>
    %cst_8 = arith.constant dense<0.000000e+00> : vector<4x4096xf32>
    %9 = tpu.matmul %7, %8, %cst_8 {dimension_numbers = #tpu.dot_dimension_numbers<[1], [0], [0], [1], [0, 0, 1, 1], [], []>} : vector<4x64xbf16>, vector<64x4096xbf16>, vector<4x4096xf32> -> vector<4x4096xf32>
    %c0_9 = arith.constant 0 : index
    %c0_10 = arith.constant 0 : index
    %10 = vector.load %arg5[%c0_9, %c0_10] : memref<1x4096xf32, #tpu.memory_space<vmem>>, vector<1x4096xf32>
    %11 = vector.broadcast %10 : vector<1x4096xf32> to vector<4x4096xf32>
    %12 = arith.addf %9, %11 : vector<4x4096xf32>
    %cst_11 = arith.constant 0.000000e+00 : f32
    %13 = vector.broadcast %cst_11 : f32 to vector<4x4096xf32>
    %14 = arith.maximumf %12, %13 : vector<4x4096xf32>
    %15 = arith.truncf %14 : vector<4x4096xf32> to vector<4x4096xbf16>
    %c0_12 = arith.constant 0 : index
    %c0_13 = arith.constant 0 : index
    %c0_14 = arith.constant 0 : index
    %16 = vector.load %arg6[%c0_12, %c0_13, %c0_14] : memref<1x4x4096xbf16, #tpu.memory_space<vmem>>, vector<1x4x4096xbf16>
    %17 = vector.shape_cast %16 : vector<1x4x4096xbf16> to vector<4x4096xbf16>
    %18 = vector.shape_cast %15 : vector<4x4096xbf16> to vector<1x4x4096xbf16>
    tpu.vector_store %arg6[%c0_12, %c0_13, %c0_14], %18 {strides = array<i32>} : memref<1x4x4096xbf16, #tpu.memory_space<vmem>>, vector<1x4x4096xbf16>,
    return
  }
  func.func @transform_0(%arg0: i32) -> (i32, i32, i32) {
    %c0_i32 = arith.constant 0 : i32
    %c0_i32_0 = arith.constant 0 : i32
    %c0_i32_1 = arith.constant 0 : i32
    return %arg0, %c0_i32, %c0_i32_0 : i32, i32, i32
  }
  func.func @transform_1(%arg0: i32) -> (i32, i32) {
    %c0_i32 = arith.constant 0 : i32
    %c0_i32_0 = arith.constant 0 : i32
    %c0_i32_1 = arith.constant 0 : i32
    return %c0_i32, %c0_i32_0 : i32, i32
  }
  func.func @transform_2(%arg0: i32) -> (i32, i32) {
    %c0_i32 = arith.constant 0 : i32
    %c0_i32_0 = arith.constant 0 : i32
    %c0_i32_1 = arith.constant 0 : i32
    return %c0_i32, %c0_i32_0 : i32, i32
  }
  func.func @transform_3(%arg0: i32) -> (i32, i32) {
    %c0_i32 = arith.constant 0 : i32
    %c0_i32_0 = arith.constant 0 : i32
    %c0_i32_1 = arith.constant 0 : i32
    return %c0_i32, %c0_i32_0 : i32, i32
  }
  func.func @transform_4(%arg0: i32) -> (i32, i32) {
    %c0_i32 = arith.constant 0 : i32
    %c0_i32_0 = arith.constant 0 : i32
    %c0_i32_1 = arith.constant 0 : i32
    return %c0_i32, %c0_i32_0 : i32, i32
  }
  func.func @transform_5(%arg0: i32) -> (i32, i32, i32) {
    %c0_i32 = arith.constant 0 : i32
    %c0_i32_0 = arith.constant 0 : i32
    %c0_i32_1 = arith.constant 0 : i32
    return %arg0, %c0_i32, %c0_i32_0 : i32, i32, i32
  }
}

module attributes {stable_mosaic.version = 11 : i64} {
  func.func @_decoder_kernel(%arg0: i32, %arg1: memref<1x4x64x64xbf16, #tpu.memory_space<vmem>>, %arg2: memref<9x32x64xbf16, #tpu.memory_space<vmem>>, %arg3: memref<32x1xf32, #tpu.memory_space<vmem>>, %arg4: memref<9x16x32xbf16, #tpu.memory_space<vmem>>, %arg5: memref<16x1xf32, #tpu.memory_space<vmem>>, %arg6: memref<9x1x16xbf16, #tpu.memory_space<vmem>>, %arg7: memref<1x1xf32, #tpu.memory_space<vmem>>, %arg8: memref<1x1x256xf32, #tpu.memory_space<vmem>>) attributes {dimension_semantics = [#tpu.dimension_semantics<parallel>], iteration_bounds = array<i64: 2>, scalar_prefetch = 0 : i64, scratch_operands = 0 : i64, tpu.core_type = #tpu.core_type<tc>, window_params = [{transform_indices = @transform_0, window_bounds = array<i64: 1, 4, 64, 64>}, {pipeline_mode = #tpu.pipeline_mode<synchronous>, transform_indices = @transform_1, window_bounds = array<i64: 9, 32, 64>}, {pipeline_mode = #tpu.pipeline_mode<synchronous>, transform_indices = @transform_2, window_bounds = array<i64: 32, 1>}, {pipeline_mode = #tpu.pipeline_mode<synchronous>, transform_indices = @transform_3, window_bounds = array<i64: 9, 16, 32>}, {pipeline_mode = #tpu.pipeline_mode<synchronous>, transform_indices = @transform_4, window_bounds = array<i64: 16, 1>}, {pipeline_mode = #tpu.pipeline_mode<synchronous>, transform_indices = @transform_5, window_bounds = array<i64: 9, 1, 16>}, {pipeline_mode = #tpu.pipeline_mode<synchronous>, transform_indices = @transform_6, window_bounds = array<i64: 1, 1>}, {transform_indices = @transform_7, window_bounds = array<i64: 1, 1, 256>}]} {
    %0 = tpu.iota {dimensions = array<i32: 1>} : vector<1x256xi32>
    %c63_i32 = arith.constant 63 : i32
    %1 = vector.broadcast %c63_i32 : i32 to vector<1x256xi32>
    %2 = arith.andi %0, %1 : vector<1x256xi32>
    %c3_i32 = arith.constant 3 : i32
    %3 = vector.broadcast %c3_i32 : i32 to vector<1x256xi32>
    %4 = arith.shrsi %2, %3 : vector<1x256xi32>
    %c7_i32 = arith.constant 7 : i32
    %5 = vector.broadcast %c7_i32 : i32 to vector<1x256xi32>
    %6 = arith.andi %2, %5 : vector<1x256xi32>
    %c-1_i32 = arith.constant -1 : i32
    %7 = vector.broadcast %c-1_i32 : i32 to vector<1x256xi32>
    %8 = arith.addi %4, %7 : vector<1x256xi32>
    %c0_i32 = arith.constant 0 : i32
    %9 = vector.broadcast %c0_i32 : i32 to vector<1x256xi32>
    %10 = arith.cmpi sge, %8, %9 : vector<1x256xi32>
    %c-1_i32_0 = arith.constant -1 : i32
    %11 = vector.broadcast %c-1_i32_0 : i32 to vector<1x256xi32>
    %12 = arith.addi %4, %11 : vector<1x256xi32>
    %c8_i32 = arith.constant 8 : i32
    %13 = vector.broadcast %c8_i32 : i32 to vector<1x256xi32>
    %14 = arith.cmpi slt, %12, %13 : vector<1x256xi32>
    %15 = arith.andi %10, %14 : vector<1x256xi1>
    %c-1_i32_1 = arith.constant -1 : i32
    %16 = vector.broadcast %c-1_i32_1 : i32 to vector<1x256xi32>
    %17 = arith.addi %6, %16 : vector<1x256xi32>
    %c0_i32_2 = arith.constant 0 : i32
    %18 = vector.broadcast %c0_i32_2 : i32 to vector<1x256xi32>
    %19 = arith.cmpi sge, %17, %18 : vector<1x256xi32>
    %20 = arith.andi %15, %19 : vector<1x256xi1>
    %c-1_i32_3 = arith.constant -1 : i32
    %21 = vector.broadcast %c-1_i32_3 : i32 to vector<1x256xi32>
    %22 = arith.addi %6, %21 : vector<1x256xi32>
    %c8_i32_4 = arith.constant 8 : i32
    %23 = vector.broadcast %c8_i32_4 : i32 to vector<1x256xi32>
    %24 = arith.cmpi slt, %22, %23 : vector<1x256xi32>
    %25 = arith.andi %20, %24 : vector<1x256xi1>
    %c-1_i32_5 = arith.constant -1 : i32
    %26 = vector.broadcast %c-1_i32_5 : i32 to vector<1x256xi32>
    %27 = arith.addi %4, %26 : vector<1x256xi32>
    %c0_i32_6 = arith.constant 0 : i32
    %28 = vector.broadcast %c0_i32_6 : i32 to vector<1x256xi32>
    %29 = arith.cmpi sge, %27, %28 : vector<1x256xi32>
    %c-1_i32_7 = arith.constant -1 : i32
    %30 = vector.broadcast %c-1_i32_7 : i32 to vector<1x256xi32>
    %31 = arith.addi %4, %30 : vector<1x256xi32>
    %c8_i32_8 = arith.constant 8 : i32
    %32 = vector.broadcast %c8_i32_8 : i32 to vector<1x256xi32>
    %33 = arith.cmpi slt, %31, %32 : vector<1x256xi32>
    %34 = arith.andi %29, %33 : vector<1x256xi1>
    %c0_i32_9 = arith.constant 0 : i32
    %35 = vector.broadcast %c0_i32_9 : i32 to vector<1x256xi32>
    %36 = arith.addi %6, %35 : vector<1x256xi32>
    %c0_i32_10 = arith.constant 0 : i32
    %37 = vector.broadcast %c0_i32_10 : i32 to vector<1x256xi32>
    %38 = arith.cmpi sge, %36, %37 : vector<1x256xi32>
    %39 = arith.andi %34, %38 : vector<1x256xi1>
    %c0_i32_11 = arith.constant 0 : i32
    %40 = vector.broadcast %c0_i32_11 : i32 to vector<1x256xi32>
    %41 = arith.addi %6, %40 : vector<1x256xi32>
    %c8_i32_12 = arith.constant 8 : i32
    %42 = vector.broadcast %c8_i32_12 : i32 to vector<1x256xi32>
    %43 = arith.cmpi slt, %41, %42 : vector<1x256xi32>
    %44 = arith.andi %39, %43 : vector<1x256xi1>
    %c-1_i32_13 = arith.constant -1 : i32
    %45 = vector.broadcast %c-1_i32_13 : i32 to vector<1x256xi32>
    %46 = arith.addi %4, %45 : vector<1x256xi32>
    %c0_i32_14 = arith.constant 0 : i32
    %47 = vector.broadcast %c0_i32_14 : i32 to vector<1x256xi32>
    %48 = arith.cmpi sge, %46, %47 : vector<1x256xi32>
    %c-1_i32_15 = arith.constant -1 : i32
    %49 = vector.broadcast %c-1_i32_15 : i32 to vector<1x256xi32>
    %50 = arith.addi %4, %49 : vector<1x256xi32>
    %c8_i32_16 = arith.constant 8 : i32
    %51 = vector.broadcast %c8_i32_16 : i32 to vector<1x256xi32>
    %52 = arith.cmpi slt, %50, %51 : vector<1x256xi32>
    %53 = arith.andi %48, %52 : vector<1x256xi1>
    %c1_i32 = arith.constant 1 : i32
    %54 = vector.broadcast %c1_i32 : i32 to vector<1x256xi32>
    %55 = arith.addi %6, %54 : vector<1x256xi32>
    %c0_i32_17 = arith.constant 0 : i32
    %56 = vector.broadcast %c0_i32_17 : i32 to vector<1x256xi32>
    %57 = arith.cmpi sge, %55, %56 : vector<1x256xi32>
    %58 = arith.andi %53, %57 : vector<1x256xi1>
    %c1_i32_18 = arith.constant 1 : i32
    %59 = vector.broadcast %c1_i32_18 : i32 to vector<1x256xi32>
    %60 = arith.addi %6, %59 : vector<1x256xi32>
    %c8_i32_19 = arith.constant 8 : i32
    %61 = vector.broadcast %c8_i32_19 : i32 to vector<1x256xi32>
    %62 = arith.cmpi slt, %60, %61 : vector<1x256xi32>
    %63 = arith.andi %58, %62 : vector<1x256xi1>
    %c0_i32_20 = arith.constant 0 : i32
    %64 = vector.broadcast %c0_i32_20 : i32 to vector<1x256xi32>
    %65 = arith.addi %4, %64 : vector<1x256xi32>
    %c0_i32_21 = arith.constant 0 : i32
    %66 = vector.broadcast %c0_i32_21 : i32 to vector<1x256xi32>
    %67 = arith.cmpi sge, %65, %66 : vector<1x256xi32>
    %c0_i32_22 = arith.constant 0 : i32
    %68 = vector.broadcast %c0_i32_22 : i32 to vector<1x256xi32>
    %69 = arith.addi %4, %68 : vector<1x256xi32>
    %c8_i32_23 = arith.constant 8 : i32
    %70 = vector.broadcast %c8_i32_23 : i32 to vector<1x256xi32>
    %71 = arith.cmpi slt, %69, %70 : vector<1x256xi32>
    %72 = arith.andi %67, %71 : vector<1x256xi1>
    %c-1_i32_24 = arith.constant -1 : i32
    %73 = vector.broadcast %c-1_i32_24 : i32 to vector<1x256xi32>
    %74 = arith.addi %6, %73 : vector<1x256xi32>
    %c0_i32_25 = arith.constant 0 : i32
    %75 = vector.broadcast %c0_i32_25 : i32 to vector<1x256xi32>
    %76 = arith.cmpi sge, %74, %75 : vector<1x256xi32>
    %77 = arith.andi %72, %76 : vector<1x256xi1>
    %c-1_i32_26 = arith.constant -1 : i32
    %78 = vector.broadcast %c-1_i32_26 : i32 to vector<1x256xi32>
    %79 = arith.addi %6, %78 : vector<1x256xi32>
    %c8_i32_27 = arith.constant 8 : i32
    %80 = vector.broadcast %c8_i32_27 : i32 to vector<1x256xi32>
    %81 = arith.cmpi slt, %79, %80 : vector<1x256xi32>
    %82 = arith.andi %77, %81 : vector<1x256xi1>
    %c0_i32_28 = arith.constant 0 : i32
    %83 = vector.broadcast %c0_i32_28 : i32 to vector<1x256xi32>
    %84 = arith.addi %4, %83 : vector<1x256xi32>
    %c0_i32_29 = arith.constant 0 : i32
    %85 = vector.broadcast %c0_i32_29 : i32 to vector<1x256xi32>
    %86 = arith.cmpi sge, %84, %85 : vector<1x256xi32>
    %c0_i32_30 = arith.constant 0 : i32
    %87 = vector.broadcast %c0_i32_30 : i32 to vector<1x256xi32>
    %88 = arith.addi %4, %87 : vector<1x256xi32>
    %c8_i32_31 = arith.constant 8 : i32
    %89 = vector.broadcast %c8_i32_31 : i32 to vector<1x256xi32>
    %90 = arith.cmpi slt, %88, %89 : vector<1x256xi32>
    %91 = arith.andi %86, %90 : vector<1x256xi1>
    %c1_i32_32 = arith.constant 1 : i32
    %92 = vector.broadcast %c1_i32_32 : i32 to vector<1x256xi32>
    %93 = arith.addi %6, %92 : vector<1x256xi32>
    %c0_i32_33 = arith.constant 0 : i32
    %94 = vector.broadcast %c0_i32_33 : i32 to vector<1x256xi32>
    %95 = arith.cmpi sge, %93, %94 : vector<1x256xi32>
    %96 = arith.andi %91, %95 : vector<1x256xi1>
    %c1_i32_34 = arith.constant 1 : i32
    %97 = vector.broadcast %c1_i32_34 : i32 to vector<1x256xi32>
    %98 = arith.addi %6, %97 : vector<1x256xi32>
    %c8_i32_35 = arith.constant 8 : i32
    %99 = vector.broadcast %c8_i32_35 : i32 to vector<1x256xi32>
    %100 = arith.cmpi slt, %98, %99 : vector<1x256xi32>
    %101 = arith.andi %96, %100 : vector<1x256xi1>
    %c1_i32_36 = arith.constant 1 : i32
    %102 = vector.broadcast %c1_i32_36 : i32 to vector<1x256xi32>
    %103 = arith.addi %4, %102 : vector<1x256xi32>
    %c0_i32_37 = arith.constant 0 : i32
    %104 = vector.broadcast %c0_i32_37 : i32 to vector<1x256xi32>
    %105 = arith.cmpi sge, %103, %104 : vector<1x256xi32>
    %c1_i32_38 = arith.constant 1 : i32
    %106 = vector.broadcast %c1_i32_38 : i32 to vector<1x256xi32>
    %107 = arith.addi %4, %106 : vector<1x256xi32>
    %c8_i32_39 = arith.constant 8 : i32
    %108 = vector.broadcast %c8_i32_39 : i32 to vector<1x256xi32>
    %109 = arith.cmpi slt, %107, %108 : vector<1x256xi32>
    %110 = arith.andi %105, %109 : vector<1x256xi1>
    %c-1_i32_40 = arith.constant -1 : i32
    %111 = vector.broadcast %c-1_i32_40 : i32 to vector<1x256xi32>
    %112 = arith.addi %6, %111 : vector<1x256xi32>
    %c0_i32_41 = arith.constant 0 : i32
    %113 = vector.broadcast %c0_i32_41 : i32 to vector<1x256xi32>
    %114 = arith.cmpi sge, %112, %113 : vector<1x256xi32>
    %115 = arith.andi %110, %114 : vector<1x256xi1>
    %c-1_i32_42 = arith.constant -1 : i32
    %116 = vector.broadcast %c-1_i32_42 : i32 to vector<1x256xi32>
    %117 = arith.addi %6, %116 : vector<1x256xi32>
    %c8_i32_43 = arith.constant 8 : i32
    %118 = vector.broadcast %c8_i32_43 : i32 to vector<1x256xi32>
    %119 = arith.cmpi slt, %117, %118 : vector<1x256xi32>
    %120 = arith.andi %115, %119 : vector<1x256xi1>
    %c1_i32_44 = arith.constant 1 : i32
    %121 = vector.broadcast %c1_i32_44 : i32 to vector<1x256xi32>
    %122 = arith.addi %4, %121 : vector<1x256xi32>
    %c0_i32_45 = arith.constant 0 : i32
    %123 = vector.broadcast %c0_i32_45 : i32 to vector<1x256xi32>
    %124 = arith.cmpi sge, %122, %123 : vector<1x256xi32>
    %c1_i32_46 = arith.constant 1 : i32
    %125 = vector.broadcast %c1_i32_46 : i32 to vector<1x256xi32>
    %126 = arith.addi %4, %125 : vector<1x256xi32>
    %c8_i32_47 = arith.constant 8 : i32
    %127 = vector.broadcast %c8_i32_47 : i32 to vector<1x256xi32>
    %128 = arith.cmpi slt, %126, %127 : vector<1x256xi32>
    %129 = arith.andi %124, %128 : vector<1x256xi1>
    %c0_i32_48 = arith.constant 0 : i32
    %130 = vector.broadcast %c0_i32_48 : i32 to vector<1x256xi32>
    %131 = arith.addi %6, %130 : vector<1x256xi32>
    %c0_i32_49 = arith.constant 0 : i32
    %132 = vector.broadcast %c0_i32_49 : i32 to vector<1x256xi32>
    %133 = arith.cmpi sge, %131, %132 : vector<1x256xi32>
    %134 = arith.andi %129, %133 : vector<1x256xi1>
    %c0_i32_50 = arith.constant 0 : i32
    %135 = vector.broadcast %c0_i32_50 : i32 to vector<1x256xi32>
    %136 = arith.addi %6, %135 : vector<1x256xi32>
    %c8_i32_51 = arith.constant 8 : i32
    %137 = vector.broadcast %c8_i32_51 : i32 to vector<1x256xi32>
    %138 = arith.cmpi slt, %136, %137 : vector<1x256xi32>
    %139 = arith.andi %134, %138 : vector<1x256xi1>
    %c1_i32_52 = arith.constant 1 : i32
    %140 = vector.broadcast %c1_i32_52 : i32 to vector<1x256xi32>
    %141 = arith.addi %4, %140 : vector<1x256xi32>
    %c0_i32_53 = arith.constant 0 : i32
    %142 = vector.broadcast %c0_i32_53 : i32 to vector<1x256xi32>
    %143 = arith.cmpi sge, %141, %142 : vector<1x256xi32>
    %c1_i32_54 = arith.constant 1 : i32
    %144 = vector.broadcast %c1_i32_54 : i32 to vector<1x256xi32>
    %145 = arith.addi %4, %144 : vector<1x256xi32>
    %c8_i32_55 = arith.constant 8 : i32
    %146 = vector.broadcast %c8_i32_55 : i32 to vector<1x256xi32>
    %147 = arith.cmpi slt, %145, %146 : vector<1x256xi32>
    %148 = arith.andi %143, %147 : vector<1x256xi1>
    %c1_i32_56 = arith.constant 1 : i32
    %149 = vector.broadcast %c1_i32_56 : i32 to vector<1x256xi32>
    %150 = arith.addi %6, %149 : vector<1x256xi32>
    %c0_i32_57 = arith.constant 0 : i32
    %151 = vector.broadcast %c0_i32_57 : i32 to vector<1x256xi32>
    %152 = arith.cmpi sge, %150, %151 : vector<1x256xi32>
    %153 = arith.andi %148, %152 : vector<1x256xi1>
    %c1_i32_58 = arith.constant 1 : i32
    %154 = vector.broadcast %c1_i32_58 : i32 to vector<1x256xi32>
    %155 = arith.addi %6, %154 : vector<1x256xi32>
    %c8_i32_59 = arith.constant 8 : i32
    %156 = vector.broadcast %c8_i32_59 : i32 to vector<1x256xi32>
    %157 = arith.cmpi slt, %155, %156 : vector<1x256xi32>
    %158 = arith.andi %153, %157 : vector<1x256xi1>
    %c0 = arith.constant 0 : index
    %c0_60 = arith.constant 0 : index
    %c0_61 = arith.constant 0 : index
    %c0_62 = arith.constant 0 : index
    %159 = vector.load %arg1[%c0, %c0_60, %c0_61, %c0_62] : memref<1x4x64x64xbf16, #tpu.memory_space<vmem>>, vector<1x1x64x64xbf16>
    %160 = vector.shape_cast %159 : vector<1x1x64x64xbf16> to vector<64x64xbf16>
    %c0_63 = arith.constant 0 : index
    %c1 = arith.constant 1 : index
    %c0_64 = arith.constant 0 : index
    %c0_65 = arith.constant 0 : index
    %161 = vector.load %arg1[%c0_63, %c1, %c0_64, %c0_65] : memref<1x4x64x64xbf16, #tpu.memory_space<vmem>>, vector<1x1x64x64xbf16>
    %162 = vector.shape_cast %161 : vector<1x1x64x64xbf16> to vector<64x64xbf16>
    %c0_66 = arith.constant 0 : index
    %c2 = arith.constant 2 : index
    %c0_67 = arith.constant 0 : index
    %c0_68 = arith.constant 0 : index
    %163 = vector.load %arg1[%c0_66, %c2, %c0_67, %c0_68] : memref<1x4x64x64xbf16, #tpu.memory_space<vmem>>, vector<1x1x64x64xbf16>
    %164 = vector.shape_cast %163 : vector<1x1x64x64xbf16> to vector<64x64xbf16>
    %c0_69 = arith.constant 0 : index
    %c3 = arith.constant 3 : index
    %c0_70 = arith.constant 0 : index
    %c0_71 = arith.constant 0 : index
    %165 = vector.load %arg1[%c0_69, %c3, %c0_70, %c0_71] : memref<1x4x64x64xbf16, #tpu.memory_space<vmem>>, vector<1x1x64x64xbf16>
    %166 = vector.shape_cast %165 : vector<1x1x64x64xbf16> to vector<64x64xbf16>
    %167 = tpu.concatenate %160, %162, %164, %166 in 1 : vector<64x64xbf16>, vector<64x64xbf16>, vector<64x64xbf16>, vector<64x64xbf16> -> vector<64x256xbf16>
    %cst = arith.constant 0.000000e+00 : f32
    %168 = vector.broadcast %cst : f32 to vector<32x256xf32>
    %169 = vector.extract_strided_slice %167 {offsets = [0, 247], sizes = [64, 9], strides = [1, 1]} : vector<64x256xbf16> to vector<64x9xbf16>
    %170 = vector.extract_strided_slice %167 {offsets = [0, 0], sizes = [64, 247], strides = [1, 1]} : vector<64x256xbf16> to vector<64x247xbf16>
    %171 = tpu.concatenate %169, %170 in 1 : vector<64x9xbf16>, vector<64x247xbf16> -> vector<64x256xbf16>
    %cst_72 = arith.constant 0.000000e+00 : f32
    %172 = arith.truncf %cst_72 : f32 to bf16
    %173 = vector.shape_cast %25 : vector<1x256xi1> to vector<1x256xi1>
    %174 = vector.broadcast %173 : vector<1x256xi1> to vector<64x256xi1>
    %175 = vector.broadcast %172 : bf16 to vector<64x256xbf16>
    %176 = arith.select %174, %171, %175 : vector<64x256xi1>, vector<64x256xbf16>
    %c0_73 = arith.constant 0 : index
    %c0_74 = arith.constant 0 : index
    %c0_75 = arith.constant 0 : index
    %177 = vector.load %arg2[%c0_73, %c0_74, %c0_75] : memref<9x32x64xbf16, #tpu.memory_space<vmem>>, vector<1x32x64xbf16>
    %178 = vector.shape_cast %177 : vector<1x32x64xbf16> to vector<32x64xbf16>
    %cst_76 = arith.constant dense<0.000000e+00> : vector<32x256xf32>
    %179 = tpu.matmul %178, %176, %cst_76 {dimension_numbers = #tpu.dot_dimension_numbers<[1], [0], [0], [1], [0, 0, 1, 1], [], []>} : vector<32x64xbf16>, vector<64x256xbf16>, vector<32x256xf32> -> vector<32x256xf32>
    %180 = arith.addf %168, %179 : vector<32x256xf32>
    %181 = vector.extract_strided_slice %167 {offsets = [0, 248], sizes = [64, 8], strides = [1, 1]} : vector<64x256xbf16> to vector<64x8xbf16>
    %182 = vector.extract_strided_slice %167 {offsets = [0, 0], sizes = [64, 248], strides = [1, 1]} : vector<64x256xbf16> to vector<64x248xbf16>
    %183 = tpu.concatenate %181, %182 in 1 : vector<64x8xbf16>, vector<64x248xbf16> -> vector<64x256xbf16>
    %cst_77 = arith.constant 0.000000e+00 : f32
    %184 = arith.truncf %cst_77 : f32 to bf16
    %185 = vector.shape_cast %44 : vector<1x256xi1> to vector<1x256xi1>
    %186 = vector.broadcast %185 : vector<1x256xi1> to vector<64x256xi1>
    %187 = vector.broadcast %184 : bf16 to vector<64x256xbf16>
    %188 = arith.select %186, %183, %187 : vector<64x256xi1>, vector<64x256xbf16>
    %c1_78 = arith.constant 1 : index
    %c0_79 = arith.constant 0 : index
    %c0_80 = arith.constant 0 : index
    %189 = vector.load %arg2[%c1_78, %c0_79, %c0_80] : memref<9x32x64xbf16, #tpu.memory_space<vmem>>, vector<1x32x64xbf16>
    %190 = vector.shape_cast %189 : vector<1x32x64xbf16> to vector<32x64xbf16>
    %cst_81 = arith.constant dense<0.000000e+00> : vector<32x256xf32>
    %191 = tpu.matmul %190, %188, %cst_81 {dimension_numbers = #tpu.dot_dimension_numbers<[1], [0], [0], [1], [0, 0, 1, 1], [], []>} : vector<32x64xbf16>, vector<64x256xbf16>, vector<32x256xf32> -> vector<32x256xf32>
    %192 = arith.addf %180, %191 : vector<32x256xf32>
    %193 = vector.extract_strided_slice %167 {offsets = [0, 249], sizes = [64, 7], strides = [1, 1]} : vector<64x256xbf16> to vector<64x7xbf16>
    %194 = vector.extract_strided_slice %167 {offsets = [0, 0], sizes = [64, 249], strides = [1, 1]} : vector<64x256xbf16> to vector<64x249xbf16>
    %195 = tpu.concatenate %193, %194 in 1 : vector<64x7xbf16>, vector<64x249xbf16> -> vector<64x256xbf16>
    %cst_82 = arith.constant 0.000000e+00 : f32
    %196 = arith.truncf %cst_82 : f32 to bf16
    %197 = vector.shape_cast %63 : vector<1x256xi1> to vector<1x256xi1>
    %198 = vector.broadcast %197 : vector<1x256xi1> to vector<64x256xi1>
    %199 = vector.broadcast %196 : bf16 to vector<64x256xbf16>
    %200 = arith.select %198, %195, %199 : vector<64x256xi1>, vector<64x256xbf16>
    %c2_83 = arith.constant 2 : index
    %c0_84 = arith.constant 0 : index
    %c0_85 = arith.constant 0 : index
    %201 = vector.load %arg2[%c2_83, %c0_84, %c0_85] : memref<9x32x64xbf16, #tpu.memory_space<vmem>>, vector<1x32x64xbf16>
    %202 = vector.shape_cast %201 : vector<1x32x64xbf16> to vector<32x64xbf16>
    %cst_86 = arith.constant dense<0.000000e+00> : vector<32x256xf32>
    %203 = tpu.matmul %202, %200, %cst_86 {dimension_numbers = #tpu.dot_dimension_numbers<[1], [0], [0], [1], [0, 0, 1, 1], [], []>} : vector<32x64xbf16>, vector<64x256xbf16>, vector<32x256xf32> -> vector<32x256xf32>
    %204 = arith.addf %192, %203 : vector<32x256xf32>
    %205 = vector.extract_strided_slice %167 {offsets = [0, 255], sizes = [64, 1], strides = [1, 1]} : vector<64x256xbf16> to vector<64x1xbf16>
    %206 = vector.extract_strided_slice %167 {offsets = [0, 0], sizes = [64, 255], strides = [1, 1]} : vector<64x256xbf16> to vector<64x255xbf16>
    %207 = tpu.concatenate %205, %206 in 1 : vector<64x1xbf16>, vector<64x255xbf16> -> vector<64x256xbf16>
    %cst_87 = arith.constant 0.000000e+00 : f32
    %208 = arith.truncf %cst_87 : f32 to bf16
    %209 = vector.shape_cast %82 : vector<1x256xi1> to vector<1x256xi1>
    %210 = vector.broadcast %209 : vector<1x256xi1> to vector<64x256xi1>
    %211 = vector.broadcast %208 : bf16 to vector<64x256xbf16>
    %212 = arith.select %210, %207, %211 : vector<64x256xi1>, vector<64x256xbf16>
    %c3_88 = arith.constant 3 : index
    %c0_89 = arith.constant 0 : index
    %c0_90 = arith.constant 0 : index
    %213 = vector.load %arg2[%c3_88, %c0_89, %c0_90] : memref<9x32x64xbf16, #tpu.memory_space<vmem>>, vector<1x32x64xbf16>
    %214 = vector.shape_cast %213 : vector<1x32x64xbf16> to vector<32x64xbf16>
    %cst_91 = arith.constant dense<0.000000e+00> : vector<32x256xf32>
    %215 = tpu.matmul %214, %212, %cst_91 {dimension_numbers = #tpu.dot_dimension_numbers<[1], [0], [0], [1], [0, 0, 1, 1], [], []>} : vector<32x64xbf16>, vector<64x256xbf16>, vector<32x256xf32> -> vector<32x256xf32>
    %216 = arith.addf %204, %215 : vector<32x256xf32>
    %c4 = arith.constant 4 : index
    %c0_92 = arith.constant 0 : index
    %c0_93 = arith.constant 0 : index
    %217 = vector.load %arg2[%c4, %c0_92, %c0_93] : memref<9x32x64xbf16, #tpu.memory_space<vmem>>, vector<1x32x64xbf16>
    %218 = vector.shape_cast %217 : vector<1x32x64xbf16> to vector<32x64xbf16>
    %cst_94 = arith.constant dense<0.000000e+00> : vector<32x256xf32>
    %219 = tpu.matmul %218, %167, %cst_94 {dimension_numbers = #tpu.dot_dimension_numbers<[1], [0], [0], [1], [0, 0, 1, 1], [], []>} : vector<32x64xbf16>, vector<64x256xbf16>, vector<32x256xf32> -> vector<32x256xf32>
    %220 = arith.addf %216, %219 : vector<32x256xf32>
    %221 = vector.extract_strided_slice %167 {offsets = [0, 1], sizes = [64, 255], strides = [1, 1]} : vector<64x256xbf16> to vector<64x255xbf16>
    %222 = vector.extract_strided_slice %167 {offsets = [0, 0], sizes = [64, 1], strides = [1, 1]} : vector<64x256xbf16> to vector<64x1xbf16>
    %223 = tpu.concatenate %221, %222 in 1 : vector<64x255xbf16>, vector<64x1xbf16> -> vector<64x256xbf16>
    %cst_95 = arith.constant 0.000000e+00 : f32
    %224 = arith.truncf %cst_95 : f32 to bf16
    %225 = vector.shape_cast %101 : vector<1x256xi1> to vector<1x256xi1>
    %226 = vector.broadcast %225 : vector<1x256xi1> to vector<64x256xi1>
    %227 = vector.broadcast %224 : bf16 to vector<64x256xbf16>
    %228 = arith.select %226, %223, %227 : vector<64x256xi1>, vector<64x256xbf16>
    %c5 = arith.constant 5 : index
    %c0_96 = arith.constant 0 : index
    %c0_97 = arith.constant 0 : index
    %229 = vector.load %arg2[%c5, %c0_96, %c0_97] : memref<9x32x64xbf16, #tpu.memory_space<vmem>>, vector<1x32x64xbf16>
    %230 = vector.shape_cast %229 : vector<1x32x64xbf16> to vector<32x64xbf16>
    %cst_98 = arith.constant dense<0.000000e+00> : vector<32x256xf32>
    %231 = tpu.matmul %230, %228, %cst_98 {dimension_numbers = #tpu.dot_dimension_numbers<[1], [0], [0], [1], [0, 0, 1, 1], [], []>} : vector<32x64xbf16>, vector<64x256xbf16>, vector<32x256xf32> -> vector<32x256xf32>
    %232 = arith.addf %220, %231 : vector<32x256xf32>
    %233 = vector.extract_strided_slice %167 {offsets = [0, 7], sizes = [64, 249], strides = [1, 1]} : vector<64x256xbf16> to vector<64x249xbf16>
    %234 = vector.extract_strided_slice %167 {offsets = [0, 0], sizes = [64, 7], strides = [1, 1]} : vector<64x256xbf16> to vector<64x7xbf16>
    %235 = tpu.concatenate %233, %234 in 1 : vector<64x249xbf16>, vector<64x7xbf16> -> vector<64x256xbf16>
    %cst_99 = arith.constant 0.000000e+00 : f32
    %236 = arith.truncf %cst_99 : f32 to bf16
    %237 = vector.shape_cast %120 : vector<1x256xi1> to vector<1x256xi1>
    %238 = vector.broadcast %237 : vector<1x256xi1> to vector<64x256xi1>
    %239 = vector.broadcast %236 : bf16 to vector<64x256xbf16>
    %240 = arith.select %238, %235, %239 : vector<64x256xi1>, vector<64x256xbf16>
    %c6 = arith.constant 6 : index
    %c0_100 = arith.constant 0 : index
    %c0_101 = arith.constant 0 : index
    %241 = vector.load %arg2[%c6, %c0_100, %c0_101] : memref<9x32x64xbf16, #tpu.memory_space<vmem>>, vector<1x32x64xbf16>
    %242 = vector.shape_cast %241 : vector<1x32x64xbf16> to vector<32x64xbf16>
    %cst_102 = arith.constant dense<0.000000e+00> : vector<32x256xf32>
    %243 = tpu.matmul %242, %240, %cst_102 {dimension_numbers = #tpu.dot_dimension_numbers<[1], [0], [0], [1], [0, 0, 1, 1], [], []>} : vector<32x64xbf16>, vector<64x256xbf16>, vector<32x256xf32> -> vector<32x256xf32>
    %244 = arith.addf %232, %243 : vector<32x256xf32>
    %245 = vector.extract_strided_slice %167 {offsets = [0, 8], sizes = [64, 248], strides = [1, 1]} : vector<64x256xbf16> to vector<64x248xbf16>
    %246 = vector.extract_strided_slice %167 {offsets = [0, 0], sizes = [64, 8], strides = [1, 1]} : vector<64x256xbf16> to vector<64x8xbf16>
    %247 = tpu.concatenate %245, %246 in 1 : vector<64x248xbf16>, vector<64x8xbf16> -> vector<64x256xbf16>
    %cst_103 = arith.constant 0.000000e+00 : f32
    %248 = arith.truncf %cst_103 : f32 to bf16
    %249 = vector.shape_cast %139 : vector<1x256xi1> to vector<1x256xi1>
    %250 = vector.broadcast %249 : vector<1x256xi1> to vector<64x256xi1>
    %251 = vector.broadcast %248 : bf16 to vector<64x256xbf16>
    %252 = arith.select %250, %247, %251 : vector<64x256xi1>, vector<64x256xbf16>
    %c7 = arith.constant 7 : index
    %c0_104 = arith.constant 0 : index
    %c0_105 = arith.constant 0 : index
    %253 = vector.load %arg2[%c7, %c0_104, %c0_105] : memref<9x32x64xbf16, #tpu.memory_space<vmem>>, vector<1x32x64xbf16>
    %254 = vector.shape_cast %253 : vector<1x32x64xbf16> to vector<32x64xbf16>
    %cst_106 = arith.constant dense<0.000000e+00> : vector<32x256xf32>
    %255 = tpu.matmul %254, %252, %cst_106 {dimension_numbers = #tpu.dot_dimension_numbers<[1], [0], [0], [1], [0, 0, 1, 1], [], []>} : vector<32x64xbf16>, vector<64x256xbf16>, vector<32x256xf32> -> vector<32x256xf32>
    %256 = arith.addf %244, %255 : vector<32x256xf32>
    %257 = vector.extract_strided_slice %167 {offsets = [0, 9], sizes = [64, 247], strides = [1, 1]} : vector<64x256xbf16> to vector<64x247xbf16>
    %258 = vector.extract_strided_slice %167 {offsets = [0, 0], sizes = [64, 9], strides = [1, 1]} : vector<64x256xbf16> to vector<64x9xbf16>
    %259 = tpu.concatenate %257, %258 in 1 : vector<64x247xbf16>, vector<64x9xbf16> -> vector<64x256xbf16>
    %cst_107 = arith.constant 0.000000e+00 : f32
    %260 = arith.truncf %cst_107 : f32 to bf16
    %261 = vector.shape_cast %158 : vector<1x256xi1> to vector<1x256xi1>
    %262 = vector.broadcast %261 : vector<1x256xi1> to vector<64x256xi1>
    %263 = vector.broadcast %260 : bf16 to vector<64x256xbf16>
    %264 = arith.select %262, %259, %263 : vector<64x256xi1>, vector<64x256xbf16>
    %c8 = arith.constant 8 : index
    %c0_108 = arith.constant 0 : index
    %c0_109 = arith.constant 0 : index
    %265 = vector.load %arg2[%c8, %c0_108, %c0_109] : memref<9x32x64xbf16, #tpu.memory_space<vmem>>, vector<1x32x64xbf16>
    %266 = vector.shape_cast %265 : vector<1x32x64xbf16> to vector<32x64xbf16>
    %cst_110 = arith.constant dense<0.000000e+00> : vector<32x256xf32>
    %267 = tpu.matmul %266, %264, %cst_110 {dimension_numbers = #tpu.dot_dimension_numbers<[1], [0], [0], [1], [0, 0, 1, 1], [], []>} : vector<32x64xbf16>, vector<64x256xbf16>, vector<32x256xf32> -> vector<32x256xf32>
    %268 = arith.addf %256, %267 : vector<32x256xf32>
    %c0_111 = arith.constant 0 : index
    %c0_112 = arith.constant 0 : index
    %269 = vector.load %arg3[%c0_111, %c0_112] : memref<32x1xf32, #tpu.memory_space<vmem>>, vector<32x1xf32>
    %270 = vector.broadcast %269 : vector<32x1xf32> to vector<32x256xf32>
    %271 = arith.addf %268, %270 : vector<32x256xf32>
    %cst_113 = arith.constant 0.000000e+00 : f32
    %272 = vector.broadcast %cst_113 : f32 to vector<32x256xf32>
    %273 = arith.maximumf %271, %272 : vector<32x256xf32>
    %274 = arith.truncf %273 : vector<32x256xf32> to vector<32x256xbf16>
    %cst_114 = arith.constant 0.000000e+00 : f32
    %275 = vector.broadcast %cst_114 : f32 to vector<16x256xf32>
    %276 = vector.extract_strided_slice %274 {offsets = [0, 247], sizes = [32, 9], strides = [1, 1]} : vector<32x256xbf16> to vector<32x9xbf16>
    %277 = vector.extract_strided_slice %274 {offsets = [0, 0], sizes = [32, 247], strides = [1, 1]} : vector<32x256xbf16> to vector<32x247xbf16>
    %278 = tpu.concatenate %276, %277 in 1 : vector<32x9xbf16>, vector<32x247xbf16> -> vector<32x256xbf16>
    %cst_115 = arith.constant 0.000000e+00 : f32
    %279 = arith.truncf %cst_115 : f32 to bf16
    %280 = vector.shape_cast %25 : vector<1x256xi1> to vector<1x256xi1>
    %281 = vector.broadcast %280 : vector<1x256xi1> to vector<32x256xi1>
    %282 = vector.broadcast %279 : bf16 to vector<32x256xbf16>
    %283 = arith.select %281, %278, %282 : vector<32x256xi1>, vector<32x256xbf16>
    %c0_116 = arith.constant 0 : index
    %c0_117 = arith.constant 0 : index
    %c0_118 = arith.constant 0 : index
    %284 = vector.load %arg4[%c0_116, %c0_117, %c0_118] : memref<9x16x32xbf16, #tpu.memory_space<vmem>>, vector<1x16x32xbf16>
    %285 = vector.shape_cast %284 : vector<1x16x32xbf16> to vector<16x32xbf16>
    %cst_119 = arith.constant dense<0.000000e+00> : vector<16x256xf32>
    %286 = tpu.matmul %285, %283, %cst_119 {dimension_numbers = #tpu.dot_dimension_numbers<[1], [0], [0], [1], [0, 0, 1, 1], [], []>} : vector<16x32xbf16>, vector<32x256xbf16>, vector<16x256xf32> -> vector<16x256xf32>
    %287 = arith.addf %275, %286 : vector<16x256xf32>
    %288 = vector.extract_strided_slice %274 {offsets = [0, 248], sizes = [32, 8], strides = [1, 1]} : vector<32x256xbf16> to vector<32x8xbf16>
    %289 = vector.extract_strided_slice %274 {offsets = [0, 0], sizes = [32, 248], strides = [1, 1]} : vector<32x256xbf16> to vector<32x248xbf16>
    %290 = tpu.concatenate %288, %289 in 1 : vector<32x8xbf16>, vector<32x248xbf16> -> vector<32x256xbf16>
    %cst_120 = arith.constant 0.000000e+00 : f32
    %291 = arith.truncf %cst_120 : f32 to bf16
    %292 = vector.shape_cast %44 : vector<1x256xi1> to vector<1x256xi1>
    %293 = vector.broadcast %292 : vector<1x256xi1> to vector<32x256xi1>
    %294 = vector.broadcast %291 : bf16 to vector<32x256xbf16>
    %295 = arith.select %293, %290, %294 : vector<32x256xi1>, vector<32x256xbf16>
    %c1_121 = arith.constant 1 : index
    %c0_122 = arith.constant 0 : index
    %c0_123 = arith.constant 0 : index
    %296 = vector.load %arg4[%c1_121, %c0_122, %c0_123] : memref<9x16x32xbf16, #tpu.memory_space<vmem>>, vector<1x16x32xbf16>
    %297 = vector.shape_cast %296 : vector<1x16x32xbf16> to vector<16x32xbf16>
    %cst_124 = arith.constant dense<0.000000e+00> : vector<16x256xf32>
    %298 = tpu.matmul %297, %295, %cst_124 {dimension_numbers = #tpu.dot_dimension_numbers<[1], [0], [0], [1], [0, 0, 1, 1], [], []>} : vector<16x32xbf16>, vector<32x256xbf16>, vector<16x256xf32> -> vector<16x256xf32>
    %299 = arith.addf %287, %298 : vector<16x256xf32>
    %300 = vector.extract_strided_slice %274 {offsets = [0, 249], sizes = [32, 7], strides = [1, 1]} : vector<32x256xbf16> to vector<32x7xbf16>
    %301 = vector.extract_strided_slice %274 {offsets = [0, 0], sizes = [32, 249], strides = [1, 1]} : vector<32x256xbf16> to vector<32x249xbf16>
    %302 = tpu.concatenate %300, %301 in 1 : vector<32x7xbf16>, vector<32x249xbf16> -> vector<32x256xbf16>
    %cst_125 = arith.constant 0.000000e+00 : f32
    %303 = arith.truncf %cst_125 : f32 to bf16
    %304 = vector.shape_cast %63 : vector<1x256xi1> to vector<1x256xi1>
    %305 = vector.broadcast %304 : vector<1x256xi1> to vector<32x256xi1>
    %306 = vector.broadcast %303 : bf16 to vector<32x256xbf16>
    %307 = arith.select %305, %302, %306 : vector<32x256xi1>, vector<32x256xbf16>
    %c2_126 = arith.constant 2 : index
    %c0_127 = arith.constant 0 : index
    %c0_128 = arith.constant 0 : index
    %308 = vector.load %arg4[%c2_126, %c0_127, %c0_128] : memref<9x16x32xbf16, #tpu.memory_space<vmem>>, vector<1x16x32xbf16>
    %309 = vector.shape_cast %308 : vector<1x16x32xbf16> to vector<16x32xbf16>
    %cst_129 = arith.constant dense<0.000000e+00> : vector<16x256xf32>
    %310 = tpu.matmul %309, %307, %cst_129 {dimension_numbers = #tpu.dot_dimension_numbers<[1], [0], [0], [1], [0, 0, 1, 1], [], []>} : vector<16x32xbf16>, vector<32x256xbf16>, vector<16x256xf32> -> vector<16x256xf32>
    %311 = arith.addf %299, %310 : vector<16x256xf32>
    %312 = vector.extract_strided_slice %274 {offsets = [0, 255], sizes = [32, 1], strides = [1, 1]} : vector<32x256xbf16> to vector<32x1xbf16>
    %313 = vector.extract_strided_slice %274 {offsets = [0, 0], sizes = [32, 255], strides = [1, 1]} : vector<32x256xbf16> to vector<32x255xbf16>
    %314 = tpu.concatenate %312, %313 in 1 : vector<32x1xbf16>, vector<32x255xbf16> -> vector<32x256xbf16>
    %cst_130 = arith.constant 0.000000e+00 : f32
    %315 = arith.truncf %cst_130 : f32 to bf16
    %316 = vector.shape_cast %82 : vector<1x256xi1> to vector<1x256xi1>
    %317 = vector.broadcast %316 : vector<1x256xi1> to vector<32x256xi1>
    %318 = vector.broadcast %315 : bf16 to vector<32x256xbf16>
    %319 = arith.select %317, %314, %318 : vector<32x256xi1>, vector<32x256xbf16>
    %c3_131 = arith.constant 3 : index
    %c0_132 = arith.constant 0 : index
    %c0_133 = arith.constant 0 : index
    %320 = vector.load %arg4[%c3_131, %c0_132, %c0_133] : memref<9x16x32xbf16, #tpu.memory_space<vmem>>, vector<1x16x32xbf16>
    %321 = vector.shape_cast %320 : vector<1x16x32xbf16> to vector<16x32xbf16>
    %cst_134 = arith.constant dense<0.000000e+00> : vector<16x256xf32>
    %322 = tpu.matmul %321, %319, %cst_134 {dimension_numbers = #tpu.dot_dimension_numbers<[1], [0], [0], [1], [0, 0, 1, 1], [], []>} : vector<16x32xbf16>, vector<32x256xbf16>, vector<16x256xf32> -> vector<16x256xf32>
    %323 = arith.addf %311, %322 : vector<16x256xf32>
    %c4_135 = arith.constant 4 : index
    %c0_136 = arith.constant 0 : index
    %c0_137 = arith.constant 0 : index
    %324 = vector.load %arg4[%c4_135, %c0_136, %c0_137] : memref<9x16x32xbf16, #tpu.memory_space<vmem>>, vector<1x16x32xbf16>
    %325 = vector.shape_cast %324 : vector<1x16x32xbf16> to vector<16x32xbf16>
    %cst_138 = arith.constant dense<0.000000e+00> : vector<16x256xf32>
    %326 = tpu.matmul %325, %274, %cst_138 {dimension_numbers = #tpu.dot_dimension_numbers<[1], [0], [0], [1], [0, 0, 1, 1], [], []>} : vector<16x32xbf16>, vector<32x256xbf16>, vector<16x256xf32> -> vector<16x256xf32>
    %327 = arith.addf %323, %326 : vector<16x256xf32>
    %328 = vector.extract_strided_slice %274 {offsets = [0, 1], sizes = [32, 255], strides = [1, 1]} : vector<32x256xbf16> to vector<32x255xbf16>
    %329 = vector.extract_strided_slice %274 {offsets = [0, 0], sizes = [32, 1], strides = [1, 1]} : vector<32x256xbf16> to vector<32x1xbf16>
    %330 = tpu.concatenate %328, %329 in 1 : vector<32x255xbf16>, vector<32x1xbf16> -> vector<32x256xbf16>
    %cst_139 = arith.constant 0.000000e+00 : f32
    %331 = arith.truncf %cst_139 : f32 to bf16
    %332 = vector.shape_cast %101 : vector<1x256xi1> to vector<1x256xi1>
    %333 = vector.broadcast %332 : vector<1x256xi1> to vector<32x256xi1>
    %334 = vector.broadcast %331 : bf16 to vector<32x256xbf16>
    %335 = arith.select %333, %330, %334 : vector<32x256xi1>, vector<32x256xbf16>
    %c5_140 = arith.constant 5 : index
    %c0_141 = arith.constant 0 : index
    %c0_142 = arith.constant 0 : index
    %336 = vector.load %arg4[%c5_140, %c0_141, %c0_142] : memref<9x16x32xbf16, #tpu.memory_space<vmem>>, vector<1x16x32xbf16>
    %337 = vector.shape_cast %336 : vector<1x16x32xbf16> to vector<16x32xbf16>
    %cst_143 = arith.constant dense<0.000000e+00> : vector<16x256xf32>
    %338 = tpu.matmul %337, %335, %cst_143 {dimension_numbers = #tpu.dot_dimension_numbers<[1], [0], [0], [1], [0, 0, 1, 1], [], []>} : vector<16x32xbf16>, vector<32x256xbf16>, vector<16x256xf32> -> vector<16x256xf32>
    %339 = arith.addf %327, %338 : vector<16x256xf32>
    %340 = vector.extract_strided_slice %274 {offsets = [0, 7], sizes = [32, 249], strides = [1, 1]} : vector<32x256xbf16> to vector<32x249xbf16>
    %341 = vector.extract_strided_slice %274 {offsets = [0, 0], sizes = [32, 7], strides = [1, 1]} : vector<32x256xbf16> to vector<32x7xbf16>
    %342 = tpu.concatenate %340, %341 in 1 : vector<32x249xbf16>, vector<32x7xbf16> -> vector<32x256xbf16>
    %cst_144 = arith.constant 0.000000e+00 : f32
    %343 = arith.truncf %cst_144 : f32 to bf16
    %344 = vector.shape_cast %120 : vector<1x256xi1> to vector<1x256xi1>
    %345 = vector.broadcast %344 : vector<1x256xi1> to vector<32x256xi1>
    %346 = vector.broadcast %343 : bf16 to vector<32x256xbf16>
    %347 = arith.select %345, %342, %346 : vector<32x256xi1>, vector<32x256xbf16>
    %c6_145 = arith.constant 6 : index
    %c0_146 = arith.constant 0 : index
    %c0_147 = arith.constant 0 : index
    %348 = vector.load %arg4[%c6_145, %c0_146, %c0_147] : memref<9x16x32xbf16, #tpu.memory_space<vmem>>, vector<1x16x32xbf16>
    %349 = vector.shape_cast %348 : vector<1x16x32xbf16> to vector<16x32xbf16>
    %cst_148 = arith.constant dense<0.000000e+00> : vector<16x256xf32>
    %350 = tpu.matmul %349, %347, %cst_148 {dimension_numbers = #tpu.dot_dimension_numbers<[1], [0], [0], [1], [0, 0, 1, 1], [], []>} : vector<16x32xbf16>, vector<32x256xbf16>, vector<16x256xf32> -> vector<16x256xf32>
    %351 = arith.addf %339, %350 : vector<16x256xf32>
    %352 = vector.extract_strided_slice %274 {offsets = [0, 8], sizes = [32, 248], strides = [1, 1]} : vector<32x256xbf16> to vector<32x248xbf16>
    %353 = vector.extract_strided_slice %274 {offsets = [0, 0], sizes = [32, 8], strides = [1, 1]} : vector<32x256xbf16> to vector<32x8xbf16>
    %354 = tpu.concatenate %352, %353 in 1 : vector<32x248xbf16>, vector<32x8xbf16> -> vector<32x256xbf16>
    %cst_149 = arith.constant 0.000000e+00 : f32
    %355 = arith.truncf %cst_149 : f32 to bf16
    %356 = vector.shape_cast %139 : vector<1x256xi1> to vector<1x256xi1>
    %357 = vector.broadcast %356 : vector<1x256xi1> to vector<32x256xi1>
    %358 = vector.broadcast %355 : bf16 to vector<32x256xbf16>
    %359 = arith.select %357, %354, %358 : vector<32x256xi1>, vector<32x256xbf16>
    %c7_150 = arith.constant 7 : index
    %c0_151 = arith.constant 0 : index
    %c0_152 = arith.constant 0 : index
    %360 = vector.load %arg4[%c7_150, %c0_151, %c0_152] : memref<9x16x32xbf16, #tpu.memory_space<vmem>>, vector<1x16x32xbf16>
    %361 = vector.shape_cast %360 : vector<1x16x32xbf16> to vector<16x32xbf16>
    %cst_153 = arith.constant dense<0.000000e+00> : vector<16x256xf32>
    %362 = tpu.matmul %361, %359, %cst_153 {dimension_numbers = #tpu.dot_dimension_numbers<[1], [0], [0], [1], [0, 0, 1, 1], [], []>} : vector<16x32xbf16>, vector<32x256xbf16>, vector<16x256xf32> -> vector<16x256xf32>
    %363 = arith.addf %351, %362 : vector<16x256xf32>
    %364 = vector.extract_strided_slice %274 {offsets = [0, 9], sizes = [32, 247], strides = [1, 1]} : vector<32x256xbf16> to vector<32x247xbf16>
    %365 = vector.extract_strided_slice %274 {offsets = [0, 0], sizes = [32, 9], strides = [1, 1]} : vector<32x256xbf16> to vector<32x9xbf16>
    %366 = tpu.concatenate %364, %365 in 1 : vector<32x247xbf16>, vector<32x9xbf16> -> vector<32x256xbf16>
    %cst_154 = arith.constant 0.000000e+00 : f32
    %367 = arith.truncf %cst_154 : f32 to bf16
    %368 = vector.shape_cast %158 : vector<1x256xi1> to vector<1x256xi1>
    %369 = vector.broadcast %368 : vector<1x256xi1> to vector<32x256xi1>
    %370 = vector.broadcast %367 : bf16 to vector<32x256xbf16>
    %371 = arith.select %369, %366, %370 : vector<32x256xi1>, vector<32x256xbf16>
    %c8_155 = arith.constant 8 : index
    %c0_156 = arith.constant 0 : index
    %c0_157 = arith.constant 0 : index
    %372 = vector.load %arg4[%c8_155, %c0_156, %c0_157] : memref<9x16x32xbf16, #tpu.memory_space<vmem>>, vector<1x16x32xbf16>
    %373 = vector.shape_cast %372 : vector<1x16x32xbf16> to vector<16x32xbf16>
    %cst_158 = arith.constant dense<0.000000e+00> : vector<16x256xf32>
    %374 = tpu.matmul %373, %371, %cst_158 {dimension_numbers = #tpu.dot_dimension_numbers<[1], [0], [0], [1], [0, 0, 1, 1], [], []>} : vector<16x32xbf16>, vector<32x256xbf16>, vector<16x256xf32> -> vector<16x256xf32>
    %375 = arith.addf %363, %374 : vector<16x256xf32>
    %c0_159 = arith.constant 0 : index
    %c0_160 = arith.constant 0 : index
    %376 = vector.load %arg5[%c0_159, %c0_160] : memref<16x1xf32, #tpu.memory_space<vmem>>, vector<16x1xf32>
    %377 = vector.broadcast %376 : vector<16x1xf32> to vector<16x256xf32>
    %378 = arith.addf %375, %377 : vector<16x256xf32>
    %cst_161 = arith.constant 0.000000e+00 : f32
    %379 = vector.broadcast %cst_161 : f32 to vector<16x256xf32>
    %380 = arith.maximumf %378, %379 : vector<16x256xf32>
    %381 = arith.truncf %380 : vector<16x256xf32> to vector<16x256xbf16>
    %cst_162 = arith.constant 0.000000e+00 : f32
    %382 = vector.broadcast %cst_162 : f32 to vector<1x256xf32>
    %383 = vector.extract_strided_slice %381 {offsets = [0, 247], sizes = [16, 9], strides = [1, 1]} : vector<16x256xbf16> to vector<16x9xbf16>
    %384 = vector.extract_strided_slice %381 {offsets = [0, 0], sizes = [16, 247], strides = [1, 1]} : vector<16x256xbf16> to vector<16x247xbf16>
    %385 = tpu.concatenate %383, %384 in 1 : vector<16x9xbf16>, vector<16x247xbf16> -> vector<16x256xbf16>
    %cst_163 = arith.constant 0.000000e+00 : f32
    %386 = arith.truncf %cst_163 : f32 to bf16
    %387 = vector.shape_cast %25 : vector<1x256xi1> to vector<1x256xi1>
    %388 = vector.broadcast %387 : vector<1x256xi1> to vector<16x256xi1>
    %389 = vector.broadcast %386 : bf16 to vector<16x256xbf16>
    %390 = arith.select %388, %385, %389 : vector<16x256xi1>, vector<16x256xbf16>
    %c0_164 = arith.constant 0 : index
    %c0_165 = arith.constant 0 : index
    %c0_166 = arith.constant 0 : index
    %391 = vector.load %arg6[%c0_164, %c0_165, %c0_166] : memref<9x1x16xbf16, #tpu.memory_space<vmem>>, vector<1x1x16xbf16>
    %392 = vector.shape_cast %391 : vector<1x1x16xbf16> to vector<1x16xbf16>
    %cst_167 = arith.constant dense<0.000000e+00> : vector<1x256xf32>
    %393 = tpu.matmul %392, %390, %cst_167 {dimension_numbers = #tpu.dot_dimension_numbers<[1], [0], [0], [1], [0, 0, 1, 1], [], []>} : vector<1x16xbf16>, vector<16x256xbf16>, vector<1x256xf32> -> vector<1x256xf32>
    %394 = arith.addf %382, %393 : vector<1x256xf32>
    %395 = vector.extract_strided_slice %381 {offsets = [0, 248], sizes = [16, 8], strides = [1, 1]} : vector<16x256xbf16> to vector<16x8xbf16>
    %396 = vector.extract_strided_slice %381 {offsets = [0, 0], sizes = [16, 248], strides = [1, 1]} : vector<16x256xbf16> to vector<16x248xbf16>
    %397 = tpu.concatenate %395, %396 in 1 : vector<16x8xbf16>, vector<16x248xbf16> -> vector<16x256xbf16>
    %cst_168 = arith.constant 0.000000e+00 : f32
    %398 = arith.truncf %cst_168 : f32 to bf16
    %399 = vector.shape_cast %44 : vector<1x256xi1> to vector<1x256xi1>
    %400 = vector.broadcast %399 : vector<1x256xi1> to vector<16x256xi1>
    %401 = vector.broadcast %398 : bf16 to vector<16x256xbf16>
    %402 = arith.select %400, %397, %401 : vector<16x256xi1>, vector<16x256xbf16>
    %c1_169 = arith.constant 1 : index
    %c0_170 = arith.constant 0 : index
    %c0_171 = arith.constant 0 : index
    %403 = vector.load %arg6[%c1_169, %c0_170, %c0_171] : memref<9x1x16xbf16, #tpu.memory_space<vmem>>, vector<1x1x16xbf16>
    %404 = vector.shape_cast %403 : vector<1x1x16xbf16> to vector<1x16xbf16>
    %cst_172 = arith.constant dense<0.000000e+00> : vector<1x256xf32>
    %405 = tpu.matmul %404, %402, %cst_172 {dimension_numbers = #tpu.dot_dimension_numbers<[1], [0], [0], [1], [0, 0, 1, 1], [], []>} : vector<1x16xbf16>, vector<16x256xbf16>, vector<1x256xf32> -> vector<1x256xf32>
    %406 = arith.addf %394, %405 : vector<1x256xf32>
    %407 = vector.extract_strided_slice %381 {offsets = [0, 249], sizes = [16, 7], strides = [1, 1]} : vector<16x256xbf16> to vector<16x7xbf16>
    %408 = vector.extract_strided_slice %381 {offsets = [0, 0], sizes = [16, 249], strides = [1, 1]} : vector<16x256xbf16> to vector<16x249xbf16>
    %409 = tpu.concatenate %407, %408 in 1 : vector<16x7xbf16>, vector<16x249xbf16> -> vector<16x256xbf16>
    %cst_173 = arith.constant 0.000000e+00 : f32
    %410 = arith.truncf %cst_173 : f32 to bf16
    %411 = vector.shape_cast %63 : vector<1x256xi1> to vector<1x256xi1>
    %412 = vector.broadcast %411 : vector<1x256xi1> to vector<16x256xi1>
    %413 = vector.broadcast %410 : bf16 to vector<16x256xbf16>
    %414 = arith.select %412, %409, %413 : vector<16x256xi1>, vector<16x256xbf16>
    %c2_174 = arith.constant 2 : index
    %c0_175 = arith.constant 0 : index
    %c0_176 = arith.constant 0 : index
    %415 = vector.load %arg6[%c2_174, %c0_175, %c0_176] : memref<9x1x16xbf16, #tpu.memory_space<vmem>>, vector<1x1x16xbf16>
    %416 = vector.shape_cast %415 : vector<1x1x16xbf16> to vector<1x16xbf16>
    %cst_177 = arith.constant dense<0.000000e+00> : vector<1x256xf32>
    %417 = tpu.matmul %416, %414, %cst_177 {dimension_numbers = #tpu.dot_dimension_numbers<[1], [0], [0], [1], [0, 0, 1, 1], [], []>} : vector<1x16xbf16>, vector<16x256xbf16>, vector<1x256xf32> -> vector<1x256xf32>
    %418 = arith.addf %406, %417 : vector<1x256xf32>
    %419 = vector.extract_strided_slice %381 {offsets = [0, 255], sizes = [16, 1], strides = [1, 1]} : vector<16x256xbf16> to vector<16x1xbf16>
    %420 = vector.extract_strided_slice %381 {offsets = [0, 0], sizes = [16, 255], strides = [1, 1]} : vector<16x256xbf16> to vector<16x255xbf16>
    %421 = tpu.concatenate %419, %420 in 1 : vector<16x1xbf16>, vector<16x255xbf16> -> vector<16x256xbf16>
    %cst_178 = arith.constant 0.000000e+00 : f32
    %422 = arith.truncf %cst_178 : f32 to bf16
    %423 = vector.shape_cast %82 : vector<1x256xi1> to vector<1x256xi1>
    %424 = vector.broadcast %423 : vector<1x256xi1> to vector<16x256xi1>
    %425 = vector.broadcast %422 : bf16 to vector<16x256xbf16>
    %426 = arith.select %424, %421, %425 : vector<16x256xi1>, vector<16x256xbf16>
    %c3_179 = arith.constant 3 : index
    %c0_180 = arith.constant 0 : index
    %c0_181 = arith.constant 0 : index
    %427 = vector.load %arg6[%c3_179, %c0_180, %c0_181] : memref<9x1x16xbf16, #tpu.memory_space<vmem>>, vector<1x1x16xbf16>
    %428 = vector.shape_cast %427 : vector<1x1x16xbf16> to vector<1x16xbf16>
    %cst_182 = arith.constant dense<0.000000e+00> : vector<1x256xf32>
    %429 = tpu.matmul %428, %426, %cst_182 {dimension_numbers = #tpu.dot_dimension_numbers<[1], [0], [0], [1], [0, 0, 1, 1], [], []>} : vector<1x16xbf16>, vector<16x256xbf16>, vector<1x256xf32> -> vector<1x256xf32>
    %430 = arith.addf %418, %429 : vector<1x256xf32>
    %c4_183 = arith.constant 4 : index
    %c0_184 = arith.constant 0 : index
    %c0_185 = arith.constant 0 : index
    %431 = vector.load %arg6[%c4_183, %c0_184, %c0_185] : memref<9x1x16xbf16, #tpu.memory_space<vmem>>, vector<1x1x16xbf16>
    %432 = vector.shape_cast %431 : vector<1x1x16xbf16> to vector<1x16xbf16>
    %cst_186 = arith.constant dense<0.000000e+00> : vector<1x256xf32>
    %433 = tpu.matmul %432, %381, %cst_186 {dimension_numbers = #tpu.dot_dimension_numbers<[1], [0], [0], [1], [0, 0, 1, 1], [], []>} : vector<1x16xbf16>, vector<16x256xbf16>, vector<1x256xf32> -> vector<1x256xf32>
    %434 = arith.addf %430, %433 : vector<1x256xf32>
    %435 = vector.extract_strided_slice %381 {offsets = [0, 1], sizes = [16, 255], strides = [1, 1]} : vector<16x256xbf16> to vector<16x255xbf16>
    %436 = vector.extract_strided_slice %381 {offsets = [0, 0], sizes = [16, 1], strides = [1, 1]} : vector<16x256xbf16> to vector<16x1xbf16>
    %437 = tpu.concatenate %435, %436 in 1 : vector<16x255xbf16>, vector<16x1xbf16> -> vector<16x256xbf16>
    %cst_187 = arith.constant 0.000000e+00 : f32
    %438 = arith.truncf %cst_187 : f32 to bf16
    %439 = vector.shape_cast %101 : vector<1x256xi1> to vector<1x256xi1>
    %440 = vector.broadcast %439 : vector<1x256xi1> to vector<16x256xi1>
    %441 = vector.broadcast %438 : bf16 to vector<16x256xbf16>
    %442 = arith.select %440, %437, %441 : vector<16x256xi1>, vector<16x256xbf16>
    %c5_188 = arith.constant 5 : index
    %c0_189 = arith.constant 0 : index
    %c0_190 = arith.constant 0 : index
    %443 = vector.load %arg6[%c5_188, %c0_189, %c0_190] : memref<9x1x16xbf16, #tpu.memory_space<vmem>>, vector<1x1x16xbf16>
    %444 = vector.shape_cast %443 : vector<1x1x16xbf16> to vector<1x16xbf16>
    %cst_191 = arith.constant dense<0.000000e+00> : vector<1x256xf32>
    %445 = tpu.matmul %444, %442, %cst_191 {dimension_numbers = #tpu.dot_dimension_numbers<[1], [0], [0], [1], [0, 0, 1, 1], [], []>} : vector<1x16xbf16>, vector<16x256xbf16>, vector<1x256xf32> -> vector<1x256xf32>
    %446 = arith.addf %434, %445 : vector<1x256xf32>
    %447 = vector.extract_strided_slice %381 {offsets = [0, 7], sizes = [16, 249], strides = [1, 1]} : vector<16x256xbf16> to vector<16x249xbf16>
    %448 = vector.extract_strided_slice %381 {offsets = [0, 0], sizes = [16, 7], strides = [1, 1]} : vector<16x256xbf16> to vector<16x7xbf16>
    %449 = tpu.concatenate %447, %448 in 1 : vector<16x249xbf16>, vector<16x7xbf16> -> vector<16x256xbf16>
    %cst_192 = arith.constant 0.000000e+00 : f32
    %450 = arith.truncf %cst_192 : f32 to bf16
    %451 = vector.shape_cast %120 : vector<1x256xi1> to vector<1x256xi1>
    %452 = vector.broadcast %451 : vector<1x256xi1> to vector<16x256xi1>
    %453 = vector.broadcast %450 : bf16 to vector<16x256xbf16>
    %454 = arith.select %452, %449, %453 : vector<16x256xi1>, vector<16x256xbf16>
    %c6_193 = arith.constant 6 : index
    %c0_194 = arith.constant 0 : index
    %c0_195 = arith.constant 0 : index
    %455 = vector.load %arg6[%c6_193, %c0_194, %c0_195] : memref<9x1x16xbf16, #tpu.memory_space<vmem>>, vector<1x1x16xbf16>
    %456 = vector.shape_cast %455 : vector<1x1x16xbf16> to vector<1x16xbf16>
    %cst_196 = arith.constant dense<0.000000e+00> : vector<1x256xf32>
    %457 = tpu.matmul %456, %454, %cst_196 {dimension_numbers = #tpu.dot_dimension_numbers<[1], [0], [0], [1], [0, 0, 1, 1], [], []>} : vector<1x16xbf16>, vector<16x256xbf16>, vector<1x256xf32> -> vector<1x256xf32>
    %458 = arith.addf %446, %457 : vector<1x256xf32>
    %459 = vector.extract_strided_slice %381 {offsets = [0, 8], sizes = [16, 248], strides = [1, 1]} : vector<16x256xbf16> to vector<16x248xbf16>
    %460 = vector.extract_strided_slice %381 {offsets = [0, 0], sizes = [16, 8], strides = [1, 1]} : vector<16x256xbf16> to vector<16x8xbf16>
    %461 = tpu.concatenate %459, %460 in 1 : vector<16x248xbf16>, vector<16x8xbf16> -> vector<16x256xbf16>
    %cst_197 = arith.constant 0.000000e+00 : f32
    %462 = arith.truncf %cst_197 : f32 to bf16
    %463 = vector.shape_cast %139 : vector<1x256xi1> to vector<1x256xi1>
    %464 = vector.broadcast %463 : vector<1x256xi1> to vector<16x256xi1>
    %465 = vector.broadcast %462 : bf16 to vector<16x256xbf16>
    %466 = arith.select %464, %461, %465 : vector<16x256xi1>, vector<16x256xbf16>
    %c7_198 = arith.constant 7 : index
    %c0_199 = arith.constant 0 : index
    %c0_200 = arith.constant 0 : index
    %467 = vector.load %arg6[%c7_198, %c0_199, %c0_200] : memref<9x1x16xbf16, #tpu.memory_space<vmem>>, vector<1x1x16xbf16>
    %468 = vector.shape_cast %467 : vector<1x1x16xbf16> to vector<1x16xbf16>
    %cst_201 = arith.constant dense<0.000000e+00> : vector<1x256xf32>
    %469 = tpu.matmul %468, %466, %cst_201 {dimension_numbers = #tpu.dot_dimension_numbers<[1], [0], [0], [1], [0, 0, 1, 1], [], []>} : vector<1x16xbf16>, vector<16x256xbf16>, vector<1x256xf32> -> vector<1x256xf32>
    %470 = arith.addf %458, %469 : vector<1x256xf32>
    %471 = vector.extract_strided_slice %381 {offsets = [0, 9], sizes = [16, 247], strides = [1, 1]} : vector<16x256xbf16> to vector<16x247xbf16>
    %472 = vector.extract_strided_slice %381 {offsets = [0, 0], sizes = [16, 9], strides = [1, 1]} : vector<16x256xbf16> to vector<16x9xbf16>
    %473 = tpu.concatenate %471, %472 in 1 : vector<16x247xbf16>, vector<16x9xbf16> -> vector<16x256xbf16>
    %cst_202 = arith.constant 0.000000e+00 : f32
    %474 = arith.truncf %cst_202 : f32 to bf16
    %475 = vector.shape_cast %158 : vector<1x256xi1> to vector<1x256xi1>
    %476 = vector.broadcast %475 : vector<1x256xi1> to vector<16x256xi1>
    %477 = vector.broadcast %474 : bf16 to vector<16x256xbf16>
    %478 = arith.select %476, %473, %477 : vector<16x256xi1>, vector<16x256xbf16>
    %c8_203 = arith.constant 8 : index
    %c0_204 = arith.constant 0 : index
    %c0_205 = arith.constant 0 : index
    %479 = vector.load %arg6[%c8_203, %c0_204, %c0_205] : memref<9x1x16xbf16, #tpu.memory_space<vmem>>, vector<1x1x16xbf16>
    %480 = vector.shape_cast %479 : vector<1x1x16xbf16> to vector<1x16xbf16>
    %cst_206 = arith.constant dense<0.000000e+00> : vector<1x256xf32>
    %481 = tpu.matmul %480, %478, %cst_206 {dimension_numbers = #tpu.dot_dimension_numbers<[1], [0], [0], [1], [0, 0, 1, 1], [], []>} : vector<1x16xbf16>, vector<16x256xbf16>, vector<1x256xf32> -> vector<1x256xf32>
    %482 = arith.addf %470, %481 : vector<1x256xf32>
    %c0_207 = arith.constant 0 : index
    %c0_208 = arith.constant 0 : index
    %483 = vector.load %arg7[%c0_207, %c0_208] : memref<1x1xf32, #tpu.memory_space<vmem>>, vector<1x1xf32>
    %484 = vector.broadcast %483 : vector<1x1xf32> to vector<1x256xf32>
    %485 = arith.addf %482, %484 : vector<1x256xf32>
    %c0_209 = arith.constant 0 : index
    %c0_210 = arith.constant 0 : index
    %c0_211 = arith.constant 0 : index
    %486 = vector.load %arg8[%c0_209, %c0_210, %c0_211] : memref<1x1x256xf32, #tpu.memory_space<vmem>>, vector<1x1x256xf32>
    %487 = vector.shape_cast %486 : vector<1x1x256xf32> to vector<1x256xf32>
    %488 = vector.shape_cast %485 : vector<1x256xf32> to vector<1x1x256xf32>
    tpu.vector_store %arg8[%c0_209, %c0_210, %c0_211], %488 {strides = array<i32>} : memref<1x1x256xf32, #tpu.memory_space<vmem>>, vector<1x1x256xf32>,
    return
  }
  func.func @transform_0(%arg0: i32) -> (i32, i32, i32, i32) {
    %c0_i32 = arith.constant 0 : i32
    %c0_i32_0 = arith.constant 0 : i32
    %c0_i32_1 = arith.constant 0 : i32
    %c0_i32_2 = arith.constant 0 : i32
    return %arg0, %c0_i32, %c0_i32_0, %c0_i32_1 : i32, i32, i32, i32
  }
  func.func @transform_1(%arg0: i32) -> (i32, i32, i32) {
    %c0_i32 = arith.constant 0 : i32
    %c0_i32_0 = arith.constant 0 : i32
    %c0_i32_1 = arith.constant 0 : i32
    %c0_i32_2 = arith.constant 0 : i32
    return %c0_i32, %c0_i32_0, %c0_i32_1 : i32, i32, i32
  }
  func.func @transform_2(%arg0: i32) -> (i32, i32) {
    %c0_i32 = arith.constant 0 : i32
    %c0_i32_0 = arith.constant 0 : i32
    %c0_i32_1 = arith.constant 0 : i32
    return %c0_i32, %c0_i32_0 : i32, i32
  }
  func.func @transform_3(%arg0: i32) -> (i32, i32, i32) {
    %c0_i32 = arith.constant 0 : i32
    %c0_i32_0 = arith.constant 0 : i32
    %c0_i32_1 = arith.constant 0 : i32
    %c0_i32_2 = arith.constant 0 : i32
    return %c0_i32, %c0_i32_0, %c0_i32_1 : i32, i32, i32
  }
  func.func @transform_4(%arg0: i32) -> (i32, i32) {
    %c0_i32 = arith.constant 0 : i32
    %c0_i32_0 = arith.constant 0 : i32
    %c0_i32_1 = arith.constant 0 : i32
    return %c0_i32, %c0_i32_0 : i32, i32
  }
  func.func @transform_5(%arg0: i32) -> (i32, i32, i32) {
    %c0_i32 = arith.constant 0 : i32
    %c0_i32_0 = arith.constant 0 : i32
    %c0_i32_1 = arith.constant 0 : i32
    %c0_i32_2 = arith.constant 0 : i32
    return %c0_i32, %c0_i32_0, %c0_i32_1 : i32, i32, i32
  }
  func.func @transform_6(%arg0: i32) -> (i32, i32) {
    %c0_i32 = arith.constant 0 : i32
    %c0_i32_0 = arith.constant 0 : i32
    %c0_i32_1 = arith.constant 0 : i32
    return %c0_i32, %c0_i32_0 : i32, i32
  }
  func.func @transform_7(%arg0: i32) -> (i32, i32, i32) {
    %c0_i32 = arith.constant 0 : i32
    %c0_i32_0 = arith.constant 0 : i32
    %c0_i32_1 = arith.constant 0 : i32
    return %arg0, %c0_i32, %c0_i32_0 : i32, i32, i32
  }
}

</mosaic_0001>

<bundles_post_ra>
// kernel: autoencoder_forward.3
= control target key start
LH: loop header
LB: loop body
LE: loop exit
PB: predicated region body
PF: predicated region fallthrough
CT: control target
= control target key end

     0   :  { %s3802_s24 = smov 0   ;;  %s5285_s0 = inlined_call_operand.vmem [shape: f32[2,1,256], index: 0, kind: input, shape index: {}]   ;;  %s5286_s1 = inlined_call_operand.vmem [shape: f32[9,16,1], index: 1, kind: input, shape index: {}]   ;;  %s5287_s2 = inlined_call_operand.vmem [shape: f32[16,1], index: 2, kind: input, shape index: {}]   ;;  %s5288_s3 = inlined_call_operand.vmem [shape: bf16[9,32,16], index: 3, kind: input, shape index: {}]   ;;  %s5289_s4 = inlined_call_operand.vmem [shape: f32[32,1], index: 4, kind: input, shape index: {}]   ;;  %s5290_s5 = inlined_call_operand.vmem [shape: bf16[9,64,32], index: 5, kind: input, shape index: {}]   ;;  %s5291_s6 = inlined_call_operand.vmem [shape: f32[64,1], index: 6, kind: input, shape index: {}]   ;;  %s5292_s7 = inlined_call_operand.vmem [shape: bf16[2,4,64,64], index: 7, kind: output, shape index: {}]  }
   0x1 LB: > { %s3357_s25 = sadd.s32 4294967295, %s3750_s24   ;;  %p3361_p0 = scmp.ge.s32.totalorder %s3750_s24, 1  ;;  %s3750_s24 = sphi %s3802_s24, %s17_s24  }
   0x2   : > { %p236_p1 = scmp.lt.s32.totalorder %s3750_s24, 3 }
   0x4   : > { %p237_p2 = pnand %p3361_p0, %p236_p1 }
   0x6   : > { %240 = sbr.rel (%p237_p2) target bundleno = 1223 (0x4c7), region = 48 }
   0xb   : > { %v3365_v0 = vld [vmem:[%s5286_s1 + $0x10] sm:$0xff]  ;;  %v380_v1 = vld [vmem:[%s5286_s1] sm:$0xff]  ;;  %p267_p3 = scmp.lt.s32.totalorder %s3357_s25, 1  ;;  %v279_v2 = vlaneseq  ;;  %v5318_v3 = vmov 0   ;;  %v3366_v5 = vld [vmem:[%s5286_s1 + $0x18] sm:$0xff]  ;;  %s3753_s15 = smov 9  }
   0xc   : > { %3689 = vset.pattern.permute.xlu1 %v5318_v3  ;;  %3688 = vset.pattern.permute.xlu0 %v5318_v3  ;;  %v381_v6 = vld [vmem:[%s5286_s1 + $0x8] sm:$0xff]  ;;  %s3754_s18 = smov 8   ;;  %v3367_v13 = vld [vmem:[%s5286_s1 + $0x20] sm:$0xff]  ;;  %v3370_v14 = vld [vmem:[%s5286_s1 + $0x38] sm:$0xff]  ;;  %s3755_s27 = smov 7   ;;  %vm5294_vm10 = vcmask 64512  }
   0xd   : > { %425 = vperm.xlu1 %3689, %v3365_v0   ;;  %384 = vperm.xlu0 %3688, %v380_v1   ;;  %s5611_s25 = smov (!%p267_p3, %s3357_s25), 1  ;;  %v3821_v4 = vshrl.u32 %v279_v2, 7  ;;  %v3368_v12 = vld [vmem:[%s5286_s1 + $0x28] sm:$0xff]  ;;  %v3369_v15 = vld [vmem:[%s5286_s1 + $0x30] sm:$0xff]  ;;  %s3756_s30 = smov 1   ;;  %v3371_v17 = vld [vmem:[%s5286_s1 + $0x40] sm:$0xff] }
   0xe   : > { %858 = vmatprep.mubr.bf16.mxu0 %v5318_v3  ;;  %937 = vmatprep.mubr.bf16.mxu1 %v5318_v3  ;;  %s3362_s11 = sshll.u32 %s5611_s25, 1  ;;  %v3372_v16 = vld [vmem:[%s5286_s1 + $0x48] sm:$0xff]  ;;  %v3374_v18 = vld [vmem:[%s5286_s1 + $0x58] sm:$0xff]  ;;  %v3373_v19 = vld [vmem:[%s5286_s1 + $0x50] sm:$0xff]  ;;  %s3757_s17 = smov 127   ;;  %v280_v32 = vand.u32 127, %v279_v2 }
   0xf   : > { %v3833_v7 = vsub.s32 0, %v3821_v4  ;;  %v362_v8 = vsub.s32 1, %v3821_v4  ;;  %s270_s14 = scalar_lea.vmem %s5285_s0, %s3362_s11  ;;  %v3376_v20 = vld [vmem:[%s5286_s1 + $0x68] sm:$0xff]  ;;  %v3375_v21 = vld [vmem:[%s5286_s1 + $0x60] sm:$0xff]  ;;  %v3378_v22 = vld [vmem:[%s5286_s1 + $0x78] sm:$0xff]  ;;  %s3758_s23 = smov 121  }
  0x10   : > { %v358_v9 = vld [vmem:[%s270_s14] sm:$0x3]  ;;  %v3377_v23 = vld [vmem:[%s5286_s1 + $0x70] sm:$0xff]  ;;  %s3759_s29 = smov 120   ;;  %v3380_v24 = vld [vmem:[%s5286_s1 + $0x88] sm:$0xff]  ;;  %s3760_s12 = smov 119  }
  0x11   : > { %430 = vperm.xlu1 %3689, %v3366_v5   ;;  %389 = vperm.xlu0 %3688, %v381_v6   ;;  %v3840_v10 = vrot.slane %v358_v9, %v3833_v7  ;;  %v3842_v11 = vrot.slane %v358_v9, %v362_v8  ;;  %v3379_v25 = vld [vmem:[%s5286_s1 + $0x80] sm:$0xff]  ;;  %v719_v26 = vld [vmem:[%s5287_s2 + $0x8] sm:$0xff]  ;;  %v281_v34 = vadd.s32 128, %v280_v32  ;;  %v282_v39 = vand.u32 63, %v280_v32  ;;  %s3761_s8 = smov 64  }
  0x12   : > { %v718_v27 = vld [vmem:[%s5287_s2] sm:$0xff]  ;;  %v5413_v54 = vmov 0  ;;  %v3691_v5 = vld [vmem:[%s5288_s3 + $0x8] sm:$0xff]  }
  0x13   : > { %v283_v36 = vand.u32 63, %v281_v34  ;;  %v284_v43 = vshra.s32 %v282_v39, 3  ;;  %v286_v48 = vand.u32 7, %v282_v39 }
  0x15   : > { %371 = vrot.lane.b32.xlu1 %v3840_v10, %s3753_s15  ;;  %364 = vrot.lane.b32.xlu0 %v3842_v11, %s3753_s15  ;;  %v285_v40 = vshra.s32 %v283_v36, 3  ;;  %v287_v44 = vand.u32 7, %v283_v36  ;;  %v288_v49 = vadd.s32 4294967295, %v284_v43  ;;  %v3943_v53 = vadd.s32 4294967295, %v286_v48 }
  0x16   : > { %v3957_v59 = vadd.s32 1, %v286_v48 }
  0x17   : > { %v289_v45 = vadd.s32 4294967295, %v285_v40  ;;  %v3937_v50 = vadd.s32 4294967295, %v287_v44  ;;  %vm290_vm2 = vcmp.ge.s32.totalorder %v288_v49, 0  ;;  %vm292_vm3 = vcmp.lt.s32.totalorder %v288_v49, 8 }
  0x18   : > { %v3950_v55 = vadd.s32 1, %v287_v44  ;;  %vm3952_vm6 = vmand %vm290_vm2, %vm292_vm3  ;;  %vm5296_vm7 = vcmp.ge.s32.totalorder %v3943_v53, 0  ;;  %vm325_vm13 = vcmp.ge.s32.totalorder %v285_v40, 0  ;;  %vm327_vm14 = vcmp.lt.s32.totalorder %v285_v40, 8 }
  0x19   : > { %411 = vrot.lane.b32.xlu1 %v3840_v10, %s3754_s18  ;;  %408 = vrot.lane.b32.xlu0 %v3842_v11, %s3754_s18  ;;  %vm291_vm0 = vcmp.ge.s32.totalorder %v289_v45, 0  ;;  %vm293_vm1 = vcmp.lt.s32.totalorder %v289_v45, 8  ;;  %vm5298_vm5 = vcmp.ge.s32.totalorder %v3937_v50, 0  ;;  %vm5293_vm9 = vcmp.lt.s32.totalorder %v3937_v50, 8  ;;  %vm3969_vm12 = vmand %vm3952_vm6, %vm5296_vm7 }
  0x1a   : > { %vm3945_vm4 = vmand %vm291_vm0, %vm293_vm1  ;;  %vm5295_vm11 = vcmp.ge.s32.totalorder %v3950_v55, 0  ;;  %vm5297_vm0 = vcmask 72704   ;;  %vm5301_vm1 = vcmp.lt.s32.totalorder %v3957_v59, 8  ;;  %vm324_vm3 = vcmp.ge.s32.totalorder %v284_v43, 0 }
  0x1b   : > { %vm301_vm8 = vmand %vm3945_vm4, %vm5298_vm5  ;;  %vm5300_vm7 = vcmask 56320  }
  0x1c   : > { %vm3979_vm15 = vmand %vm301_vm8, %vm5293_vm9  ;;  %vm326_vm8 = vcmp.lt.s32.totalorder %v284_v43, 8 }
  0x1d   : > { %471 = vperm.xlu1 %3689, %v3368_v12   ;;  %466 = vperm.xlu0 %3688, %v3367_v13   ;;  %vm3990_vm2 = vmand %vm3945_vm4, %vm5295_vm11 }
  0x1e   : > { %vm3994_vm9 = vmand %vm325_vm13, %vm327_vm14 }
  0x1f   : > { %vm4005_vm11 = vmand %vm3952_vm6, %vm5301_vm1 }
  0x20   : > { %vm4017_vm13 = vmand %vm324_vm3, %vm326_vm8  ;;  %vm5370_vm8 = vcmp.ge.s32.totalorder %v3943_v53, 0 }
  0x21   : > { %452 = vrot.lane.b32.xlu1 %v3840_v10, %s3755_s27  ;;  %449 = vrot.lane.b32.xlu0 %v3842_v11, %s3755_s27  ;;  %vm331_vm14 = vmand %vm3994_vm9, %vm5298_vm5 }
  0x22   : > { %vm4045_vm5 = vmand %vm4017_vm13, %vm5370_vm8 }
  0x25   : > { %512 = vperm.xlu1 %3689, %v3370_v14   ;;  %507 = vperm.xlu0 %3688, %v3369_v15  }
  0x29   : > { %493 = vrot.lane.b32.xlu1 %v3840_v10, %s3756_s30  ;;  %490 = vrot.lane.b32.xlu0 %v3842_v11, %s3756_s30 }
  0x2d   : > { %541 = vperm.xlu1 %3689, %v3372_v16   ;;  %536 = vperm.xlu0 %3688, %v3371_v17   ;;  %v339_v17 = vadd.s32 1, %v285_v40 }
  0x2f   : > { %vm343_vm1 = vcmp.lt.s32.totalorder %v339_v17, 8 }
  0x31   : > { %576 = vperm.xlu1 %3689, %v3374_v18   ;;  %571 = vperm.xlu0 %3688, %v3373_v19   ;;  %v338_v18 = vadd.s32 1, %v284_v43 }
  0x35   : > { %556 = vrot.lane.b32.xlu1 %v3842_v11, %s3757_s17  ;;  %554 = vrot.lane.b32.xlu0 %v3840_v10, %s3757_s17 }
  0x39   : > { %617 = vperm.xlu1 %3689, %v3376_v20   ;;  %612 = vperm.xlu0 %3688, %v3375_v21   ;;  %v5368_v21 = vmov 0 }
  0x3d   : > { %597 = vrot.lane.b32.xlu1 %v3842_v11, %s3758_s23  ;;  %595 = vrot.lane.b32.xlu0 %v3840_v10, %s3758_s23 }
  0x41   : > { %658 = vperm.xlu1 %3689, %v3378_v22   ;;  %653 = vperm.xlu0 %3688, %v3377_v23  }
  0x45   : > { %638 = vrot.lane.b32.xlu1 %v3842_v11, %s3759_s29  ;;  %636 = vrot.lane.b32.xlu0 %v3840_v10, %s3759_s29 }
  0x49   : > { %699 = vperm.xlu1 %3689, %v3380_v24   ;;  %694 = vperm.xlu0 %3688, %v3379_v25  }
  0x4d   : > { %679 = vrot.lane.b32.xlu1 %v3842_v11, %s3760_s12  ;;  %677 = vrot.lane.b32.xlu0 %v3840_v10, %s3760_s12 }
  0x51   : > { %727 = vperm.xlu1 %3689, %v719_v26   ;;  %722 = vperm.xlu0 %3688, %v718_v27   ;;  %v5371_v26 = vmov 0 }
  0x52   : > { %v5372_v26 = vsel %vm4045_vm5, 4294967295, %v5371_v26 }
  0x88   : > { %v3924_v28 = vpop.permute.xlu1 %425  ;;  %v3926_v29 = vpop.permute.xlu0 %384 }
  0x8c   : > { %v3928_v30 = vpop.permute.xlu1 %430  ;;  %v3930_v31 = vpop.permute.xlu0 %389 }
  0x90   : > { %v372_v33 = vpop.permute.xlu1 %371  ;;  %v365_v35 = vpop.permute.xlu0 %364 }
  0x91   : > { %v374_v6 = vsel %vm5297_vm0, %v372_v33, %v365_v35  ;;  %v377_v8 = vsel %vm5297_vm0, %v365_v35, %v372_v33  ;;  %vm5302_vm0 = vcmask 7168   ;;  %v5374_v33 = vmov 0 }
  0x92   : > { %v378_v19 = vsel %vm3969_vm12, %v377_v8, 0.0  ;;  %v379_v20 = vsel %vm3979_vm15, %v374_v6, 0.0 }
  0x93   : > { %v395_v36 = vrot.slane %v378_v19, %v3833_v7 }
  0x94   : > { %v412_v37 = vpop.permute.xlu1 %411  ;;  %v409_v38 = vpop.permute.xlu0 %408 }
  0x95   : > { %v414_v0 = vsel %vm5294_vm10, %v412_v37, %v409_v38  ;;  %v417_v1 = vsel %vm5294_vm10, %v409_v38, %v412_v37  ;;  %vm5299_vm10 = vcmp.lt.s32.totalorder %v3950_v55, 8  ;;  %v399_v37 = vrot.slane %v379_v20, %v3833_v7 }
  0x96   : > { %v418_v14 = vsel %vm3952_vm6, %v417_v1, 0.0  ;;  %v419_v15 = vsel %vm3945_vm4, %v414_v0, 0.0  ;;  %vm4033_vm3 = vmand %vm3990_vm2, %vm5299_vm10  ;;  %vm5373_vm2 = vcmp.lt.s32.totalorder %v3937_v50, 8 }
  0x97   : > { %v5369_v21 = vsel %vm4033_vm3, 4294967295, %v5368_v21  ;;  %v436_v24 = vrot.slane %v418_v14, %v3833_v7  ;;  %v440_v25 = vrot.slane %v419_v15, %v3833_v7  ;;  %vm4051_vm10 = vmand %vm331_vm14, %vm5373_vm2  ;;  %vm5376_vm2 = vcmp.ge.s32.totalorder %v3950_v55, 0 }
  0x98   : > { %v3933_v41 = vpop.permute.xlu1 %471  ;;  %v3935_v42 = vpop.permute.xlu0 %466  ;;  %v5375_v33 = vsel %vm4051_vm10, 4294967295, %v5374_v33  ;;  %v401_v0 = vmul.f32 %v399_v37, %v3926_v29  ;;  %v403_v14 = vmul.f32 %v399_v37, %v3930_v31 }
  0x99   : > { %v441_v40 = vmul.f32 %v436_v24, %v3924_v28  ;;  %v442_v43 = vmul.f32 %v440_v25, %v3924_v28  ;;  %v443_v1 = vmul.f32 %v436_v24, %v3928_v30  ;;  %v444_v2 = vmul.f32 %v440_v25, %v3928_v30 }
  0x9a   : > { %v402_v30 = vmul.f32 %v395_v36, %v3930_v31 }
  0x9b   : > { %v446_v16 = vadd.f32 %v442_v43, %v401_v0  ;;  %v448_v25 = vadd.f32 %v444_v2, %v403_v14 }
  0x9c   : > { %v453_v46 = vpop.permute.xlu1 %452  ;;  %v450_v47 = vpop.permute.xlu0 %449  ;;  %v447_v24 = vadd.f32 %v443_v1, %v402_v30 }
  0x9d   : > { %v455_v22 = vsel %vm5300_vm7, %v453_v46, %v450_v47  ;;  %v458_v23 = vsel %vm5300_vm7, %v450_v47, %v453_v46  ;;  %vm341_vm7 = vcmp.ge.s32.totalorder %v339_v17, 0 }
  0x9e   : > { %v459_v38 = vsel %vm4005_vm11, %v458_v23, 0.0  ;;  %v460_v39 = vsel %vm4033_vm3, %v455_v22, 0.0  ;;  %vm4085_vm8 = vmand %vm341_vm7, %vm343_vm1  ;;  %vm5384_vm7 = vcmp.lt.s32.totalorder %v338_v18, 8  ;;  %vm5385_vm1 = vcmp.ge.s32.totalorder %v338_v18, 0 }
  0x9f   : > { %v477_v28 = vrot.slane %v459_v38, %v3833_v7  ;;  %v481_v49 = vrot.slane %v460_v39, %v3833_v7  ;;  %vm4105_vm14 = vmand %vm5385_vm1, %vm5384_vm7  ;;  %vm5389_vm7 = vcmp.lt.s32.totalorder %v3950_v55, 8  ;;  %v5428_v22 = vmov 0 }
  0xa0   : > { %v3939_v51 = vpop.permute.xlu1 %512  ;;  %v3941_v52 = vpop.permute.xlu0 %507 }
  0xa1   : > { %v484_v18 = vmul.f32 %v477_v28, %v3933_v41  ;;  %v485_v20 = vmul.f32 %v481_v49, %v3933_v41 }
  0xa3   : > { %v488_v43 = vadd.f32 %v484_v18, %v447_v24 }
  0xa4   : > { %v494_v56 = vpop.permute.xlu1 %493  ;;  %v491_v57 = vpop.permute.xlu0 %490 }
  0xa5   : > { %v496_v34 = vsel %vm5302_vm0, %v494_v56, %v491_v57  ;;  %v499_v35 = vsel %vm5302_vm0, %v491_v57, %v494_v56  ;;  %vm4073_vm0 = vmand %vm3994_vm9, %vm5376_vm2  ;;  %v400_v57 = vmul.f32 %v395_v36, %v3926_v29  ;;  %vm5381_vm9 = vcmp.lt.s32.totalorder %v3957_v59, 8  ;;  %v3693_v56 = vld [vmem:[%s5288_s3 + $0x30] sm:$0xff]  }
  0xa6   : > { %v500_v44 = vsel %vm4045_vm5, %v499_v35, 0.0  ;;  %v501_v45 = vsel %vm4051_vm10, %v496_v34, 0.0  ;;  %vm4097_vm2 = vmand %vm4017_vm13, %vm5381_vm9  ;;  %vm5388_vm13 = vcmp.ge.s32.totalorder %v3937_v50, 0  ;;  %vm5392_vm10 = vcmask 1039360  }
  0xa7   : > { %v518_v6 = vrot.slane %v500_v44, %v3833_v7  ;;  %v522_v8 = vrot.slane %v501_v45, %v3833_v7  ;;  %v445_v15 = vadd.f32 %v441_v40, %v400_v57  ;;  %vm347_vm9 = vmand %vm4085_vm8, %vm5388_vm13  ;;  %v482_v34 = vmul.f32 %v477_v28, %v3935_v42 }
  0xa8   : > { %v3973_v61 = vpop.permute.xlu1 %541  ;;  %v3975_v62 = vpop.permute.xlu0 %536  ;;  %vm4121_vm1 = vmand %vm4073_vm0, %vm5389_vm7  ;;  %v483_v35 = vmul.f32 %v481_v49, %v3935_v42  ;;  %vm5394_vm13 = vcmp.ge.s32.totalorder %v3943_v53, 0  ;;  %vm5400_vm0 = vcmask 990208   ;;  %v489_v44 = vadd.f32 %v485_v20, %v448_v25 }
  0xa9   : > { %vm5393_vm5 = vmmov %vm5392_vm10  ;;  %v523_v36 = vmul.f32 %v518_v6, %v3941_v52  ;;  %v524_v37 = vmul.f32 %v522_v8, %v3941_v52  ;;  %v526_v38 = vmul.f32 %v522_v8, %v3939_v51  ;;  %v486_v45 = vadd.f32 %v482_v34, %v445_v15 }
  0xaa   : > { %vm4133_vm3 = vmand %vm4105_vm14, %vm5394_vm13  ;;  %v487_v46 = vadd.f32 %v483_v35, %v446_v16  ;;  %v549_v57 = vmul.f32 %v3973_v61, %v3842_v11  ;;  %v547_v20 = vmul.f32 %v3975_v62, %v3842_v11  ;;  %vm5402_vm13 = vcmp.ge.s32.totalorder %v3950_v55, 0 }
  0xab   : > { %vm5401_vm7 = vmmov %vm5400_vm0  ;;  %v527_v8 = vadd.f32 %v523_v36, %v486_v45  ;;  %v5443_v29 = vmov 0 }
  0xac   : > { %v4009_v12 = vpop.permute.xlu1 %576  ;;  %v4011_v13 = vpop.permute.xlu0 %571  ;;  %v528_v30 = vadd.f32 %v524_v37, %v487_v46 }
  0xb0   : > { %v557_v27 = vpop.permute.xlu1 %556  ;;  %v555_v32 = vpop.permute.xlu0 %554 }
  0xb1   : > { %v559_v31 = vsel %vm5392_vm10, %v555_v32, %v557_v27  ;;  %v563_v23 = vsel %vm5393_vm5, %v557_v27, %v555_v32  ;;  %vm5397_vm5 = vcmp.lt.s32.totalorder %v3937_v50, 8  ;;  %v5398_v27 = vmov 0 }
  0xb2   : > { %vm4141_vm10 = vmand %vm347_vm9, %vm5397_vm5  ;;  %v525_v32 = vmul.f32 %v518_v6, %v3939_v51  ;;  %v564_v39 = vsel %vm4097_vm2, %v559_v31, 0.0  ;;  %v565_v52 = vsel %vm4121_vm1, %v563_v23, 0.0  ;;  %vm5306_vm9 = vcmask 982016  }
  0xb3   : > { %v5399_v27 = vsel %vm4141_vm10, 4294967295, %v5398_v27  ;;  %v548_v51 = vmul.f32 %v3973_v61, %v3840_v10  ;;  %v582_v0 = vrot.slane %v564_v39, %v3833_v7  ;;  %v586_v1 = vrot.slane %v565_v52, %v3833_v7  ;;  %vm355_vm5 = vmand %vm4085_vm8, %vm5402_vm13  ;;  %v3699_v52 = vld [vmem:[%s5288_s3 + $0x40] sm:$0xff]  }
  0xb4   : > { %v4077_v47 = vpop.permute.xlu1 %617  ;;  %v4079_v48 = vpop.permute.xlu0 %612  ;;  %v529_v2 = vadd.f32 %v525_v32, %v488_v43  ;;  %v530_v6 = vadd.f32 %v526_v38, %v489_v44  ;;  %v546_v61 = vmul.f32 %v3975_v62, %v3840_v10  ;;  %v551_v32 = vadd.f32 %v547_v20, %v528_v30 }
  0xb5   : > { %v587_v24 = vmul.f32 %v582_v0, %v4011_v13  ;;  %v588_v25 = vmul.f32 %v586_v1, %v4011_v13  ;;  %v589_v34 = vmul.f32 %v582_v0, %v4009_v12  ;;  %v590_v35 = vmul.f32 %v586_v1, %v4009_v12 }
  0xb6   : > { %v552_v36 = vadd.f32 %v548_v51, %v529_v2  ;;  %v553_v37 = vadd.f32 %v549_v57, %v530_v6  ;;  %vm5406_vm13 = vcmp.lt.s32.totalorder %v3950_v55, 8 }
  0xb7   : > { %v592_v44 = vadd.f32 %v588_v25, %v551_v32 }
  0xb8   : > { %v598_v17 = vpop.permute.xlu1 %597  ;;  %v596_v19 = vpop.permute.xlu0 %595  ;;  %v593_v45 = vadd.f32 %v589_v34, %v552_v36  ;;  %v594_v46 = vadd.f32 %v590_v35, %v553_v37 }
  0xb9   : > { %v600_v42 = vsel %vm5400_vm0, %v596_v19, %v598_v17  ;;  %v604_v53 = vsel %vm5401_vm7, %v598_v17, %v596_v19  ;;  %vm5403_vm0 = vcmp.lt.s32.totalorder %v3957_v59, 8 }
  0xba   : > { %v605_v28 = vsel %vm4133_vm3, %v600_v42, 0.0  ;;  %v606_v49 = vsel %vm4141_vm10, %v604_v53, 0.0  ;;  %v550_v53 = vadd.f32 %v546_v61, %v527_v8  ;;  %vm4193_vm7 = vmand %vm4105_vm14, %vm5403_vm0 }
  0xbb   : > { %v623_v16 = vrot.slane %v605_v28, %v3833_v7  ;;  %v627_v17 = vrot.slane %v606_v49, %v3833_v7  ;;  %vm4199_vm10 = vmand %vm355_vm5, %vm5406_vm13 }
  0xbc   : > { %v659_v40 = vpop.permute.xlu1 %658  ;;  %v654_v50 = vpop.permute.xlu0 %653  ;;  %v591_v43 = vadd.f32 %v587_v24, %v550_v53  ;;  %vm790_vm5 = vmpackc.low %vm3945_vm4, %vm3952_vm6  ;;  %vm5409_vm4 = vnez %v5369_v21 }
  0xbd   : > { %v630_v13 = vmul.f32 %v623_v16, %v4077_v47  ;;  %v631_v38 = vmul.f32 %v627_v17, %v4077_v47  ;;  %v628_v12 = vmul.f32 %v623_v16, %v4079_v48  ;;  %v629_v39 = vmul.f32 %v627_v17, %v4079_v48  ;;  %vm757_vm0 = vmpackc.low %vm3979_vm15, %vm3969_vm12 }
  0xbe   : > { %vm963_vm6 = vmpackc.low %vm5409_vm4, %vm4005_vm11  ;;  %vm5416_vm12 = vnez %v5372_v26  ;;  %vm5417_vm11 = vnez %v5375_v33  ;;  %v5420_v26 = vmov 0  ;;  %v5423_v33 = vmov 0 }
  0xbf   : > { %v634_v2 = vadd.f32 %v630_v13, %v593_v45  ;;  %v635_v6 = vadd.f32 %v631_v38, %v594_v46  ;;  %v632_v30 = vadd.f32 %v628_v12, %v591_v43  ;;  %v1696_v45 = vld [vmem:[%s5289_s4] sm:$0xff]  ;;  %v4264_v46 = vsub.s32 4, %v3821_v4  ;;  %vm1074_vm15 = vmpackc.low %vm5417_vm11, %vm5416_vm12 }
  0xc0   : > { %v639_v14 = vpop.permute.xlu1 %638  ;;  %v637_v15 = vpop.permute.xlu0 %636  ;;  %v5410_v4 = vmov 0  ;;  %vm5309_vm12 = vcmask 130048   ;;  %v5469_v47 = vmov 0 }
  0xc1   : > { %v641_v19 = vsel %vm5306_vm9, %v637_v15, %v639_v14  ;;  %v645_v18 = vsel %vm5306_vm9, %v639_v14, %v637_v15  ;;  %vm5308_vm9 = vcmask 973824   ;;  %v633_v14 = vadd.f32 %v629_v39, %v592_v44  ;;  %v1697_v44 = vld [vmem:[%s5289_s4 + $0x8] sm:$0xff] }
  0xc2   : > { %v646_v31 = vsel %vm4105_vm14, %v641_v19, 0.0  ;;  %v647_v23 = vsel %vm4085_vm8, %v645_v18, 0.0 }
  0xc3   : > { %v664_v10 = vrot.slane %v646_v31, %v3833_v7  ;;  %v668_v11 = vrot.slane %v647_v23, %v3833_v7 }
  0xc4   : > { %v700_v62 = vpop.permute.xlu1 %699  ;;  %v695_v42 = vpop.permute.xlu0 %694 }
  0xc5   : > { %v669_v48 = vmul.f32 %v664_v10, %v654_v50  ;;  %v670_v28 = vmul.f32 %v668_v11, %v654_v50  ;;  %v671_v59 = vmul.f32 %v664_v10, %v659_v40  ;;  %v672_v49 = vmul.f32 %v668_v11, %v659_v40 }
  0xc7   : > { %v675_v15 = vadd.f32 %v671_v59, %v634_v2  ;;  %v676_v16 = vadd.f32 %v672_v49, %v635_v6  ;;  %v673_v17 = vadd.f32 %v669_v48, %v632_v30  ;;  %v674_v19 = vadd.f32 %v670_v28, %v633_v14 }
  0xc8   : > { %v680_v51 = vpop.permute.xlu1 %679  ;;  %v678_v57 = vpop.permute.xlu0 %677  ;;  %v791_v48 = vsel %vm790_vm5, 65537, %v5318_v3  ;;  %v758_v49 = vsel %vm757_vm0, 65537, %v5318_v3  ;;  %vm5418_vm0 = vcmask 64512   ;;  %v1075_v6 = vsel %vm1074_vm15, 65537, %v5318_v3 }
  0xc9   : > { %v682_v0 = vsel %vm5308_vm9, %v678_v57, %v680_v51  ;;  %v686_v1 = vsel %vm5308_vm9, %v680_v51, %v678_v57  ;;  %v799_v28 = vrot.slane %v791_v48, %v4264_v46  ;;  %v795_v59 = vrot.slane %v791_v48, %v3833_v7  ;;  %vm5419_vm4 = vmmov %vm5418_vm0 }
  0xca   : > { %v687_v8 = vsel %vm4193_vm7, %v682_v0, 0.0  ;;  %v688_v55 = vsel %vm4199_vm10, %v686_v1, 0.0  ;;  %v762_v58 = vrot.slane %v758_v49, %v3833_v7  ;;  %v766_v60 = vrot.slane %v758_v49, %v4264_v46  ;;  %v3690_v1 = vld [vmem:[%s5288_s3 + $0x10] sm:$0xff]  }
  0xcb   : > { %v705_v50 = vrot.slane %v687_v8, %v3833_v7  ;;  %v709_v40 = vrot.slane %v688_v55, %v3833_v7  ;;  %vm4278_vm13 = vcmp.ne.s16.totalorder %v799_v28, 0  ;;  %vm4282_vm5 = vcmp.ne.s16.totalorder %v795_v59, 0 }
  0xcc   : > { %v728_v35 = vpop.permute.xlu1 %727  ;;  %v723_v36 = vpop.permute.xlu0 %722  ;;  %v5411_v4 = vsel %vm4278_vm13, 4294967295, %v5410_v4  ;;  %v5414_v54 = vsel %vm4282_vm5, 4294967295, %v5413_v54  ;;  %v4289_v57 = vsel %vm963_vm6, 65537, %v5318_v3  ;;  %vm4304_vm6 = vcmp.ne.s16.totalorder %v762_v58, 0  ;;  %v3695_v58 = vld [vmem:[%s5288_s3 + $0x38] sm:$0xff]  }
  0xcd   : > { %v712_v18 = vmul.f32 %v705_v50, %v700_v62  ;;  %v713_v61 = vmul.f32 %v709_v40, %v700_v62  ;;  %v710_v20 = vmul.f32 %v705_v50, %v695_v42  ;;  %v711_v31 = vmul.f32 %v709_v40, %v695_v42  ;;  %v1699_v62 = vld [vmem:[%s5289_s4 + $0x18] sm:$0xff]  ;;  %v1698_v42 = vld [vmem:[%s5289_s4 + $0x10] sm:$0xff]  ;;  %5412 = vst [vmem:[#allocation2_spill] sm:$0xff] %v5411_v4 }
  0xce   : > { %5415 = vst [vmem:[#allocation3_spill] sm:$0xff] %v5414_v54  ;;  %v5421_v26 = vsel %vm4304_vm6, 4294967295, %v5420_v26  ;;  %vm4308_vm11 = vcmp.ne.s16.totalorder %v766_v60, 0  ;;  %v972_v2 = vrot.slane %v4289_v57, %v4264_v46  ;;  %v1079_v40 = vrot.slane %v1075_v6, %v3833_v7 }
  0xcf   : > { %v716_v23 = vadd.f32 %v712_v18, %v675_v15  ;;  %v717_v24 = vadd.f32 %v713_v61, %v676_v16  ;;  %v714_v25 = vadd.f32 %v710_v20, %v673_v17  ;;  %v715_v34 = vadd.f32 %v711_v31, %v674_v19  ;;  %5422 = vst [vmem:[#allocation4_spill] sm:$0xff] %v5421_v26  ;;  %v3692_v61 = vld [vmem:[%s5288_s3 + $0x18] sm:$0xff]  }
  0xd0   : > { %v5424_v33 = vsel %vm4308_vm11, 4294967295, %v5423_v33  ;;  %v1083_v15 = vrot.slane %v1075_v6, %v4264_v46  ;;  %v5432_v20 = vmov 0  ;;  %v5435_v31 = vmov 0 }
  0xd1   : > { %v732_v37 = vadd.f32 %v728_v35, %v716_v23  ;;  %v733_v10 = vadd.f32 %v728_v35, %v717_v24  ;;  %v730_v11 = vadd.f32 %v723_v36, %v714_v25  ;;  %v731_v53 = vadd.f32 %v723_v36, %v715_v34  ;;  %5425 = vst [vmem:[#allocation5_spill] sm:$0xff] %v5424_v33 }
  0xd2   : > { %vm4350_vm15 = vcmp.ne.s16.totalorder %v1083_v15, 0  ;;  %v5455_v60 = vmov 0 }
  0xd3   : > { %v736_v32 = vmax.f32 %v732_v37, 0.0  ;;  %v737_v13 = vmax.f32 %v733_v10, 0.0  ;;  %v734_v38 = vmax.f32 %v730_v11, 0.0  ;;  %v735_v12 = vmax.f32 %v731_v53, 0.0 }
  0xd4   : > { %v5436_v31 = vsel %vm4350_vm15, 4294967295, %v5435_v31  ;;  %v968_v10 = vrot.slane %v4289_v57, %v3833_v7  ;;  %v5440_v11 = vmov 0 }
  0xd5   : > { %v4211_v39 = vpack.c.bf16 %v736_v32, %v734_v38  ;;  %v4213_v43 = vpack.c.bf16 %v737_v13, %v735_v12  ;;  %5437 = vst [vmem:[#allocation8_spill] sm:$0xff] %v5436_v31 }
  0xd7   : > { %777 = vrot.lane.b32.xlu1 %v4211_v39, %s3754_s18  ;;  %775 = vrot.lane.b32.xlu0 %v4213_v43, %s3754_s18 }
  0xdb   : > { %744 = vrot.lane.b32.xlu1 %v4211_v39, %s3753_s15  ;;  %741 = vrot.lane.b32.xlu0 %v4213_v43, %s3753_s15 }
  0xdf   : > { %950 = vrot.lane.b32.xlu1 %v4211_v39, %s3755_s27  ;;  %948 = vrot.lane.b32.xlu0 %v4213_v43, %s3755_s27 }
  0xe3   : > { %1061 = vrot.lane.b32.xlu1 %v4211_v39, %s3756_s30  ;;  %1059 = vrot.lane.b32.xlu0 %v4213_v43, %s3756_s30 }
  0xe7   : > { %1254 = vrot.lane.b32.xlu1 %v4213_v43, %s3757_s17  ;;  %1252 = vrot.lane.b32.xlu0 %v4211_v39, %s3757_s17 }
  0xeb   : > { %1365 = vrot.lane.b32.xlu1 %v4213_v43, %s3758_s23  ;;  %1363 = vrot.lane.b32.xlu0 %v4211_v39, %s3758_s23 }
  0xef   : > { %1476 = vrot.lane.b32.xlu1 %v4213_v43, %s3759_s29  ;;  %1474 = vrot.lane.b32.xlu0 %v4211_v39, %s3759_s29 }
  0xf3   : > { %1587 = vrot.lane.b32.xlu1 %v4213_v43, %s3760_s12  ;;  %1585 = vrot.lane.b32.xlu0 %v4211_v39, %s3760_s12 }
  0xf7   : > { %1717 = vperm.xlu1 %3689, %v1699_v62   ;;  %1712 = vperm.xlu0 %3688, %v1698_v42   ;;  %v3694_v42 = vld [vmem:[%s5288_s3] sm:$0xff]  }
  0xfb   : > { %1707 = vperm.xlu1 %3689, %v1697_v44   ;;  %1702 = vperm.xlu0 %3688, %v1696_v45   ;;  %v5448_v44 = vmov 0 }
 0x149   : > { %v778_v63 = vpop.permute.xlu1 %777  ;;  %v776_v51 = vpop.permute.xlu0 %775 }
 0x14a   : > { %v780_v9 = vsel %vm5418_vm0, %v778_v63, %v776_v51  ;;  %v784_v21 = vsel %vm5419_vm4, %v776_v51, %v778_v63  ;;  %vm1267_vm0 = vmpackc.low %vm4121_vm1, %vm4097_vm2  ;;  %vm5426_vm4 = vcmask 72704   ;;  %vm4331_vm2 = vcmp.ne.s16.totalorder %v972_v2, 0 }
 0x14b   : > { %3387 = vmatprep.subr.msk.bf16.mxu0 %vm4278_vm13, %v780_v9  ;;  %v802_v0 = vsel %vm4282_vm5, %v784_v21, 0  ;;  %vm5427_vm9 = vmmov %vm5426_vm4  ;;  %v5429_v22 = vsel %vm4331_vm2, 4294967295, %v5428_v22  ;;  %v1268_v16 = vsel %vm1267_vm0, 65537, %v5318_v3  ;;  %vm5431_vm1 = vcmask 56320   ;;  %v3696_v9 = vld [vmem:[%s5288_s3 + $0x20] sm:$0xff]  }
 0x14c   : > { %841 = vmatpush1.bf16.msra.mxu0 %v802_v0  ;;  %5430 = vst [vmem:[#allocation6_spill] sm:$0xff] %v5429_v22  ;;  %v1272_v23 = vrot.slane %v1268_v16, %v3833_v7  ;;  %v1276_v24 = vrot.slane %v1268_v16, %v4264_v46  ;;  %vm5438_vm0 = vcmask 7168   ;;  %v5464_v2 = vmov 0 }
 0x14d   : > { %v745_v8 = vpop.permute.xlu1 %744  ;;  %v742_v55 = vpop.permute.xlu0 %741  ;;  %v5474_v16 = vmov 0 }
 0x14e   : > { %v747_v30 = vsel %vm5426_vm4, %v745_v8, %v742_v55  ;;  %v751_v14 = vsel %vm5427_vm9, %v742_v55, %v745_v8  ;;  %vm4346_vm9 = vcmp.ne.s16.totalorder %v1079_v40, 0  ;;  %vm5439_vm4 = vmmov %vm5438_vm0  ;;  %v3698_v8 = vld [vmem:[%s5288_s3 + $0x28] sm:$0xff]  }
 0x14f   : > { %v769_v50 = vsel %vm4304_vm6, %v751_v14, 0  ;;  %3388 = vmatmul.mubr.msk.bf16.vlgmr.msra.gmra.mxu0 %vm5309_vm12, %v3690_v1  ;;  %3392 = vmatprep.subr.msk.bf16.mxu0 %vm4308_vm11, %v747_v30  ;;  %v5433_v20 = vsel %vm4346_vm9, 4294967295, %v5432_v20  ;;  %v3697_v1 = vld [vmem:[%s5288_s3 + $0x50] sm:$0xff]  }
 0x150   : > { %3668 = vmatprep.subr.msk.bf16.mxu1 %vm4308_vm11, %v747_v30  ;;  %910 = vmatpush1.bf16.msra.mxu0 %v769_v50  ;;  %5434 = vst [vmem:[#allocation7_spill] sm:$0xff] %v5433_v20  ;;  %v3701_v30 = vld [vmem:[%s5288_s3 + $0x58] sm:$0xff]  }
 0x151   : > { %3669 = vmatpush1.bf16.msra.mxu1 %v769_v50  ;;  %v951_v17 = vpop.permute.xlu1 %950  ;;  %v949_v19 = vpop.permute.xlu0 %948  ;;  %868 = vmatprep.mubr.bf16.mxu0 %v5318_v3 }
 0x152   : > { %v953_v18 = vsel %vm5431_vm1, %v951_v17, %v949_v19  ;;  %vm1489_vm1 = vmpackc.low %vm4085_vm8, %vm4105_vm14  ;;  %vm4377_vm14 = vcmp.ne.s16.totalorder %v1276_v24, 0  ;;  %vm5446_vm8 = vcmask 1039360   ;;  %v3702_v24 = vld [vmem:[%s5288_s3 + $0x60] sm:$0xff]  }
 0x153   : > { %3401 = vmatprep.subr.msk.bf16.mxu0 %vm4331_vm2, %v953_v18  ;;  %v5444_v29 = vsel %vm4377_vm14, 4294967295, %v5443_v29  ;;  %v1490_v13 = vsel %vm1489_vm1, 65537, %v5318_v3  ;;  %vm5452_vm1 = vcmask 130048   ;;  %v3700_v18 = vld [vmem:[%s5288_s3 + $0x48] sm:$0xff]  }
 0x154   : > { %3394 = vmatmul.mubr.msk.bf16.vlgmr.msra.gmra.mxu1 %vm5309_vm12, %v3691_v5  ;;  %5445 = vst [vmem:[#allocation10_spill] sm:$0xff] %v5444_v29  ;;  %v1498_v48 = vrot.slane %v1490_v13, %v4264_v46  ;;  %v1494_v21 = vrot.slane %v1490_v13, %v3833_v7 }
 0x155   : > { %v1062_v25 = vpop.permute.xlu1 %1061  ;;  %v1060_v34 = vpop.permute.xlu0 %1059  ;;  %1141 = vmatprep.mubr.bf16.mxu1 %v5318_v3 }
 0x156   : > { %v1064_v35 = vsel %vm5438_vm0, %v1062_v25, %v1060_v34  ;;  %v1068_v36 = vsel %vm5439_vm4, %v1060_v34, %v1062_v25  ;;  %vm4370_vm0 = vcmp.ne.s16.totalorder %v1272_v23, 0  ;;  %vm5447_vm4 = vmmov %vm5446_vm8  ;;  %v3705_v23 = vld [vmem:[%s5288_s3 + $0x78] sm:$0xff]   ;;  %v5481_v25 = vmov 0 }
 0x157   : > { %v1086_v37 = vsel %vm4346_vm9, %v1068_v36, 0  ;;  %3389 = vmatmul.mubr.msk.bf16.gmra.mxu0 %vm5309_vm12, %v3692_v61  ;;  %3410 = vmatprep.subr.msk.bf16.mxu1 %vm4350_vm15, %v1064_v35  ;;  %v5441_v11 = vsel %vm4370_vm0, 4294967295, %v5440_v11  ;;  %vm4392_vm12 = vcmp.ne.s16.totalorder %v968_v10, 0  ;;  %vm5451_vm15 = vcmask 56320   ;;  %v3704_v35 = vld [vmem:[%s5288_s3 + $0x68] sm:$0xff]   ;;  %v3706_v36 = vld [vmem:[%s5288_s3 + $0x80] sm:$0xff]  }
 0x158   : > { %1124 = vmatpush1.bf16.msra.mxu1 %v1086_v37  ;;  %5442 = vst [vmem:[#allocation9_spill] sm:$0xff] %v5441_v11  ;;  %927 = vmatprep.mubr.bf16.mxu0 %v5318_v3  ;;  %v5449_v44 = vsel %vm4392_vm12, 4294967295, %v5448_v44  ;;  %v957_v45 = vsel %vm5451_vm15, %v949_v19, %v951_v17  ;;  %vm4410_vm15 = vcmp.ne.s16.totalorder %v1498_v48, 0  ;;  %v3703_v19 = vld [vmem:[%s5288_s3 + $0x70] sm:$0xff]   ;;  %v3707_v37 = vld [vmem:[%s5288_s3 + $0x88] sm:$0xff]  }
 0x159   : > { %v1255_v53 = vpop.permute.xlu1 %1254  ;;  %v1253_v32 = vpop.permute.xlu0 %1252  ;;  %5450 = vst [vmem:[#allocation11_spill] sm:$0xff] %v5449_v44  ;;  %v975_v49 = vsel %vm4392_vm12, %v957_v45, 0  ;;  %v5456_v60 = vsel %vm4410_vm15, 4294967295, %v5455_v60 }
 0x15a   : > { %v1257_v38 = vsel %vm5446_vm8, %v1253_v32, %v1255_v53  ;;  %v1261_v12 = vsel %vm5447_vm4, %v1255_v53, %v1253_v32  ;;  %vm5453_vm8 = vnez %v5399_v27  ;;  %5457 = vst [vmem:[#allocation12_spill] sm:$0xff] %v5456_v60 }
 0x15b   : > { %v1279_v62 = vsel %vm4370_vm0, %v1257_v38, 0  ;;  %3427 = vmatprep.subr.msk.bf16.mxu1 %vm4377_vm14, %v1261_v12  ;;  %vm1378_vm4 = vmpackc.low %vm5453_vm8, %vm4133_vm3  ;;  %vm5458_vm3 = vcmask 982016  }
 0x15c   : > { %3411 = vmatmul.mubr.msk.bf16.vlgmr.msra.gmra.mxu1 %vm5452_vm1, %v3693_v56  ;;  %vm5454_vm0 = vmmov %vm5452_vm1  ;;  %v1379_v41 = vsel %vm1378_vm4, 65537, %v5318_v3  ;;  %vm5463_vm4 = vcmask 990208  }
 0x15d   : > { %1317 = vmatpush1.bf16.msra.mxu1 %v1279_v62  ;;  %v1366_v28 = vpop.permute.xlu1 %1365  ;;  %v1364_v59 = vpop.permute.xlu0 %1363  ;;  %1151 = vmatprep.mubr.bf16.mxu1 %v5318_v3  ;;  %v1387_v57 = vrot.slane %v1379_v41, %v4264_v46  ;;  %vm5462_vm8 = vmmov %vm5454_vm0  ;;  %v1383_v55 = vrot.slane %v1379_v41, %v3833_v7 }
 0x15e   : > { %v1372_v0 = vsel %vm5463_vm4, %v1366_v28, %v1364_v59  ;;  %vm1600_vm4 = vmpackc.low %vm4199_vm10, %vm4193_vm7  ;;  %vm5472_vm10 = vcmask 990208  }
 0x15f   : > { %3393 = vmatmul.mubr.msk.bf16.vlgmr.msra.gmra.mxu0 %vm5454_vm0, %v3694_v42  ;;  %vm4427_vm1 = vcmp.ne.s16.totalorder %v1387_v57, 0  ;;  %v1601_v14 = vsel %vm1600_vm4, 65537, %v5318_v3  ;;  %v1368_v5 = vsel %vm5472_vm10, %v1364_v59, %v1366_v28 }
 0x160   : > { %1013 = vmatpush1.bf16.msra.mxu0 %v975_v49  ;;  %1030 = vmatprep.mubr.bf16.mxu0 %v5318_v3  ;;  %v1609_v50 = vrot.slane %v1601_v14, %v4264_v46  ;;  %v1605_v61 = vrot.slane %v1601_v14, %v3833_v7 }
 0x161   : > { %1205 = vmatprep.subr.bf16.mxu0 %v4213_v43  ;;  %v1477_v27 = vpop.permute.xlu1 %1476  ;;  %v1475_v63 = vpop.permute.xlu0 %1474  ;;  %v5459_v43 = vmov 0 }
 0x162   : > { %v1483_v51 = vsel %vm5458_vm3, %v1477_v27, %v1475_v63  ;;  %v5460_v43 = vsel %vm4427_vm1, 4294967295, %v5459_v43  ;;  %vm4438_vm3 = vcmp.ne.s16.totalorder %v1494_v21, 0 }
 0x163   : > { %3445 = vmatprep.subr.msk.bf16.mxu1 %vm4410_vm15, %v1483_v51  ;;  %5461 = vst [vmem:[#allocation13_spill] sm:$0xff] %v5460_v43  ;;  %v5465_v2 = vsel %vm4438_vm3, 4294967295, %v5464_v2 }
 0x164   : > { %3412 = vmatmul.mubr.msk.bf16.gmra.mxu1 %vm5454_vm0, %v3695_v58  ;;  %5466 = vst [vmem:[#allocation14_spill] sm:$0xff] %v5465_v2  ;;  %vm5467_vm0 = vcmask 982016  }
 0x165   : > { %1334 = vmatprep.mubr.bf16.mxu1 %v5318_v3  ;;  %v1479_v6 = vsel %vm5467_vm0, %v1475_v63, %v1477_v27  ;;  %vm5468_vm0 = vmmov %vm5462_vm8  ;;  %v1588_v40 = vpop.permute.xlu1 %1587  ;;  %v1586_v15 = vpop.permute.xlu0 %1585 }
 0x166   : > { %vm5473_vm7 = vmmov %vm5468_vm0 }
 0x167   : > { %3402 = vmatmul.mubr.msk.bf16.vlgmr.msra.gmra.mxu0 %vm5462_vm8, %v3696_v9  ;;  %vm5477_vm4 = vmmov %vm5473_vm7 }
 0x168   : > { %1206 = vmatpush1.bf16.msra.mxu0 %v4211_v39  ;;  %1040 = vmatprep.mubr.bf16.mxu0 %v5318_v3  ;;  %v1501_v39 = vsel %vm4438_vm3, %v1479_v6, 0  ;;  %vm5478_vm3 = vcmask 973824   ;;  %vm5479_vm10 = vmmov %vm5477_vm4 }
 0x169   : > { %3436 = vmatprep.subr.msk.bf16.mxu0 %vm4427_vm1, %v1372_v0  ;;  %v1594_v17 = vsel %vm5478_vm3, %v1588_v40, %v1586_v15  ;;  %vm4502_vm3 = vcmp.ne.s16.totalorder %v1605_v61, 0 }
 0x16a   : > { %v5482_v25 = vsel %vm4502_vm3, 4294967295, %v5481_v25 }
 0x16b   : > { %5483 = vst [vmem:[#allocation17_spill] sm:$0xff] %v5482_v25 }
 0x16c   : > { %3428 = vmatmul.mubr.msk.bf16.vlgmr.msra.gmra.mxu1 %vm5462_vm8, %v3697_v1  ;;  %vm4467_vm8 = vcmp.ne.s16.totalorder %v1383_v55, 0 }
 0x16d   : > { %1539 = vmatpush1.bf16.msra.mxu1 %v1501_v39  ;;  %1344 = vmatprep.mubr.bf16.mxu1 %v5318_v3  ;;  %v5470_v47 = vsel %vm4467_vm8, 4294967295, %v5469_v47  ;;  %v1390_v46 = vsel %vm4467_vm8, %v1368_v5, 0 }
 0x16e   : > { %5471 = vst [vmem:[#allocation15_spill] sm:$0xff] %v5470_v47 }
 0x16f   : > { %3403 = vmatmul.mubr.msk.bf16.gmra.mxu0 %vm5468_vm0, %v3698_v8  ;;  %vm4474_vm0 = vcmp.ne.s16.totalorder %v1609_v50, 0 }
 0x170   : > { %1223 = vmatprep.mubr.bf16.mxu0 %v5318_v3  ;;  %v5475_v16 = vsel %vm4474_vm0, 4294967295, %v5474_v16 }
 0x171   : > { %5476 = vst [vmem:[#allocation16_spill] sm:$0xff] %v5475_v16 }
 0x174   : > { %3429 = vmatmul.mubr.msk.bf16.gmra.mxu1 %vm5473_vm7, %v3701_v30  ;;  %vm5480_vm7 = vmmov %vm5477_vm4 }
 0x175   : > { %1556 = vmatprep.mubr.bf16.mxu1 %v5318_v3 }
 0x177   : > { %3419 = vmatmul.mubr.msk.bf16.vlgmr.msra.gmra.mxu0 %vm5477_vm4, %v3699_v52  ;;  %vm5484_vm4 = vcmask 973824  }
 0x178   : > { %1428 = vmatpush1.bf16.msra.mxu0 %v1390_v46  ;;  %1233 = vmatprep.mubr.bf16.mxu0 %v5318_v3  ;;  %v1590_v34 = vsel %vm5484_vm4, %v1586_v15, %v1588_v40 }
 0x179   : > { %3454 = vmatprep.subr.msk.bf16.mxu0 %vm4474_vm0, %v1594_v17  ;;  %v1612_v7 = vsel %vm4502_vm3, %v1590_v34, 0  ;;  %vm5486_vm0 = vmmov %vm5480_vm7 }
 0x17a   : > { %vm5487_vm4 = vmmov %vm5486_vm0 }
 0x17c   : > { %3446 = vmatmul.mubr.msk.bf16.vlgmr.msra.gmra.mxu1 %vm5479_vm10, %v3703_v19  ;;  %vm5485_vm10 = vmmov %vm5480_vm7 }
 0x17d   : > { %1566 = vmatprep.mubr.bf16.mxu1 %v5318_v3 }
 0x17f   : > { %3420 = vmatmul.mubr.msk.bf16.gmra.mxu0 %vm5480_vm7, %v3700_v18 }
 0x180   : > { %1445 = vmatprep.mubr.bf16.mxu0 %v5318_v3 }
 0x184   : > { %3447 = vmatmul.mubr.msk.bf16.gmra.mxu1 %vm5485_vm10, %v3705_v23  ;;  %vm5488_vm10 = vmmov %vm5486_vm0 }
 0x185   : > { %1874 = vmatprep.mubr.bf16.mxu1 %v5318_v3 }
 0x187   : > { %3437 = vmatmul.mubr.msk.bf16.vlgmr.msra.gmra.mxu0 %vm5480_vm7, %v3702_v24 }
 0x188   : > { %1650 = vmatpush1.bf16.msra.mxu0 %v1612_v7  ;;  %1455 = vmatprep.mubr.bf16.mxu0 %v5318_v3 }
 0x18f   : > { %3438 = vmatmul.mubr.msk.bf16.gmra.mxu0 %vm5486_vm0, %v3704_v35  ;;  %vm5497_vm0 = vcmask 64512  }
 0x190   : > { %1667 = vmatprep.mubr.bf16.mxu0 %v5318_v3  ;;  %vm5498_vm7 = vmmov %vm5497_vm0 }
 0x197   : > { %3455 = vmatmul.mubr.msk.bf16.vlgmr.msra.gmra.mxu0 %vm5487_vm4, %v3706_v36  ;;  %vm5501_vm4 = vmmov %vm5497_vm0 }
 0x198   : > { %1677 = vmatprep.mubr.bf16.mxu0 %v5318_v3 }
 0x19f   : > { %3456 = vmatmul.mubr.msk.bf16.gmra.mxu0 %vm5488_vm10, %v3707_v37  ;;  %vm5502_vm10 = vmmov %vm5497_vm0 }
 0x1a0   : > { %1979 = vmatprep.mubr.bf16.mxu0 %v5318_v3 }
 0x20f   : > { %v860_v10 = vpop.f32.mrf.mxu0 }
 0x211   : > { %v862_v56 = vpop.f32.mrf.mxu0 }
 0x213   : > { %v864_v53 = vpop.f32.mrf.mxu0 }
 0x214   : > { %v939_v32 = vpop.f32.mrf.mxu1 }
 0x215   : > { %v866_v13 = vpop.f32.mrf.mxu0 }
 0x216   : > { %v941_v38 = vpop.f32.mrf.mxu1 }
 0x217   : > { %v870_v12 = vpop.f32.mrf.mxu0 }
 0x218   : > { %v4528_v62 = vpop.f32.mrf.mxu1  ;;  %v940_v26 = vadd.f32 %v939_v32, %v870_v12 }
 0x219   : > { %v872_v42 = vpop.f32.mrf.mxu0 }
 0x21a   : > { %v4530_v45 = vpop.f32.mrf.mxu1 }
 0x21b   : > { %v874_v48 = vpop.f32.mrf.mxu0 }
 0x21c   : > { %v1143_v28 = vpop.f32.mrf.mxu1 }
 0x21d   : > { %v4532_v59 = vpop.f32.mrf.mxu0 }
 0x21e   : > { %v1145_v49 = vpop.f32.mrf.mxu1 }
 0x21f   : > { %v929_v58 = vpop.f32.mrf.mxu0 }
 0x220   : > { %v1147_v41 = vpop.f32.mrf.mxu1  ;;  %v930_v3 = vadd.f32 %v929_v58, %v860_v10 }
 0x221   : > { %v931_v27 = vpop.f32.mrf.mxu0 }
 0x222   : > { %v1149_v63 = vpop.f32.mrf.mxu1  ;;  %v932_v16 = vadd.f32 %v931_v27, %v862_v56 }
 0x223   : > { %v933_v51 = vpop.f32.mrf.mxu0 }
 0x224   : > { %v1153_v57 = vpop.f32.mrf.mxu1  ;;  %v934_v11 = vadd.f32 %v933_v51, %v864_v53 }
 0x225   : > { %v935_v9 = vpop.f32.mrf.mxu0 }
 0x226   : > { %v4534_v21 = vpop.f32.mrf.mxu1  ;;  %v936_v20 = vadd.f32 %v935_v9, %v866_v13 }
 0x227   : > { %v1032_v0 = vpop.f32.mrf.mxu0 }
 0x228   : > { %v4536_v1 = vpop.f32.mrf.mxu1  ;;  %v1051_v47 = vadd.f32 %v1032_v0, %v930_v3  ;;  %v944_v3 = vadd.f32 %v4528_v62, %v874_v48  ;;  %v1713_v62 = vpop.permute.xlu0 %1712 }
 0x229   : > { %v1034_v6 = vpop.f32.mrf.mxu0 }
 0x22a   : > { %v4538_v8 = vpop.f32.mrf.mxu1  ;;  %v1052_v43 = vadd.f32 %v1034_v6, %v932_v16  ;;  %v1162_v22 = vadd.f32 %v1143_v28, %v1051_v47 }
 0x22b   : > { %v1036_v39 = vpop.f32.mrf.mxu0 }
 0x22c   : > { %v1336_v55 = vpop.f32.mrf.mxu1  ;;  %v1053_v44 = vadd.f32 %v1036_v39, %v934_v11  ;;  %v1163_v4 = vadd.f32 %v1145_v49, %v1052_v43  ;;  %v946_v11 = vadd.f32 %v4530_v45, %v4532_v59  ;;  %v1718_v59 = vpop.permute.xlu1 %1717 }
 0x22d   : > { %v1038_v30 = vpop.f32.mrf.mxu0 }
 0x22e   : > { %v1338_v14 = vpop.f32.mrf.mxu1  ;;  %v1054_v54 = vadd.f32 %v1038_v30, %v936_v20  ;;  %v1164_v58 = vadd.f32 %v1147_v41, %v1053_v44 }
 0x22f   : > { %v1042_v50 = vpop.f32.mrf.mxu0 }
 0x230   : > { %v1340_v52 = vpop.f32.mrf.mxu1  ;;  %v1165_v27 = vadd.f32 %v1149_v63, %v1054_v54 }
 0x231   : > { %v1044_v5 = vpop.f32.mrf.mxu0 }
 0x232   : > { %v4540_v40 = vpop.f32.mrf.mxu1 }
 0x233   : > { %v1046_v15 = vpop.f32.mrf.mxu0 }
 0x234   : > { %v4542_v17 = vpop.f32.mrf.mxu1  ;;  %v1057_v47 = vadd.f32 %v1046_v15, %v944_v3 }
 0x235   : > { %v1048_v46 = vpop.f32.mrf.mxu0  ;;  %5489 = vst [vmem:[#allocation18_spill] sm:$0xff] %v4542_v17  ;;  %v1055_v17 = vadd.f32 %v1042_v50, %v940_v26 }
 0x236   : > { %v4544_v61 = vpop.f32.mrf.mxu1  ;;  %v1168_v28 = vadd.f32 %v4536_v1, %v1057_v47 }
 0x237   : > { %v1225_v19 = vpop.f32.mrf.mxu0  ;;  %5490 = vst [vmem:[#allocation19_spill] sm:$0xff] %v4544_v61 }
 0x238   : > { %v4546_v34 = vpop.f32.mrf.mxu1 }
 0x239   : > { %v1227_v18 = vpop.f32.mrf.mxu0  ;;  %5491 = vst [vmem:[#allocation20_spill] sm:$0xff] %v4546_v34  ;;  %v1244_v34 = vadd.f32 %v1225_v19, %v1162_v22  ;;  %v1166_v22 = vadd.f32 %v1153_v57, %v1055_v17 }
 0x23a   : > { %v4548_v36 = vpop.f32.mrf.mxu1  ;;  %v1245_v56 = vadd.f32 %v1227_v18, %v1163_v4  ;;  %v1058_v4 = vadd.f32 %v1048_v46, %v946_v11  ;;  %v1708_v18 = vpop.permute.xlu1 %1707 }
 0x23b   : > { %v1229_v23 = vpop.f32.mrf.mxu0  ;;  %5492 = vst [vmem:[#allocation21_spill] sm:$0xff] %v4548_v36  ;;  %v942_v36 = vadd.f32 %v941_v38, %v872_v42  ;;  %v1355_v51 = vadd.f32 %v1336_v55, %v1244_v34 }
 0x23c   : > { %v1558_v2 = vpop.f32.mrf.mxu1  ;;  %v1246_v13 = vadd.f32 %v1229_v23, %v1164_v58  ;;  %v1356_v32 = vadd.f32 %v1338_v14, %v1245_v56  ;;  %v5493_v6 = vld [vmem:[#allocation18_spill] sm:$0xff] }
 0x23d   : > { %v1231_v24 = vpop.f32.mrf.mxu0  ;;  %v1056_v53 = vadd.f32 %v1044_v5, %v942_v36 }
 0x23e   : > { %v1560_v31 = vpop.f32.mrf.mxu1  ;;  %v1247_v38 = vadd.f32 %v1231_v24, %v1165_v27  ;;  %v1357_v42 = vadd.f32 %v1340_v52, %v1246_v13 }
 0x23f   : > { %v1235_v7 = vpop.f32.mrf.mxu0  ;;  %v1167_v26 = vadd.f32 %v4534_v21, %v1056_v53 }
 0x240   : > { %v1562_v10 = vpop.f32.mrf.mxu1  ;;  %v1248_v48 = vadd.f32 %v1235_v7, %v1166_v22  ;;  %v1358_v63 = vadd.f32 %v4540_v40, %v1247_v38  ;;  %v1703_v40 = vpop.permute.xlu0 %1702 }
 0x241   : > { %v1237_v35 = vpop.f32.mrf.mxu0 }
 0x242   : > { %v1564_v43 = vpop.f32.mrf.mxu1  ;;  %v1249_v49 = vadd.f32 %v1237_v35, %v1167_v26  ;;  %v1359_v39 = vadd.f32 %v5493_v6, %v1248_v48  ;;  %v3076_v6 = vld [vmem:[%s5291_s6 + $0x10] sm:$0xff] }
 0x243   : > { %v1239_v37 = vpop.f32.mrf.mxu0 }
 0x244   : > { %v1568_v41 = vpop.f32.mrf.mxu1  ;;  %v1250_v0 = vadd.f32 %v1239_v37, %v1168_v28 }
 0x245   : > { %v1241_v25 = vpop.f32.mrf.mxu0 }
 0x246   : > { %v1570_v52 = vpop.f32.mrf.mxu1 }
 0x247   : > { %v1447_v60 = vpop.f32.mrf.mxu0 }
 0x248   : > { %v1466_v12 = vadd.f32 %v1447_v60, %v1355_v51  ;;  %v1169_v60 = vadd.f32 %v4538_v8, %v1058_v4  ;;  %v1572_v35 = vpop.f32.mrf.mxu1 }
 0x249   : > { %v1449_v29 = vpop.f32.mrf.mxu0 }
 0x24a   : > { %v1467_v54 = vadd.f32 %v1449_v29, %v1356_v32  ;;  %v1577_v57 = vadd.f32 %v1558_v2, %v1466_v12  ;;  %v5494_v29 = vld [vmem:[#allocation19_spill] sm:$0xff]  ;;  %v1251_v1 = vadd.f32 %v1241_v25, %v1169_v60  ;;  %v5495_v2 = vld [vmem:[#allocation20_spill] sm:$0xff]  ;;  %v1574_v47 = vpop.f32.mrf.mxu1 }
 0x24b   : > { %v1451_v33 = vpop.f32.mrf.mxu0  ;;  %v1360_v50 = vadd.f32 %v5494_v29, %v1249_v49 }
 0x24c   : > { %v1468_v9 = vadd.f32 %v1451_v33, %v1357_v42  ;;  %v1578_v55 = vadd.f32 %v1560_v31, %v1467_v54  ;;  %v1361_v33 = vadd.f32 %v5495_v2, %v1250_v0  ;;  %v5496_v31 = vld [vmem:[#allocation21_spill] sm:$0xff] }
 0x24d   : > { %v1453_v61 = vpop.f32.mrf.mxu0 }
 0x24e   : > { %v1469_v30 = vadd.f32 %v1453_v61, %v1358_v63  ;;  %v1579_v15 = vadd.f32 %v1562_v10, %v1468_v9  ;;  %v1362_v61 = vadd.f32 %v5496_v31, %v1251_v1 }
 0x24f   : > { %v1457_v16 = vpop.f32.mrf.mxu0 }
 0x250   : > { %v1470_v46 = vadd.f32 %v1457_v16, %v1359_v39  ;;  %v1580_v23 = vadd.f32 %v1564_v43, %v1469_v30  ;;  %v3079_v39 = vld [vmem:[%s5291_s6 + $0x28] sm:$0xff]  ;;  %v3081_v30 = vld [vmem:[%s5291_s6 + $0x38] sm:$0xff] }
 0x251   : > { %v1459_v20 = vpop.f32.mrf.mxu0 }
 0x252   : > { %v1471_v19 = vadd.f32 %v1459_v20, %v1360_v50  ;;  %v1581_v25 = vadd.f32 %v1568_v41, %v1470_v46 }
 0x253   : > { %v1461_v44 = vpop.f32.mrf.mxu0 }
 0x254   : > { %v1472_v7 = vadd.f32 %v1461_v44, %v1361_v33  ;;  %v1582_v56 = vadd.f32 %v1570_v52, %v1471_v19 }
 0x255   : > { %v1463_v45 = vpop.f32.mrf.mxu0 }
 0x256   : > { %v1473_v3 = vadd.f32 %v1463_v45, %v1362_v61  ;;  %v1583_v11 = vadd.f32 %v1572_v35, %v1472_v7 }
 0x257   : > { %v1669_v21 = vpop.f32.mrf.mxu0 }
 0x258   : > { %v1688_v14 = vadd.f32 %v1669_v21, %v1577_v57  ;;  %v1584_v26 = vadd.f32 %v1574_v47, %v1473_v3  ;;  %v3077_v21 = vld [vmem:[%s5291_s6 + $0x18] sm:$0xff]  ;;  %v3725_v47 = vld [vmem:[%s5290_s5 + $0x88] sm:$0xff]  }
 0x259   : > { %v1671_v5 = vpop.f32.mrf.mxu0 }
 0x25a   : > { %v1689_v17 = vadd.f32 %v1671_v5, %v1578_v55  ;;  %v1720_v24 = vadd.f32 %v1703_v40, %v1688_v14  ;;  %v3078_v55 = vld [vmem:[%s5291_s6 + $0x20] sm:$0xff]  ;;  %v3080_v14 = vld [vmem:[%s5291_s6 + $0x30] sm:$0xff] }
 0x25b   : > { %v1673_v8 = vpop.f32.mrf.mxu0 }
 0x25c   : > { %v1690_v34 = vadd.f32 %v1673_v8, %v1579_v15  ;;  %v1721_v37 = vadd.f32 %v1703_v40, %v1689_v17  ;;  %v1728_v16 = vmax.f32 %v1720_v24, 0.0 }
 0x25d   : > { %v1675_v36 = vpop.f32.mrf.mxu0 }
 0x25e   : > { %v1722_v58 = vadd.f32 %v1708_v18, %v1690_v34  ;;  %v1691_v10 = vadd.f32 %v1675_v36, %v1580_v23  ;;  %v1729_v20 = vmax.f32 %v1721_v37, 0.0  ;;  %v5503_v34 = vmov 0   ;;  %v3722_v37 = vld [vmem:[%s5290_s5 + $0x70] sm:$0xff]  }
 0x25f   : > { %v1679_v53 = vpop.f32.mrf.mxu0 }
 0x260   : > { %v1730_v27 = vmax.f32 %v1722_v58, 0.0  ;;  %v1723_v51 = vadd.f32 %v1708_v18, %v1691_v10  ;;  %v1692_v13 = vadd.f32 %v1679_v53, %v1581_v25  ;;  %v3708_v18 = vld [vmem:[%s5290_s5 + $0x20] sm:$0xff]   ;;  %v3709_v58 = vld [vmem:[%s5290_s5 + $0x28] sm:$0xff]  }
 0x261   : > { %v1681_v43 = vpop.f32.mrf.mxu0 }
 0x262   : > { %v4561_v22 = vpack.c.bf16 %v1730_v27, %v1728_v16  ;;  %v1731_v32 = vmax.f32 %v1723_v51, 0.0  ;;  %v1693_v38 = vadd.f32 %v1681_v43, %v1582_v56  ;;  %v1724_v44 = vadd.f32 %v1713_v62, %v1692_v13  ;;  %v3710_v43 = vld [vmem:[%s5290_s5] sm:$0xff]  }
 0x263   : > { %v1683_v12 = vpop.f32.mrf.mxu0 }
 0x264   : > { %v4563_v4 = vpack.c.bf16 %v1731_v32, %v1729_v20  ;;  %v1694_v42 = vadd.f32 %v1683_v12, %v1583_v11  ;;  %v1725_v54 = vadd.f32 %v1713_v62, %v1693_v38  ;;  %v1732_v41 = vmax.f32 %v1724_v44, 0.0  ;;  %v3075_v62 = vld [vmem:[%s5291_s6 + $0x8] sm:$0xff]  ;;  %v3711_v44 = vld [vmem:[%s5290_s5 + $0x30] sm:$0xff]  }
 0x265   : > { %v1685_v48 = vpop.f32.mrf.mxu0 }
 0x266   : > { %v1726_v28 = vadd.f32 %v1718_v59, %v1694_v42  ;;  %v1695_v49 = vadd.f32 %v1685_v48, %v1584_v26  ;;  %v1733_v57 = vmax.f32 %v1725_v54, 0.0 }
 0x268   : > { %v1734_v45 = vmax.f32 %v1726_v28, 0.0  ;;  %v1727_v63 = vadd.f32 %v1718_v59, %v1695_v49  ;;  %v3074_v59 = vld [vmem:[%s5291_s6] sm:$0xff] }
 0x26a   : > { %v4565_v9 = vpack.c.bf16 %v1734_v45, %v1732_v41  ;;  %v1735_v60 = vmax.f32 %v1727_v63, 0.0  ;;  %v5519_v45 = vld [vmem:[#allocation8_spill] sm:$0xff]  ;;  %v3712_v63 = vld [vmem:[%s5290_s5 + $0x8] sm:$0xff]  }
 0x26c   : > { %v4567_v0 = vpack.c.bf16 %v1735_v60, %v1733_v57  ;;  %1782 = vrot.lane.b32.xlu1 %v4565_v9, %s3754_s18 }
 0x26e   : > { %1778 = vrot.lane.b32.xlu0 %v4567_v0, %s3754_s18 }
 0x270   : > { %1780 = vrot.lane.b32.xlu1 %v4561_v22, %s3754_s18 }
 0x272   : > { %1776 = vrot.lane.b32.xlu0 %v4563_v4, %s3754_s18 }
 0x274   : > { %1750 = vrot.lane.b32.xlu1 %v4565_v9, %s3753_s15 }
 0x276   : > { %1742 = vrot.lane.b32.xlu0 %v4563_v4, %s3753_s15 }
 0x278   : > { %2026 = vrot.lane.b32.xlu1 %v4565_v9, %s3755_s27 }
 0x27a   : > { %1744 = vrot.lane.b32.xlu0 %v4567_v0, %s3753_s15 }
 0x27c   : > { %1748 = vrot.lane.b32.xlu1 %v4561_v22, %s3753_s15 }
 0x27e   : > { %2022 = vrot.lane.b32.xlu0 %v4567_v0, %s3755_s27 }
 0x280   : > { %2024 = vrot.lane.b32.xlu1 %v4561_v22, %s3755_s27 }
 0x282   : > { %2020 = vrot.lane.b32.xlu0 %v4563_v4, %s3755_s27 }
 0x284   : > { %2180 = vrot.lane.b32.xlu1 %v4565_v9, %s3756_s30 }
 0x286   : > { %2176 = vrot.lane.b32.xlu0 %v4567_v0, %s3756_s30 }
 0x288   : > { %2178 = vrot.lane.b32.xlu1 %v4561_v22, %s3756_s30 }
 0x28a   : > { %2174 = vrot.lane.b32.xlu0 %v4563_v4, %s3756_s30 }
 0x28c   : > { %2460 = vrot.lane.b32.xlu1 %v4563_v4, %s3757_s17 }
 0x28e   : > { %2462 = vrot.lane.b32.xlu0 %v4565_v9, %s3757_s17 }
 0x290   : > { %2464 = vrot.lane.b32.xlu1 %v4567_v0, %s3757_s17 }
 0x292   : > { %2616 = vrot.lane.b32.xlu0 %v4565_v9, %s3758_s23 }
 0x294   : > { %2618 = vrot.lane.b32.xlu1 %v4567_v0, %s3758_s23 }
 0x296   : > { %2458 = vrot.lane.b32.xlu0 %v4561_v22, %s3757_s17  ;;  %s3651_s17 = sshll.u32 %s5611_s25, 7 }
 0x298   : > { %2614 = vrot.lane.b32.xlu1 %v4563_v4, %s3758_s23 }
 0x29a   : > { %2612 = vrot.lane.b32.xlu0 %v4561_v22, %s3758_s23 }
 0x29c   : > { %2768 = vrot.lane.b32.xlu1 %v4563_v4, %s3759_s29 }
 0x29e   : > { %2770 = vrot.lane.b32.xlu0 %v4565_v9, %s3759_s29 }
 0x2a0   : > { %2772 = vrot.lane.b32.xlu1 %v4567_v0, %s3759_s29 }
 0x2a2   : > { %2924 = vrot.lane.b32.xlu0 %v4565_v9, %s3760_s12 }
 0x2a4   : > { %2926 = vrot.lane.b32.xlu1 %v4567_v0, %s3760_s12 }
 0x2a6   : > { %2766 = vrot.lane.b32.xlu0 %v4561_v22, %s3759_s29  ;;  %s5155_s29 = scalar_lea.vmem %s5292_s7, %s3651_s17 }
 0x2a8   : > { %2922 = vrot.lane.b32.xlu1 %v4563_v4, %s3760_s12 }
 0x2aa   : > { %2920 = vrot.lane.b32.xlu0 %v4561_v22, %s3760_s12 }
 0x2ac   : > { %3089 = vperm.xlu1 %3689, %v3075_v62  }
 0x2ae   : > { %3084 = vperm.xlu0 %3688, %v3074_v59  }
 0x2b0   : > { %3099 = vperm.xlu1 %3689, %v3077_v21   ;;  %v3713_v21 = vld [vmem:[%s5290_s5 + $0x38] sm:$0xff]  }
 0x2b2   : > { %3094 = vperm.xlu0 %3688, %v3076_v6  }
 0x2b4   : > { %3109 = vperm.xlu1 %3689, %v3079_v39  }
 0x2b6   : > { %3104 = vperm.xlu0 %3688, %v3078_v55   ;;  %v3714_v55 = vld [vmem:[%s5290_s5 + $0x10] sm:$0xff]  }
 0x2b8   : > { %3119 = vperm.xlu1 %3689, %v3081_v30  }
 0x2ba   : > { %3114 = vperm.xlu0 %3688, %v3080_v14   ;;  %v3734_v14 = vld [vmem:[%s5290_s5 + $0xe0] sm:$0xff]  }
 0x2de   : > { %v1783_v29 = vpop.permute.xlu1 %1782 }
 0x2e0   : > { %v1779_v50 = vpop.permute.xlu0 %1778 }
 0x2e1   : > { %v1785_v1 = vsel %vm5497_vm0, %v1783_v29, %v1779_v50  ;;  %v1794_v52 = vsel %vm5498_vm7, %v1779_v50, %v1783_v29  ;;  %vm1829_vm0 = vcmask 261120   ;;  %vm5504_vm7 = vcmask 72704   ;;  %v3715_v50 = vld [vmem:[%s5290_s5 + $0x40] sm:$0xff]  }
 0x2e2   : > { %v1798_v15 = vsel %vm4282_vm5, %v1794_v52, 0  ;;  %v1781_v46 = vpop.permute.xlu1 %1780  ;;  %3469 = vmatprep.subr.msk.bf16.mxu1 %vm4278_vm13, %v1785_v1  ;;  %v3716_v52 = vld [vmem:[%s5290_s5 + $0x18] sm:$0xff]  }
 0x2e3   : > { %1855 = vmatpush1.bf16.msra.mxu1 %v1798_v15 }
 0x2e4   : > { %v1777_v40 = vpop.permute.xlu0 %1776 }
 0x2e5   : > { %v1784_v2 = vsel %vm5501_vm4, %v1781_v46, %v1777_v40  ;;  %v1790_v33 = vsel %vm5502_vm10, %v1777_v40, %v1781_v46  ;;  %vm5510_vm10 = vcmask 56320   ;;  %v3717_v46 = vld [vmem:[%s5290_s5 + $0x48] sm:$0xff]   ;;  %v3743_v40 = vld [vmem:[%s5290_s5 + $0x118] sm:$0xff]  }
 0x2e6   : > { %v1796_v19 = vsel %vm4282_vm5, %v1790_v33, 0  ;;  %v1751_v8 = vpop.permute.xlu1 %1750  ;;  %3470 = vmatprep.subr.msk.bf16.mxu1 %vm4278_vm13, %v1784_v2  ;;  %vm5505_vm5 = vmmov %vm5504_vm7 }
 0x2e7   : > { %1857 = vmatpush1.bf16.msra.mxu1 %v1796_v19  ;;  %vm5508_vm13 = vmmov %vm5505_vm5  ;;  %v5528_v19 = vld [vmem:[#allocation9_spill] sm:$0xff] }
 0x2e8   : > { %v1743_v23 = vpop.permute.xlu0 %1742  ;;  %vm5509_vm4 = vmmov %vm5505_vm5 }
 0x2ea   : > { %v2027_v24 = vpop.permute.xlu1 %2026  ;;  %3471 = vmatmul.mubr.msk.bf16.vlgmr.msra.gmra.mxu1 %vm1829_vm0, %v3708_v18 }
 0x2eb   : > { %1884 = vmatprep.mubr.bf16.mxu1 %v5503_v34 }
 0x2ec   : > { %v1745_v31 = vpop.permute.xlu0 %1744 }
 0x2ed   : > { %v1753_v61 = vsel %vm5504_vm7, %v1751_v8, %v1745_v31  ;;  %v1762_v7 = vsel %vm5505_vm5, %v1745_v31, %v1751_v8  ;;  %vm5511_vm7 = vmmov %vm5510_vm10  ;;  %vm5516_vm5 = vcmask 7168   ;;  %v3719_v8 = vld [vmem:[%s5290_s5 + $0x50] sm:$0xff]  }
 0x2ee   : > { %v1766_v36 = vsel %vm4304_vm6, %v1762_v7, 0  ;;  %v1749_v25 = vpop.permute.xlu1 %1748  ;;  %3479 = vmatprep.subr.msk.bf16.mxu0 %vm4308_vm11, %v1753_v61  ;;  %v3720_v7 = vld [vmem:[%s5290_s5 + $0x68] sm:$0xff]  }
 0x2ef   : > { %v1752_v10 = vsel %vm5508_vm13, %v1749_v25, %v1743_v23  ;;  %v1758_v56 = vsel %vm5509_vm4, %v1743_v23, %v1749_v25  ;;  %1960 = vmatpush1.bf16.msra.mxu0 %v1766_v36  ;;  %vm5517_vm13 = vmmov %vm5516_vm5  ;;  %v3721_v25 = vld [vmem:[%s5290_s5 + $0x58] sm:$0xff]  }
 0x2f0   : > { %3480 = vmatprep.subr.msk.bf16.mxu0 %vm4308_vm11, %v1752_v10  ;;  %v2023_v3 = vpop.permute.xlu0 %2022  ;;  %v1764_v27 = vsel %vm4304_vm6, %v1758_v56, 0  ;;  %vm5514_vm11 = vmmov %vm5511_vm7 }
 0x2f1   : > { %v2029_v53 = vsel %vm5510_vm10, %v2027_v24, %v2023_v3  ;;  %v2038_v16 = vsel %vm5511_vm7, %v2023_v3, %v2027_v24  ;;  %vm5515_vm6 = vmmov %vm5511_vm7  ;;  %vm5525_vm10 = vcmask 990208  }
 0x2f2   : > { %v2042_v13 = vsel %vm4392_vm12, %v2038_v16, 0  ;;  %v2025_v11 = vpop.permute.xlu1 %2024  ;;  %3472 = vmatmul.mubr.msk.bf16.gmra.mxu1 %vm1829_vm0, %v3709_v58  ;;  %3497 = vmatprep.subr.msk.bf16.mxu1 %vm4331_vm2, %v2029_v53  ;;  %v3723_v58 = vld [vmem:[%s5290_s5 + $0x80] sm:$0xff]   ;;  %v3724_v53 = vld [vmem:[%s5290_s5 + $0x78] sm:$0xff]  }
 0x2f3   : > { %1962 = vmatpush1.bf16.msra.mxu0 %v1764_v27  ;;  %2098 = vmatpush1.bf16.msra.mxu1 %v2042_v13 }
 0x2f4   : > { %v2021_v20 = vpop.permute.xlu0 %2020  ;;  %1894 = vmatprep.mubr.bf16.mxu1 %v5503_v34 }
 0x2f5   : > { %v2028_v32 = vsel %vm5514_vm11, %v2025_v11, %v2021_v20  ;;  %v2034_v38 = vsel %vm5515_vm6, %v2021_v20, %v2025_v11  ;;  %vm5529_vm11 = vnez %v5528_v19  ;;  %v5539_v20 = vld [vmem:[#allocation16_spill] sm:$0xff] }
 0x2f6   : > { %v2040_v12 = vsel %vm4392_vm12, %v2034_v38, 0  ;;  %v2181_v26 = vpop.permute.xlu1 %2180  ;;  %3481 = vmatmul.mubr.msk.bf16.vlgmr.msra.gmra.mxu0 %vm1829_vm0, %v3710_v43  ;;  %3498 = vmatprep.subr.msk.bf16.mxu1 %vm4331_vm2, %v2028_v32  ;;  %vm5520_vm12 = vnez %v5519_v45  ;;  %vm5521_vm2 = vmmov %vm5516_vm5  ;;  %v3726_v32 = vld [vmem:[%s5290_s5 + $0xa0] sm:$0xff]   ;;  %v3730_v45 = vld [vmem:[%s5290_s5 + $0xb0] sm:$0xff]  }
 0x2f7   : > { %2100 = vmatpush1.bf16.msra.mxu1 %v2040_v12  ;;  %1989 = vmatprep.mubr.bf16.mxu0 %v5503_v34  ;;  %vm5522_vm4 = vmmov %vm5521_vm2 }
 0x2f8   : > { %2381 = vmatprep.subr.bf16.mxu1 %v4567_v0  ;;  %v2177_v42 = vpop.permute.xlu0 %2176 }
 0x2f9   : > { %v2183_v48 = vsel %vm5516_vm5, %v2181_v26, %v2177_v42  ;;  %v2192_v54 = vsel %vm5517_vm13, %v2177_v42, %v2181_v26  ;;  %vm5532_vm13 = vcmask 982016   ;;  %v5542_v26 = vld [vmem:[#allocation14_spill] sm:$0xff]  ;;  %v3727_v42 = vld [vmem:[%s5290_s5 + $0x90] sm:$0xff]  }
 0x2fa   : > { %v2196_v49 = vsel %vm4346_vm9, %v2192_v54, 0  ;;  %v2179_v41 = vpop.permute.xlu1 %2178  ;;  %3473 = vmatmul.mubr.msk.bf16.gmra.mxu1 %vm1829_vm0, %v3711_v44  ;;  %3515 = vmatprep.subr.msk.bf16.mxu0 %vm5520_vm12, %v2183_v48 }
 0x2fb   : > { %2252 = vmatpush1.bf16.msra.mxu0 %v2196_v49  ;;  %1904 = vmatprep.mubr.bf16.mxu1 %v5503_v34  ;;  %v3728_v49 = vld [vmem:[%s5290_s5 + $0xa8] sm:$0xff]  }
 0x2fc   : > { %v2175_v57 = vpop.permute.xlu0 %2174 }
 0x2fd   : > { %v2182_v60 = vsel %vm5521_vm2, %v2179_v41, %v2175_v57  ;;  %v2188_v0 = vsel %vm5522_vm4, %v2175_v57, %v2179_v41  ;;  %vm5537_vm2 = vmmov %vm5525_vm10  ;;  %vm5538_vm4 = vcmask 973824   ;;  %v3729_v41 = vld [vmem:[%s5290_s5 + $0x98] sm:$0xff]  }
 0x2fe   : > { %v2194_v62 = vsel %vm4346_vm9, %v2188_v0, 0  ;;  %v2461_v59 = vpop.permute.xlu1 %2460  ;;  %3482 = vmatmul.mubr.msk.bf16.gmra.mxu0 %vm1829_vm0, %v3712_v63  ;;  %3516 = vmatprep.subr.msk.bf16.mxu0 %vm5520_vm12, %v2182_v60  ;;  %vm5523_vm9 = vcmask 1039360   ;;  %vm5536_vm12 = vmmov %vm5525_vm10  ;;  %v3731_v63 = vld [vmem:[%s5290_s5 + $0xc0] sm:$0xff]  }
 0x2ff   : > { %2254 = vmatpush1.bf16.msra.mxu0 %v2194_v62  ;;  %1999 = vmatprep.mubr.bf16.mxu0 %v5503_v34  ;;  %vm5527_vm7 = vmmov %vm5523_vm9 }
 0x300   : > { %v2463_v6 = vpop.permute.xlu0 %2462  ;;  %vm5530_vm6 = vmmov %vm5527_vm7 }
 0x301   : > { %vm5531_vm5 = vmmov %vm5530_vm6 }
 0x302   : > { %v2465_v39 = vpop.permute.xlu1 %2464  ;;  %3474 = vmatmul.mubr.msk.bf16.gmra.mxu1 %vm1829_vm0, %v3713_v21  ;;  %v3732_v21 = vld [vmem:[%s5290_s5 + $0xb8] sm:$0xff]  }
 0x303   : > { %v2476_v30 = vsel %vm5523_vm9, %v2465_v39, %v2463_v6  ;;  %2117 = vmatprep.mubr.bf16.mxu1 %v5503_v34  ;;  %v2467_v2 = vsel %vm5527_vm7, %v2463_v6, %v2465_v39  ;;  %vm5540_vm9 = vnez %v5539_v20 }
 0x304   : > { %3549 = vmatprep.subr.msk.bf16.mxu0 %vm4377_vm14, %v2476_v30  ;;  %v2617_v1 = vpop.permute.xlu0 %2616  ;;  %v3733_v30 = vld [vmem:[%s5290_s5 + $0xc8] sm:$0xff]  }
 0x306   : > { %v2619_v29 = vpop.permute.xlu1 %2618  ;;  %3483 = vmatmul.mubr.msk.bf16.gmra.mxu0 %vm1829_vm0, %v3714_v55 }
 0x307   : > { %2009 = vmatprep.mubr.bf16.mxu0 %v5503_v34  ;;  %v2630_v17 = vsel %vm5525_vm10, %v2619_v29, %v2617_v1 }
 0x308   : > { %v2459_v15 = vpop.permute.xlu0 %2458 }
 0x309   : > { %v2466_v18 = vsel %vm5530_vm6, %v2459_v15, %v2461_v59  ;;  %v2472_v23 = vsel %vm5531_vm5, %v2461_v59, %v2459_v15  ;;  %vm5549_vm6 = vmmov %vm5538_vm4  ;;  %v3740_v15 = vld [vmem:[%s5290_s5 + $0xf8] sm:$0xff]  }
 0x30a   : > { %3499 = vmatmul.mubr.msk.bf16.vlgmr.msra.gmra.mxu1 %vm1829_vm0, %v3715_v50  ;;  %v2615_v5 = vpop.permute.xlu1 %2614  ;;  %v2478_v31 = vsel %vm5529_vm11, %v2466_v18, 0  ;;  %v3736_v50 = vld [vmem:[%s5290_s5 + $0xe8] sm:$0xff]  }
 0x30b   : > { %2382 = vmatpush1.bf16.msra.mxu1 %v4565_v9  ;;  %2127 = vmatprep.mubr.bf16.mxu1 %v5503_v34 }
 0x30c   : > { %2383 = vmatprep.subr.bf16.mxu1 %v4563_v4  ;;  %v3718_v4 = vld [vmem:[%s5290_s5 + $0x60] sm:$0xff]   ;;  %v2613_v33 = vpop.permute.xlu0 %2612 }
 0x30d   : > { %v2620_v16 = vsel %vm5536_vm12, %v2613_v33, %v2615_v5  ;;  %v2626_v27 = vsel %vm5537_vm2, %v2615_v5, %v2613_v33  ;;  %v3739_v5 = vld [vmem:[%s5290_s5 + $0x100] sm:$0xff]  }
 0x30e   : > { %3484 = vmatmul.mubr.msk.bf16.gmra.mxu0 %vm1829_vm0, %v3716_v52  ;;  %v2769_v9 = vpop.permute.xlu1 %2768  ;;  %v2632_v13 = vsel %vm4467_vm8, %v2620_v16, 0  ;;  %v3738_v52 = vld [vmem:[%s5290_s5 + $0xf0] sm:$0xff]  }
 0x30f   : > { %2384 = vmatpush1.bf16.msra.mxu1 %v4561_v22  ;;  %2271 = vmatprep.mubr.bf16.mxu0 %v5503_v34  ;;  %v2480_v22 = vsel %vm5529_vm11, %v2467_v2, 0  ;;  %vm5548_vm11 = vmmov %vm5538_vm4 }
 0x310   : > { %3567 = vmatprep.subr.msk.bf16.mxu1 %vm4427_vm1, %v2630_v17  ;;  %v2771_v61 = vpop.permute.xlu0 %2770  ;;  %v3742_v17 = vld [vmem:[%s5290_s5 + $0x110] sm:$0xff]  }
 0x312   : > { %3500 = vmatmul.mubr.msk.bf16.gmra.mxu1 %vm1829_vm0, %v3717_v46  ;;  %v2773_v24 = vpop.permute.xlu1 %2772  ;;  %v3741_v46 = vld [vmem:[%s5290_s5 + $0x108] sm:$0xff]  }
 0x313   : > { %2137 = vmatprep.mubr.bf16.mxu1 %v5503_v34  ;;  %v2784_v35 = vsel %vm5532_vm13, %v2773_v24, %v2771_v61 }
 0x314   : > { %v2925_v11 = vpop.permute.xlu0 %2924 }
 0x316   : > { %3517 = vmatmul.mubr.msk.bf16.vlgmr.msra.gmra.mxu0 %vm1829_vm0, %v3718_v4  ;;  %v2927_v51 = vpop.permute.xlu1 %2926 }
 0x317   : > { %2536 = vmatpush1.bf16.msra.mxu0 %v2480_v22  ;;  %2281 = vmatprep.mubr.bf16.mxu0 %v5503_v34  ;;  %v2938_v43 = vsel %vm5538_vm4, %v2927_v51, %v2925_v11 }
 0x318   : > { %3550 = vmatprep.subr.msk.bf16.mxu0 %vm4377_vm14, %v2472_v23  ;;  %vm5534_vm14 = vmmov %vm5525_vm10  ;;  %v2767_v12 = vpop.permute.xlu0 %2766 }
 0x319   : > { %v2621_v10 = vsel %vm5534_vm14, %v2617_v1, %v2619_v29  ;;  %v3735_v29 = vld [vmem:[%s5290_s5 + $0xd0] sm:$0xff]   ;;  %v3737_v1 = vld [vmem:[%s5290_s5 + $0xd8] sm:$0xff]  }
 0x31a   : > { %3501 = vmatmul.mubr.msk.bf16.gmra.mxu1 %vm1829_vm0, %v3719_v8  ;;  %v2634_v3 = vsel %vm4467_vm8, %v2621_v10, 0  ;;  %vm5543_vm8 = vnez %v5542_v26  ;;  %v2923_v59 = vpop.permute.xlu1 %2922 }
 0x31b   : > { %2538 = vmatpush1.bf16.msra.mxu0 %v2478_v31  ;;  %2147 = vmatprep.mubr.bf16.mxu1 %v5503_v34 }
 0x31c   : > { %3585 = vmatprep.subr.msk.bf16.mxu0 %vm4410_vm15, %v2784_v35  ;;  %v2921_v60 = vpop.permute.xlu0 %2920 }
 0x31d   : > { %v2928_v6 = vsel %vm5548_vm11, %v2921_v60, %v2923_v59  ;;  %v2934_v39 = vsel %vm5549_vm6, %v2923_v59, %v2921_v60 }
 0x31e   : > { %3518 = vmatmul.mubr.msk.bf16.gmra.mxu0 %vm1829_vm0, %v3720_v7  ;;  %v2940_v55 = vsel %vm4502_vm3, %v2928_v6, 0 }
 0x31f   : > { %2291 = vmatprep.mubr.bf16.mxu0 %v5503_v34 }
 0x322   : > { %3502 = vmatmul.mubr.msk.bf16.gmra.mxu1 %vm1829_vm0, %v3721_v25 }
 0x323   : > { %2401 = vmatprep.mubr.bf16.mxu1 %v5503_v34 }
 0x326   : > { %3519 = vmatmul.mubr.msk.bf16.gmra.mxu0 %vm1829_vm0, %v3722_v37 }
 0x327   : > { %2301 = vmatprep.mubr.bf16.mxu0 %v5503_v34 }
 0x32a   : > { %3533 = vmatmul.mubr.msk.bf16.vlgmr.msra.gmra.mxu1 %vm1829_vm0, %v3723_v58 }
 0x32b   : > { %2690 = vmatpush1.bf16.msra.mxu1 %v2634_v3  ;;  %2411 = vmatprep.mubr.bf16.mxu1 %v5503_v34 }
 0x32c   : > { %3568 = vmatprep.subr.msk.bf16.mxu1 %vm4427_vm1, %v2626_v27  ;;  %vm5541_vm1 = vmmov %vm5532_vm13 }
 0x32d   : > { %v2775_v38 = vsel %vm5541_vm1, %v2771_v61, %v2773_v24  ;;  %vm5544_vm10 = vmmov %vm5541_vm1 }
 0x32e   : > { %3520 = vmatmul.mubr.msk.bf16.gmra.mxu0 %vm1829_vm0, %v3724_v53  ;;  %v2788_v44 = vsel %vm5543_vm8, %v2775_v38, 0  ;;  %v2774_v48 = vsel %vm5544_vm10, %v2767_v12, %v2769_v9  ;;  %vm5545_vm7 = vmmov %vm5541_vm1 }
 0x32f   : > { %2692 = vmatpush1.bf16.msra.mxu1 %v2632_v13  ;;  %2555 = vmatprep.mubr.bf16.mxu0 %v5503_v34  ;;  %v2780_v54 = vsel %vm5545_vm7, %v2769_v9, %v2767_v12  ;;  %v2786_v28 = vsel %vm5543_vm8, %v2774_v48, 0 }
 0x330   : > { %3603 = vmatprep.subr.msk.bf16.mxu1 %vm5540_vm9, %v2938_v43 }
 0x332   : > { %3534 = vmatmul.mubr.msk.bf16.gmra.mxu1 %vm1829_vm0, %v3725_v47 }
 0x333   : > { %2421 = vmatprep.mubr.bf16.mxu1 %v5503_v34 }
 0x336   : > { %3551 = vmatmul.mubr.msk.bf16.vlgmr.msra.gmra.mxu0 %vm1829_vm0, %v3726_v32 }
 0x337   : > { %2844 = vmatpush1.bf16.msra.mxu0 %v2788_v44  ;;  %2565 = vmatprep.mubr.bf16.mxu0 %v5503_v34 }
 0x338   : > { %3586 = vmatprep.subr.msk.bf16.mxu0 %vm4410_vm15, %v2780_v54  ;;  %vm5546_vm15 = vmmov %vm5538_vm4 }
 0x339   : > { %v2929_v57 = vsel %vm5546_vm15, %v2925_v11, %v2927_v51 }
 0x33a   : > { %3535 = vmatmul.mubr.msk.bf16.gmra.mxu1 %vm1829_vm0, %v3727_v42  ;;  %v2942_v62 = vsel %vm4502_vm3, %v2929_v57, 0  ;;  %vm3186_vm3 = vcmask 519168  }
 0x33b   : > { %2846 = vmatpush1.bf16.msra.mxu0 %v2786_v28  ;;  %2431 = vmatprep.mubr.bf16.mxu1 %v5503_v34 }
 0x33e   : > { %3552 = vmatmul.mubr.msk.bf16.gmra.mxu0 %vm1829_vm0, %v3728_v49 }
 0x33f   : > { %2575 = vmatprep.mubr.bf16.mxu0 %v5503_v34 }
 0x342   : > { %3536 = vmatmul.mubr.msk.bf16.gmra.mxu1 %vm1829_vm0, %v3729_v41 }
 0x343   : > { %2709 = vmatprep.mubr.bf16.mxu1 %v5503_v34 }
 0x346   : > { %3553 = vmatmul.mubr.msk.bf16.gmra.mxu0 %vm1829_vm0, %v3730_v45 }
 0x347   : > { %2585 = vmatprep.mubr.bf16.mxu0 %v5503_v34 }
 0x34a   : > { %3569 = vmatmul.mubr.msk.bf16.vlgmr.msra.gmra.mxu1 %vm1829_vm0, %v3731_v63 }
 0x34b   : > { %2998 = vmatpush1.bf16.msra.mxu1 %v2942_v62  ;;  %2719 = vmatprep.mubr.bf16.mxu1 %v5503_v34 }
 0x34c   : > { %3604 = vmatprep.subr.msk.bf16.mxu1 %vm5540_vm9, %v2934_v39 }
 0x34e   : > { %3554 = vmatmul.mubr.msk.bf16.gmra.mxu0 %vm1829_vm0, %v3732_v21 }
 0x34f   : > { %3000 = vmatpush1.bf16.msra.mxu1 %v2940_v55  ;;  %2863 = vmatprep.mubr.bf16.mxu0 %v5503_v34 }
 0x352   : > { %3570 = vmatmul.mubr.msk.bf16.gmra.mxu1 %vm1829_vm0, %v3733_v30 }
 0x353   : > { %2729 = vmatprep.mubr.bf16.mxu1 %v5503_v34 }
 0x356   : > { %3587 = vmatmul.mubr.msk.bf16.vlgmr.msra.gmra.mxu0 %vm1829_vm0, %v3734_v14 }
 0x357   : > { %2873 = vmatprep.mubr.bf16.mxu0 %v5503_v34 }
 0x35a   : > { %3571 = vmatmul.mubr.msk.bf16.gmra.mxu1 %vm1829_vm0, %v3735_v29 }
 0x35b   : > { %2739 = vmatprep.mubr.bf16.mxu1 %v5503_v34 }
 0x35e   : > { %3588 = vmatmul.mubr.msk.bf16.gmra.mxu0 %vm1829_vm0, %v3736_v50 }
 0x35f   : > { %2883 = vmatprep.mubr.bf16.mxu0 %v5503_v34 }
 0x362   : > { %3572 = vmatmul.mubr.msk.bf16.gmra.mxu1 %vm1829_vm0, %v3737_v1 }
 0x363   : > { %3017 = vmatprep.mubr.bf16.mxu1 %v5503_v34 }
 0x366   : > { %3589 = vmatmul.mubr.msk.bf16.gmra.mxu0 %vm1829_vm0, %v3738_v52 }
 0x367   : > { %2893 = vmatprep.mubr.bf16.mxu0 %v5503_v34 }
 0x36a   : > { %3605 = vmatmul.mubr.msk.bf16.vlgmr.msra.gmra.mxu1 %vm1829_vm0, %v3739_v5 }
 0x36b   : > { %3027 = vmatprep.mubr.bf16.mxu1 %v5503_v34 }
 0x36e   : > { %3590 = vmatmul.mubr.msk.bf16.gmra.mxu0 %vm1829_vm0, %v3740_v15 }
 0x372   : > { %3606 = vmatmul.mubr.msk.bf16.gmra.mxu1 %vm1829_vm0, %v3741_v46 }
 0x373   : > { %3037 = vmatprep.mubr.bf16.mxu1 %v5503_v34 }
 0x37a   : > { %3607 = vmatmul.mubr.msk.bf16.gmra.mxu1 %vm1829_vm0, %v3742_v17 }
 0x37b   : > { %3047 = vmatprep.mubr.bf16.mxu1 %v5503_v34 }
 0x382   : > { %3608 = vmatmul.mubr.msk.bf16.gmra.mxu1 %vm1829_vm0, %v3743_v40 }
 0x3aa   : > { %v1876_v9 = vpop.f32.mrf.mxu1 }
 0x3ac   : > { %v1878_v4 = vpop.f32.mrf.mxu1 }
 0x3ae   : > { %v1880_v2 = vpop.f32.mrf.mxu1 }
 0x3b0   : > { %v1882_v33 = vpop.f32.mrf.mxu1 }
 0x3b2   : > { %v1886_v19 = vpop.f32.mrf.mxu1 }
 0x3b4   : > { %v1888_v22 = vpop.f32.mrf.mxu1 }
 0x3b6   : > { %v1890_v8 = vpop.f32.mrf.mxu1  ;;  %v1981_v18 = vpop.f32.mrf.mxu0 }
 0x3b7   : > { %v1982_v23 = vadd.f32 %v1981_v18, %v1876_v9 }
 0x3b8   : > { %v1892_v24 = vpop.f32.mrf.mxu1  ;;  %v1983_v31 = vpop.f32.mrf.mxu0 }
 0x3b9   : > { %v1984_v61 = vadd.f32 %v1983_v31, %v1878_v4 }
 0x3ba   : > { %v1896_v7 = vpop.f32.mrf.mxu1  ;;  %v1985_v34 = vpop.f32.mrf.mxu0 }
 0x3bb   : > { %v1986_v35 = vadd.f32 %v1985_v34, %v1880_v2 }
 0x3bc   : > { %v1898_v36 = vpop.f32.mrf.mxu1  ;;  %v1987_v25 = vpop.f32.mrf.mxu0 }
 0x3bd   : > { %v1988_v37 = vadd.f32 %v1987_v25, %v1882_v33 }
 0x3be   : > { %v1900_v58 = vpop.f32.mrf.mxu1  ;;  %v1991_v10 = vpop.f32.mrf.mxu0 }
 0x3bf   : > { %v1992_v56 = vadd.f32 %v1991_v10, %v1886_v19 }
 0x3c0   : > { %v1902_v3 = vpop.f32.mrf.mxu1  ;;  %v1993_v53 = vpop.f32.mrf.mxu0 }
 0x3c1   : > { %v1994_v16 = vadd.f32 %v1993_v53, %v1888_v22 }
 0x3c2   : > { %v1906_v27 = vpop.f32.mrf.mxu1  ;;  %v1995_v51 = vpop.f32.mrf.mxu0 }
 0x3c3   : > { %v1996_v13 = vadd.f32 %v1995_v51, %v1890_v8 }
 0x3c4   : > { %v1908_v11 = vpop.f32.mrf.mxu1  ;;  %v1997_v47 = vpop.f32.mrf.mxu0 }
 0x3c5   : > { %v1998_v43 = vadd.f32 %v1997_v47, %v1892_v24 }
 0x3c6   : > { %v1910_v20 = vpop.f32.mrf.mxu1  ;;  %v2001_v32 = vpop.f32.mrf.mxu0 }
 0x3c7   : > { %v2002_v38 = vadd.f32 %v2001_v32, %v1896_v7 }
 0x3c8   : > { %v1912_v12 = vpop.f32.mrf.mxu1  ;;  %v2003_v26 = vpop.f32.mrf.mxu0 }
 0x3c9   : > { %v2004_v44 = vadd.f32 %v2003_v26, %v1898_v36 }
 0x3ca   : > { %v2005_v42 = vpop.f32.mrf.mxu0  ;;  %v2119_v48 = vpop.f32.mrf.mxu1 }
 0x3cb   : > { %v2006_v54 = vadd.f32 %v2005_v42, %v1900_v58  ;;  %v4935_v28 = vadd.f32 %v2119_v48, %v1982_v23 }
 0x3cc   : > { %v2007_v49 = vpop.f32.mrf.mxu0  ;;  %v2121_v41 = vpop.f32.mrf.mxu1 }
 0x3cd   : > { %v2008_v45 = vadd.f32 %v2007_v49, %v1902_v3  ;;  %v4937_v63 = vadd.f32 %v2121_v41, %v1984_v61 }
 0x3ce   : > { %v2011_v57 = vpop.f32.mrf.mxu0  ;;  %v2123_v60 = vpop.f32.mrf.mxu1 }
 0x3cf   : > { %v2012_v0 = vadd.f32 %v2011_v57, %v1906_v27  ;;  %v4939_v62 = vadd.f32 %v2123_v60, %v1986_v35 }
 0x3d0   : > { %v2013_v59 = vpop.f32.mrf.mxu0  ;;  %v2125_v21 = vpop.f32.mrf.mxu1 }
 0x3d1   : > { %v2014_v6 = vadd.f32 %v2013_v59, %v1908_v11  ;;  %v4941_v39 = vadd.f32 %v2125_v21, %v1988_v37 }
 0x3d2   : > { %v2015_v55 = vpop.f32.mrf.mxu0  ;;  %v2129_v30 = vpop.f32.mrf.mxu1 }
 0x3d3   : > { %v2016_v14 = vadd.f32 %v2015_v55, %v1910_v20  ;;  %v4943_v29 = vadd.f32 %v2129_v30, %v1992_v56 }
 0x3d4   : > { %v2017_v50 = vpop.f32.mrf.mxu0  ;;  %v2131_v1 = vpop.f32.mrf.mxu1 }
 0x3d5   : > { %v2018_v52 = vadd.f32 %v2017_v50, %v1912_v12  ;;  %v4945_v5 = vadd.f32 %v2131_v1, %v1994_v16 }
 0x3d6   : > { %v2133_v15 = vpop.f32.mrf.mxu1  ;;  %v4947_v46 = vpop.f32.mrf.mxu0 }
 0x3d7   : > { %v4949_v17 = vadd.f32 %v2133_v15, %v1996_v13 }
 0x3d8   : > { %v2135_v40 = vpop.f32.mrf.mxu1  ;;  %v4951_v9 = vpop.f32.mrf.mxu0 }
 0x3d9   : > { %v4953_v4 = vadd.f32 %v2135_v40, %v1998_v43 }
 0x3da   : > { %v2139_v2 = vpop.f32.mrf.mxu1  ;;  %v4955_v33 = vpop.f32.mrf.mxu0 }
 0x3db   : > { %v4957_v19 = vadd.f32 %v2139_v2, %v2002_v38 }
 0x3dc   : > { %v2141_v22 = vpop.f32.mrf.mxu1  ;;  %v4959_v8 = vpop.f32.mrf.mxu0 }
 0x3dd   : > { %v4961_v18 = vadd.f32 %v2141_v22, %v2004_v44 }
 0x3de   : > { %v2143_v23 = vpop.f32.mrf.mxu1  ;;  %v4963_v24 = vpop.f32.mrf.mxu0 }
 0x3df   : > { %v4965_v31 = vadd.f32 %v2143_v23, %v2006_v54 }
 0x3e0   : > { %v2145_v61 = vpop.f32.mrf.mxu1  ;;  %v4967_v7 = vpop.f32.mrf.mxu0 }
 0x3e1   : > { %v4969_v34 = vadd.f32 %v2145_v61, %v2008_v45 }
 0x3e2   : > { %v2149_v35 = vpop.f32.mrf.mxu1  ;;  %v4971_v36 = vpop.f32.mrf.mxu0 }
 0x3e3   : > { %v4973_v25 = vadd.f32 %v2149_v35, %v2012_v0 }
 0x3e4   : > { %v2151_v37 = vpop.f32.mrf.mxu1  ;;  %v4975_v58 = vpop.f32.mrf.mxu0 }
 0x3e5   : > { %v4977_v10 = vadd.f32 %v2151_v37, %v2014_v6 }
 0x3e6   : > { %v2153_v56 = vpop.f32.mrf.mxu1  ;;  %v4979_v3 = vpop.f32.mrf.mxu0 }
 0x3e7   : > { %v4981_v53 = vadd.f32 %v2153_v56, %v2016_v14 }
 0x3e8   : > { %v2155_v16 = vpop.f32.mrf.mxu1  ;;  %v4983_v27 = vpop.f32.mrf.mxu0 }
 0x3e9   : > { %v4985_v51 = vadd.f32 %v2155_v16, %v2018_v52 }
 0x3ea   : > { %v4987_v13 = vpop.f32.mrf.mxu0  ;;  %v2403_v11 = vpop.f32.mrf.mxu1 }
 0x3ec   : > { %v4989_v47 = vpop.f32.mrf.mxu0  ;;  %v2405_v43 = vpop.f32.mrf.mxu1 }
 0x3ee   : > { %v4991_v20 = vpop.f32.mrf.mxu0  ;;  %v4993_v32 = vpop.f32.mrf.mxu1 }
 0x3f0   : > { %v4995_v38 = vpop.f32.mrf.mxu0  ;;  %v4997_v12 = vpop.f32.mrf.mxu1 }
 0x3f2   : > { %v4999_v26 = vpop.f32.mrf.mxu0  ;;  %v5001_v44 = vpop.f32.mrf.mxu1 }
 0x3f4   : > { %v5003_v42 = vpop.f32.mrf.mxu0  ;;  %v5005_v48 = vpop.f32.mrf.mxu1 }
 0x3f6   : > { %v5007_v54 = vpop.f32.mrf.mxu1  ;;  %v2557_v49 = vpop.f32.mrf.mxu0 }
 0x3f8   : > { %v5009_v41 = vpop.f32.mrf.mxu1  ;;  %v2559_v45 = vpop.f32.mrf.mxu0 }
 0x3fa   : > { %v5011_v57 = vpop.f32.mrf.mxu1  ;;  %v5013_v60 = vpop.f32.mrf.mxu0 }
 0x3fb   : > { %5550 = vst [vmem:[#allocation18_spill] sm:$0xff] %v5011_v57 }
 0x3fc   : > { %v5015_v0 = vpop.f32.mrf.mxu1  ;;  %v5017_v59 = vpop.f32.mrf.mxu0 }
 0x3fd   : > { %5551 = vst [vmem:[#allocation19_spill] sm:$0xff] %v5015_v0 }
 0x3fe   : > { %v5019_v21 = vpop.f32.mrf.mxu1  ;;  %v5021_v6 = vpop.f32.mrf.mxu0 }
 0x3ff   : > { %5552 = vst [vmem:[#allocation20_spill] sm:$0xff] %v5019_v21 }
 0x400   : > { %v5023_v55 = vpop.f32.mrf.mxu1  ;;  %v5025_v30 = vpop.f32.mrf.mxu0 }
 0x401   : > { %5553 = vst [vmem:[#allocation21_spill] sm:$0xff] %v5023_v55 }
 0x402   : > { %v5027_v14 = vpop.f32.mrf.mxu1  ;;  %v5029_v50 = vpop.f32.mrf.mxu0 }
 0x403   : > { %5554 = vst [vmem:[#allocation3_spill] sm:$0xff] %v5027_v14  ;;  %5555 = vst [vmem:[#allocation2_spill] sm:$0xff] %v5029_v50 }
 0x404   : > { %v5031_v1 = vpop.f32.mrf.mxu1  ;;  %v5033_v52 = vpop.f32.mrf.mxu0 }
 0x405   : > { %5556 = vst [vmem:[#allocation4_spill] sm:$0xff] %v5031_v1  ;;  %5557 = vst [vmem:[#allocation5_spill] sm:$0xff] %v5033_v52 }
 0x406   : > { %v5035_v15 = vpop.f32.mrf.mxu1  ;;  %v5037_v40 = vpop.f32.mrf.mxu0 }
 0x407   : > { %5558 = vst [vmem:[#allocation11_spill] sm:$0xff] %v5035_v15  ;;  %5559 = vst [vmem:[#allocation6_spill] sm:$0xff] %v5037_v40 }
 0x408   : > { %v5039_v2 = vpop.f32.mrf.mxu1  ;;  %v5041_v22 = vpop.f32.mrf.mxu0 }
 0x409   : > { %5560 = vst [vmem:[#allocation7_spill] sm:$0xff] %v5039_v2  ;;  %5561 = vst [vmem:[#allocation8_spill] sm:$0xff] %v5041_v22 }
 0x40a   : > { %v5043_v23 = vpop.f32.mrf.mxu0  ;;  %v2711_v61 = vpop.f32.mrf.mxu1 }
 0x40b   : > { %5562 = vst [vmem:[#allocation10_spill] sm:$0xff] %v5043_v23 }
 0x40c   : > { %v5045_v35 = vpop.f32.mrf.mxu0  ;;  %v2713_v37 = vpop.f32.mrf.mxu1 }
 0x40d   : > { %5563 = vst [vmem:[#allocation13_spill] sm:$0xff] %v5045_v35 }
 0x40e   : > { %v5047_v56 = vpop.f32.mrf.mxu0  ;;  %v2715_v16 = vpop.f32.mrf.mxu1 }
 0x40f   : > { %5564 = vst [vmem:[#allocation9_spill] sm:$0xff] %v5047_v56 }
 0x410   : > { %v5049_v1 = vpop.f32.mrf.mxu0  ;;  %v5051_v14 = vpop.f32.mrf.mxu1 }
 0x411   : > { %5565 = vst [vmem:[#allocation12_spill] sm:$0xff] %v5049_v1 }
 0x412   : > { %v5053_v15 = vpop.f32.mrf.mxu0  ;;  %v5055_v55 = vpop.f32.mrf.mxu1 }
 0x413   : > { %5566 = vst [vmem:[#allocation15_spill] sm:$0xff] %v5053_v15 }
 0x414   : > { %v5057_v2 = vpop.f32.mrf.mxu0  ;;  %v5059_v22 = vpop.f32.mrf.mxu1 }
 0x415   : > { %5567 = vst [vmem:[#allocation16_spill] sm:$0xff] %v5057_v2  ;;  %5568 = vst [vmem:[#allocation14_spill] sm:$0xff] %v5059_v22 }
 0x416   : > { %v5061_v23 = vpop.f32.mrf.mxu1  ;;  %v2865_v40 = vpop.f32.mrf.mxu0 }
 0x417   : > { %5569 = vst [vmem:[#allocation17_spill] sm:$0xff] %v5061_v23  ;;  %v2312_v23 = vadd.f32 %v4947_v46, %v4935_v28  ;;  %v2315_v28 = vadd.f32 %v4959_v8, %v4941_v39  ;;  %v2316_v46 = vadd.f32 %v4963_v24, %v4943_v29  ;;  %v2319_v39 = vadd.f32 %v4975_v58, %v4953_v4 }
 0x418   : > { %v5063_v35 = vpop.f32.mrf.mxu1  ;;  %v2867_v21 = vpop.f32.mrf.mxu0  ;;  %v2320_v29 = vadd.f32 %v4979_v3, %v4957_v19  ;;  %v5123_v4 = vadd.f32 %v4991_v20, %v4973_v25  ;;  %v5127_v19 = vadd.f32 %v4995_v38, %v4977_v10  ;;  %v5139_v25 = vadd.f32 %v5003_v42, %v4985_v51 }
 0x419   : > { %5570 = vst [vmem:[#allocation22_spill] sm:$0xff] %v5063_v35 }
 0x41a   : > { %v5065_v56 = vpop.f32.mrf.mxu1  ;;  %v2869_v52 = vpop.f32.mrf.mxu0 }
 0x41b   : > { %5571 = vst [vmem:[#allocation23_spill] sm:$0xff] %v5065_v56  ;;  %v2442_v56 = vadd.f32 %v2403_v11, %v2312_v23 }
 0x41c   : > { %v5067_v1 = vpop.f32.mrf.mxu1  ;;  %v5069_v0 = vpop.f32.mrf.mxu0 }
 0x41d   : > { %5572 = vst [vmem:[#allocation24_spill] sm:$0xff] %v5067_v1  ;;  %5573 = vst [vmem:[#allocation25_spill] sm:$0xff] %v5069_v0  ;;  %v2313_v1 = vadd.f32 %v4951_v9, %v4937_v63  ;;  %v2317_v63 = vadd.f32 %v4967_v7, %v4945_v5  ;;  %v2322_v5 = vadd.f32 %v4987_v13, %v4965_v31  ;;  %v3085_v13 = vpop.permute.xlu0 %3084 }
 0x41e   : > { %v5071_v15 = vpop.f32.mrf.mxu1  ;;  %v5073_v50 = vpop.f32.mrf.mxu0 }
 0x41f   : > { %5574 = vst [vmem:[#allocation26_spill] sm:$0xff] %v5071_v15  ;;  %5575 = vst [vmem:[#allocation27_spill] sm:$0xff] %v5073_v50  ;;  %v2443_v50 = vadd.f32 %v2405_v43, %v2313_v1  ;;  %v2447_v10 = vadd.f32 %v5005_v48, %v2317_v63  ;;  %v5586_v63 = vld [vmem:[#allocation5_spill] sm:$0xff] }
 0x420   : > { %v5075_v2 = vpop.f32.mrf.mxu1  ;;  %v5077_v22 = vpop.f32.mrf.mxu0 }
 0x421   : > { %5576 = vst [vmem:[#allocation28_spill] sm:$0xff] %v5075_v2  ;;  %5577 = vst [vmem:[#allocation29_spill] sm:$0xff] %v5077_v22  ;;  %v2314_v2 = vadd.f32 %v4955_v33, %v4939_v62  ;;  %v2596_v22 = vadd.f32 %v2557_v49, %v2442_v56  ;;  %v2597_v11 = vadd.f32 %v2559_v45, %v2443_v50 }
 0x422   : > { %v5081_v35 = vpop.f32.mrf.mxu1  ;;  %v5083_v57 = vpop.f32.mrf.mxu0  ;;  %v2318_v62 = vadd.f32 %v4971_v36, %v4949_v17  ;;  %v2321_v33 = vadd.f32 %v4983_v27, %v4961_v18  ;;  %v5119_v17 = vadd.f32 %v4989_v47, %v4969_v34  ;;  %v2445_v18 = vadd.f32 %v4997_v12, %v2315_v28  ;;  %v5585_v28 = vld [vmem:[#allocation19_spill] sm:$0xff] }
 0x423   : > { %5578 = vst [vmem:[#allocation30_spill] sm:$0xff] %v5081_v35  ;;  %v2444_v9 = vadd.f32 %v4993_v32, %v2314_v2  ;;  %v2750_v23 = vadd.f32 %v2711_v61, %v2596_v22  ;;  %v2751_v7 = vadd.f32 %v2713_v37, %v2597_v11  ;;  %v2446_v36 = vadd.f32 %v5001_v44, %v2316_v46  ;;  %v5587_v11 = vld [vmem:[#allocation17_spill] sm:$0xff] }
 0x424   : > { %v5087_v0 = vpop.f32.mrf.mxu1  ;;  %v5089_v15 = vpop.f32.mrf.mxu0  ;;  %v5135_v47 = vadd.f32 %v4999_v26, %v4981_v53  ;;  %v2599_v20 = vadd.f32 %v5017_v59, %v2445_v18  ;;  %v2448_v45 = vadd.f32 %v5007_v54, %v2318_v62  ;;  %v2449_v53 = vadd.f32 %v5009_v41, %v2319_v39 }
 0x425   : > { %5579 = vst [vmem:[#allocation31_spill] sm:$0xff] %v5087_v0  ;;  %v2598_v24 = vadd.f32 %v5013_v60, %v2444_v9  ;;  %v2904_v43 = vadd.f32 %v2865_v40, %v2750_v23  ;;  %v2905_v3 = vadd.f32 %v2867_v21, %v2751_v7  ;;  %v2600_v38 = vadd.f32 %v5021_v6, %v2446_v36  ;;  %v3090_v54 = vpop.permute.xlu1 %3089  ;;  %v5580_v6 = vld [vmem:[#allocation18_spill] sm:$0xff]  ;;  %v5583_v40 = vld [vmem:[#allocation25_spill] sm:$0xff]  ;;  %v5589_v36 = vld [vmem:[#allocation20_spill] sm:$0xff] }
 0x426   : > { %v5097_v35 = vpop.f32.mrf.mxu1  ;;  %v5102_v0 = vpop.f32.mrf.mxu0  ;;  %v2601_v26 = vadd.f32 %v5025_v30, %v2447_v10  ;;  %v2753_v51 = vadd.f32 %v5051_v14, %v2599_v20  ;;  %v2450_v41 = vadd.f32 %v5580_v6, %v2320_v29  ;;  %v5581_v30 = vld [vmem:[#allocation2_spill] sm:$0xff]  ;;  %v5584_v22 = vld [vmem:[#allocation27_spill] sm:$0xff]  ;;  %v2451_v46 = vadd.f32 %v5585_v28, %v2321_v33 }
 0x427   : > { %v2752_v58 = vadd.f32 %v2715_v16, %v2598_v24  ;;  %v2754_v48 = vadd.f32 %v5055_v55, %v2600_v38  ;;  %v2602_v1 = vadd.f32 %v5581_v30, %v2448_v45  ;;  %v5582_v14 = vld [vmem:[#allocation14_spill] sm:$0xff]  ;;  %v2603_v9 = vadd.f32 %v5586_v63, %v2449_v53  ;;  %v3095_v33 = vpop.permute.xlu0 %3094  ;;  %v5592_v45 = vld [vmem:[#allocation21_spill] sm:$0xff] }
 0x428   : > { %v5112_v8 = vpop.f32.mrf.mxu1  ;;  %v5131_v27 = vpop.f32.mrf.mxu0  ;;  %v2907_v55 = vadd.f32 %v5583_v40, %v2753_v51  ;;  %v5588_v29 = vld [vmem:[#allocation29_spill] sm:$0xff]  ;;  %v2453_v53 = vadd.f32 %v5592_v45, %v5119_v17 }
 0x429   : > { %v2906_v12 = vadd.f32 %v2869_v52, %v2752_v58  ;;  %v2755_v52 = vadd.f32 %v5582_v14, %v2601_v26  ;;  %v2908_v61 = vadd.f32 %v5584_v22, %v2754_v48  ;;  %v2756_v23 = vadd.f32 %v5587_v11, %v2602_v1  ;;  %v5593_v26 = vld [vmem:[#allocation8_spill] sm:$0xff]  ;;  %v3100_v17 = vpop.permute.xlu1 %3099 }
 0x42a   : > { %v3019_v31 = vpop.f32.mrf.mxu1  ;;  %v5150_v60 = vpop.f32.mrf.mxu0  ;;  %v2452_v58 = vadd.f32 %v5589_v36, %v2322_v5  ;;  %v2605_v51 = vadd.f32 %v5593_v26, %v2451_v46  ;;  %v5594_v5 = vld [vmem:[#allocation23_spill] sm:$0xff]  ;;  %v5596_v1 = vld [vmem:[#allocation24_spill] sm:$0xff]  ;;  %v5599_v46 = vld [vmem:[#allocation26_spill] sm:$0xff] }
 0x42b   : > { %v3058_v34 = vadd.f32 %v3019_v31, %v2904_v43  ;;  %v2909_v24 = vadd.f32 %v5588_v29, %v2755_v52  ;;  %v2910_v38 = vadd.f32 %v5083_v57, %v2756_v23 }
 0x42c   : > { %v3021_v32 = vpop.f32.mrf.mxu1  ;;  %v5168_v7 = vpop.f32.mrf.mxu0  ;;  %v2759_v14 = vadd.f32 %v5596_v1, %v2605_v51 }
 0x42d   : > { %v3122_v44 = vadd.f32 %v3085_v13, %v3058_v34  ;;  %v3059_v49 = vadd.f32 %v3021_v32, %v2905_v3  ;;  %v5590_v3 = vld [vmem:[#allocation6_spill] sm:$0xff] }
 0x42e   : > { %v3023_v42 = vpop.f32.mrf.mxu1  ;;  %v2604_v34 = vadd.f32 %v5590_v3, %v2450_v41  ;;  %v5595_v41 = vld [vmem:[#allocation10_spill] sm:$0xff] }
 0x42f   : > { %v3138_v59 = vmax.f32 %v3122_v44, 0.0  ;;  %v3123_v21 = vadd.f32 %v3085_v13, %v3059_v49  ;;  %v3060_v50 = vadd.f32 %v3023_v42, %v2906_v12  ;;  %v5591_v13 = vld [vmem:[#allocation22_spill] sm:$0xff]  ;;  %v2606_v30 = vadd.f32 %v5595_v41, %v2452_v58 }
 0x430   : > { %v3025_v2 = vpop.f32.mrf.mxu1  ;;  %v2757_v10 = vadd.f32 %v5591_v13, %v2603_v9  ;;  %v2758_v42 = vadd.f32 %v5594_v5, %v2604_v34  ;;  %v2913_v9 = vadd.f32 %v5131_v27, %v2759_v14  ;;  %v5601_v27 = vld [vmem:[#allocation9_spill] sm:$0xff]  ;;  %v5609_v14 = vld [vmem:[#allocation16_spill] sm:$0xff] }
 0x431   : > { %v3652_v37 = vpack.c.bf16 %v3138_v59, %v3138_v59  ;;  %v3139_v56 = vmax.f32 %v3123_v21, 0.0  ;;  %v3124_v16 = vadd.f32 %v3090_v54, %v3060_v50  ;;  %v3061_v62 = vadd.f32 %v3025_v2, %v2907_v55  ;;  %v2895_v50 = vpop.f32.mrf.mxu0 }
 0x432   : > { %v3029_v39 = vpop.f32.mrf.mxu1  ;;  %v2911_v21 = vadd.f32 %v5089_v15, %v2757_v10  ;;  %v2912_v52 = vadd.f32 %v5102_v0, %v2758_v42  ;;  %v2760_v63 = vadd.f32 %v5599_v46, %v2606_v30  ;;  %v5606_v42 = vld [vmem:[#allocation7_spill] sm:$0xff] }
 0x433   : > { %3187 = vst.msk [vmem:[%s5155_s29] sm:$0xf] %vm3186_vm3, %v3652_v37  ;;  %v3660_v43 = vpack.c.bf16 %v3139_v56, %v3139_v56  ;;  %v3140_v18 = vmax.f32 %v3124_v16, 0.0  ;;  %v3062_v31 = vadd.f32 %v3029_v39, %v2908_v61  ;;  %3195 = vrot.lane.b32.xlu0 %v3652_v37, %s3761_s8  ;;  %v3125_v20 = vadd.f32 %v3090_v54, %v3061_v62  ;;  %v5597_v37 = vld [vmem:[#allocation3_spill] sm:$0xff]  ;;  %v5598_v16 = vld [vmem:[#allocation13_spill] sm:$0xff]  ;;  %v2897_v0 = vpop.f32.mrf.mxu0 }
 0x434   : > { %v3031_v32 = vpop.f32.mrf.mxu1  ;;  %v2454_v56 = vadd.f32 %v5597_v37, %v5123_v4  ;;  %v2607_v28 = vadd.f32 %v5598_v16, %v2453_v53  ;;  %v3105_v4 = vpop.permute.xlu0 %3104  ;;  %v2914_v36 = vadd.f32 %v5150_v60, %v2760_v63 }
 0x435   : > { %3633 = vst.msk [vmem:[%s5155_s29 + $0x40] sm:$0xf] %vm3186_vm3, %v3660_v43  ;;  %v3653_v12 = vpack.c.bf16 %v3140_v18, %v3140_v18  ;;  %v3126_v44 = vadd.f32 %v3095_v33, %v3062_v31  ;;  %v3063_v49 = vadd.f32 %v3031_v32, %v2909_v24  ;;  %v3141_v48 = vmax.f32 %v3125_v20, 0.0  ;;  %v5600_v24 = vld [vmem:[#allocation4_spill] sm:$0xff]  ;;  %v5603_v20 = vld [vmem:[#allocation11_spill] sm:$0xff]  ;;  %v2899_v53 = vpop.f32.mrf.mxu0 }
 0x436   : > { %v3033_v59 = vpop.f32.mrf.mxu1  ;;  %v2608_v18 = vadd.f32 %v5601_v27, %v2454_v56  ;;  %v5602_v31 = vld [vmem:[#allocation28_spill] sm:$0xff]  ;;  %v2456_v32 = vadd.f32 %v5603_v20, %v5135_v47  ;;  %v3110_v47 = vpop.permute.xlu1 %3109 }
 0x437   : > { %3188 = vst.msk [vmem:[%s5155_s29 + $0x4] sm:$0xf] %vm3186_vm3, %v3653_v12  ;;  %v3142_v57 = vmax.f32 %v3126_v44, 0.0  ;;  %v3127_v54 = vadd.f32 %v3095_v33, %v3063_v49  ;;  %v3064_v6 = vadd.f32 %v3033_v59, %v2910_v38  ;;  %3197 = vrot.lane.b32.xlu1 %v3653_v12, %s3761_s8  ;;  %3269 = vrot.lane.b32.xlu0 %v3660_v43, %s3761_s8  ;;  %v5604_v38 = vld [vmem:[#allocation12_spill] sm:$0xff]  ;;  %v5607_v59 = vld [vmem:[#allocation15_spill] sm:$0xff] }
 0x438   : > { %v3661_v15 = vpack.c.bf16 %v3141_v48, %v3141_v48  ;;  %v3035_v40 = vpop.f32.mrf.mxu1  ;;  %v2455_v43 = vadd.f32 %v5600_v24, %v5127_v19  ;;  %v2761_v33 = vadd.f32 %v5602_v31, %v2607_v28  ;;  %v5605_v19 = vld [vmem:[#allocation30_spill] sm:$0xff]  ;;  %v2457_v48 = vadd.f32 %v5606_v42, %v5139_v25  ;;  %v2901_v25 = vpop.f32.mrf.mxu0 }
 0x439   : > { %v3654_v55 = vpack.c.bf16 %v3142_v57, %v3142_v57  ;;  %v3143_v2 = vmax.f32 %v3127_v54, 0.0  ;;  %v3128_v22 = vadd.f32 %v3100_v17, %v3064_v6  ;;  %v3065_v61 = vadd.f32 %v3035_v40, %v2911_v21  ;;  %v5608_v21 = vld [vmem:[#allocation31_spill] sm:$0xff]  ;;  %v3115_v37 = vpop.permute.xlu0 %3114 }
 0x43a   : > { %3634 = vst.msk [vmem:[%s5155_s29 + $0x44] sm:$0xf] %vm3186_vm3, %v3661_v15  ;;  %v3039_v11 = vpop.f32.mrf.mxu1  ;;  %v2609_v12 = vadd.f32 %v5604_v38, %v2455_v43  ;;  %v2762_v44 = vadd.f32 %v5605_v19, %v2608_v18  ;;  %v2915_v49 = vadd.f32 %v5168_v7, %v2761_v33  ;;  %v2610_v7 = vadd.f32 %v5607_v59, %v2456_v32 }
 0x43b   : > { %3189 = vst.msk [vmem:[%s5155_s29 + $0x8] sm:$0xf] %vm3186_vm3, %v3654_v55  ;;  %v3662_v23 = vpack.c.bf16 %v3143_v2, %v3143_v2  ;;  %v3144_v62 = vmax.f32 %v3128_v22, 0.0  ;;  %v3129_v39 = vadd.f32 %v3100_v17, %v3065_v61  ;;  %v3066_v29 = vadd.f32 %v3039_v11, %v2912_v52  ;;  %3271 = vrot.lane.b32.xlu1 %v3661_v15, %s3761_s8 }
 0x43c   : > { %3199 = vrot.lane.b32.xlu0 %v3654_v55, %s3761_s8  ;;  %v3041_v58 = vpop.f32.mrf.mxu1  ;;  %v2763_v57 = vadd.f32 %v5608_v21, %v2609_v12  ;;  %v2916_v54 = vadd.f32 %v2895_v50, %v2762_v44  ;;  %v2611_v52 = vadd.f32 %v5609_v14, %v2457_v48  ;;  %v2764_v15 = vadd.f32 %v5097_v35, %v2610_v7 }
 0x43d   : > { %3635 = vst.msk [vmem:[%s5155_s29 + $0x48] sm:$0xf] %vm3186_vm3, %v3662_v23  ;;  %v3655_v3 = vpack.c.bf16 %v3144_v62, %v3144_v62  ;;  %v3145_v34 = vmax.f32 %v3129_v39, 0.0  ;;  %v3130_v13 = vadd.f32 %v3105_v4, %v3066_v29  ;;  %v3067_v10 = vadd.f32 %v3041_v58, %v2913_v9 }
 0x43e   : > { %v3043_v45 = vpop.f32.mrf.mxu1  ;;  %v2917_v40 = vadd.f32 %v2897_v0, %v2763_v57  ;;  %v2765_v56 = vadd.f32 %v5112_v8, %v2611_v52  ;;  %v2918_v16 = vadd.f32 %v2899_v53, %v2764_v15  ;;  %v3120_v8 = vpop.permute.xlu1 %3119 }
 0x43f   : > { %3190 = vst.msk [vmem:[%s5155_s29 + $0xc] sm:$0xf] %vm3186_vm3, %v3655_v3  ;;  %v3663_v60 = vpack.c.bf16 %v3145_v34, %v3145_v34  ;;  %v3146_v26 = vmax.f32 %v3130_v13, 0.0  ;;  %v3131_v51 = vadd.f32 %v3105_v4, %v3067_v10  ;;  %v3068_v5 = vadd.f32 %v3043_v45, %v2914_v36  ;;  %3201 = vrot.lane.b32.xlu1 %v3655_v3, %s3761_s8 }
 0x440   : > { %3273 = vrot.lane.b32.xlu0 %v3662_v23, %s3761_s8  ;;  %v3045_v6 = vpop.f32.mrf.mxu1  ;;  %v2919_v11 = vadd.f32 %v2901_v25, %v2765_v56 }
 0x441   : > { %3636 = vst.msk [vmem:[%s5155_s29 + $0x4c] sm:$0xf] %vm3186_vm3, %v3663_v60  ;;  %v3656_v17 = vpack.c.bf16 %v3146_v26, %v3146_v26  ;;  %v3147_v41 = vmax.f32 %v3131_v51, 0.0  ;;  %v3132_v30 = vadd.f32 %v3110_v47, %v3068_v5  ;;  %v3069_v1 = vadd.f32 %v3045_v6, %v2915_v49 }
 0x442   : > { %v3049_v55 = vpop.f32.mrf.mxu1 }
 0x443   : > { %3191 = vst.msk [vmem:[%s5155_s29 + $0x10] sm:$0xf] %vm3186_vm3, %v3656_v17  ;;  %v3664_v2 = vpack.c.bf16 %v3147_v41, %v3147_v41  ;;  %v3148_v22 = vmax.f32 %v3132_v30, 0.0  ;;  %v3133_v50 = vadd.f32 %v3110_v47, %v3069_v1  ;;  %v3070_v61 = vadd.f32 %v3049_v55, %v2916_v54  ;;  %3275 = vrot.lane.b32.xlu1 %v3663_v60, %s3761_s8 }
 0x444   : > { %3203 = vrot.lane.b32.xlu0 %v3656_v17, %s3761_s8  ;;  %v3051_v28 = vpop.f32.mrf.mxu1 }
 0x445   : > { %3637 = vst.msk [vmem:[%s5155_s29 + $0x50] sm:$0xf] %vm3186_vm3, %v3664_v2  ;;  %v3657_v35 = vpack.c.bf16 %v3148_v22, %v3148_v22  ;;  %v3149_v46 = vmax.f32 %v3133_v50, 0.0  ;;  %v3134_v63 = vadd.f32 %v3115_v37, %v3070_v61  ;;  %v3071_v9 = vadd.f32 %v3051_v28, %v2917_v40 }
 0x446   : > { %v3053_v0 = vpop.f32.mrf.mxu1 }
 0x447   : > { %3192 = vst.msk [vmem:[%s5155_s29 + $0x14] sm:$0xf] %vm3186_vm3, %v3657_v35  ;;  %v3665_v23 = vpack.c.bf16 %v3149_v46, %v3149_v46  ;;  %v3150_v62 = vmax.f32 %v3134_v63, 0.0  ;;  %v3135_v39 = vadd.f32 %v3115_v37, %v3071_v9  ;;  %v3072_v29 = vadd.f32 %v3053_v0, %v2918_v16  ;;  %3205 = vrot.lane.b32.xlu1 %v3657_v35, %s3761_s8 }
 0x448   : > { %3277 = vrot.lane.b32.xlu0 %v3664_v2, %s3761_s8  ;;  %v3055_v4 = vpop.f32.mrf.mxu1 }
 0x449   : > { %3638 = vst.msk [vmem:[%s5155_s29 + $0x54] sm:$0xf] %vm3186_vm3, %v3665_v23  ;;  %v3658_v24 = vpack.c.bf16 %v3150_v62, %v3150_v62  ;;  %v3151_v43 = vmax.f32 %v3135_v39, 0.0  ;;  %v3136_v27 = vadd.f32 %v3120_v8, %v3072_v29  ;;  %v3073_v18 = vadd.f32 %v3055_v4, %v2919_v11 }
 0x44b   : > { %3193 = vst.msk [vmem:[%s5155_s29 + $0x18] sm:$0xf] %vm3186_vm3, %v3658_v24  ;;  %v3666_v31 = vpack.c.bf16 %v3151_v43, %v3151_v43  ;;  %v3152_v33 = vmax.f32 %v3136_v27, 0.0  ;;  %v3137_v36 = vadd.f32 %v3120_v8, %v3073_v18  ;;  %3279 = vrot.lane.b32.xlu1 %v3665_v23, %s3761_s8 }
 0x44c   : > { %3207 = vrot.lane.b32.xlu0 %v3658_v24, %s3761_s8 }
 0x44d   : > { %3639 = vst.msk [vmem:[%s5155_s29 + $0x58] sm:$0xf] %vm3186_vm3, %v3666_v31  ;;  %v3659_v58 = vpack.c.bf16 %v3152_v33, %v3152_v33  ;;  %v3153_v3 = vmax.f32 %v3137_v36, 0.0 }
 0x44f   : > { %3194 = vst.msk [vmem:[%s5155_s29 + $0x1c] sm:$0xf] %vm3186_vm3, %v3659_v58  ;;  %v3667_v34 = vpack.c.bf16 %v3153_v3, %v3153_v3  ;;  %3209 = vrot.lane.b32.xlu1 %v3659_v58, %s3761_s8 }
 0x450   : > { %3281 = vrot.lane.b32.xlu0 %v3666_v31, %s3761_s8 }
 0x451   : > { %3640 = vst.msk [vmem:[%s5155_s29 + $0x5c] sm:$0xf] %vm3186_vm3, %v3667_v34 }
 0x453   : > { %3283 = vrot.lane.b32.xlu1 %v3667_v34, %s3761_s8 }
 0x4a5   : > { %v3196_v13 = vpop.permute.xlu0 %3195 }
 0x4a6   : > { %3617 = vst.msk [vmem:[%s5155_s29 + $0x20] sm:$0xf] %vm3186_vm3, %v3196_v13 }
 0x4a9   : > { %v3198_v10 = vpop.permute.xlu1 %3197  ;;  %v3270_v20 = vpop.permute.xlu0 %3269 }
 0x4aa   : > { %3618 = vst.msk [vmem:[%s5155_s29 + $0x24] sm:$0xf] %vm3186_vm3, %v3198_v10  ;;  %3641 = vst.msk [vmem:[%s5155_s29 + $0x60] sm:$0xf] %vm3186_vm3, %v3270_v20 }
 0x4ad   : > { %v3272_v32 = vpop.permute.xlu1 %3271 }
 0x4ae   : > { %v3200_v38 = vpop.permute.xlu0 %3199  ;;  %3642 = vst.msk [vmem:[%s5155_s29 + $0x64] sm:$0xf] %vm3186_vm3, %v3272_v32 }
 0x4af   : > { %3619 = vst.msk [vmem:[%s5155_s29 + $0x28] sm:$0xf] %vm3186_vm3, %v3200_v38 }
 0x4b1   : > { %v3202_v12 = vpop.permute.xlu1 %3201 }
 0x4b2   : > { %v3274_v19 = vpop.permute.xlu0 %3273  ;;  %3620 = vst.msk [vmem:[%s5155_s29 + $0x2c] sm:$0xf] %vm3186_vm3, %v3202_v12 }
 0x4b3   : > { %3643 = vst.msk [vmem:[%s5155_s29 + $0x68] sm:$0xf] %vm3186_vm3, %v3274_v19 }
 0x4b5   : > { %v3276_v44 = vpop.permute.xlu1 %3275 }
 0x4b6   : > { %v3204_v49 = vpop.permute.xlu0 %3203  ;;  %3644 = vst.msk [vmem:[%s5155_s29 + $0x6c] sm:$0xf] %vm3186_vm3, %v3276_v44 }
 0x4b7   : > { %3621 = vst.msk [vmem:[%s5155_s29 + $0x30] sm:$0xf] %vm3186_vm3, %v3204_v49 }
 0x4b9   : > { %v3206_v45 = vpop.permute.xlu1 %3205 }
 0x4ba   : > { %v3278_v53 = vpop.permute.xlu0 %3277  ;;  %3622 = vst.msk [vmem:[%s5155_s29 + $0x34] sm:$0xf] %vm3186_vm3, %v3206_v45 }
 0x4bb   : > { %3645 = vst.msk [vmem:[%s5155_s29 + $0x70] sm:$0xf] %vm3186_vm3, %v3278_v53 }
 0x4bd   : > { %v3280_v60 = vpop.permute.xlu1 %3279 }
 0x4be   : > { %v3208_v26 = vpop.permute.xlu0 %3207  ;;  %3646 = vst.msk [vmem:[%s5155_s29 + $0x74] sm:$0xf] %vm3186_vm3, %v3280_v60 }
 0x4bf   : > { %3623 = vst.msk [vmem:[%s5155_s29 + $0x38] sm:$0xf] %vm3186_vm3, %v3208_v26 }
 0x4c1   : > { %v3210_v51 = vpop.permute.xlu1 %3209 }
 0x4c2   : > { %v3282_v5 = vpop.permute.xlu0 %3281  ;;  %3624 = vst.msk [vmem:[%s5155_s29 + $0x3c] sm:$0xf] %vm3186_vm3, %v3210_v51 }
 0x4c3   : > { %3647 = vst.msk [vmem:[%s5155_s29 + $0x78] sm:$0xf] %vm3186_vm3, %v3282_v5 }
 0x4c5   : > { %v3284_v47 = vpop.permute.xlu1 %3283 }
 0x4c6   : > { %3648 = vst.msk [vmem:[%s5155_s29 + $0x7c] sm:$0xf] %vm3186_vm3, %v3284_v47 }
 0x4c7 PF: > { %s17_s24 = sadd.s32 1, %s3750_s24  }
 0x4c8   : > { %p14_p4 = scmp.ge.s32.totalorder %s17_s24, 4  }
 0x4ca   :  { %16 = sbr.rel (!%p14_p4) target bundleno = 1 (0x1), region = 105 }

// kernel: autoencoder_forward.4
= control target key start
LH: loop header
LB: loop body
LE: loop exit
PB: predicated region body
PF: predicated region fallthrough
CT: control target
= control target key end

     0   :  { %s6101_s18 = smov 0   ;;  %s7481_s0 = inlined_call_operand.vmem [shape: bf16[2,4,4096], index: 0, kind: input, shape index: {}]   ;;  %s7482_s1 = inlined_call_operand.vmem [shape: bf16[4096,64], index: 1, kind: input, shape index: {}]   ;;  %s7483_s2 = inlined_call_operand.vmem [shape: f32[1,64], index: 2, kind: input, shape index: {}]   ;;  %s7484_s3 = inlined_call_operand.vmem [shape: bf16[64,4096], index: 3, kind: input, shape index: {}]   ;;  %s7485_s4 = inlined_call_operand.vmem [shape: f32[1,4096], index: 4, kind: input, shape index: {}]   ;;  %s7486_s5 = inlined_call_operand.vmem [shape: bf16[2,4,4096], index: 5, kind: output, shape index: {}]  }
   0x1 LB: > { %s5005_s19 = sadd.s32 4294967295, %s6067_s18   ;;  %p5009_p0 = scmp.ge.s32.totalorder %s6067_s18, 1  ;;  %s6067_s18 = sphi %s6101_s18, %s15_s18  }
   0x2   : > { %p187_p1 = scmp.lt.s32.totalorder %s6067_s18, 3 }
   0x4   : > { %p188_p2 = pnand %p5009_p0, %p187_p1 }
   0x5   : > { %p215_p3 = scmp.lt.s32.totalorder (!%p188_p2), %s5005_s19, 1 }
   0x6   : > { %191 = sbr.rel (%p188_p2) target bundleno = 790 (0x316), region = 40 }
   0xb   : > { %v5797_v0 = vld [vmem:[%s7482_s1 + $0x78] sm:$0xff]   ;;  %v5801_v4 = vld [vmem:[%s7482_s1 + $0x70] sm:$0xff]   ;;  %v5805_v8 = vld [vmem:[%s7482_s1 + $0x68] sm:$0xff]   ;;  %s7488_s19 = smov (!%p215_p3, %s5005_s19), 1  ;;  %v765_v28 = vlaneseq  ;;  %v6069_v36 = vmov 1983009808  }
   0xc   : > { %v5798_v1 = vld [vmem:[%s7482_s1 + $0xf8] sm:$0xff]   ;;  %5435 = vmatprep.subr.bf16.mxu0 %v5797_v0  ;;  %v5802_v5 = vld [vmem:[%s7482_s1 + $0xf0] sm:$0xff]   ;;  %v5806_v9 = vld [vmem:[%s7482_s1 + $0xe8] sm:$0xff]   ;;  %s5433_s28 = sshll.u32 %s7488_s19, 6  ;;  %v763_v37 = vunpack.c.l.s4 %v6069_v36  ;;  %vm4042_vm0 = vcmask 523264  }
   0xd   : > { %v5799_v2 = vld [vmem:[%s7482_s1 + $0x38] sm:$0xff]   ;;  %5457 = vmatprep.subr.bf16.mxu1 %v5798_v1  ;;  %v5803_v6 = vld [vmem:[%s7482_s1 + $0x30] sm:$0xff]   ;;  %v5807_v10 = vld [vmem:[%s7482_s1 + $0x28] sm:$0xff]   ;;  %s6211_s12 = scalar_lea.vmem %s7481_s0, %s5433_s28  ;;  %v6219_v33 = vshrl.u32 %v765_v28, 7  ;;  %s7411_s24 = scalar_lea.vmem %s7486_s5, %s5433_s28 }
   0xe   : > { %v5800_v3 = vld [vmem:[%s7482_s1 + $0xb8] sm:$0xff]   ;;  %5436 = vmatpush3.bf16.msra.mxu0 %v5799_v2  ;;  %v5804_v7 = vld [vmem:[%s7482_s1 + $0xb0] sm:$0xff]   ;;  %v5808_v11 = vld [vmem:[%s7482_s1 + $0xa8] sm:$0xff]   ;;  %v764_v39 = vunpack.c.0.s8 %v763_v37 }
   0xf   : > { %5458 = vmatpush3.bf16.msra.mxu1 %v5800_v3  ;;  %5437 = vmatprep.subr.bf16.mxu0 %v5801_v4  ;;  %v5809_v12 = vld [vmem:[%s7482_s1 + $0x60] sm:$0xff]   ;;  %v5813_v16 = vld [vmem:[%s7482_s1 + $0x58] sm:$0xff]   ;;  %v5817_v20 = vld [vmem:[%s7482_s1 + $0x50] sm:$0xff]  }
  0x10   : > { %5459 = vmatprep.subr.bf16.mxu1 %v5802_v5  ;;  %v5810_v13 = vld [vmem:[%s7482_s1 + $0xe0] sm:$0xff]   ;;  %v5814_v17 = vld [vmem:[%s7482_s1 + $0xd8] sm:$0xff]   ;;  %v5818_v21 = vld [vmem:[%s7482_s1 + $0xd0] sm:$0xff]   ;;  %v6229_v41 = vsub.s32 %v764_v39, %v6219_v33 }
  0x11   : > { %v5811_v14 = vld [vmem:[%s7482_s1 + $0x20] sm:$0xff]   ;;  %v5815_v18 = vld [vmem:[%s7482_s1 + $0x18] sm:$0xff]   ;;  %v5819_v22 = vld [vmem:[%s7482_s1 + $0x10] sm:$0xff]  }
  0x12   : > { %5438 = vmatpush3.bf16.msra.mxu0 %v5803_v6  ;;  %v5812_v15 = vld [vmem:[%s7482_s1 + $0xa0] sm:$0xff]   ;;  %v5816_v19 = vld [vmem:[%s7482_s1 + $0x98] sm:$0xff]   ;;  %v5820_v23 = vld [vmem:[%s7482_s1 + $0x90] sm:$0xff]  }
  0x13   : > { %5460 = vmatpush3.bf16.msra.mxu1 %v5804_v7  ;;  %5439 = vmatprep.subr.bf16.mxu0 %v5805_v8  ;;  %v5821_v24 = vld [vmem:[%s7482_s1 + $0x48] sm:$0xff]   ;;  %v5825_v29 = vld [vmem:[%s7482_s1 + $0x40] sm:$0xff]   ;;  %v5830_v35 = vld [vmem:[%s7482_s1 + $0x178] sm:$0xff]  }
  0x14   : > { %5461 = vmatprep.subr.bf16.mxu1 %v5806_v9  ;;  %v5822_v25 = vld [vmem:[%s7482_s1 + $0xc8] sm:$0xff]   ;;  %v5826_v30 = vld [vmem:[%s7482_s1 + $0xc0] sm:$0xff]   ;;  %v5831_v38 = vld [vmem:[%s7482_s1 + $0x1f8] sm:$0xff]  }
  0x15   : > { %v5823_v26 = vld [vmem:[%s7482_s1 + $0x8] sm:$0xff]   ;;  %v5827_v31 = vld [vmem:[%s7482_s1] sm:$0xff]   ;;  %v5832_v44 = vld [vmem:[%s7482_s1 + $0x138] sm:$0xff]  }
  0x16   : > { %5440 = vmatpush3.bf16.msra.mxu0 %v5807_v10  ;;  %v5824_v27 = vld [vmem:[%s7482_s1 + $0x88] sm:$0xff]   ;;  %v5828_v32 = vld [vmem:[%s7482_s1 + $0x80] sm:$0xff]   ;;  %v5833_v45 = vld [vmem:[%s7482_s1 + $0x1b8] sm:$0xff]  }
  0x17   : > { %5462 = vmatpush3.bf16.msra.mxu1 %v5808_v11  ;;  %5441 = vmatprep.subr.bf16.mxu0 %v5809_v12  ;;  %v226_v34 = vld [vmem:[%s6211_s12] sm:$0xff]  ;;  %v5834_v48 = vld [vmem:[%s7482_s1 + $0x170] sm:$0xff]   ;;  %v5838_v52 = vld [vmem:[%s7482_s1 + $0x168] sm:$0xff]  }
  0x18   : > { %5463 = vmatprep.subr.bf16.mxu1 %v5810_v13  ;;  %v761_v40 = vcombine.high %v226_v34, %v226_v34  ;;  %v768_v42 = vrot.slane %v226_v34, %v6229_v41  ;;  %v5835_v49 = vld [vmem:[%s7482_s1 + $0x1f0] sm:$0xff]   ;;  %v5839_v53 = vld [vmem:[%s7482_s1 + $0x1e8] sm:$0xff]   ;;  %v5842_v56 = vld [vmem:[%s7482_s1 + $0x160] sm:$0xff]  }
  0x19   : > { %v5836_v50 = vld [vmem:[%s7482_s1 + $0x130] sm:$0xff]   ;;  %v5840_v54 = vld [vmem:[%s7482_s1 + $0x128] sm:$0xff]   ;;  %v5843_v57 = vld [vmem:[%s7482_s1 + $0x1e0] sm:$0xff]  }
  0x1a   : > { %5442 = vmatpush3.bf16.msra.mxu0 %v5811_v14  ;;  %v775_v43 = vrot.slane %v761_v40, %v6229_v41  ;;  %v776_v46 = vcombine.high %v768_v42, %v768_v42  ;;  %v5837_v51 = vld [vmem:[%s7482_s1 + $0x1b0] sm:$0xff]   ;;  %v5841_v55 = vld [vmem:[%s7482_s1 + $0x1a8] sm:$0xff]   ;;  %v5844_v58 = vld [vmem:[%s7482_s1 + $0x120] sm:$0xff]  }
  0x1b   : > { %5464 = vmatpush3.bf16.msra.mxu1 %v5812_v15  ;;  %5443 = vmatprep.subr.bf16.mxu0 %v5813_v16  ;;  %v5845_v59 = vld [vmem:[%s7482_s1 + $0x1a0] sm:$0xff]   ;;  %v5846_v60 = vld [vmem:[%s7482_s1 + $0x158] sm:$0xff]   ;;  %v5850_v0 = vld [vmem:[%s7482_s1 + $0x150] sm:$0xff]  }
  0x1c   : > { %5465 = vmatprep.subr.bf16.mxu1 %v5814_v17  ;;  %v777_v47 = vcombine.high %v775_v43, %v775_v43  ;;  %2497 = vmatprep.mubr.bf16.mxu0 %v776_v46  ;;  %v5847_v61 = vld [vmem:[%s7482_s1 + $0x1d8] sm:$0xff]   ;;  %v5851_v1 = vld [vmem:[%s7482_s1 + $0x1d0] sm:$0xff]   ;;  %v5854_v4 = vld [vmem:[%s7482_s1 + $0x148] sm:$0xff]  }
  0x1d   : > { %v5848_v62 = vld [vmem:[%s7482_s1 + $0x118] sm:$0xff]   ;;  %v5852_v2 = vld [vmem:[%s7482_s1 + $0x110] sm:$0xff]   ;;  %v5855_v5 = vld [vmem:[%s7482_s1 + $0x1c8] sm:$0xff]  }
  0x1e   : > { %5444 = vmatpush3.bf16.msra.mxu0 %v5815_v18  ;;  %2537 = vmatprep.mubr.bf16.mxu1 %v777_v47  ;;  %v5849_v63 = vld [vmem:[%s7482_s1 + $0x198] sm:$0xff]   ;;  %v5853_v3 = vld [vmem:[%s7482_s1 + $0x190] sm:$0xff]   ;;  %v5856_v6 = vld [vmem:[%s7482_s1 + $0x108] sm:$0xff]  }
  0x1f   : > { %5466 = vmatpush3.bf16.msra.mxu1 %v5816_v19  ;;  %5445 = vmatprep.subr.bf16.mxu0 %v5817_v20  ;;  %v5857_v7 = vld [vmem:[%s7482_s1 + $0x188] sm:$0xff]   ;;  %v5858_v9 = vld [vmem:[%s7482_s1 + $0x140] sm:$0xff]   ;;  %v5863_v18 = vld [vmem:[%s7482_s1 + $0x278] sm:$0xff]  }
  0x20   : > { %5467 = vmatprep.subr.bf16.mxu1 %v5818_v21  ;;  %v227_v8 = vld [vmem:[%s6211_s12 + $0x8] sm:$0xff]  ;;  %v5859_v12 = vld [vmem:[%s7482_s1 + $0x1c0] sm:$0xff]   ;;  %v5864_v19 = vld [vmem:[%s7482_s1 + $0x2f8] sm:$0xff]  }
  0x21   : > { %v785_v10 = vrot.slane %v227_v8, %v6229_v41  ;;  %v778_v11 = vcombine.high %v227_v8, %v227_v8  ;;  %v5860_v13 = vld [vmem:[%s7482_s1 + $0x100] sm:$0xff]   ;;  %v5865_v20 = vld [vmem:[%s7482_s1 + $0x238] sm:$0xff]   ;;  %v5873_v28 = vld [vmem:[%s7482_s1 + $0x228] sm:$0xff]  }
  0x22   : > { %5446 = vmatpush3.bf16.msra.mxu0 %v5819_v22  ;;  %v5861_v16 = vld [vmem:[%s7482_s1 + $0x180] sm:$0xff]   ;;  %v5866_v21 = vld [vmem:[%s7482_s1 + $0x2b8] sm:$0xff]   ;;  %v5867_v22 = vld [vmem:[%s7482_s1 + $0x270] sm:$0xff]  }
  0x23   : > { %5468 = vmatpush3.bf16.msra.mxu1 %v5820_v23  ;;  %5447 = vmatprep.subr.bf16.mxu0 %v5821_v24  ;;  %v793_v14 = vcombine.high %v785_v10, %v785_v10  ;;  %v792_v15 = vrot.slane %v778_v11, %v6229_v41  ;;  %v5868_v23 = vld [vmem:[%s7482_s1 + $0x2f0] sm:$0xff]   ;;  %v5878_v34 = vld [vmem:[%s7482_s1 + $0x2a0] sm:$0xff]   ;;  %v5880_v36 = vld [vmem:[%s7482_s1 + $0x2d8] sm:$0xff]  }
  0x24   : > { %5469 = vmatprep.subr.bf16.mxu1 %v5822_v25  ;;  %v5869_v24 = vld [vmem:[%s7482_s1 + $0x230] sm:$0xff]   ;;  %v5881_v37 = vld [vmem:[%s7482_s1 + $0x218] sm:$0xff]   ;;  %v5889_v46 = vld [vmem:[%s7482_s1 + $0x208] sm:$0xff]  }
  0x25   : > { %v794_v17 = vcombine.high %v792_v15, %v792_v15  ;;  %v5870_v25 = vld [vmem:[%s7482_s1 + $0x2b0] sm:$0xff]   ;;  %v5890_v47 = vld [vmem:[%s7482_s1 + $0x288] sm:$0xff]   ;;  %v5910_v8 = vld [vmem:[%s7482_s1 + $0x320] sm:$0xff]  }
  0x26   : > { %5448 = vmatpush3.bf16.msra.mxu0 %v5823_v26  ;;  %v5871_v26 = vld [vmem:[%s7482_s1 + $0x268] sm:$0xff]   ;;  %v5883_v39 = vld [vmem:[%s7482_s1 + $0x250] sm:$0xff]   ;;  %v5913_v11 = vld [vmem:[%s7482_s1 + $0x3d8] sm:$0xff]  }
  0x27   : > { %5470 = vmatpush3.bf16.msra.mxu1 %v5824_v27  ;;  %5449 = vmatprep.subr.bf16.mxu0 %v5825_v29  ;;  %v5872_v27 = vld [vmem:[%s7482_s1 + $0x2e8] sm:$0xff]   ;;  %v5884_v40 = vld [vmem:[%s7482_s1 + $0x2d0] sm:$0xff]  }
  0x28   : > { %5471 = vmatprep.subr.bf16.mxu1 %v5826_v30  ;;  %v5874_v29 = vld [vmem:[%s7482_s1 + $0x2a8] sm:$0xff]   ;;  %v5875_v30 = vld [vmem:[%s7482_s1 + $0x260] sm:$0xff]  }
  0x2a   : > { %5450 = vmatpush3.bf16.msra.mxu0 %v5827_v31  ;;  %v5876_v31 = vld [vmem:[%s7482_s1 + $0x2e0] sm:$0xff]  }
  0x2b   : > { %5472 = vmatpush3.bf16.msra.mxu1 %v5828_v32  ;;  %5479 = vmatprep.subr.bf16.mxu0 %v5830_v35  ;;  %v5877_v32 = vld [vmem:[%s7482_s1 + $0x220] sm:$0xff]   ;;  %v5879_v35 = vld [vmem:[%s7482_s1 + $0x258] sm:$0xff]  }
  0x2c   : > { %5501 = vmatprep.subr.bf16.mxu1 %v5831_v38  ;;  %v5882_v38 = vld [vmem:[%s7482_s1 + $0x298] sm:$0xff]  }
  0x2d   : > { %2498 = vmatmul.mubr.bf16.vlgmr.msra.gmra.mxu0 %v768_v42  ;;  %v5885_v42 = vld [vmem:[%s7482_s1 + $0x210] sm:$0xff]  }
  0x2e   : > { %2538 = vmatmul.mubr.bf16.vlgmr.msra.gmra.mxu1 %v775_v43  ;;  %5480 = vmatpush3.bf16.msra.mxu0 %v5832_v44  ;;  %v5886_v43 = vld [vmem:[%s7482_s1 + $0x290] sm:$0xff]   ;;  %v5887_v44 = vld [vmem:[%s7482_s1 + $0x248] sm:$0xff]  }
  0x2f   : > { %5502 = vmatpush3.bf16.msra.mxu1 %v5833_v45  ;;  %5481 = vmatprep.subr.bf16.mxu0 %v5834_v48  ;;  %v5888_v45 = vld [vmem:[%s7482_s1 + $0x2c8] sm:$0xff]   ;;  %v228_v48 = vld [vmem:[%s6211_s12 + $0x10] sm:$0xff] }
  0x30   : > { %5503 = vmatprep.subr.bf16.mxu1 %v5835_v49  ;;  %2577 = vmatprep.mubr.bf16.mxu0 %v793_v14  ;;  %v5891_v49 = vld [vmem:[%s7482_s1 + $0x240] sm:$0xff]   ;;  %v5916_v14 = vld [vmem:[%s7482_s1 + $0x350] sm:$0xff]  }
  0x31   : > { %2617 = vmatprep.mubr.bf16.mxu1 %v794_v17  ;;  %v5919_v17 = vld [vmem:[%s7482_s1 + $0x390] sm:$0xff]  }
  0x32   : > { %5482 = vmatpush3.bf16.msra.mxu0 %v5836_v50  ;;  %v802_v50 = vrot.slane %v228_v48, %v6229_v41 }
  0x33   : > { %5504 = vmatpush3.bf16.msra.mxu1 %v5837_v51  ;;  %5483 = vmatprep.subr.bf16.mxu0 %v5838_v52  ;;  %v795_v51 = vcombine.high %v228_v48, %v228_v48  ;;  %v5892_v52 = vld [vmem:[%s7482_s1 + $0x2c0] sm:$0xff]  }
  0x34   : > { %5505 = vmatprep.subr.bf16.mxu1 %v5839_v53  ;;  %v5893_v53 = vld [vmem:[%s7482_s1 + $0x200] sm:$0xff]  }
  0x35   : > { %v5943_v48 = vld [vmem:[%s7482_s1 + $0x420] sm:$0xff]  }
  0x36   : > { %5484 = vmatpush3.bf16.msra.mxu0 %v5840_v54  ;;  %v810_v54 = vcombine.high %v802_v50, %v802_v50 }
  0x37   : > { %5506 = vmatpush3.bf16.msra.mxu1 %v5841_v55  ;;  %5485 = vmatprep.subr.bf16.mxu0 %v5842_v56  ;;  %v809_v55 = vrot.slane %v795_v51, %v6229_v41  ;;  %v5894_v56 = vld [vmem:[%s7482_s1 + $0x280] sm:$0xff]   ;;  %v5946_v51 = vld [vmem:[%s7482_s1 + $0x4d8] sm:$0xff]  }
  0x38   : > { %5507 = vmatprep.subr.bf16.mxu1 %v5843_v57 }
  0x39   : > { %v811_v57 = vcombine.high %v809_v55, %v809_v55 }
  0x3a   : > { %5486 = vmatpush3.bf16.msra.mxu0 %v5844_v58  ;;  %v5896_v58 = vld [vmem:[%s7482_s1 + $0x378] sm:$0xff]  }
  0x3b   : > { %5508 = vmatpush3.bf16.msra.mxu1 %v5845_v59  ;;  %5487 = vmatprep.subr.bf16.mxu0 %v5846_v60  ;;  %v5897_v59 = vld [vmem:[%s7482_s1 + $0x3f8] sm:$0xff]  }
  0x3c   : > { %5509 = vmatprep.subr.bf16.mxu1 %v5847_v61  ;;  %v5898_v60 = vld [vmem:[%s7482_s1 + $0x338] sm:$0xff]  }
  0x3d   : > { %v5899_v61 = vld [vmem:[%s7482_s1 + $0x3b8] sm:$0xff]  }
  0x3e   : > { %5488 = vmatpush3.bf16.msra.mxu0 %v5848_v62  ;;  %v5900_v62 = vld [vmem:[%s7482_s1 + $0x370] sm:$0xff]  }
  0x3f   : > { %5510 = vmatpush3.bf16.msra.mxu1 %v5849_v63  ;;  %5489 = vmatprep.subr.bf16.mxu0 %v5850_v0  ;;  %v5901_v63 = vld [vmem:[%s7482_s1 + $0x3f0] sm:$0xff]  }
  0x40   : > { %5511 = vmatprep.subr.bf16.mxu1 %v5851_v1  ;;  %v5902_v0 = vld [vmem:[%s7482_s1 + $0x330] sm:$0xff]  }
  0x41   : > { %v5903_v1 = vld [vmem:[%s7482_s1 + $0x3b0] sm:$0xff]  }
  0x42   : > { %5490 = vmatpush3.bf16.msra.mxu0 %v5852_v2  ;;  %v5904_v2 = vld [vmem:[%s7482_s1 + $0x368] sm:$0xff]  }
  0x43   : > { %5512 = vmatpush3.bf16.msra.mxu1 %v5853_v3  ;;  %5491 = vmatprep.subr.bf16.mxu0 %v5854_v4  ;;  %v5905_v3 = vld [vmem:[%s7482_s1 + $0x3e8] sm:$0xff]  }
  0x44   : > { %5513 = vmatprep.subr.bf16.mxu1 %v5855_v5  ;;  %v5906_v4 = vld [vmem:[%s7482_s1 + $0x328] sm:$0xff]  }
  0x45   : > { %v5907_v5 = vld [vmem:[%s7482_s1 + $0x3a8] sm:$0xff]  }
  0x46   : > { %5492 = vmatpush3.bf16.msra.mxu0 %v5856_v6  ;;  %v5908_v6 = vld [vmem:[%s7482_s1 + $0x360] sm:$0xff]  }
  0x47   : > { %5514 = vmatpush3.bf16.msra.mxu1 %v5857_v7  ;;  %5493 = vmatprep.subr.bf16.mxu0 %v5858_v9  ;;  %v5909_v7 = vld [vmem:[%s7482_s1 + $0x3e0] sm:$0xff]  }
  0x48   : > { %5515 = vmatprep.subr.bf16.mxu1 %v5859_v12  ;;  %v5911_v9 = vld [vmem:[%s7482_s1 + $0x3a0] sm:$0xff]   ;;  %v5914_v12 = vld [vmem:[%s7482_s1 + $0x318] sm:$0xff]  }
  0x4a   : > { %5494 = vmatpush3.bf16.msra.mxu0 %v5860_v13  ;;  %v5915_v13 = vld [vmem:[%s7482_s1 + $0x398] sm:$0xff]  }
  0x4b   : > { %5516 = vmatpush3.bf16.msra.mxu1 %v5861_v16  ;;  %5523 = vmatprep.subr.bf16.mxu0 %v5863_v18  ;;  %v5918_v16 = vld [vmem:[%s7482_s1 + $0x310] sm:$0xff]   ;;  %v5920_v18 = vld [vmem:[%s7482_s1 + $0x348] sm:$0xff]  }
  0x4c   : > { %5545 = vmatprep.subr.bf16.mxu1 %v5864_v19  ;;  %v5921_v19 = vld [vmem:[%s7482_s1 + $0x3c8] sm:$0xff]  }
  0x4d   : > { %2578 = vmatmul.mubr.bf16.vlgmr.msra.gmra.mxu0 %v785_v10  ;;  %v5912_v10 = vld [vmem:[%s7482_s1 + $0x358] sm:$0xff]  }
  0x4e   : > { %2618 = vmatmul.mubr.bf16.vlgmr.msra.gmra.mxu1 %v792_v15  ;;  %5524 = vmatpush3.bf16.msra.mxu0 %v5865_v20  ;;  %v5917_v15 = vld [vmem:[%s7482_s1 + $0x3d0] sm:$0xff]   ;;  %v5922_v20 = vld [vmem:[%s7482_s1 + $0x308] sm:$0xff]  }
  0x4f   : > { %5546 = vmatpush3.bf16.msra.mxu1 %v5866_v21  ;;  %5525 = vmatprep.subr.bf16.mxu0 %v5867_v22  ;;  %v5923_v21 = vld [vmem:[%s7482_s1 + $0x388] sm:$0xff]   ;;  %v5924_v22 = vld [vmem:[%s7482_s1 + $0x340] sm:$0xff]  }
  0x50   : > { %5547 = vmatprep.subr.bf16.mxu1 %v5868_v23  ;;  %2657 = vmatprep.mubr.bf16.mxu0 %v810_v54  ;;  %v229_v23 = vld [vmem:[%s6211_s12 + $0x18] sm:$0xff]  ;;  %v5949_v54 = vld [vmem:[%s7482_s1 + $0x450] sm:$0xff]  }
  0x51   : > { %2697 = vmatprep.mubr.bf16.mxu1 %v811_v57  ;;  %v5952_v57 = vld [vmem:[%s7482_s1 + $0x490] sm:$0xff]  }
  0x52   : > { %5526 = vmatpush3.bf16.msra.mxu0 %v5869_v24  ;;  %v5925_v24 = vld [vmem:[%s7482_s1 + $0x3c0] sm:$0xff]  }
  0x53   : > { %5548 = vmatpush3.bf16.msra.mxu1 %v5870_v25  ;;  %5527 = vmatprep.subr.bf16.mxu0 %v5871_v26  ;;  %v819_v25 = vrot.slane %v229_v23, %v6229_v41  ;;  %v812_v26 = vcombine.high %v229_v23, %v229_v23  ;;  %v5977_v23 = vld [vmem:[%s7482_s1 + $0x5a0] sm:$0xff]  }
  0x54   : > { %5549 = vmatprep.subr.bf16.mxu1 %v5872_v27  ;;  %v5926_v27 = vld [vmem:[%s7482_s1 + $0x300] sm:$0xff]  }
  0x56   : > { %5528 = vmatpush3.bf16.msra.mxu0 %v5873_v28  ;;  %v5927_v28 = vld [vmem:[%s7482_s1 + $0x380] sm:$0xff]  }
  0x57   : > { %5550 = vmatpush3.bf16.msra.mxu1 %v5874_v29  ;;  %5529 = vmatprep.subr.bf16.mxu0 %v5875_v30  ;;  %v827_v29 = vcombine.high %v819_v25, %v819_v25  ;;  %v826_v30 = vrot.slane %v812_v26, %v6229_v41  ;;  %v5980_v26 = vld [vmem:[%s7482_s1 + $0x518] sm:$0xff]  }
  0x58   : > { %5551 = vmatprep.subr.bf16.mxu1 %v5876_v31  ;;  %v5929_v31 = vld [vmem:[%s7482_s1 + $0x478] sm:$0xff]  }
  0x5a   : > { %5530 = vmatpush3.bf16.msra.mxu0 %v5877_v32  ;;  %v828_v32 = vcombine.high %v826_v30, %v826_v30 }
  0x5b   : > { %5552 = vmatpush3.bf16.msra.mxu1 %v5878_v34  ;;  %5531 = vmatprep.subr.bf16.mxu0 %v5879_v35  ;;  %v5930_v34 = vld [vmem:[%s7482_s1 + $0x4f8] sm:$0xff]  }
  0x5c   : > { %5553 = vmatprep.subr.bf16.mxu1 %v5880_v36  ;;  %v5931_v35 = vld [vmem:[%s7482_s1 + $0x438] sm:$0xff]  }
  0x5d   : > { %v5932_v36 = vld [vmem:[%s7482_s1 + $0x4b8] sm:$0xff]  }
  0x5e   : > { %5532 = vmatpush3.bf16.msra.mxu0 %v5881_v37  ;;  %v5933_v37 = vld [vmem:[%s7482_s1 + $0x470] sm:$0xff]  }
  0x5f   : > { %5554 = vmatpush3.bf16.msra.mxu1 %v5882_v38  ;;  %5533 = vmatprep.subr.bf16.mxu0 %v5883_v39  ;;  %v5934_v38 = vld [vmem:[%s7482_s1 + $0x4f0] sm:$0xff]  }
  0x60   : > { %5555 = vmatprep.subr.bf16.mxu1 %v5884_v40  ;;  %v5935_v39 = vld [vmem:[%s7482_s1 + $0x430] sm:$0xff]  }
  0x61   : > { %v5936_v40 = vld [vmem:[%s7482_s1 + $0x4b0] sm:$0xff]  }
  0x62   : > { %5534 = vmatpush3.bf16.msra.mxu0 %v5885_v42  ;;  %v5937_v42 = vld [vmem:[%s7482_s1 + $0x468] sm:$0xff]  }
  0x63   : > { %5556 = vmatpush3.bf16.msra.mxu1 %v5886_v43  ;;  %5535 = vmatprep.subr.bf16.mxu0 %v5887_v44  ;;  %v5938_v43 = vld [vmem:[%s7482_s1 + $0x4e8] sm:$0xff]  }
  0x64   : > { %5557 = vmatprep.subr.bf16.mxu1 %v5888_v45  ;;  %v5939_v44 = vld [vmem:[%s7482_s1 + $0x428] sm:$0xff]  }
  0x65   : > { %v5940_v45 = vld [vmem:[%s7482_s1 + $0x4a8] sm:$0xff]  }
  0x66   : > { %5536 = vmatpush3.bf16.msra.mxu0 %v5889_v46  ;;  %v5941_v46 = vld [vmem:[%s7482_s1 + $0x460] sm:$0xff]  }
  0x67   : > { %5558 = vmatpush3.bf16.msra.mxu1 %v5890_v47  ;;  %5537 = vmatprep.subr.bf16.mxu0 %v5891_v49  ;;  %v5942_v47 = vld [vmem:[%s7482_s1 + $0x4e0] sm:$0xff]  }
  0x68   : > { %5559 = vmatprep.subr.bf16.mxu1 %v5892_v52  ;;  %v5944_v49 = vld [vmem:[%s7482_s1 + $0x4a0] sm:$0xff]   ;;  %v5947_v52 = vld [vmem:[%s7482_s1 + $0x418] sm:$0xff]  }
  0x6a   : > { %5538 = vmatpush3.bf16.msra.mxu0 %v5893_v53  ;;  %v5948_v53 = vld [vmem:[%s7482_s1 + $0x498] sm:$0xff]  }
  0x6b   : > { %5560 = vmatpush3.bf16.msra.mxu1 %v5894_v56  ;;  %5567 = vmatprep.subr.bf16.mxu0 %v5896_v58  ;;  %v5951_v56 = vld [vmem:[%s7482_s1 + $0x410] sm:$0xff]   ;;  %v5953_v58 = vld [vmem:[%s7482_s1 + $0x448] sm:$0xff]  }
  0x6c   : > { %5589 = vmatprep.subr.bf16.mxu1 %v5897_v59  ;;  %v5954_v59 = vld [vmem:[%s7482_s1 + $0x4c8] sm:$0xff]  }
  0x6d   : > { %2658 = vmatmul.mubr.bf16.vlgmr.msra.gmra.mxu0 %v802_v50  ;;  %v5945_v50 = vld [vmem:[%s7482_s1 + $0x458] sm:$0xff]  }
  0x6e   : > { %2698 = vmatmul.mubr.bf16.vlgmr.msra.gmra.mxu1 %v809_v55  ;;  %5568 = vmatpush3.bf16.msra.mxu0 %v5898_v60  ;;  %v5950_v55 = vld [vmem:[%s7482_s1 + $0x4d0] sm:$0xff]   ;;  %v5955_v60 = vld [vmem:[%s7482_s1 + $0x408] sm:$0xff]  }
  0x6f   : > { %5590 = vmatpush3.bf16.msra.mxu1 %v5899_v61  ;;  %5569 = vmatprep.subr.bf16.mxu0 %v5900_v62  ;;  %v5956_v61 = vld [vmem:[%s7482_s1 + $0x488] sm:$0xff]   ;;  %v5957_v62 = vld [vmem:[%s7482_s1 + $0x440] sm:$0xff]  }
  0x70   : > { %5591 = vmatprep.subr.bf16.mxu1 %v5901_v63  ;;  %2737 = vmatprep.mubr.bf16.mxu0 %v827_v29  ;;  %v230_v63 = vld [vmem:[%s6211_s12 + $0x20] sm:$0xff]  ;;  %v5983_v29 = vld [vmem:[%s7482_s1 + $0x5d0] sm:$0xff]  }
  0x71   : > { %2777 = vmatprep.mubr.bf16.mxu1 %v828_v32  ;;  %v5986_v32 = vld [vmem:[%s7482_s1 + $0x548] sm:$0xff]  }
  0x72   : > { %5570 = vmatpush3.bf16.msra.mxu0 %v5902_v0  ;;  %v5958_v0 = vld [vmem:[%s7482_s1 + $0x4c0] sm:$0xff]  }
  0x73   : > { %5592 = vmatpush3.bf16.msra.mxu1 %v5903_v1  ;;  %5571 = vmatprep.subr.bf16.mxu0 %v5904_v2  ;;  %v836_v1 = vrot.slane %v230_v63, %v6229_v41  ;;  %v829_v2 = vcombine.high %v230_v63, %v230_v63  ;;  %v6010_v63 = vld [vmem:[%s7482_s1 + $0x6a0] sm:$0xff]  }
  0x74   : > { %5593 = vmatprep.subr.bf16.mxu1 %v5905_v3  ;;  %v5959_v3 = vld [vmem:[%s7482_s1 + $0x400] sm:$0xff]  }
  0x76   : > { %5572 = vmatpush3.bf16.msra.mxu0 %v5906_v4  ;;  %v5960_v4 = vld [vmem:[%s7482_s1 + $0x480] sm:$0xff]  }
  0x77   : > { %5594 = vmatpush3.bf16.msra.mxu1 %v5907_v5  ;;  %5573 = vmatprep.subr.bf16.mxu0 %v5908_v6  ;;  %v844_v5 = vcombine.high %v836_v1, %v836_v1  ;;  %v843_v6 = vrot.slane %v829_v2, %v6229_v41  ;;  %v6013_v2 = vld [vmem:[%s7482_s1 + $0x618] sm:$0xff]  }
  0x78   : > { %5595 = vmatprep.subr.bf16.mxu1 %v5909_v7  ;;  %v5962_v7 = vld [vmem:[%s7482_s1 + $0x578] sm:$0xff]  }
  0x7a   : > { %5574 = vmatpush3.bf16.msra.mxu0 %v5910_v8  ;;  %v845_v8 = vcombine.high %v843_v6, %v843_v6 }
  0x7b   : > { %5596 = vmatpush3.bf16.msra.mxu1 %v5911_v9  ;;  %5575 = vmatprep.subr.bf16.mxu0 %v5912_v10  ;;  %v5963_v9 = vld [vmem:[%s7482_s1 + $0x5f8] sm:$0xff]  }
  0x7c   : > { %5597 = vmatprep.subr.bf16.mxu1 %v5913_v11  ;;  %v5964_v10 = vld [vmem:[%s7482_s1 + $0x538] sm:$0xff]  }
  0x7d   : > { %v5965_v11 = vld [vmem:[%s7482_s1 + $0x5b8] sm:$0xff]  }
  0x7e   : > { %5576 = vmatpush3.bf16.msra.mxu0 %v5914_v12  ;;  %v5966_v12 = vld [vmem:[%s7482_s1 + $0x570] sm:$0xff]  }
  0x7f   : > { %5598 = vmatpush3.bf16.msra.mxu1 %v5915_v13  ;;  %5577 = vmatprep.subr.bf16.mxu0 %v5916_v14  ;;  %v5967_v13 = vld [vmem:[%s7482_s1 + $0x5f0] sm:$0xff]  }
  0x80   : > { %5599 = vmatprep.subr.bf16.mxu1 %v5917_v15  ;;  %v5968_v14 = vld [vmem:[%s7482_s1 + $0x530] sm:$0xff]  }
  0x81   : > { %v5969_v15 = vld [vmem:[%s7482_s1 + $0x5b0] sm:$0xff]  }
  0x82   : > { %5578 = vmatpush3.bf16.msra.mxu0 %v5918_v16  ;;  %v5970_v16 = vld [vmem:[%s7482_s1 + $0x568] sm:$0xff]  }
  0x83   : > { %5600 = vmatpush3.bf16.msra.mxu1 %v5919_v17  ;;  %5579 = vmatprep.subr.bf16.mxu0 %v5920_v18  ;;  %v5971_v17 = vld [vmem:[%s7482_s1 + $0x5e8] sm:$0xff]  }
  0x84   : > { %5601 = vmatprep.subr.bf16.mxu1 %v5921_v19  ;;  %v5972_v18 = vld [vmem:[%s7482_s1 + $0x528] sm:$0xff]  }
  0x85   : > { %v5973_v19 = vld [vmem:[%s7482_s1 + $0x5a8] sm:$0xff]  }
  0x86   : > { %5580 = vmatpush3.bf16.msra.mxu0 %v5922_v20  ;;  %v5974_v20 = vld [vmem:[%s7482_s1 + $0x560] sm:$0xff]  }
  0x87   : > { %5602 = vmatpush3.bf16.msra.mxu1 %v5923_v21  ;;  %5581 = vmatprep.subr.bf16.mxu0 %v5924_v22  ;;  %v5975_v21 = vld [vmem:[%s7482_s1 + $0x5e0] sm:$0xff]  }
  0x88   : > { %5603 = vmatprep.subr.bf16.mxu1 %v5925_v24  ;;  %v5976_v22 = vld [vmem:[%s7482_s1 + $0x520] sm:$0xff]   ;;  %v5978_v24 = vld [vmem:[%s7482_s1 + $0x558] sm:$0xff]  }
  0x8a   : > { %5582 = vmatpush3.bf16.msra.mxu0 %v5926_v27  ;;  %v5981_v27 = vld [vmem:[%s7482_s1 + $0x598] sm:$0xff]  }
  0x8b   : > { %5604 = vmatpush3.bf16.msra.mxu1 %v5927_v28  ;;  %5611 = vmatprep.subr.bf16.mxu0 %v5929_v31  ;;  %v5982_v28 = vld [vmem:[%s7482_s1 + $0x550] sm:$0xff]  }
  0x8c   : > { %5633 = vmatprep.subr.bf16.mxu1 %v5930_v34  ;;  %v5985_v31 = vld [vmem:[%s7482_s1 + $0x590] sm:$0xff]   ;;  %v5987_v34 = vld [vmem:[%s7482_s1 + $0x5c8] sm:$0xff]  }
  0x8d   : > { %2738 = vmatmul.mubr.bf16.vlgmr.msra.gmra.mxu0 %v819_v25  ;;  %v5979_v25 = vld [vmem:[%s7482_s1 + $0x5d8] sm:$0xff]  }
  0x8e   : > { %2778 = vmatmul.mubr.bf16.vlgmr.msra.gmra.mxu1 %v826_v30  ;;  %5612 = vmatpush3.bf16.msra.mxu0 %v5931_v35  ;;  %v5984_v30 = vld [vmem:[%s7482_s1 + $0x510] sm:$0xff]   ;;  %v5988_v35 = vld [vmem:[%s7482_s1 + $0x508] sm:$0xff]  }
  0x8f   : > { %5634 = vmatpush3.bf16.msra.mxu1 %v5932_v36  ;;  %5613 = vmatprep.subr.bf16.mxu0 %v5933_v37  ;;  %v5989_v36 = vld [vmem:[%s7482_s1 + $0x588] sm:$0xff]   ;;  %v5990_v37 = vld [vmem:[%s7482_s1 + $0x540] sm:$0xff]  }
  0x90   : > { %5635 = vmatprep.subr.bf16.mxu1 %v5934_v38  ;;  %2817 = vmatprep.mubr.bf16.mxu0 %v844_v5  ;;  %v231_v38 = vld [vmem:[%s6211_s12 + $0x28] sm:$0xff]  ;;  %v6016_v5 = vld [vmem:[%s7482_s1 + $0x6d0] sm:$0xff]  }
  0x91   : > { %2857 = vmatprep.mubr.bf16.mxu1 %v845_v8  ;;  %v6019_v8 = vld [vmem:[%s7482_s1 + $0x648] sm:$0xff]  }
  0x92   : > { %5614 = vmatpush3.bf16.msra.mxu0 %v5935_v39  ;;  %v5991_v39 = vld [vmem:[%s7482_s1 + $0x5c0] sm:$0xff]  }
  0x93   : > { %5636 = vmatpush3.bf16.msra.mxu1 %v5936_v40  ;;  %5615 = vmatprep.subr.bf16.mxu0 %v5937_v42  ;;  %v853_v40 = vrot.slane %v231_v38, %v6229_v41  ;;  %v846_v42 = vcombine.high %v231_v38, %v231_v38 }
  0x94   : > { %5637 = vmatprep.subr.bf16.mxu1 %v5938_v43  ;;  %v5992_v43 = vld [vmem:[%s7482_s1 + $0x500] sm:$0xff]  }
  0x96   : > { %5616 = vmatpush3.bf16.msra.mxu0 %v5939_v44  ;;  %v5993_v44 = vld [vmem:[%s7482_s1 + $0x580] sm:$0xff]  }
  0x97   : > { %5638 = vmatpush3.bf16.msra.mxu1 %v5940_v45  ;;  %5617 = vmatprep.subr.bf16.mxu0 %v5941_v46  ;;  %v861_v45 = vcombine.high %v853_v40, %v853_v40  ;;  %v860_v46 = vrot.slane %v846_v42, %v6229_v41 }
  0x98   : > { %5639 = vmatprep.subr.bf16.mxu1 %v5942_v47  ;;  %v5995_v47 = vld [vmem:[%s7482_s1 + $0x678] sm:$0xff]  }
  0x9a   : > { %5618 = vmatpush3.bf16.msra.mxu0 %v5943_v48  ;;  %v862_v48 = vcombine.high %v860_v46, %v860_v46 }
  0x9b   : > { %5640 = vmatpush3.bf16.msra.mxu1 %v5944_v49  ;;  %5619 = vmatprep.subr.bf16.mxu0 %v5945_v50  ;;  %v5996_v49 = vld [vmem:[%s7482_s1 + $0x6f8] sm:$0xff]  }
  0x9c   : > { %5641 = vmatprep.subr.bf16.mxu1 %v5946_v51  ;;  %v5997_v50 = vld [vmem:[%s7482_s1 + $0x638] sm:$0xff]  }
  0x9d   : > { %v5998_v51 = vld [vmem:[%s7482_s1 + $0x6b8] sm:$0xff]  }
  0x9e   : > { %5620 = vmatpush3.bf16.msra.mxu0 %v5947_v52  ;;  %v5999_v52 = vld [vmem:[%s7482_s1 + $0x670] sm:$0xff]  }
  0x9f   : > { %5642 = vmatpush3.bf16.msra.mxu1 %v5948_v53  ;;  %5621 = vmatprep.subr.bf16.mxu0 %v5949_v54  ;;  %v6000_v53 = vld [vmem:[%s7482_s1 + $0x6f0] sm:$0xff]  }
  0xa0   : > { %5643 = vmatprep.subr.bf16.mxu1 %v5950_v55  ;;  %v6001_v54 = vld [vmem:[%s7482_s1 + $0x630] sm:$0xff]  }
  0xa1   : > { %v6002_v55 = vld [vmem:[%s7482_s1 + $0x6b0] sm:$0xff]  }
  0xa2   : > { %5622 = vmatpush3.bf16.msra.mxu0 %v5951_v56  ;;  %v6003_v56 = vld [vmem:[%s7482_s1 + $0x668] sm:$0xff]  }
  0xa3   : > { %5644 = vmatpush3.bf16.msra.mxu1 %v5952_v57  ;;  %5623 = vmatprep.subr.bf16.mxu0 %v5953_v58  ;;  %v6004_v57 = vld [vmem:[%s7482_s1 + $0x6e8] sm:$0xff]  }
  0xa4   : > { %5645 = vmatprep.subr.bf16.mxu1 %v5954_v59  ;;  %v6005_v58 = vld [vmem:[%s7482_s1 + $0x628] sm:$0xff]  }
  0xa5   : > { %v6006_v59 = vld [vmem:[%s7482_s1 + $0x6a8] sm:$0xff]  }
  0xa6   : > { %5624 = vmatpush3.bf16.msra.mxu0 %v5955_v60  ;;  %v6007_v60 = vld [vmem:[%s7482_s1 + $0x660] sm:$0xff]  }
  0xa7   : > { %5646 = vmatpush3.bf16.msra.mxu1 %v5956_v61  ;;  %5625 = vmatprep.subr.bf16.mxu0 %v5957_v62  ;;  %v6008_v61 = vld [vmem:[%s7482_s1 + $0x6e0] sm:$0xff]  }
  0xa8   : > { %5647 = vmatprep.subr.bf16.mxu1 %v5958_v0  ;;  %v6009_v62 = vld [vmem:[%s7482_s1 + $0x620] sm:$0xff]   ;;  %v6011_v0 = vld [vmem:[%s7482_s1 + $0x658] sm:$0xff]  }
  0xaa   : > { %5626 = vmatpush3.bf16.msra.mxu0 %v5959_v3  ;;  %v6014_v3 = vld [vmem:[%s7482_s1 + $0x698] sm:$0xff]  }
  0xab   : > { %5648 = vmatpush3.bf16.msra.mxu1 %v5960_v4  ;;  %5655 = vmatprep.subr.bf16.mxu0 %v5962_v7  ;;  %v6015_v4 = vld [vmem:[%s7482_s1 + $0x650] sm:$0xff]  }
  0xac   : > { %5677 = vmatprep.subr.bf16.mxu1 %v5963_v9  ;;  %v6018_v7 = vld [vmem:[%s7482_s1 + $0x690] sm:$0xff]   ;;  %v6020_v9 = vld [vmem:[%s7482_s1 + $0x6c8] sm:$0xff]  }
  0xad   : > { %2818 = vmatmul.mubr.bf16.vlgmr.msra.gmra.mxu0 %v836_v1  ;;  %v6012_v1 = vld [vmem:[%s7482_s1 + $0x6d8] sm:$0xff]  }
  0xae   : > { %2858 = vmatmul.mubr.bf16.vlgmr.msra.gmra.mxu1 %v843_v6  ;;  %5656 = vmatpush3.bf16.msra.mxu0 %v5964_v10  ;;  %v6017_v6 = vld [vmem:[%s7482_s1 + $0x610] sm:$0xff]   ;;  %v6021_v10 = vld [vmem:[%s7482_s1 + $0x608] sm:$0xff]  }
  0xaf   : > { %5678 = vmatpush3.bf16.msra.mxu1 %v5965_v11  ;;  %5657 = vmatprep.subr.bf16.mxu0 %v5966_v12  ;;  %v6022_v11 = vld [vmem:[%s7482_s1 + $0x688] sm:$0xff]   ;;  %v6023_v12 = vld [vmem:[%s7482_s1 + $0x640] sm:$0xff]  }
  0xb0   : > { %5679 = vmatprep.subr.bf16.mxu1 %v5967_v13  ;;  %2897 = vmatprep.mubr.bf16.mxu0 %v861_v45  ;;  %v6024_v13 = vld [vmem:[%s7482_s1 + $0x6c0] sm:$0xff]  }
  0xb1   : > { %2937 = vmatprep.mubr.bf16.mxu1 %v862_v48 }
  0xb2   : > { %5658 = vmatpush3.bf16.msra.mxu0 %v5968_v14  ;;  %v232_v14 = vld [vmem:[%s6211_s12 + $0x30] sm:$0xff] }
  0xb3   : > { %5680 = vmatpush3.bf16.msra.mxu1 %v5969_v15  ;;  %5659 = vmatprep.subr.bf16.mxu0 %v5970_v16  ;;  %v870_v15 = vrot.slane %v232_v14, %v6229_v41  ;;  %v863_v16 = vcombine.high %v232_v14, %v232_v14 }
  0xb4   : > { %5681 = vmatprep.subr.bf16.mxu1 %v5971_v17  ;;  %v6025_v17 = vld [vmem:[%s7482_s1 + $0x600] sm:$0xff]  }
  0xb6   : > { %5660 = vmatpush3.bf16.msra.mxu0 %v5972_v18  ;;  %v6026_v18 = vld [vmem:[%s7482_s1 + $0x680] sm:$0xff]  }
  0xb7   : > { %5682 = vmatpush3.bf16.msra.mxu1 %v5973_v19  ;;  %5661 = vmatprep.subr.bf16.mxu0 %v5974_v20  ;;  %v878_v19 = vcombine.high %v870_v15, %v870_v15  ;;  %v877_v20 = vrot.slane %v863_v16, %v6229_v41 }
  0xb8   : > { %5683 = vmatprep.subr.bf16.mxu1 %v5975_v21  ;;  %v6028_v21 = vld [vmem:[%s7482_s1 + $0x778] sm:$0xff]  }
  0xba   : > { %5662 = vmatpush3.bf16.msra.mxu0 %v5976_v22  ;;  %v6029_v22 = vld [vmem:[%s7482_s1 + $0x7f8] sm:$0xff]  }
  0xbb   : > { %5684 = vmatpush3.bf16.msra.mxu1 %v5977_v23  ;;  %5663 = vmatprep.subr.bf16.mxu0 %v5978_v24  ;;  %v879_v23 = vcombine.high %v877_v20, %v877_v20  ;;  %v6030_v24 = vld [vmem:[%s7482_s1 + $0x738] sm:$0xff]  }
  0xbc   : > { %5685 = vmatprep.subr.bf16.mxu1 %v5979_v25  ;;  %v6031_v25 = vld [vmem:[%s7482_s1 + $0x7b8] sm:$0xff]  }
  0xbe   : > { %5664 = vmatpush3.bf16.msra.mxu0 %v5980_v26  ;;  %v6032_v26 = vld [vmem:[%s7482_s1 + $0x770] sm:$0xff]  }
  0xbf   : > { %5686 = vmatpush3.bf16.msra.mxu1 %v5981_v27  ;;  %5665 = vmatprep.subr.bf16.mxu0 %v5982_v28  ;;  %v6033_v27 = vld [vmem:[%s7482_s1 + $0x7f0] sm:$0xff]  }
  0xc0   : > { %5687 = vmatprep.subr.bf16.mxu1 %v5983_v29  ;;  %v6034_v28 = vld [vmem:[%s7482_s1 + $0x730] sm:$0xff]  }
  0xc2   : > { %5666 = vmatpush3.bf16.msra.mxu0 %v5984_v30 }
  0xc3   : > { %5688 = vmatpush3.bf16.msra.mxu1 %v5985_v31  ;;  %5667 = vmatprep.subr.bf16.mxu0 %v5986_v32  ;;  %v5014_v31 = vld [vmem:[%s7483_s2] ss:$0 sm:$0xff]  ;;  %v6035_v32 = vld [vmem:[%s7482_s1 + $0x7b0] sm:$0xff]  }
  0xc4   : > { %5689 = vmatprep.subr.bf16.mxu1 %v5987_v34  ;;  %v6036_v34 = vld [vmem:[%s7482_s1 + $0x768] sm:$0xff]  }
  0xc6   : > { %5668 = vmatpush3.bf16.msra.mxu0 %v5988_v35 }
  0xc7   : > { %5690 = vmatpush3.bf16.msra.mxu1 %v5989_v36  ;;  %5669 = vmatprep.subr.bf16.mxu0 %v5990_v37  ;;  %v6037_v37 = vld [vmem:[%s7482_s1 + $0x7e8] sm:$0xff]  }
  0xc8   : > { %5691 = vmatprep.subr.bf16.mxu1 %v5991_v39 }
  0xca   : > { %5670 = vmatpush3.bf16.msra.mxu0 %v5992_v43 }
  0xcb   : > { %5692 = vmatpush3.bf16.msra.mxu1 %v5993_v44  ;;  %5699 = vmatprep.subr.bf16.mxu0 %v5995_v47  ;;  %v6039_v44 = vld [vmem:[%s7482_s1 + $0x7a8] sm:$0xff]  }
  0xcc   : > { %5721 = vmatprep.subr.bf16.mxu1 %v5996_v49  ;;  %v6041_v49 = vld [vmem:[%s7482_s1 + $0x7e0] sm:$0xff]  }
  0xcd   : > { %2898 = vmatmul.mubr.bf16.vlgmr.msra.gmra.mxu0 %v853_v40  ;;  %v6038_v40 = vld [vmem:[%s7482_s1 + $0x728] sm:$0xff]  }
  0xce   : > { %2938 = vmatmul.mubr.bf16.vlgmr.msra.gmra.mxu1 %v860_v46  ;;  %5700 = vmatpush3.bf16.msra.mxu0 %v5997_v50  ;;  %v6040_v46 = vld [vmem:[%s7482_s1 + $0x760] sm:$0xff]  }
  0xcf   : > { %5722 = vmatpush3.bf16.msra.mxu1 %v5998_v51  ;;  %5701 = vmatprep.subr.bf16.mxu0 %v5999_v52  ;;  %v6042_v51 = vld [vmem:[%s7482_s1 + $0x720] sm:$0xff]  }
  0xd0   : > { %5723 = vmatprep.subr.bf16.mxu1 %v6000_v53  ;;  %2977 = vmatprep.mubr.bf16.mxu0 %v878_v19  ;;  %v6043_v52 = vld [vmem:[%s7482_s1 + $0x7a0] sm:$0xff]   ;;  %v6044_v53 = vld [vmem:[%s7482_s1 + $0x758] sm:$0xff]  }
  0xd1   : > { %3017 = vmatprep.mubr.bf16.mxu1 %v879_v23 }
  0xd2   : > { %5702 = vmatpush3.bf16.msra.mxu0 %v6001_v54  ;;  %v6045_v54 = vld [vmem:[%s7482_s1 + $0x7d8] sm:$0xff]  }
  0xd3   : > { %5724 = vmatpush3.bf16.msra.mxu1 %v6002_v55  ;;  %5703 = vmatprep.subr.bf16.mxu0 %v6003_v56  ;;  %v6046_v55 = vld [vmem:[%s7482_s1 + $0x718] sm:$0xff]  }
  0xd4   : > { %5725 = vmatprep.subr.bf16.mxu1 %v6004_v57  ;;  %v6047_v56 = vld [vmem:[%s7482_s1 + $0x798] sm:$0xff]   ;;  %v6048_v57 = vld [vmem:[%s7482_s1 + $0x750] sm:$0xff]  }
  0xd6   : > { %5704 = vmatpush3.bf16.msra.mxu0 %v6005_v58  ;;  %v6049_v58 = vld [vmem:[%s7482_s1 + $0x7d0] sm:$0xff]  }
  0xd7   : > { %5726 = vmatpush3.bf16.msra.mxu1 %v6006_v59  ;;  %5705 = vmatprep.subr.bf16.mxu0 %v6007_v60  ;;  %v6050_v59 = vld [vmem:[%s7482_s1 + $0x710] sm:$0xff]  }
  0xd8   : > { %5727 = vmatprep.subr.bf16.mxu1 %v6008_v61  ;;  %v6051_v60 = vld [vmem:[%s7482_s1 + $0x790] sm:$0xff]   ;;  %v6052_v61 = vld [vmem:[%s7482_s1 + $0x748] sm:$0xff]  }
  0xda   : > { %5706 = vmatpush3.bf16.msra.mxu0 %v6009_v62  ;;  %v6053_v62 = vld [vmem:[%s7482_s1 + $0x7c8] sm:$0xff]  }
  0xdb   : > { %5728 = vmatpush3.bf16.msra.mxu1 %v6010_v63  ;;  %5707 = vmatprep.subr.bf16.mxu0 %v6011_v0  ;;  %v6054_v63 = vld [vmem:[%s7482_s1 + $0x708] sm:$0xff]  }
  0xdc   : > { %5729 = vmatprep.subr.bf16.mxu1 %v6012_v1  ;;  %v6055_v0 = vld [vmem:[%s7482_s1 + $0x788] sm:$0xff]   ;;  %v6056_v1 = vld [vmem:[%s7482_s1 + $0x740] sm:$0xff]  }
  0xde   : > { %5708 = vmatpush3.bf16.msra.mxu0 %v6013_v2  ;;  %v6057_v2 = vld [vmem:[%s7482_s1 + $0x7c0] sm:$0xff]  }
  0xdf   : > { %5730 = vmatpush3.bf16.msra.mxu1 %v6014_v3  ;;  %5709 = vmatprep.subr.bf16.mxu0 %v6015_v4  ;;  %v233_v3 = vld [vmem:[%s6211_s12 + $0x38] sm:$0xff] }
  0xe0   : > { %5731 = vmatprep.subr.bf16.mxu1 %v6016_v5  ;;  %v887_v4 = vrot.slane %v233_v3, %v6229_v41  ;;  %v880_v5 = vcombine.high %v233_v3, %v233_v3  ;;  %v3106_v3 = vld [vmem:[%s7484_s3] sm:$0xff] }
  0xe2   : > { %5710 = vmatpush3.bf16.msra.mxu0 %v6017_v6  ;;  %v6058_v6 = vld [vmem:[%s7482_s1 + $0x700] sm:$0xff]  }
  0xe3   : > { %5732 = vmatpush3.bf16.msra.mxu1 %v6018_v7  ;;  %5711 = vmatprep.subr.bf16.mxu0 %v6019_v8  ;;  %v6059_v7 = vld [vmem:[%s7482_s1 + $0x780] sm:$0xff]   ;;  %v895_v8 = vcombine.high %v887_v4, %v887_v4 }
  0xe4   : > { %5733 = vmatprep.subr.bf16.mxu1 %v6020_v9  ;;  %v894_v9 = vrot.slane %v880_v5, %v6229_v41  ;;  %v3107_v5 = vld [vmem:[%s7484_s3 + $0x8] sm:$0xff] }
  0xe6   : > { %5712 = vmatpush3.bf16.msra.mxu0 %v6021_v10  ;;  %v896_v10 = vcombine.high %v894_v9, %v894_v9 }
  0xe7   : > { %5734 = vmatpush3.bf16.msra.mxu1 %v6022_v11  ;;  %5713 = vmatprep.subr.bf16.mxu0 %v6023_v12 }
  0xe8   : > { %5735 = vmatprep.subr.bf16.mxu1 %v6024_v13 }
  0xea   : > { %5714 = vmatpush3.bf16.msra.mxu0 %v6025_v17 }
  0xeb   : > { %5736 = vmatpush3.bf16.msra.mxu1 %v6026_v18  ;;  %5743 = vmatprep.subr.bf16.mxu0 %v6028_v21 }
  0xec   : > { %5765 = vmatprep.subr.bf16.mxu1 %v6029_v22 }
  0xed   : > { %v5451_v29 = vpop.f32.mrf.mxu0  ;;  %2978 = vmatmul.mubr.bf16.vlgmr.msra.gmra.mxu0 %v870_v15 }
  0xee   : > { %v5473_v30 = vpop.f32.mrf.mxu1  ;;  %3018 = vmatmul.mubr.bf16.vlgmr.msra.gmra.mxu1 %v877_v20  ;;  %5744 = vmatpush3.bf16.msra.mxu0 %v6030_v24 }
  0xef   : > { %5766 = vmatpush3.bf16.msra.mxu1 %v6031_v25  ;;  %v5452_v35 = vpop.f32.mrf.mxu0  ;;  %5745 = vmatprep.subr.bf16.mxu0 %v6032_v26 }
  0xf0   : > { %v5474_v36 = vpop.f32.mrf.mxu1  ;;  %5767 = vmatprep.subr.bf16.mxu1 %v6033_v27  ;;  %v5453_v38 = vadd.f32 %v5452_v35, %v5451_v29  ;;  %3057 = vmatprep.mubr.bf16.mxu0 %v895_v8 }
  0xf1   : > { %v5475_v39 = vadd.f32 %v5474_v36, %v5473_v30  ;;  %v5454_v42 = vpop.f32.mrf.mxu0  ;;  %3097 = vmatprep.mubr.bf16.mxu1 %v896_v10  ;;  %v3202_v36 = vld [vmem:[%s7484_s3 + $0x300] sm:$0xff] }
  0xf2   : > { %v5476_v43 = vpop.f32.mrf.mxu1  ;;  %v2500_v45 = vadd.f32 %v5453_v38, %v5014_v31  ;;  %5746 = vmatpush3.bf16.msra.mxu0 %v6034_v28  ;;  %v3203_v38 = vld [vmem:[%s7484_s3 + $0x308] sm:$0xff] }
  0xf3   : > { %5768 = vmatpush3.bf16.msra.mxu1 %v6035_v32  ;;  %v5455_v47 = vpop.f32.mrf.mxu0  ;;  %5747 = vmatprep.subr.bf16.mxu0 %v6036_v34  ;;  %v3219_v42 = vld [vmem:[%s7484_s3 + $0x388] sm:$0xff]  ;;  %v3170_v43 = vld [vmem:[%s7484_s3 + $0x200] sm:$0xff] }
  0xf4   : > { %v5477_v48 = vpop.f32.mrf.mxu1  ;;  %5769 = vmatprep.subr.bf16.mxu1 %v6037_v37  ;;  %v2540_v50 = vadd.f32 %v5475_v39, %v2500_v45  ;;  %v3218_v37 = vld [vmem:[%s7484_s3 + $0x380] sm:$0xff]  ;;  %v5369_v45 = vcombine.low %v3203_v38, %v3219_v42 }
  0xf5   : > { %v5367_v39 = vcombine.low %v3202_v36, %v3218_v37  ;;  %v3171_v48 = vld [vmem:[%s7484_s3 + $0x208] sm:$0xff] }
  0xf6   : > { %5748 = vmatpush3.bf16.msra.mxu0 %v6038_v40  ;;  %v5368_v40 = vcombine.high %v3202_v36, %v3218_v37 }
  0xf7   : > { %5770 = vmatpush3.bf16.msra.mxu1 %v6039_v44  ;;  %5749 = vmatprep.subr.bf16.mxu0 %v6040_v46  ;;  %v3186_v44 = vld [vmem:[%s7484_s3 + $0x280] sm:$0xff]  ;;  %v5370_v46 = vcombine.high %v3203_v38, %v3219_v42 }
  0xf8   : > { %5771 = vmatprep.subr.bf16.mxu1 %v6041_v49  ;;  %v5336_v47 = vcombine.high %v3170_v43, %v3186_v44  ;;  %v3187_v49 = vld [vmem:[%s7484_s3 + $0x288] sm:$0xff] }
  0xfa   : > { %5750 = vmatpush3.bf16.msra.mxu0 %v6042_v51  ;;  %v5335_v51 = vcombine.low %v3170_v43, %v3186_v44 }
  0xfb   : > { %5772 = vmatpush3.bf16.msra.mxu1 %v6043_v52  ;;  %5751 = vmatprep.subr.bf16.mxu0 %v6044_v53  ;;  %v5337_v52 = vcombine.low %v3171_v48, %v3187_v49  ;;  %v3138_v53 = vld [vmem:[%s7484_s3 + $0x100] sm:$0xff] }
  0xfc   : > { %5773 = vmatprep.subr.bf16.mxu1 %v6045_v54  ;;  %v3154_v54 = vld [vmem:[%s7484_s3 + $0x180] sm:$0xff] }
  0xfe   : > { %5752 = vmatpush3.bf16.msra.mxu0 %v6046_v55  ;;  %v3139_v55 = vld [vmem:[%s7484_s3 + $0x108] sm:$0xff] }
  0xff   : > { %5774 = vmatpush3.bf16.msra.mxu1 %v6047_v56  ;;  %5753 = vmatprep.subr.bf16.mxu0 %v6048_v57 }
 0x100   : > { %5775 = vmatprep.subr.bf16.mxu1 %v6049_v58  ;;  %v5304_v58 = vcombine.high %v3138_v53, %v3154_v54 }
 0x102   : > { %5754 = vmatpush3.bf16.msra.mxu0 %v6050_v59  ;;  %v3155_v59 = vld [vmem:[%s7484_s3 + $0x188] sm:$0xff] }
 0x103   : > { %5776 = vmatpush3.bf16.msra.mxu1 %v6051_v60  ;;  %5755 = vmatprep.subr.bf16.mxu0 %v6052_v61  ;;  %v5303_v60 = vcombine.low %v3138_v53, %v3154_v54  ;;  %v5305_v61 = vcombine.low %v3139_v55, %v3155_v59 }
 0x104   : > { %5777 = vmatprep.subr.bf16.mxu1 %v6053_v62  ;;  %v5306_v62 = vcombine.high %v3139_v55, %v3155_v59 }
 0x106   : > { %5756 = vmatpush3.bf16.msra.mxu0 %v6054_v63 }
 0x107   : > { %5778 = vmatpush3.bf16.msra.mxu1 %v6055_v0  ;;  %5757 = vmatprep.subr.bf16.mxu0 %v6056_v1 }
 0x108   : > { %5779 = vmatprep.subr.bf16.mxu1 %v6057_v2 }
 0x10a   : > { %5758 = vmatpush3.bf16.msra.mxu0 %v6058_v6 }
 0x10b   : > { %5780 = vmatpush3.bf16.msra.mxu1 %v6059_v7  ;;  %4054 = vmatprep.subr.bf16.mxu0 %v5368_v40 }
 0x10c   : > { %4095 = vmatprep.subr.bf16.mxu1 %v5370_v46 }
 0x10d   : > { %v5495_v11 = vpop.f32.mrf.mxu0  ;;  %3058 = vmatmul.mubr.bf16.vlgmr.msra.gmra.mxu0 %v887_v4  ;;  %v3122_v4 = vld [vmem:[%s7484_s3 + $0x80] sm:$0xff] }
 0x10e   : > { %v5517_v12 = vpop.f32.mrf.mxu1  ;;  %3098 = vmatmul.mubr.bf16.vlgmr.msra.gmra.mxu1 %v894_v9  ;;  %4055 = vmatpush1.bf16.msra.mxu0 %v5367_v39  ;;  %v5272_v8 = vcombine.high %v3106_v3, %v3122_v4  ;;  %v3123_v9 = vld [vmem:[%s7484_s3 + $0x88] sm:$0xff] }
 0x10f   : > { %v5496_v13 = vpop.f32.mrf.mxu0  ;;  %4096 = vmatpush1.bf16.msra.mxu1 %v5369_v45  ;;  %4056 = vmatprep.subr.bf16.mxu0 %v5336_v47 }
 0x110   : > { %v5518_v14 = vpop.f32.mrf.mxu1  ;;  %v5497_v15 = vadd.f32 %v5496_v13, %v5495_v11  ;;  %v5271_v11 = vcombine.low %v3106_v3, %v3122_v4  ;;  %v5274_v13 = vcombine.high %v3107_v5, %v3123_v9 }
 0x111   : > { %v5519_v16 = vadd.f32 %v5518_v14, %v5517_v12  ;;  %v5498_v17 = vpop.f32.mrf.mxu0  ;;  %v5273_v12 = vcombine.low %v3107_v5, %v3123_v9  ;;  %v3172_v9 = vld [vmem:[%s7484_s3 + $0x210] sm:$0xff] }
 0x112   : > { %v5520_v18 = vpop.f32.mrf.mxu1  ;;  %v2580_v19 = vadd.f32 %v5497_v15, %v2540_v50  ;;  %v5338_v50 = vcombine.high %v3171_v48, %v3187_v49  ;;  %4057 = vmatpush1.bf16.msra.mxu0 %v5335_v51  ;;  %v6974_v17 = vld [vmem:[%s7484_s3 + $0x310] sm:$0xff] }
 0x113   : > { %v5499_v20 = vpop.f32.mrf.mxu0  ;;  %4058 = vmatprep.subr.bf16.mxu0 %v5304_v58  ;;  %v6979_v18 = vld [vmem:[%s7484_s3 + $0x390] sm:$0xff] }
 0x114   : > { %v5521_v21 = vpop.f32.mrf.mxu1  ;;  %v2620_v22 = vadd.f32 %v5519_v16, %v2580_v19  ;;  %4097 = vmatprep.subr.bf16.mxu1 %v5338_v50  ;;  %v6984_v19 = vld [vmem:[%s7484_s3 + $0x318] sm:$0xff]  ;;  %v5372_v20 = vcombine.high %v6974_v17, %v6979_v18 }
 0x115   : > { %4098 = vmatpush1.bf16.msra.mxu1 %v5337_v52  ;;  %v6991_v21 = vld [vmem:[%s7484_s3 + $0x398] sm:$0xff] }
 0x116   : > { %4099 = vmatprep.subr.bf16.mxu1 %v5306_v62  ;;  %4059 = vmatpush1.bf16.msra.mxu0 %v5303_v60 }
 0x117   : > { %4060 = vmatprep.subr.bf16.mxu0 %v5272_v8 }
 0x119   : > { %4100 = vmatpush1.bf16.msra.mxu1 %v5305_v61 }
 0x11a   : > { %4101 = vmatprep.subr.bf16.mxu1 %v5274_v13  ;;  %4061 = vmatpush1.bf16.msra.mxu0 %v5271_v11  ;;  %v3173_v13 = vld [vmem:[%s7484_s3 + $0x218] sm:$0xff] }
 0x11b   : > { %4136 = vmatprep.subr.bf16.mxu0 %v5372_v20 }
 0x11d   : > { %4102 = vmatpush1.bf16.msra.mxu1 %v5273_v12  ;;  %v3188_v12 = vld [vmem:[%s7484_s3 + $0x290] sm:$0xff] }
 0x11e   : > { %v5340_v20 = vcombine.high %v3172_v9, %v3188_v12 }
 0x12d   : > { %v5539_v23 = vpop.f32.mrf.mxu0 }
 0x12e   : > { %v5561_v24 = vpop.f32.mrf.mxu1 }
 0x12f   : > { %v5540_v25 = vpop.f32.mrf.mxu0 }
 0x130   : > { %v5562_v26 = vpop.f32.mrf.mxu1  ;;  %v5541_v27 = vadd.f32 %v5540_v25, %v5539_v23  ;;  %v5373_v23 = vcombine.low %v6984_v19, %v6991_v21  ;;  %v6070_v25 = vmov 0  }
 0x131   : > { %v5563_v28 = vadd.f32 %v5562_v26, %v5561_v24  ;;  %v5542_v29 = vpop.f32.mrf.mxu0  ;;  %v5374_v24 = vcombine.high %v6984_v19, %v6991_v21  ;;  %4078 = vmatprep.mubr.bf16.mxu0 %v6070_v25  ;;  %4119 = vmatprep.mubr.bf16.mxu1 %v6070_v25 }
 0x132   : > { %v5564_v30 = vpop.f32.mrf.mxu1  ;;  %v2660_v31 = vadd.f32 %v5541_v27, %v2620_v22  ;;  %v5371_v22 = vcombine.low %v6974_v17, %v6979_v18  ;;  %v3109_v17 = vld [vmem:[%s7484_s3 + $0x18] sm:$0xff] }
 0x133   : > { %v5543_v32 = vpop.f32.mrf.mxu0  ;;  %4177 = vmatprep.subr.bf16.mxu1 %v5374_v24  ;;  %v3125_v18 = vld [vmem:[%s7484_s3 + $0x98] sm:$0xff] }
 0x134   : > { %v5565_v34 = vpop.f32.mrf.mxu1  ;;  %v2700_v35 = vadd.f32 %v5563_v28, %v2660_v31 }
 0x14d   : > { %v5583_v56 = vpop.f32.mrf.mxu0 }
 0x14e   : > { %v5605_v57 = vpop.f32.mrf.mxu1 }
 0x14f   : > { %v5584_v63 = vpop.f32.mrf.mxu0 }
 0x150   : > { %v5606_v0 = vpop.f32.mrf.mxu1  ;;  %v5585_v1 = vadd.f32 %v5584_v63, %v5583_v56 }
 0x151   : > { %v5607_v2 = vadd.f32 %v5606_v0, %v5605_v57  ;;  %v5586_v6 = vpop.f32.mrf.mxu0 }
 0x152   : > { %v5608_v7 = vpop.f32.mrf.mxu1  ;;  %v2740_v10 = vadd.f32 %v5585_v1, %v2700_v35 }
 0x153   : > { %v5587_v14 = vpop.f32.mrf.mxu0 }
 0x154   : > { %v5609_v15 = vpop.f32.mrf.mxu1  ;;  %v2780_v16 = vadd.f32 %v5607_v2, %v2740_v10  ;;  %v3189_v14 = vld [vmem:[%s7484_s3 + $0x298] sm:$0xff] }
 0x155   : > { %v5342_v24 = vcombine.high %v3173_v13, %v3189_v14 }
 0x16d   : > { %v5627_v26 = vpop.f32.mrf.mxu0 }
 0x16e   : > { %v5649_v27 = vpop.f32.mrf.mxu1 }
 0x16f   : > { %v5628_v28 = vpop.f32.mrf.mxu0 }
 0x170   : > { %v5650_v29 = vpop.f32.mrf.mxu1  ;;  %v5629_v30 = vadd.f32 %v5628_v28, %v5627_v26  ;;  %v3140_v26 = vld [vmem:[%s7484_s3 + $0x110] sm:$0xff]  ;;  %v3141_v28 = vld [vmem:[%s7484_s3 + $0x118] sm:$0xff] }
 0x171   : > { %v5651_v31 = vadd.f32 %v5650_v29, %v5649_v27  ;;  %v5630_v32 = vpop.f32.mrf.mxu0  ;;  %v3156_v27 = vld [vmem:[%s7484_s3 + $0x190] sm:$0xff]  ;;  %v3157_v29 = vld [vmem:[%s7484_s3 + $0x198] sm:$0xff] }
 0x172   : > { %v5652_v34 = vpop.f32.mrf.mxu1  ;;  %v2820_v35 = vadd.f32 %v5629_v30, %v2780_v16  ;;  %v5339_v30 = vcombine.low %v3172_v9, %v3188_v12  ;;  %v5308_v32 = vcombine.high %v3140_v26, %v3156_v27  ;;  %v5307_v19 = vcombine.low %v3140_v26, %v3156_v27  ;;  %v3225_v9 = vld [vmem:[%s7484_s3 + $0x3b8] sm:$0xff] }
 0x173   : > { %v5631_v36 = vpop.f32.mrf.mxu0  ;;  %v5310_v34 = vcombine.high %v3141_v28, %v3157_v29  ;;  %v5309_v21 = vcombine.low %v3141_v28, %v3157_v29 }
 0x174   : > { %v5653_v37 = vpop.f32.mrf.mxu1  ;;  %v2860_v38 = vadd.f32 %v5651_v31, %v2820_v35  ;;  %v5341_v31 = vcombine.low %v3173_v13, %v3189_v14  ;;  %v3108_v35 = vld [vmem:[%s7484_s3 + $0x10] sm:$0xff] }
 0x175   : > { %v3124_v36 = vld [vmem:[%s7484_s3 + $0x90] sm:$0xff]  ;;  %v3206_v37 = vld [vmem:[%s7484_s3 + $0x320] sm:$0xff] }
 0x176   : > { %v3176_v14 = vld [vmem:[%s7484_s3 + $0x230] sm:$0xff] }
 0x18d   : > { %v5671_v39 = vpop.f32.mrf.mxu0 }
 0x18e   : > { %v5693_v40 = vpop.f32.mrf.mxu1 }
 0x18f   : > { %v5672_v42 = vpop.f32.mrf.mxu0 }
 0x190   : > { %v5694_v43 = vpop.f32.mrf.mxu1  ;;  %v5673_v56 = vadd.f32 %v5672_v42, %v5671_v39  ;;  %v3207_v39 = vld [vmem:[%s7484_s3 + $0x328] sm:$0xff]  ;;  %v5275_v42 = vcombine.low %v3108_v35, %v3124_v36 }
 0x191   : > { %v5674_v44 = vpop.f32.mrf.mxu0  ;;  %v5695_v58 = vadd.f32 %v5694_v43, %v5693_v40  ;;  %v3223_v40 = vld [vmem:[%s7484_s3 + $0x3a8] sm:$0xff]  ;;  %v5277_v43 = vcombine.low %v3109_v17, %v3125_v18 }
 0x192   : > { %v5696_v45 = vpop.f32.mrf.mxu1  ;;  %v2900_v57 = vadd.f32 %v5673_v56, %v2860_v38  ;;  %v3222_v38 = vld [vmem:[%s7484_s3 + $0x3a0] sm:$0xff]  ;;  %v3143_v56 = vld [vmem:[%s7484_s3 + $0x128] sm:$0xff] }
 0x193   : > { %v5675_v46 = vpop.f32.mrf.mxu0  ;;  %v5376_v44 = vcombine.high %v3206_v37, %v3222_v38  ;;  %v5378_v45 = vcombine.high %v3207_v39, %v3223_v40 }
 0x194   : > { %v5697_v47 = vpop.f32.mrf.mxu1  ;;  %v2940_v60 = vadd.f32 %v5695_v58, %v2900_v57  ;;  %v3174_v46 = vld [vmem:[%s7484_s3 + $0x220] sm:$0xff]  ;;  %v3159_v57 = vld [vmem:[%s7484_s3 + $0x1a8] sm:$0xff] }
 0x195   : > { %v3190_v47 = vld [vmem:[%s7484_s3 + $0x2a0] sm:$0xff] }
 0x196   : > { %v5343_v58 = vcombine.low %v3174_v46, %v3190_v47 }
 0x1ad   : > { %v5715_v48 = vpop.f32.mrf.mxu0 }
 0x1ae   : > { %v5737_v49 = vpop.f32.mrf.mxu1 }
 0x1af   : > { %v5716_v50 = vpop.f32.mrf.mxu0 }
 0x1b0   : > { %v5738_v51 = vpop.f32.mrf.mxu1  ;;  %v5717_v59 = vadd.f32 %v5716_v50, %v5715_v48  ;;  %v3175_v48 = vld [vmem:[%s7484_s3 + $0x228] sm:$0xff]  ;;  %v5375_v50 = vcombine.low %v3206_v37, %v3222_v38 }
 0x1b1   : > { %v5718_v52 = vpop.f32.mrf.mxu0  ;;  %v5739_v62 = vadd.f32 %v5738_v51, %v5737_v49  ;;  %v3191_v49 = vld [vmem:[%s7484_s3 + $0x2a8] sm:$0xff]  ;;  %v5377_v51 = vcombine.low %v3207_v39, %v3223_v40 }
 0x1b2   : > { %v5740_v53 = vpop.f32.mrf.mxu1  ;;  %v2980_v61 = vadd.f32 %v5717_v59, %v2940_v60  ;;  %v5344_v52 = vcombine.high %v3174_v46, %v3190_v47  ;;  %v5345_v59 = vcombine.low %v3175_v48, %v3191_v49 }
 0x1b3   : > { %v5719_v54 = vpop.f32.mrf.mxu0  ;;  %v5346_v53 = vcombine.high %v3175_v48, %v3191_v49 }
 0x1b4   : > { %v5741_v55 = vpop.f32.mrf.mxu1  ;;  %v3020_v3 = vadd.f32 %v5739_v62, %v2980_v61  ;;  %v3142_v54 = vld [vmem:[%s7484_s3 + $0x120] sm:$0xff]  ;;  %v5314_v61 = vcombine.high %v3143_v56, %v3159_v57 }
 0x1b5   : > { %v3158_v55 = vld [vmem:[%s7484_s3 + $0x1a0] sm:$0xff] }
 0x1b6   : > { %v5312_v60 = vcombine.high %v3142_v54, %v3158_v55  ;;  %v3110_v62 = vld [vmem:[%s7484_s3 + $0x20] sm:$0xff] }
 0x1cd   : > { %v5759_v63 = vpop.f32.mrf.mxu0 }
 0x1ce   : > { %v5781_v0 = vpop.f32.mrf.mxu1 }
 0x1cf   : > { %v5760_v1 = vpop.f32.mrf.mxu0 }
 0x1d0   : > { %v5782_v2 = vpop.f32.mrf.mxu1  ;;  %v5761_v4 = vadd.f32 %v5760_v1, %v5759_v63  ;;  %v3126_v63 = vld [vmem:[%s7484_s3 + $0xa0] sm:$0xff]  ;;  %v3127_v1 = vld [vmem:[%s7484_s3 + $0xa8] sm:$0xff] }
 0x1d1   : > { %v5762_v5 = vpop.f32.mrf.mxu0  ;;  %v5783_v8 = vadd.f32 %v5782_v2, %v5781_v0  ;;  %v3111_v0 = vld [vmem:[%s7484_s3 + $0x28] sm:$0xff]  ;;  %v5311_v2 = vcombine.low %v3142_v54, %v3158_v55 }
 0x1d2   : > { %v5784_v6 = vpop.f32.mrf.mxu1  ;;  %v3060_v7 = vadd.f32 %v5761_v4, %v3020_v3  ;;  %v5313_v3 = vcombine.low %v3143_v56, %v3159_v57  ;;  %v5280_v4 = vcombine.high %v3110_v62, %v3126_v63  ;;  %v5282_v5 = vcombine.high %v3111_v0, %v3127_v1 }
 0x1d3   : > { %v5763_v10 = vpop.f32.mrf.mxu0  ;;  %v3208_v6 = vld [vmem:[%s7484_s3 + $0x330] sm:$0xff] }
 0x1d4   : > { %v5785_v11 = vpop.f32.mrf.mxu1  ;;  %v3100_v15 = vadd.f32 %v5783_v8, %v3060_v7  ;;  %v3224_v7 = vld [vmem:[%s7484_s3 + $0x3b0] sm:$0xff]  ;;  %v3209_v8 = vld [vmem:[%s7484_s3 + $0x338] sm:$0xff]  ;;  %v5279_v10 = vcombine.low %v3110_v62, %v3126_v63 }
 0x1d5   : > { %v5281_v11 = vcombine.low %v3111_v0, %v3127_v1  ;;  %v5380_v12 = vcombine.high %v3208_v6, %v3224_v7  ;;  %v5382_v13 = vcombine.high %v3209_v8, %v3225_v9  ;;  %v5379_v26 = vcombine.low %v3208_v6, %v3224_v7 }
 0x1d6   : > { %v7013_v16 = vpack.c.bf16 %v3100_v15, %v3100_v15  ;;  %v3192_v15 = vld [vmem:[%s7484_s3 + $0x2b0] sm:$0xff]  ;;  %v5381_v27 = vcombine.low %v3209_v8, %v3225_v9 }
 0x1d7   : > { %v5348_v28 = vcombine.high %v3176_v14, %v3192_v15 }
 0x1d8   : > { %5399 = vmatmul.mubr.msk.bf16.vlgmr.msra.gmra.mxu0 %vm4042_vm0, %v7013_v16  ;;  %5400 = vmatmul.mubr.msk.bf16.vlgmr.msra.gmra.mxu1 %vm4042_vm0, %v7013_v16 }
 0x1d9   : > { %4137 = vmatpush1.bf16.msra.mxu0 %v5371_v22  ;;  %4178 = vmatpush1.bf16.msra.mxu1 %v5373_v23  ;;  %v5276_v22 = vcombine.high %v3108_v35, %v3124_v36  ;;  %v5278_v23 = vcombine.high %v3109_v17, %v3125_v18  ;;  %v5347_v35 = vcombine.low %v3176_v14, %v3192_v15 }
 0x1da   : > { %4138 = vmatprep.subr.bf16.mxu0 %v5340_v20  ;;  %4179 = vmatprep.subr.bf16.mxu1 %v5342_v24  ;;  %v3177_v20 = vld [vmem:[%s7484_s3 + $0x238] sm:$0xff] }
 0x1db   : > { %4160 = vmatprep.mubr.bf16.mxu0 %v6070_v25  ;;  %4201 = vmatprep.mubr.bf16.mxu1 %v6070_v25  ;;  %v3193_v24 = vld [vmem:[%s7484_s3 + $0x2b8] sm:$0xff] }
 0x1dc   : > { %v5350_v29 = vcombine.high %v3177_v20, %v3193_v24  ;;  %v5349_v36 = vcombine.low %v3177_v20, %v3193_v24 }
 0x1dd   : > { %4139 = vmatpush1.bf16.msra.mxu0 %v5339_v30  ;;  %4180 = vmatpush1.bf16.msra.mxu1 %v5341_v31  ;;  %v3144_v30 = vld [vmem:[%s7484_s3 + $0x130] sm:$0xff] }
 0x1de   : > { %4140 = vmatprep.subr.bf16.mxu0 %v5308_v32  ;;  %4181 = vmatprep.subr.bf16.mxu1 %v5310_v34  ;;  %v3160_v31 = vld [vmem:[%s7484_s3 + $0x1b0] sm:$0xff]  ;;  %v3145_v32 = vld [vmem:[%s7484_s3 + $0x138] sm:$0xff] }
 0x1df   : > { %v3161_v34 = vld [vmem:[%s7484_s3 + $0x1b8] sm:$0xff]  ;;  %v5316_v17 = vcombine.high %v3144_v30, %v3160_v31  ;;  %v5315_v37 = vcombine.low %v3144_v30, %v3160_v31 }
 0x1e0   : > { %v5318_v18 = vcombine.high %v3145_v32, %v3161_v34  ;;  %v5317_v38 = vcombine.low %v3145_v32, %v3161_v34 }
 0x1e1   : > { %4141 = vmatpush1.bf16.msra.mxu0 %v5307_v19  ;;  %4182 = vmatpush1.bf16.msra.mxu1 %v5309_v21  ;;  %v3112_v19 = vld [vmem:[%s7484_s3 + $0x30] sm:$0xff] }
 0x1e2   : > { %4142 = vmatprep.subr.bf16.mxu0 %v5276_v22  ;;  %4183 = vmatprep.subr.bf16.mxu1 %v5278_v23  ;;  %v3128_v21 = vld [vmem:[%s7484_s3 + $0xb0] sm:$0xff]  ;;  %v3113_v22 = vld [vmem:[%s7484_s3 + $0x38] sm:$0xff] }
 0x1e3   : > { %v3129_v23 = vld [vmem:[%s7484_s3 + $0xb8] sm:$0xff]  ;;  %v5284_v39 = vcombine.high %v3112_v19, %v3128_v21  ;;  %v5283_v46 = vcombine.low %v3112_v19, %v3128_v21 }
 0x1e4   : > { %v5286_v40 = vcombine.high %v3113_v22, %v3129_v23  ;;  %v5285_v47 = vcombine.low %v3113_v22, %v3129_v23 }
 0x1e5   : > { %4143 = vmatpush1.bf16.msra.mxu0 %v5275_v42  ;;  %4184 = vmatpush1.bf16.msra.mxu1 %v5277_v43  ;;  %v3210_v42 = vld [vmem:[%s7484_s3 + $0x340] sm:$0xff] }
 0x1e6   : > { %4218 = vmatprep.subr.bf16.mxu0 %v5376_v44  ;;  %4259 = vmatprep.subr.bf16.mxu1 %v5378_v45  ;;  %v3226_v43 = vld [vmem:[%s7484_s3 + $0x3c0] sm:$0xff]  ;;  %v3211_v44 = vld [vmem:[%s7484_s3 + $0x348] sm:$0xff] }
 0x1e7   : > { %v3227_v45 = vld [vmem:[%s7484_s3 + $0x3c8] sm:$0xff]  ;;  %v5384_v48 = vcombine.high %v3210_v42, %v3226_v43  ;;  %v5383_v54 = vcombine.low %v3210_v42, %v3226_v43 }
 0x1e8   : > { %5401 = vmatmul.mubr.msk.bf16.vlgmr.msra.gmra.mxu0 %vm4042_vm0, %v7013_v16  ;;  %5402 = vmatmul.mubr.msk.bf16.vlgmr.msra.gmra.mxu1 %vm4042_vm0, %v7013_v16  ;;  %v5386_v49 = vcombine.high %v3211_v44, %v3227_v45  ;;  %v5385_v55 = vcombine.low %v3211_v44, %v3227_v45 }
 0x1e9   : > { %4219 = vmatpush1.bf16.msra.mxu0 %v5375_v50  ;;  %4260 = vmatpush1.bf16.msra.mxu1 %v5377_v51  ;;  %v3178_v50 = vld [vmem:[%s7484_s3 + $0x240] sm:$0xff] }
 0x1ea   : > { %4220 = vmatprep.subr.bf16.mxu0 %v5344_v52  ;;  %4261 = vmatprep.subr.bf16.mxu1 %v5346_v53  ;;  %v3194_v51 = vld [vmem:[%s7484_s3 + $0x2c0] sm:$0xff]  ;;  %v3179_v52 = vld [vmem:[%s7484_s3 + $0x248] sm:$0xff] }
 0x1eb   : > { %4242 = vmatprep.mubr.bf16.mxu0 %v6070_v25  ;;  %4283 = vmatprep.mubr.bf16.mxu1 %v6070_v25  ;;  %v3195_v53 = vld [vmem:[%s7484_s3 + $0x2c8] sm:$0xff]  ;;  %v5352_v56 = vcombine.high %v3178_v50, %v3194_v51  ;;  %v5351_v62 = vcombine.low %v3178_v50, %v3194_v51 }
 0x1ec   : > { %v5354_v57 = vcombine.high %v3179_v52, %v3195_v53  ;;  %v5353_v63 = vcombine.low %v3179_v52, %v3195_v53 }
 0x1ed   : > { %4221 = vmatpush1.bf16.msra.mxu0 %v5343_v58  ;;  %4262 = vmatpush1.bf16.msra.mxu1 %v5345_v59  ;;  %v3146_v58 = vld [vmem:[%s7484_s3 + $0x140] sm:$0xff] }
 0x1ee   : > { %4222 = vmatprep.subr.bf16.mxu0 %v5312_v60  ;;  %4263 = vmatprep.subr.bf16.mxu1 %v5314_v61  ;;  %v3162_v59 = vld [vmem:[%s7484_s3 + $0x1c0] sm:$0xff]  ;;  %v3147_v60 = vld [vmem:[%s7484_s3 + $0x148] sm:$0xff] }
 0x1ef   : > { %v3163_v61 = vld [vmem:[%s7484_s3 + $0x1c8] sm:$0xff]  ;;  %v5320_v0 = vcombine.high %v3146_v58, %v3162_v59  ;;  %v5319_v6 = vcombine.low %v3146_v58, %v3162_v59 }
 0x1f0   : > { %v5322_v1 = vcombine.high %v3147_v60, %v3163_v61  ;;  %v5321_v7 = vcombine.low %v3147_v60, %v3163_v61 }
 0x1f1   : > { %4223 = vmatpush1.bf16.msra.mxu0 %v5311_v2  ;;  %4264 = vmatpush1.bf16.msra.mxu1 %v5313_v3  ;;  %v3114_v2 = vld [vmem:[%s7484_s3 + $0x40] sm:$0xff] }
 0x1f2   : > { %4224 = vmatprep.subr.bf16.mxu0 %v5280_v4  ;;  %4265 = vmatprep.subr.bf16.mxu1 %v5282_v5  ;;  %v3130_v3 = vld [vmem:[%s7484_s3 + $0xc0] sm:$0xff]  ;;  %v3115_v4 = vld [vmem:[%s7484_s3 + $0x48] sm:$0xff] }
 0x1f3   : > { %v3131_v5 = vld [vmem:[%s7484_s3 + $0xc8] sm:$0xff]  ;;  %v5288_v8 = vcombine.high %v3114_v2, %v3130_v3  ;;  %v5287_v14 = vcombine.low %v3114_v2, %v3130_v3 }
 0x1f4   : > { %v5290_v9 = vcombine.high %v3115_v4, %v3131_v5  ;;  %v5289_v15 = vcombine.low %v3115_v4, %v3131_v5 }
 0x1f5   : > { %4225 = vmatpush1.bf16.msra.mxu0 %v5279_v10  ;;  %4266 = vmatpush1.bf16.msra.mxu1 %v5281_v11  ;;  %v3212_v10 = vld [vmem:[%s7484_s3 + $0x350] sm:$0xff] }
 0x1f6   : > { %4300 = vmatprep.subr.bf16.mxu0 %v5380_v12  ;;  %4341 = vmatprep.subr.bf16.mxu1 %v5382_v13  ;;  %v3228_v11 = vld [vmem:[%s7484_s3 + $0x3d0] sm:$0xff]  ;;  %v3213_v12 = vld [vmem:[%s7484_s3 + $0x358] sm:$0xff] }
 0x1f7   : > { %v3229_v13 = vld [vmem:[%s7484_s3 + $0x3d8] sm:$0xff]  ;;  %v5388_v20 = vcombine.high %v3212_v10, %v3228_v11  ;;  %v5387_v30 = vcombine.low %v3212_v10, %v3228_v11 }
 0x1f8   : > { %5403 = vmatmul.mubr.msk.bf16.vlgmr.msra.gmra.mxu0 %vm4042_vm0, %v7013_v16  ;;  %5404 = vmatmul.mubr.msk.bf16.vlgmr.msra.gmra.mxu1 %vm4042_vm0, %v7013_v16  ;;  %v5390_v24 = vcombine.high %v3213_v12, %v3229_v13  ;;  %v5389_v31 = vcombine.low %v3213_v12, %v3229_v13 }
 0x1f9   : > { %4301 = vmatpush1.bf16.msra.mxu0 %v5379_v26  ;;  %4342 = vmatpush1.bf16.msra.mxu1 %v5381_v27  ;;  %v3180_v26 = vld [vmem:[%s7484_s3 + $0x250] sm:$0xff] }
 0x1fa   : > { %4302 = vmatprep.subr.bf16.mxu0 %v5348_v28  ;;  %4343 = vmatprep.subr.bf16.mxu1 %v5350_v29  ;;  %v3196_v27 = vld [vmem:[%s7484_s3 + $0x2d0] sm:$0xff]  ;;  %v3181_v28 = vld [vmem:[%s7484_s3 + $0x258] sm:$0xff] }
 0x1fb   : > { %4324 = vmatprep.mubr.bf16.mxu0 %v6070_v25  ;;  %4365 = vmatprep.mubr.bf16.mxu1 %v6070_v25  ;;  %v3197_v29 = vld [vmem:[%s7484_s3 + $0x2d8] sm:$0xff]  ;;  %v5356_v32 = vcombine.high %v3180_v26, %v3196_v27  ;;  %v5355_v19 = vcombine.low %v3180_v26, %v3196_v27 }
 0x1fc   : > { %v5358_v34 = vcombine.high %v3181_v28, %v3197_v29  ;;  %v5357_v21 = vcombine.low %v3181_v28, %v3197_v29 }
 0x1fd   : > { %4303 = vmatpush1.bf16.msra.mxu0 %v5347_v35  ;;  %4344 = vmatpush1.bf16.msra.mxu1 %v5349_v36  ;;  %v3148_v35 = vld [vmem:[%s7484_s3 + $0x150] sm:$0xff] }
 0x1fe   : > { %4304 = vmatprep.subr.bf16.mxu0 %v5316_v17  ;;  %4345 = vmatprep.subr.bf16.mxu1 %v5318_v18  ;;  %v3164_v36 = vld [vmem:[%s7484_s3 + $0x1d0] sm:$0xff]  ;;  %v3149_v17 = vld [vmem:[%s7484_s3 + $0x158] sm:$0xff] }
 0x1ff   : > { %v3165_v18 = vld [vmem:[%s7484_s3 + $0x1d8] sm:$0xff]  ;;  %v5324_v22 = vcombine.high %v3148_v35, %v3164_v36  ;;  %v5323_v42 = vcombine.low %v3148_v35, %v3164_v36 }
 0x200   : > { %v5326_v23 = vcombine.high %v3149_v17, %v3165_v18  ;;  %v5325_v43 = vcombine.low %v3149_v17, %v3165_v18 }
 0x201   : > { %4305 = vmatpush1.bf16.msra.mxu0 %v5315_v37  ;;  %4346 = vmatpush1.bf16.msra.mxu1 %v5317_v38  ;;  %v3116_v37 = vld [vmem:[%s7484_s3 + $0x50] sm:$0xff] }
 0x202   : > { %4306 = vmatprep.subr.bf16.mxu0 %v5284_v39  ;;  %4347 = vmatprep.subr.bf16.mxu1 %v5286_v40  ;;  %v3132_v38 = vld [vmem:[%s7484_s3 + $0xd0] sm:$0xff]  ;;  %v3117_v39 = vld [vmem:[%s7484_s3 + $0x58] sm:$0xff] }
 0x203   : > { %v3133_v40 = vld [vmem:[%s7484_s3 + $0xd8] sm:$0xff]  ;;  %v5292_v44 = vcombine.high %v3116_v37, %v3132_v38  ;;  %v5291_v50 = vcombine.low %v3116_v37, %v3132_v38 }
 0x204   : > { %v5294_v45 = vcombine.high %v3117_v39, %v3133_v40  ;;  %v5293_v51 = vcombine.low %v3117_v39, %v3133_v40 }
 0x205   : > { %4307 = vmatpush1.bf16.msra.mxu0 %v5283_v46  ;;  %4348 = vmatpush1.bf16.msra.mxu1 %v5285_v47  ;;  %v3214_v46 = vld [vmem:[%s7484_s3 + $0x360] sm:$0xff] }
 0x206   : > { %4382 = vmatprep.subr.bf16.mxu0 %v5384_v48  ;;  %4423 = vmatprep.subr.bf16.mxu1 %v5386_v49  ;;  %v3230_v47 = vld [vmem:[%s7484_s3 + $0x3e0] sm:$0xff]  ;;  %v3215_v48 = vld [vmem:[%s7484_s3 + $0x368] sm:$0xff] }
 0x207   : > { %v3231_v49 = vld [vmem:[%s7484_s3 + $0x3e8] sm:$0xff]  ;;  %v5392_v52 = vcombine.high %v3214_v46, %v3230_v47  ;;  %v5391_v58 = vcombine.low %v3214_v46, %v3230_v47 }
 0x208   : > { %5405 = vmatmul.mubr.msk.bf16.vlgmr.msra.gmra.mxu0 %vm4042_vm0, %v7013_v16  ;;  %5406 = vmatmul.mubr.msk.bf16.vlgmr.msra.gmra.mxu1 %vm4042_vm0, %v7013_v16  ;;  %v5394_v53 = vcombine.high %v3215_v48, %v3231_v49  ;;  %v5393_v59 = vcombine.low %v3215_v48, %v3231_v49 }
 0x209   : > { %4383 = vmatpush1.bf16.msra.mxu0 %v5383_v54  ;;  %4424 = vmatpush1.bf16.msra.mxu1 %v5385_v55  ;;  %v3182_v54 = vld [vmem:[%s7484_s3 + $0x260] sm:$0xff] }
 0x20a   : > { %4384 = vmatprep.subr.bf16.mxu0 %v5352_v56  ;;  %4425 = vmatprep.subr.bf16.mxu1 %v5354_v57  ;;  %v3198_v55 = vld [vmem:[%s7484_s3 + $0x2e0] sm:$0xff]  ;;  %v3183_v56 = vld [vmem:[%s7484_s3 + $0x268] sm:$0xff] }
 0x20b   : > { %4406 = vmatprep.mubr.bf16.mxu0 %v6070_v25  ;;  %4447 = vmatprep.mubr.bf16.mxu1 %v6070_v25  ;;  %v3199_v57 = vld [vmem:[%s7484_s3 + $0x2e8] sm:$0xff]  ;;  %v5360_v60 = vcombine.high %v3182_v54, %v3198_v55  ;;  %v5359_v2 = vcombine.low %v3182_v54, %v3198_v55  ;;  %v7389_v54 = vsub.s32 1, %v6219_v33  ;;  %v7392_v55 = vsub.s32 3, %v6219_v33 }
 0x20c   : > { %v5362_v61 = vcombine.high %v3183_v56, %v3199_v57  ;;  %v5361_v3 = vcombine.low %v3183_v56, %v3199_v57 }
 0x20d   : > { %4385 = vmatpush1.bf16.msra.mxu0 %v5351_v62  ;;  %4426 = vmatpush1.bf16.msra.mxu1 %v5353_v63  ;;  %v3150_v62 = vld [vmem:[%s7484_s3 + $0x160] sm:$0xff] }
 0x20e   : > { %4386 = vmatprep.subr.bf16.mxu0 %v5320_v0  ;;  %4427 = vmatprep.subr.bf16.mxu1 %v5322_v1  ;;  %v3166_v63 = vld [vmem:[%s7484_s3 + $0x1e0] sm:$0xff]  ;;  %v3151_v0 = vld [vmem:[%s7484_s3 + $0x168] sm:$0xff] }
 0x20f   : > { %v3167_v1 = vld [vmem:[%s7484_s3 + $0x1e8] sm:$0xff]  ;;  %v5328_v4 = vcombine.high %v3150_v62, %v3166_v63  ;;  %v5327_v10 = vcombine.low %v3150_v62, %v3166_v63 }
 0x210   : > { %v5330_v5 = vcombine.high %v3151_v0, %v3167_v1  ;;  %v5329_v11 = vcombine.low %v3151_v0, %v3167_v1 }
 0x211   : > { %4387 = vmatpush1.bf16.msra.mxu0 %v5319_v6  ;;  %4428 = vmatpush1.bf16.msra.mxu1 %v5321_v7  ;;  %v3118_v6 = vld [vmem:[%s7484_s3 + $0x60] sm:$0xff] }
 0x212   : > { %4388 = vmatprep.subr.bf16.mxu0 %v5288_v8  ;;  %4429 = vmatprep.subr.bf16.mxu1 %v5290_v9  ;;  %v3134_v7 = vld [vmem:[%s7484_s3 + $0xe0] sm:$0xff]  ;;  %v3119_v8 = vld [vmem:[%s7484_s3 + $0x68] sm:$0xff] }
 0x213   : > { %v3135_v9 = vld [vmem:[%s7484_s3 + $0xe8] sm:$0xff]  ;;  %v5296_v12 = vcombine.high %v3118_v6, %v3134_v7  ;;  %v5295_v26 = vcombine.low %v3118_v6, %v3134_v7 }
 0x214   : > { %v5298_v13 = vcombine.high %v3119_v8, %v3135_v9  ;;  %v5297_v27 = vcombine.low %v3119_v8, %v3135_v9 }
 0x215   : > { %4389 = vmatpush1.bf16.msra.mxu0 %v5287_v14  ;;  %4430 = vmatpush1.bf16.msra.mxu1 %v5289_v15  ;;  %v3216_v14 = vld [vmem:[%s7484_s3 + $0x370] sm:$0xff] }
 0x216   : > { %4464 = vmatprep.subr.bf16.mxu0 %v5388_v20  ;;  %4505 = vmatprep.subr.bf16.mxu1 %v5390_v24  ;;  %v3232_v15 = vld [vmem:[%s7484_s3 + $0x3f0] sm:$0xff]  ;;  %v3217_v20 = vld [vmem:[%s7484_s3 + $0x378] sm:$0xff] }
 0x217   : > { %v3233_v24 = vld [vmem:[%s7484_s3 + $0x3f8] sm:$0xff]  ;;  %v5396_v28 = vcombine.high %v3216_v14, %v3232_v15  ;;  %v5395_v35 = vcombine.low %v3216_v14, %v3232_v15  ;;  %v7401_v15 = vsub.s32 4, %v6219_v33 }
 0x218   : > { %5407 = vmatmul.mubr.msk.bf16.vlgmr.msra.gmra.mxu0 %vm4042_vm0, %v7013_v16  ;;  %5408 = vmatmul.mubr.msk.bf16.vlgmr.msra.gmra.mxu1 %vm4042_vm0, %v7013_v16  ;;  %v5398_v29 = vcombine.high %v3217_v20, %v3233_v24  ;;  %v5397_v36 = vcombine.low %v3217_v20, %v3233_v24  ;;  %v7404_v20 = vsub.s32 6, %v6219_v33 }
 0x219   : > { %4465 = vmatpush1.bf16.msra.mxu0 %v5387_v30  ;;  %4506 = vmatpush1.bf16.msra.mxu1 %v5389_v31  ;;  %v3184_v30 = vld [vmem:[%s7484_s3 + $0x270] sm:$0xff] }
 0x21a   : > { %4466 = vmatprep.subr.bf16.mxu0 %v5356_v32  ;;  %4507 = vmatprep.subr.bf16.mxu1 %v5358_v34  ;;  %v3200_v31 = vld [vmem:[%s7484_s3 + $0x2f0] sm:$0xff]  ;;  %v3185_v32 = vld [vmem:[%s7484_s3 + $0x278] sm:$0xff] }
 0x21b   : > { %4488 = vmatprep.mubr.bf16.mxu0 %v6070_v25  ;;  %4529 = vmatprep.mubr.bf16.mxu1 %v6070_v25  ;;  %v3201_v34 = vld [vmem:[%s7484_s3 + $0x2f8] sm:$0xff]  ;;  %v5364_v17 = vcombine.high %v3184_v30, %v3200_v31  ;;  %v5363_v37 = vcombine.low %v3184_v30, %v3200_v31 }
 0x21c   : > { %v5366_v18 = vcombine.high %v3185_v32, %v3201_v34  ;;  %v5365_v38 = vcombine.low %v3185_v32, %v3201_v34 }
 0x21d   : > { %4467 = vmatpush1.bf16.msra.mxu0 %v5355_v19  ;;  %4508 = vmatpush1.bf16.msra.mxu1 %v5357_v21  ;;  %v3152_v19 = vld [vmem:[%s7484_s3 + $0x170] sm:$0xff] }
 0x21e   : > { %4468 = vmatprep.subr.bf16.mxu0 %v5324_v22  ;;  %4509 = vmatprep.subr.bf16.mxu1 %v5326_v23  ;;  %v3168_v21 = vld [vmem:[%s7484_s3 + $0x1f0] sm:$0xff]  ;;  %v3153_v22 = vld [vmem:[%s7484_s3 + $0x178] sm:$0xff] }
 0x21f   : > { %v3169_v23 = vld [vmem:[%s7484_s3 + $0x1f8] sm:$0xff]  ;;  %v5332_v39 = vcombine.high %v3152_v19, %v3168_v21  ;;  %v5331_v46 = vcombine.low %v3152_v19, %v3168_v21 }
 0x220   : > { %v5334_v40 = vcombine.high %v3153_v22, %v3169_v23  ;;  %v5333_v47 = vcombine.low %v3153_v22, %v3169_v23 }
 0x221   : > { %4469 = vmatpush1.bf16.msra.mxu0 %v5323_v42  ;;  %4510 = vmatpush1.bf16.msra.mxu1 %v5325_v43  ;;  %v3120_v42 = vld [vmem:[%s7484_s3 + $0x70] sm:$0xff] }
 0x222   : > { %4470 = vmatprep.subr.bf16.mxu0 %v5292_v44  ;;  %4511 = vmatprep.subr.bf16.mxu1 %v5294_v45  ;;  %v3136_v43 = vld [vmem:[%s7484_s3 + $0xf0] sm:$0xff]  ;;  %v3121_v44 = vld [vmem:[%s7484_s3 + $0x78] sm:$0xff] }
 0x223   : > { %v3137_v45 = vld [vmem:[%s7484_s3 + $0xf8] sm:$0xff]  ;;  %v5300_v48 = vcombine.high %v3120_v42, %v3136_v43 }
 0x224   : > { %v5302_v49 = vcombine.high %v3121_v44, %v3137_v45 }
 0x225   : > { %4471 = vmatpush1.bf16.msra.mxu0 %v5291_v50  ;;  %4512 = vmatpush1.bf16.msra.mxu1 %v5293_v51  ;;  %v5299_v50 = vcombine.low %v3120_v42, %v3136_v43  ;;  %v5301_v51 = vcombine.low %v3121_v44, %v3137_v45 }
 0x226   : > { %4546 = vmatprep.subr.bf16.mxu0 %v5392_v52  ;;  %4587 = vmatprep.subr.bf16.mxu1 %v5394_v53  ;;  %v7383_v52 = vsub.s32 2, %v6219_v33  ;;  %v3234_v53 = vld [vmem:[%s7485_s4] sm:$0xff] }
 0x227   : > { %v3249_v57 = vrot.slane %v3234_v53, %v7389_v54 }
 0x228   : > { %5409 = vmatmul.mubr.msk.bf16.vlgmr.msra.gmra.mxu0 %vm4042_vm0, %v7013_v16  ;;  %5410 = vmatmul.mubr.msk.bf16.vlgmr.msra.gmra.mxu1 %vm4042_vm0, %v7013_v16 }
 0x229   : > { %4547 = vmatpush1.bf16.msra.mxu0 %v5391_v58  ;;  %4588 = vmatpush1.bf16.msra.mxu1 %v5393_v59  ;;  %v3257_v58 = vrot.slane %v3234_v53, %v7392_v55 }
 0x22a   : > { %4548 = vmatprep.subr.bf16.mxu0 %v5360_v60  ;;  %4589 = vmatprep.subr.bf16.mxu1 %v5362_v61 }
 0x22b   : > { %4570 = vmatprep.mubr.bf16.mxu0 %v6070_v25  ;;  %4611 = vmatprep.mubr.bf16.mxu1 %v6070_v25 }
 0x22d   : > { %4549 = vmatpush1.bf16.msra.mxu0 %v5359_v2  ;;  %4590 = vmatpush1.bf16.msra.mxu1 %v5361_v3 }
 0x22e   : > { %4550 = vmatprep.subr.bf16.mxu0 %v5328_v4  ;;  %4591 = vmatprep.subr.bf16.mxu1 %v5330_v5 }
 0x231   : > { %4551 = vmatpush1.bf16.msra.mxu0 %v5327_v10  ;;  %4592 = vmatpush1.bf16.msra.mxu1 %v5329_v11 }
 0x232   : > { %4552 = vmatprep.subr.bf16.mxu0 %v5296_v12  ;;  %4593 = vmatprep.subr.bf16.mxu1 %v5298_v13 }
 0x235   : > { %4553 = vmatpush1.bf16.msra.mxu0 %v5295_v26  ;;  %4594 = vmatpush1.bf16.msra.mxu1 %v5297_v27  ;;  %v7414_v26 = vsub.s32 5, %v6219_v33  ;;  %v7417_v27 = vsub.s32 7, %v6219_v33 }
 0x236   : > { %4628 = vmatprep.subr.bf16.mxu0 %v5396_v28  ;;  %4669 = vmatprep.subr.bf16.mxu1 %v5398_v29  ;;  %v3261_v28 = vrot.slane %v3234_v53, %v7401_v15  ;;  %v3269_v29 = vrot.slane %v3234_v53, %v7404_v20 }
 0x237   : > { %v3265_v30 = vrot.slane %v3234_v53, %v7414_v26  ;;  %v3273_v31 = vrot.slane %v3234_v53, %v7417_v27 }
 0x238   : > { %5411 = vmatmul.mubr.msk.bf16.vlgmr.msra.gmra.mxu0 %vm4042_vm0, %v7013_v16  ;;  %5412 = vmatmul.mubr.msk.bf16.vlgmr.msra.gmra.mxu1 %vm4042_vm0, %v7013_v16 }
 0x239   : > { %4629 = vmatpush1.bf16.msra.mxu0 %v5395_v35  ;;  %4670 = vmatpush1.bf16.msra.mxu1 %v5397_v36 }
 0x23a   : > { %4630 = vmatprep.subr.bf16.mxu0 %v5364_v17  ;;  %4671 = vmatprep.subr.bf16.mxu1 %v5366_v18 }
 0x23b   : > { %4652 = vmatprep.mubr.bf16.mxu0 %v6070_v25  ;;  %4693 = vmatprep.mubr.bf16.mxu1 %v6070_v25  ;;  %v7380_v25 = vsub.s32 0, %v6219_v33 }
 0x23d   : > { %4631 = vmatpush1.bf16.msra.mxu0 %v5363_v37  ;;  %4672 = vmatpush1.bf16.msra.mxu1 %v5365_v38  ;;  %v3245_v56 = vrot.slane %v3234_v53, %v7380_v25 }
 0x23e   : > { %4632 = vmatprep.subr.bf16.mxu0 %v5332_v39  ;;  %4673 = vmatprep.subr.bf16.mxu1 %v5334_v40 }
 0x241   : > { %4633 = vmatpush1.bf16.msra.mxu0 %v5331_v46  ;;  %4674 = vmatpush1.bf16.msra.mxu1 %v5333_v47  ;;  %v3235_v47 = vld [vmem:[%s7485_s4 + $0x8] sm:$0xff] }
 0x242   : > { %4634 = vmatprep.subr.bf16.mxu0 %v5300_v48  ;;  %4675 = vmatprep.subr.bf16.mxu1 %v5302_v49  ;;  %v3277_v49 = vrot.slane %v3235_v47, %v7380_v25 }
 0x245   : > { %4635 = vmatpush1.bf16.msra.mxu0 %v5299_v50  ;;  %4676 = vmatpush1.bf16.msra.mxu1 %v5301_v51  ;;  %v3285_v50 = vrot.slane %v3235_v47, %v7383_v52  ;;  %v3281_v51 = vrot.slane %v3235_v47, %v7389_v54 }
 0x248   : > { %5413 = vmatmul.mubr.msk.bf16.vlgmr.msra.gmra.mxu0 %vm4042_vm0, %v7013_v16  ;;  %5414 = vmatmul.mubr.msk.bf16.vlgmr.msra.gmra.mxu1 %vm4042_vm0, %v7013_v16  ;;  %v3253_v16 = vrot.slane %v3234_v53, %v7383_v52  ;;  %v3289_v53 = vrot.slane %v3235_v47, %v7392_v55 }
 0x298   : > { %v4080_v59 = vpop.f32.mrf.mxu0  ;;  %v4121_v60 = vpop.f32.mrf.mxu1 }
 0x299   : > { %v4081_v61 = vadd.f32 %v4080_v59, %v3245_v56  ;;  %v4122_v62 = vadd.f32 %v4121_v60, %v3253_v16 }
 0x29a   : > { %v4082_v63 = vpop.f32.mrf.mxu0  ;;  %v4123_v0 = vpop.f32.mrf.mxu1 }
 0x29b   : > { %v4083_v1 = vadd.f32 %v4082_v63, %v3249_v57  ;;  %v4124_v2 = vadd.f32 %v4123_v0, %v3257_v58  ;;  %v4702_v5 = vmax.f32 %v4081_v61, 0.0  ;;  %v4704_v6 = vmax.f32 %v4122_v62, 0.0 }
 0x29c   : > { %v4084_v3 = vpop.f32.mrf.mxu0  ;;  %v4125_v4 = vpop.f32.mrf.mxu1 }
 0x29d   : > { %v4703_v7 = vmax.f32 %v4083_v1, 0.0  ;;  %v4705_v8 = vmax.f32 %v4124_v2, 0.0 }
 0x29e   : > { %v4085_v9 = vpop.f32.mrf.mxu0  ;;  %v4126_v10 = vpop.f32.mrf.mxu1 }
 0x29f   : > { %v5415_v11 = vpack.c.bf16 %v4703_v7, %v4702_v5  ;;  %v5416_v12 = vpack.c.bf16 %v4705_v8, %v4704_v6 }
 0x2a1   : > { %v4806_v13 = vrot.slane %v5415_v11, %v6229_v41  ;;  %v4813_v14 = vrot.slane %v5416_v12, %v6229_v41  ;;  %v3293_v12 = vrot.slane %v3235_v47, %v7401_v15 }
 0x2a3   : > { %v4814_v24 = vcombine.low %v4806_v13, %v4813_v14  ;;  %v3301_v13 = vrot.slane %v3235_v47, %v7404_v20  ;;  %v3297_v14 = vrot.slane %v3235_v47, %v7414_v26 }
 0x2a5   : > { %4942 = vst [vmem:[%s7411_s24] sm:$0xff] %v4814_v24  ;;  %v3305_v24 = vrot.slane %v3235_v47, %v7417_v27 }
 0x2a8   : > { %v4162_v32 = vpop.f32.mrf.mxu0  ;;  %v4203_v34 = vpop.f32.mrf.mxu1 }
 0x2a9   : > { %v4163_v35 = vadd.f32 %v4162_v32, %v3261_v28  ;;  %v4204_v36 = vadd.f32 %v4203_v34, %v3269_v29 }
 0x2aa   : > { %v4164_v17 = vpop.f32.mrf.mxu0  ;;  %v4205_v18 = vpop.f32.mrf.mxu1 }
 0x2ab   : > { %v4165_v19 = vadd.f32 %v4164_v17, %v3265_v30  ;;  %v4206_v21 = vadd.f32 %v4205_v18, %v3273_v31  ;;  %v4706_v23 = vmax.f32 %v4163_v35, 0.0  ;;  %v4708_v37 = vmax.f32 %v4204_v36, 0.0 }
 0x2ac   : > { %v4166_v33 = vpop.f32.mrf.mxu0  ;;  %v4207_v22 = vpop.f32.mrf.mxu1 }
 0x2ad   : > { %v4707_v38 = vmax.f32 %v4165_v19, 0.0  ;;  %v4709_v39 = vmax.f32 %v4206_v21, 0.0 }
 0x2ae   : > { %v4167_v40 = vpop.f32.mrf.mxu0  ;;  %v4208_v42 = vpop.f32.mrf.mxu1 }
 0x2af   : > { %v5417_v43 = vpack.c.bf16 %v4707_v38, %v4706_v23  ;;  %v5418_v44 = vpack.c.bf16 %v4709_v39, %v4708_v37 }
 0x2b1   : > { %v4823_v45 = vrot.slane %v5417_v43, %v6229_v41  ;;  %v4830_v46 = vrot.slane %v5418_v44, %v6229_v41  ;;  %v3236_v43 = vld [vmem:[%s7485_s4 + $0x10] sm:$0xff] }
 0x2b2   : > { %v3313_v47 = vrot.slane %v3236_v43, %v7389_v54 }
 0x2b3   : > { %v4831_v48 = vcombine.low %v4823_v45, %v4830_v46  ;;  %v3309_v45 = vrot.slane %v3236_v43, %v7380_v25  ;;  %v3317_v46 = vrot.slane %v3236_v43, %v7383_v52 }
 0x2b5   : > { %4943 = vst [vmem:[%s7411_s24 + $0x8] sm:$0xff] %v4831_v48  ;;  %v3321_v48 = vrot.slane %v3236_v43, %v7392_v55 }
 0x2b8   : > { %v4244_v56 = vpop.f32.mrf.mxu0  ;;  %v4285_v16 = vpop.f32.mrf.mxu1 }
 0x2b9   : > { %v4245_v57 = vadd.f32 %v4244_v56, %v3277_v49  ;;  %v4286_v58 = vadd.f32 %v4285_v16, %v3285_v50 }
 0x2ba   : > { %v4246_v59 = vpop.f32.mrf.mxu0  ;;  %v4287_v60 = vpop.f32.mrf.mxu1 }
 0x2bb   : > { %v4247_v61 = vadd.f32 %v4246_v59, %v3281_v51  ;;  %v4288_v62 = vadd.f32 %v4287_v60, %v3289_v53  ;;  %v4710_v1 = vmax.f32 %v4245_v57, 0.0  ;;  %v4712_v2 = vmax.f32 %v4286_v58, 0.0 }
 0x2bc   : > { %v4248_v63 = vpop.f32.mrf.mxu0  ;;  %v4289_v0 = vpop.f32.mrf.mxu1 }
 0x2bd   : > { %v4711_v3 = vmax.f32 %v4247_v61, 0.0  ;;  %v4713_v4 = vmax.f32 %v4288_v62, 0.0 }
 0x2be   : > { %v4249_v5 = vpop.f32.mrf.mxu0  ;;  %v4290_v6 = vpop.f32.mrf.mxu1 }
 0x2bf   : > { %v5419_v7 = vpack.c.bf16 %v4711_v3, %v4710_v1  ;;  %v5420_v8 = vpack.c.bf16 %v4713_v4, %v4712_v2 }
 0x2c1   : > { %v4840_v9 = vrot.slane %v5419_v7, %v6229_v41  ;;  %v4847_v10 = vrot.slane %v5420_v8, %v6229_v41  ;;  %v3325_v8 = vrot.slane %v3236_v43, %v7401_v15 }
 0x2c3   : > { %v4848_v11 = vcombine.low %v4840_v9, %v4847_v10  ;;  %v3333_v9 = vrot.slane %v3236_v43, %v7404_v20  ;;  %v3329_v10 = vrot.slane %v3236_v43, %v7414_v26 }
 0x2c5   : > { %4944 = vst [vmem:[%s7411_s24 + $0x10] sm:$0xff] %v4848_v11  ;;  %v3337_v11 = vrot.slane %v3236_v43, %v7417_v27 }
 0x2c8   : > { %v4326_v28 = vpop.f32.mrf.mxu0  ;;  %v4367_v29 = vpop.f32.mrf.mxu1 }
 0x2c9   : > { %v4327_v30 = vadd.f32 %v4326_v28, %v3293_v12  ;;  %v4368_v31 = vadd.f32 %v4367_v29, %v3301_v13 }
 0x2ca   : > { %v4328_v32 = vpop.f32.mrf.mxu0  ;;  %v4369_v34 = vpop.f32.mrf.mxu1 }
 0x2cb   : > { %v4329_v35 = vadd.f32 %v4328_v32, %v3297_v14  ;;  %v4370_v36 = vadd.f32 %v4369_v34, %v3305_v24  ;;  %v4714_v19 = vmax.f32 %v4327_v30, 0.0  ;;  %v4716_v21 = vmax.f32 %v4368_v31, 0.0 }
 0x2cc   : > { %v4330_v17 = vpop.f32.mrf.mxu0  ;;  %v4371_v18 = vpop.f32.mrf.mxu1 }
 0x2cd   : > { %v4715_v33 = vmax.f32 %v4329_v35, 0.0  ;;  %v4717_v22 = vmax.f32 %v4370_v36, 0.0 }
 0x2ce   : > { %v4331_v23 = vpop.f32.mrf.mxu0  ;;  %v4372_v37 = vpop.f32.mrf.mxu1 }
 0x2cf   : > { %v5421_v38 = vpack.c.bf16 %v4715_v33, %v4714_v19  ;;  %v5422_v39 = vpack.c.bf16 %v4717_v22, %v4716_v21 }
 0x2d1   : > { %v4857_v40 = vrot.slane %v5421_v38, %v6229_v41  ;;  %v4864_v42 = vrot.slane %v5422_v39, %v6229_v41  ;;  %v3237_v38 = vld [vmem:[%s7485_s4 + $0x18] sm:$0xff] }
 0x2d2   : > { %v3345_v43 = vrot.slane %v3237_v38, %v7389_v54 }
 0x2d3   : > { %v4865_v44 = vcombine.low %v4857_v40, %v4864_v42  ;;  %v3341_v40 = vrot.slane %v3237_v38, %v7380_v25  ;;  %v3349_v42 = vrot.slane %v3237_v38, %v7383_v52 }
 0x2d5   : > { %4945 = vst [vmem:[%s7411_s24 + $0x18] sm:$0xff] %v4865_v44  ;;  %v3353_v44 = vrot.slane %v3237_v38, %v7392_v55 }
 0x2d8   : > { %v4408_v49 = vpop.f32.mrf.mxu0  ;;  %v4449_v50 = vpop.f32.mrf.mxu1 }
 0x2d9   : > { %v4409_v51 = vadd.f32 %v4408_v49, %v3309_v45  ;;  %v4450_v53 = vadd.f32 %v4449_v50, %v3317_v46 }
 0x2da   : > { %v4410_v56 = vpop.f32.mrf.mxu0  ;;  %v4451_v16 = vpop.f32.mrf.mxu1 }
 0x2db   : > { %v4411_v57 = vadd.f32 %v4410_v56, %v3313_v47  ;;  %v4452_v58 = vadd.f32 %v4451_v16, %v3321_v48  ;;  %v4718_v61 = vmax.f32 %v4409_v51, 0.0  ;;  %v4720_v62 = vmax.f32 %v4450_v53, 0.0 }
 0x2dc   : > { %v4412_v59 = vpop.f32.mrf.mxu0  ;;  %v4453_v60 = vpop.f32.mrf.mxu1 }
 0x2dd   : > { %v4719_v63 = vmax.f32 %v4411_v57, 0.0  ;;  %v4721_v0 = vmax.f32 %v4452_v58, 0.0 }
 0x2de   : > { %v4413_v1 = vpop.f32.mrf.mxu0  ;;  %v4454_v2 = vpop.f32.mrf.mxu1 }
 0x2df   : > { %v5423_v3 = vpack.c.bf16 %v4719_v63, %v4718_v61  ;;  %v5424_v4 = vpack.c.bf16 %v4721_v0, %v4720_v62  ;;  %v3357_v0 = vrot.slane %v3237_v38, %v7401_v15  ;;  %v3365_v1 = vrot.slane %v3237_v38, %v7404_v20 }
 0x2e0   : > { %v3361_v2 = vrot.slane %v3237_v38, %v7414_v26 }
 0x2e1   : > { %v4874_v5 = vrot.slane %v5423_v3, %v6229_v41  ;;  %v4881_v6 = vrot.slane %v5424_v4, %v6229_v41  ;;  %v3369_v3 = vrot.slane %v3237_v38, %v7417_v27 }
 0x2e3   : > { %v4882_v7 = vcombine.low %v4874_v5, %v4881_v6 }
 0x2e5   : > { %4946 = vst [vmem:[%s7411_s24 + $0x20] sm:$0xff] %v4882_v7 }
 0x2e8   : > { %v4490_v12 = vpop.f32.mrf.mxu0  ;;  %v4531_v13 = vpop.f32.mrf.mxu1 }
 0x2e9   : > { %v4491_v14 = vadd.f32 %v4490_v12, %v3325_v8  ;;  %v4532_v24 = vadd.f32 %v4531_v13, %v3333_v9 }
 0x2ea   : > { %v4492_v28 = vpop.f32.mrf.mxu0  ;;  %v4533_v29 = vpop.f32.mrf.mxu1 }
 0x2eb   : > { %v4493_v30 = vadd.f32 %v4492_v28, %v3329_v10  ;;  %v4534_v31 = vadd.f32 %v4533_v29, %v3337_v11  ;;  %v4722_v35 = vmax.f32 %v4491_v14, 0.0  ;;  %v4724_v36 = vmax.f32 %v4532_v24, 0.0 }
 0x2ec   : > { %v4494_v32 = vpop.f32.mrf.mxu0  ;;  %v4535_v34 = vpop.f32.mrf.mxu1 }
 0x2ed   : > { %v4723_v17 = vmax.f32 %v4493_v30, 0.0  ;;  %v4725_v18 = vmax.f32 %v4534_v31, 0.0 }
 0x2ee   : > { %v4495_v19 = vpop.f32.mrf.mxu0  ;;  %v4536_v21 = vpop.f32.mrf.mxu1 }
 0x2ef   : > { %v5425_v33 = vpack.c.bf16 %v4723_v17, %v4722_v35  ;;  %v5426_v22 = vpack.c.bf16 %v4725_v18, %v4724_v36 }
 0x2f1   : > { %v4891_v23 = vrot.slane %v5425_v33, %v6229_v41  ;;  %v4898_v37 = vrot.slane %v5426_v22, %v6229_v41 }
 0x2f3   : > { %v4899_v39 = vcombine.low %v4891_v23, %v4898_v37 }
 0x2f5   : > { %4947 = vst [vmem:[%s7411_s24 + $0x28] sm:$0xff] %v4899_v39 }
 0x2f8   : > { %v4572_v45 = vpop.f32.mrf.mxu0  ;;  %v4613_v46 = vpop.f32.mrf.mxu1 }
 0x2f9   : > { %v4573_v47 = vadd.f32 %v4572_v45, %v3341_v40  ;;  %v4614_v48 = vadd.f32 %v4613_v46, %v3349_v42 }
 0x2fa   : > { %v4574_v49 = vpop.f32.mrf.mxu0  ;;  %v4615_v50 = vpop.f32.mrf.mxu1 }
 0x2fb   : > { %v4575_v51 = vadd.f32 %v4574_v49, %v3345_v43  ;;  %v4616_v53 = vadd.f32 %v4615_v50, %v3353_v44  ;;  %v4726_v57 = vmax.f32 %v4573_v47, 0.0  ;;  %v4728_v58 = vmax.f32 %v4614_v48, 0.0 }
 0x2fc   : > { %v4576_v56 = vpop.f32.mrf.mxu0  ;;  %v4617_v16 = vpop.f32.mrf.mxu1 }
 0x2fd   : > { %v4727_v25 = vmax.f32 %v4575_v51, 0.0  ;;  %v4729_v59 = vmax.f32 %v4616_v53, 0.0 }
 0x2fe   : > { %v4577_v52 = vpop.f32.mrf.mxu0  ;;  %v4618_v60 = vpop.f32.mrf.mxu1 }
 0x2ff   : > { %v5427_v54 = vpack.c.bf16 %v4727_v25, %v4726_v57  ;;  %v5428_v61 = vpack.c.bf16 %v4729_v59, %v4728_v58 }
 0x301   : > { %v4908_v55 = vrot.slane %v5427_v54, %v6229_v41  ;;  %v4915_v62 = vrot.slane %v5428_v61, %v6229_v41 }
 0x303   : > { %v4916_v63 = vcombine.low %v4908_v55, %v4915_v62 }
 0x305   : > { %4948 = vst [vmem:[%s7411_s24 + $0x30] sm:$0xff] %v4916_v63 }
 0x308   : > { %v4654_v4 = vpop.f32.mrf.mxu0  ;;  %v4695_v5 = vpop.f32.mrf.mxu1 }
 0x309   : > { %v4655_v6 = vadd.f32 %v4654_v4, %v3357_v0  ;;  %v4696_v7 = vadd.f32 %v4695_v5, %v3365_v1 }
 0x30a   : > { %v4656_v8 = vpop.f32.mrf.mxu0  ;;  %v4697_v9 = vpop.f32.mrf.mxu1 }
 0x30b   : > { %v4657_v10 = vadd.f32 %v4656_v8, %v3361_v2  ;;  %v4698_v11 = vadd.f32 %v4697_v9, %v3369_v3  ;;  %v4730_v14 = vmax.f32 %v4655_v6, 0.0  ;;  %v4732_v24 = vmax.f32 %v4696_v7, 0.0 }
 0x30c   : > { %v4658_v12 = vpop.f32.mrf.mxu0  ;;  %v4699_v13 = vpop.f32.mrf.mxu1 }
 0x30d   : > { %v4731_v15 = vmax.f32 %v4657_v10, 0.0  ;;  %v4733_v28 = vmax.f32 %v4698_v11, 0.0 }
 0x30e   : > { %v4659_v20 = vpop.f32.mrf.mxu0  ;;  %v4700_v29 = vpop.f32.mrf.mxu1 }
 0x30f   : > { %v5429_v26 = vpack.c.bf16 %v4731_v15, %v4730_v14  ;;  %v5430_v30 = vpack.c.bf16 %v4733_v28, %v4732_v24 }
 0x311   : > { %v4925_v27 = vrot.slane %v5429_v26, %v6229_v41  ;;  %v4932_v31 = vrot.slane %v5430_v30, %v6229_v41 }
 0x313   : > { %v4933_v32 = vcombine.low %v4925_v27, %v4932_v31 }
 0x315   : > { %4949 = vst [vmem:[%s7411_s24 + $0x38] sm:$0xff] %v4933_v32 }
 0x316 PF: > { %s15_s18 = sadd.s32 1, %s6067_s18  }
 0x317   : > { %p12_p4 = scmp.ge.s32.totalorder %s15_s18, 4  }
 0x319   :  { %14 = sbr.rel (!%p12_p4) target bundleno = 1 (0x1), region = 70 }

// kernel: autoencoder_forward.5
= control target key start
LH: loop header
LB: loop body
LE: loop exit
PB: predicated region body
PF: predicated region fallthrough
CT: control target
= control target key end

     0   :  { %s3524_s26 = smov 0   ;;  %s4721_s0 = inlined_call_operand.vmem [shape: bf16[2,4,64,64], index: 0, kind: input, shape index: {}]   ;;  %s4722_s1 = inlined_call_operand.vmem [shape: bf16[9,32,64], index: 1, kind: input, shape index: {}]   ;;  %s4723_s2 = inlined_call_operand.vmem [shape: f32[32,1], index: 2, kind: input, shape index: {}]   ;;  %s4724_s3 = inlined_call_operand.vmem [shape: bf16[9,16,32], index: 3, kind: input, shape index: {}]   ;;  %s4725_s4 = inlined_call_operand.vmem [shape: f32[16,1], index: 4, kind: input, shape index: {}]   ;;  %s4726_s5 = inlined_call_operand.vmem [shape: bf16[9,1,16], index: 5, kind: input, shape index: {}]   ;;  %s4727_s6 = inlined_call_operand.<no memory space> [shape: f32[1,1], index: 6, kind: input, shape index: {}]   ;;  %s4728_s7 = inlined_call_operand.vmem [shape: f32[2,1,256], index: 7, kind: output, shape index: {}]  }
   0x1   :  { %v12_v0 = vstv %s4727_s6 }
   0x2   :  { %13 = vst [vmem:[#allocation2] sm:$0x1] %v12_v0 }
   0x3 LB: > { %s3172_s27 = sadd.s32 4294967295, %s3468_s26   ;;  %p3176_p0 = scmp.ge.s32.totalorder %s3468_s26, 1  ;;  %s3468_s26 = sphi %s3524_s26, %s19_s26  }
   0x4   : > { %p239_p1 = scmp.lt.s32.totalorder %s3468_s26, 3 }
   0x6   : > { %p240_p2 = pnand %p3176_p0, %p239_p1 }
   0x8   : > { %243 = sbr.rel (%p240_p2) target bundleno = 1335 (0x537), region = 48 }
   0xd   : > { %p270_p3 = scmp.lt.s32.totalorder %s3172_s27, 1  ;;  %s3470_s8 = smov 64   ;;  %v4751_v9 = vmov 0   ;;  %vm4734_vm0 = vcmask 523264   ;;  %v4750_v34 = vlaneseq  ;;  %vm4730_vm10 = vcmask 64512  }
   0xe   : > { %722 = vmatprep.mubr.bf16.mxu0 %v4751_v9  ;;  %791 = vmatprep.mubr.bf16.mxu1 %v4751_v9  ;;  %s3472_s9 = smov 8   ;;  %s3473_s10 = smov 9   ;;  %v4802_v58 = vmov 0  ;;  %v4805_v59 = vmov 0 }
   0xf   : > { %s4997_s27 = smov (!%p270_p3, %s3172_s27), 1  ;;  %3418 = vset.pattern.permute.xlu1 %v4751_v9  ;;  %3417 = vset.pattern.permute.xlu0 %v4751_v9  ;;  %s3474_s11 = smov 7   ;;  %v283_v35 = vand.u32 127, %v4750_v34  ;;  %v3706_v45 = vshrl.u32 %v4750_v34, 7 }
  0x10   : > { %s3397_s6 = sshll.u32 %s4997_s27, 7  ;;  %s3475_s12 = smov 1  }
  0x11   : > { %s3538_s30 = scalar_lea.vmem %s4721_s0, %s3397_s6  ;;  %s3476_s13 = smov 127   ;;  %v284_v36 = vadd.s32 128, %v283_v35  ;;  %v285_v37 = vand.u32 63, %v283_v35  ;;  %4800 = vst [vmem:[#allocation3_spill] sm:$0xff] %v3706_v45  ;;  %v3717_v48 = vsub.s32 0, %v3706_v45  ;;  %v3720_v49 = vsub.s32 4, %v3706_v45 }
  0x12   : > { %v3419_v1 = vld [vmem:[%s3538_s30 + $0x38] sm:$0xff]   ;;  %v3421_v3 = vld [vmem:[%s3538_s30 + $0x30] sm:$0xff]   ;;  %v3423_v5 = vld [vmem:[%s3538_s30 + $0x28] sm:$0xff]   ;;  %s3477_s14 = smov 121   ;;  %s3478_s15 = smov 120  }
  0x13   : > { %v3420_v2 = vld [vmem:[%s3538_s30 + $0x78] sm:$0xff]   ;;  %442 = vrot.lane.b32.xlu0 %v3419_v1, %s3470_s8  ;;  %440 = vrot.lane.b32.xlu1 %v3421_v3, %s3470_s8  ;;  %v3422_v4 = vld [vmem:[%s3538_s30 + $0x70] sm:$0xff]   ;;  %v286_v38 = vand.u32 63, %v284_v36  ;;  %v3679_v39 = vshra.s32 %v285_v37, 3  ;;  %s3479_s16 = smov 119   ;;  %v289_v47 = vand.u32 7, %v285_v37 }
  0x14   : > { %v3424_v6 = vld [vmem:[%s3538_s30 + $0x68] sm:$0xff]   ;;  %v3425_v7 = vld [vmem:[%s3538_s30 + $0x20] sm:$0xff]   ;;  %v3427_v10 = vld [vmem:[%s3538_s30 + $0x18] sm:$0xff]   ;;  %4801 = vst [vmem:[#allocation4_spill] sm:$0xff] %v3717_v48  ;;  %s3179_s23 = sshll.u32 %s4997_s27, 1 }
  0x15   : > { %v3426_v8 = vld [vmem:[%s3538_s30 + $0x60] sm:$0xff]   ;;  %v3429_v11 = vld [vmem:[%s3538_s30 + $0x10] sm:$0xff]   ;;  %v3428_v14 = vld [vmem:[%s3538_s30 + $0x58] sm:$0xff]   ;;  %v3681_v40 = vshra.s32 %v286_v38, 3  ;;  %v291_v41 = vadd.s32 4294967295, %v3679_v39  ;;  %v290_v46 = vand.u32 7, %v286_v38  ;;  %s278_s6 = scalar_lea.vmem %s4728_s7, %s3179_s23 }
  0x16   : > { %v3430_v17 = vld [vmem:[%s3538_s30 + $0x50] sm:$0xff]   ;;  %v3431_v20 = vld [vmem:[%s3538_s30 + $0x8] sm:$0xff]   ;;  %v3433_v26 = vld [vmem:[%s3538_s30] sm:$0xff]   ;;  %v3725_v52 = vadd.s32 4294967295, %v289_v47  ;;  %v3746_v57 = vadd.s32 1, %v289_v47  ;;  %v4816_v38 = vmov 0 }
  0x17   : > { %490 = vrot.lane.b32.xlu0 %v3420_v2, %s3470_s8  ;;  %488 = vrot.lane.b32.xlu1 %v3422_v4, %s3470_s8  ;;  %v3432_v23 = vld [vmem:[%s3538_s30 + $0x48] sm:$0xff]   ;;  %v3434_v29 = vld [vmem:[%s3538_s30 + $0x40] sm:$0xff]   ;;  %v292_v42 = vadd.s32 4294967295, %v3681_v40  ;;  %vm293_vm1 = vcmp.ge.s32.totalorder %v291_v41, 0  ;;  %vm295_vm2 = vcmp.lt.s32.totalorder %v291_v41, 8  ;;  %v3722_v50 = vadd.s32 4294967295, %v290_v46 }
  0x18   : > { %vm3693_vm5 = vmand %vm293_vm1, %vm295_vm2  ;;  %v3734_v56 = vadd.s32 1, %v290_v46  ;;  %vm4735_vm9 = vcmp.ge.s32.totalorder %v3725_v52, 0  ;;  %v3435_v37 = vld [vmem:[%s4722_s1 + $0x10] sm:$0xff]   ;;  %v4819_v41 = vmov 0 }
  0x19   : > { %vm294_vm3 = vcmp.ge.s32.totalorder %v292_v42, 0  ;;  %vm296_vm4 = vcmp.lt.s32.totalorder %v292_v42, 8  ;;  %vm4738_vm8 = vcmp.ge.s32.totalorder %v3722_v50, 0  ;;  %vm4729_vm12 = vcmp.lt.s32.totalorder %v3722_v50, 8  ;;  %vm3760_vm15 = vmand %vm3693_vm5, %vm4735_vm9 }
  0x1a   : > { %vm3701_vm6 = vmand %vm294_vm3, %vm296_vm4  ;;  %vm4733_vm1 = vcmp.ge.s32.totalorder %v3734_v56, 0  ;;  %vm4732_vm3 = vcmp.lt.s32.totalorder %v3746_v57, 8 }
  0x1b   : > { %438 = vrot.lane.b32.xlu0 %v3423_v5, %s3470_s8  ;;  %486 = vrot.lane.b32.xlu1 %v3424_v6, %s3470_s8  ;;  %vm649_vm7 = vmpackc.low %vm3701_vm6, %vm3693_vm5 }
  0x1c   : > { %v650_v51 = vsel %vm649_vm7, 65537, %v4751_v9  ;;  %vm304_vm11 = vmand %vm3701_vm6, %vm4738_vm8  ;;  %vm4731_vm7 = vcmp.lt.s32.totalorder %v3734_v56, 8 }
  0x1d   : > { %v658_v53 = vrot.slane %v650_v51, %v3720_v49  ;;  %v654_v54 = vrot.slane %v650_v51, %v3717_v48  ;;  %vm3769_vm2 = vmand %vm304_vm11, %vm4729_vm12 }
  0x1e   : > { %vm322_vm4 = vmand %vm3701_vm6, %vm4733_vm1 }
  0x1f   : > { %436 = vrot.lane.b32.xlu0 %v3425_v7, %s3470_s8  ;;  %484 = vrot.lane.b32.xlu1 %v3426_v8, %s3470_s8  ;;  %vm3748_vm13 = vcmp.ne.s16.totalorder %v658_v53, 0  ;;  %vm3752_vm14 = vcmp.ne.s16.totalorder %v654_v54, 0  ;;  %vm579_vm11 = vmpackc.low %vm3769_vm2, %vm3760_vm15  ;;  %v1783_v53 = vld [vmem:[%s4723_s2 + $0x8] sm:$0xff] }
  0x20   : > { %v4803_v58 = vsel %vm3748_vm13, 4294967295, %v4802_v58  ;;  %v4806_v59 = vsel %vm3752_vm14, 4294967295, %v4805_v59  ;;  %vm3797_vm12 = vmand %vm3693_vm5, %vm4732_vm3  ;;  %vm329_vm3 = vcmp.lt.s32.totalorder %v3679_v39, 8 }
  0x21   : > { %4804 = vst [vmem:[#allocation5_spill] sm:$0xff] %v4803_v58  ;;  %4807 = vst [vmem:[#allocation6_spill] sm:$0xff] %v4806_v59 }
  0x22   : > { %vm3809_vm6 = vmand %vm322_vm4, %vm4731_vm7  ;;  %vm4736_vm4 = vcmask 56320   ;;  %vm327_vm7 = vcmp.ge.s32.totalorder %v3679_v39, 0 }
  0x23   : > { %vm858_vm5 = vmpackc.low %vm3809_vm6, %vm3797_vm12  ;;  %vm4737_vm12 = vcmask 72704  }
  0x85   : > { %v443_v12 = vpop.permute.xlu0 %442  ;;  %v441_v15 = vpop.permute.xlu1 %440 }
  0x86   : > { %v3555_v13 = vsel %vm4734_vm0, %v3427_v10, %v443_v12  ;;  %v3561_v16 = vsel %vm4734_vm0, %v3429_v11, %v441_v15 }
  0x87   : > { %617 = vrot.lane.b32.xlu1 %v3555_v13, %s3472_s9 }
  0x89   : > { %v491_v18 = vpop.permute.xlu0 %490  ;;  %v489_v21 = vpop.permute.xlu1 %488 }
  0x8a   : > { %v3565_v19 = vsel %vm4734_vm0, %v3428_v14, %v491_v18  ;;  %v3573_v22 = vsel %vm4734_vm0, %v3430_v17, %v489_v21  ;;  %v580_v14 = vsel %vm579_vm11, 65537, %v4751_v9 }
  0x8b   : > { %609 = vrot.lane.b32.xlu0 %v3565_v19, %s3472_s9  ;;  %615 = vrot.lane.b32.xlu1 %v3561_v16, %s3472_s9  ;;  %v588_v21 = vrot.slane %v580_v14, %v3720_v49 }
  0x8d   : > { %v439_v24 = vpop.permute.xlu0 %438  ;;  %v487_v27 = vpop.permute.xlu1 %486  ;;  %vm3849_vm15 = vcmp.ne.s16.totalorder %v588_v21, 0 }
  0x8e   : > { %v3577_v25 = vsel %vm4734_vm0, %v3431_v20, %v439_v24  ;;  %v3585_v28 = vsel %vm4734_vm0, %v3432_v23, %v487_v27  ;;  %v1785_v20 = vld [vmem:[%s4723_s2 + $0x18] sm:$0xff]  ;;  %v584_v23 = vrot.slane %v580_v14, %v3717_v48  ;;  %v1784_v24 = vld [vmem:[%s4723_s2 + $0x10] sm:$0xff]  ;;  %v4817_v38 = vsel %vm3849_vm15, 4294967295, %v4816_v38 }
  0x8f   : > { %607 = vrot.lane.b32.xlu0 %v3573_v22, %s3472_s9  ;;  %613 = vrot.lane.b32.xlu1 %v3577_v25, %s3472_s9  ;;  %4818 = vst [vmem:[#allocation7_spill] sm:$0xff] %v4817_v38 }
  0x90   : > { %vm3853_vm2 = vcmp.ne.s16.totalorder %v584_v23, 0 }
  0x91   : > { %v437_v30 = vpop.permute.xlu0 %436  ;;  %v485_v32 = vpop.permute.xlu1 %484  ;;  %v4820_v41 = vsel %vm3853_vm2, 4294967295, %v4819_v41 }
  0x92   : > { %v3589_v31 = vsel %vm4734_vm0, %v3433_v26, %v437_v30  ;;  %v3596_v33 = vsel %vm4734_vm0, %v3434_v29, %v485_v32  ;;  %v859_v29 = vsel %vm858_vm5, 65537, %v4751_v9  ;;  %v1782_v30 = vld [vmem:[%s4723_s2] sm:$0xff]  ;;  %4821 = vst [vmem:[#allocation8_spill] sm:$0xff] %v4820_v41  ;;  %vm328_vm5 = vcmp.ge.s32.totalorder %v3681_v40, 0 }
  0x93   : > { %605 = vrot.lane.b32.xlu0 %v3585_v28, %s3472_s9  ;;  %611 = vrot.lane.b32.xlu1 %v3589_v31, %s3472_s9  ;;  %v863_v42 = vrot.slane %v859_v29, %v3717_v48  ;;  %v867_v43 = vrot.slane %v859_v29, %v3720_v49 }
  0x95   : > { %vm3869_vm11 = vcmp.ne.s16.totalorder %v863_v42, 0  ;;  %vm3873_vm6 = vcmp.ne.s16.totalorder %v867_v43, 0 }
  0x97   : > { %603 = vrot.lane.b32.xlu0 %v3596_v33, %s3472_s9  ;;  %547 = vrot.lane.b32.xlu1 %v3555_v13, %s3473_s10 }
  0x9b   : > { %535 = vrot.lane.b32.xlu0 %v3565_v19, %s3473_s10  ;;  %826 = vrot.lane.b32.xlu1 %v3555_v13, %s3474_s11 }
  0x9f   : > { %818 = vrot.lane.b32.xlu0 %v3565_v19, %s3474_s11  ;;  %545 = vrot.lane.b32.xlu1 %v3561_v16, %s3473_s10 }
  0xa3   : > { %533 = vrot.lane.b32.xlu0 %v3573_v22, %s3473_s10  ;;  %824 = vrot.lane.b32.xlu1 %v3561_v16, %s3474_s11 }
  0xa7   : > { %816 = vrot.lane.b32.xlu0 %v3573_v22, %s3474_s11  ;;  %543 = vrot.lane.b32.xlu1 %v3577_v25, %s3473_s10 }
  0xab   : > { %531 = vrot.lane.b32.xlu0 %v3585_v28, %s3473_s10  ;;  %822 = vrot.lane.b32.xlu1 %v3577_v25, %s3474_s11 }
  0xaf   : > { %814 = vrot.lane.b32.xlu0 %v3585_v28, %s3474_s11  ;;  %541 = vrot.lane.b32.xlu1 %v3589_v31, %s3473_s10 }
  0xb3   : > { %529 = vrot.lane.b32.xlu0 %v3596_v33, %s3473_s10  ;;  %820 = vrot.lane.b32.xlu1 %v3589_v31, %s3474_s11 }
  0xb7   : > { %812 = vrot.lane.b32.xlu0 %v3596_v33, %s3474_s11  ;;  %974 = vrot.lane.b32.xlu1 %v3555_v13, %s3475_s12 }
  0xbb   : > { %966 = vrot.lane.b32.xlu0 %v3565_v19, %s3475_s12  ;;  %972 = vrot.lane.b32.xlu1 %v3561_v16, %s3475_s12 }
  0xbf   : > { %964 = vrot.lane.b32.xlu0 %v3573_v22, %s3475_s12  ;;  %970 = vrot.lane.b32.xlu1 %v3577_v25, %s3475_s12 }
  0xc3   : > { %962 = vrot.lane.b32.xlu0 %v3585_v28, %s3475_s12  ;;  %968 = vrot.lane.b32.xlu1 %v3589_v31, %s3475_s12 }
  0xc7   : > { %960 = vrot.lane.b32.xlu0 %v3596_v33, %s3475_s12  ;;  %1204 = vrot.lane.b32.xlu1 %v3565_v19, %s3476_s13 }
  0xcb   : > { %1202 = vrot.lane.b32.xlu0 %v3555_v13, %s3476_s13  ;;  %1352 = vrot.lane.b32.xlu1 %v3565_v19, %s3477_s14 }
  0xcf   : > { %1350 = vrot.lane.b32.xlu0 %v3555_v13, %s3477_s14  ;;  %1200 = vrot.lane.b32.xlu1 %v3573_v22, %s3476_s13 }
  0xd3   : > { %1198 = vrot.lane.b32.xlu0 %v3561_v16, %s3476_s13  ;;  %1348 = vrot.lane.b32.xlu1 %v3573_v22, %s3477_s14 }
  0xd7   : > { %1346 = vrot.lane.b32.xlu0 %v3561_v16, %s3477_s14  ;;  %1196 = vrot.lane.b32.xlu1 %v3585_v28, %s3476_s13 }
  0xdb   : > { %1194 = vrot.lane.b32.xlu0 %v3577_v25, %s3476_s13  ;;  %1344 = vrot.lane.b32.xlu1 %v3585_v28, %s3477_s14 }
  0xdf   : > { %1342 = vrot.lane.b32.xlu0 %v3577_v25, %s3477_s14  ;;  %1192 = vrot.lane.b32.xlu1 %v3596_v33, %s3476_s13 }
  0xe3   : > { %1190 = vrot.lane.b32.xlu0 %v3589_v31, %s3476_s13  ;;  %1340 = vrot.lane.b32.xlu1 %v3596_v33, %s3477_s14 }
  0xe7   : > { %1338 = vrot.lane.b32.xlu0 %v3589_v31, %s3477_s14  ;;  %1500 = vrot.lane.b32.xlu1 %v3565_v19, %s3478_s15 }
  0xeb   : > { %1498 = vrot.lane.b32.xlu0 %v3555_v13, %s3478_s15  ;;  %1648 = vrot.lane.b32.xlu1 %v3565_v19, %s3479_s16 }
  0xef   : > { %1646 = vrot.lane.b32.xlu0 %v3555_v13, %s3479_s16  ;;  %1496 = vrot.lane.b32.xlu1 %v3573_v22, %s3478_s15 }
  0xf3   : > { %1494 = vrot.lane.b32.xlu0 %v3561_v16, %s3478_s15  ;;  %1644 = vrot.lane.b32.xlu1 %v3573_v22, %s3479_s16 }
  0xf7   : > { %1642 = vrot.lane.b32.xlu0 %v3561_v16, %s3479_s16  ;;  %1492 = vrot.lane.b32.xlu1 %v3585_v28, %s3478_s15 }
  0xf9   : > { %v618_v55 = vpop.permute.xlu1 %617 }
  0xfb   : > { %1490 = vrot.lane.b32.xlu0 %v3577_v25, %s3478_s15  ;;  %1640 = vrot.lane.b32.xlu1 %v3585_v28, %s3479_s16 }
  0xfd   : > { %v610_v60 = vpop.permute.xlu0 %609  ;;  %v616_v61 = vpop.permute.xlu1 %615 }
  0xfe   : > { %v623_v63 = vsel %vm4730_vm10, %v618_v55, %v610_v60  ;;  %v643_v0 = vsel %vm4730_vm10, %v610_v60, %v618_v55  ;;  %v4822_v55 = vmov 0  ;;  %v4825_v60 = vmov 0 }
  0xff   : > { %3226 = vmatprep.subr.msk.bf16.mxu0 %vm3748_vm13, %v623_v63  ;;  %1638 = vrot.lane.b32.xlu0 %v3577_v25, %s3479_s16  ;;  %v667_v2 = vsel %vm3752_vm14, %v643_v0, 0  ;;  %v4823_v55 = vsel %vm3869_vm11, 4294967295, %v4822_v55  ;;  %v4826_v60 = vsel %vm3873_vm6, 4294967295, %v4825_v60 }
 0x100   : > { %1488 = vrot.lane.b32.xlu1 %v3596_v33, %s3478_s15  ;;  %699 = vmatpush1.bf16.msra.mxu0 %v667_v2  ;;  %4824 = vst [vmem:[#allocation9_spill] sm:$0xff] %v4823_v55  ;;  %4827 = vst [vmem:[#allocation10_spill] sm:$0xff] %v4826_v60  ;;  %v3436_v2 = vld [vmem:[%s4722_s1 + $0x18] sm:$0xff]  }
 0x101   : > { %v608_v3 = vpop.permute.xlu0 %607  ;;  %v614_v4 = vpop.permute.xlu1 %613 }
 0x102   : > { %v622_v5 = vsel %vm4730_vm10, %v616_v61, %v608_v3  ;;  %v639_v6 = vsel %vm4730_vm10, %v608_v3, %v616_v61 }
 0x103   : > { %3227 = vmatprep.subr.msk.bf16.mxu0 %vm3748_vm13, %v622_v5  ;;  %1486 = vrot.lane.b32.xlu0 %v3589_v31, %s3478_s15  ;;  %v665_v8 = vsel %vm3752_vm14, %v639_v6, 0 }
 0x104   : > { %1636 = vrot.lane.b32.xlu1 %v3596_v33, %s3479_s16  ;;  %701 = vmatpush1.bf16.msra.mxu0 %v665_v8 }
 0x105   : > { %v606_v11 = vpop.permute.xlu0 %605  ;;  %v612_v12 = vpop.permute.xlu1 %611 }
 0x106   : > { %v621_v15 = vsel %vm4730_vm10, %v614_v4, %v606_v11  ;;  %v635_v17 = vsel %vm4730_vm10, %v606_v11, %v614_v4 }
 0x107   : > { %3228 = vmatprep.subr.msk.bf16.mxu0 %vm3748_vm13, %v621_v15  ;;  %1634 = vrot.lane.b32.xlu0 %v3589_v31, %s3479_s16  ;;  %v663_v18 = vsel %vm3752_vm14, %v635_v17, 0 }
 0x108   : > { %703 = vmatpush1.bf16.msra.mxu0 %v663_v18  ;;  %1803 = vperm.xlu1 %3418, %v1785_v20  }
 0x109   : > { %v604_v26 = vpop.permute.xlu0 %603  ;;  %v548_v27 = vpop.permute.xlu1 %547 }
 0x10a   : > { %v620_v32 = vsel %vm4730_vm10, %v612_v12, %v604_v26  ;;  %v631_v35 = vsel %vm4730_vm10, %v604_v26, %v612_v12  ;;  %vm330_vm10 = vcmp.lt.s32.totalorder %v3681_v40, 8 }
 0x10b   : > { %3229 = vmatprep.subr.msk.bf16.mxu0 %vm3748_vm13, %v620_v32  ;;  %v661_v36 = vsel %vm3752_vm14, %v631_v35, 0  ;;  %1798 = vperm.xlu0 %3417, %v1784_v24   ;;  %vm3899_vm1 = vmand %vm328_vm5, %vm330_vm10 }
 0x10c   : > { %705 = vmatpush1.bf16.msra.mxu0 %v661_v36  ;;  %1788 = vperm.xlu1 %3418, %v1782_v30   ;;  %vm334_vm10 = vmand %vm3899_vm1, %vm4738_vm8 }
 0x10d   : > { %v536_v44 = vpop.permute.xlu0 %535  ;;  %v827_v46 = vpop.permute.xlu1 %826 }
 0x10e   : > { %v553_v47 = vsel %vm4737_vm12, %v548_v27, %v536_v44  ;;  %v573_v51 = vsel %vm4737_vm12, %v536_v44, %v548_v27 }
 0x10f   : > { %3234 = vmatprep.subr.msk.bf16.mxu1 %vm3849_vm15, %v553_v47  ;;  %v597_v54 = vsel %vm3853_vm2, %v573_v51, 0  ;;  %3230 = vmatmul.mubr.msk.bf16.vlgmr.msra.gmra.mxu0 %vm4734_vm0, %v3435_v37  ;;  %v3437_v51 = vld [vmem:[%s4722_s1] sm:$0xff]  }
 0x110   : > { %768 = vmatpush1.bf16.msra.mxu1 %v597_v54  ;;  %732 = vmatprep.mubr.bf16.mxu0 %v4751_v9 }
 0x111   : > { %v819_v61 = vpop.permute.xlu0 %818  ;;  %v546_v62 = vpop.permute.xlu1 %545  ;;  %1793 = vperm.xlu0 %3417, %v1783_v53  }
 0x112   : > { %v852_v63 = vsel %vm4736_vm4, %v819_v61, %v827_v46  ;;  %v832_v0 = vsel %vm4736_vm4, %v827_v46, %v819_v61  ;;  %v342_v46 = vadd.s32 1, %v3681_v40  ;;  %v341_v61 = vadd.s32 1, %v3679_v39  ;;  %v3438_v39 = vld [vmem:[%s4722_s1 + $0x20] sm:$0xff]  }
 0x113   : > { %3246 = vmatprep.subr.msk.bf16.mxu0 %vm3873_vm6, %v832_v0  ;;  %v876_v1 = vsel %vm3869_vm11, %v852_v63, 0 }
 0x114   : > { %908 = vmatpush1.bf16.msra.mxu0 %v876_v1 }
 0x115   : > { %v534_v3 = vpop.permute.xlu0 %533  ;;  %v825_v4 = vpop.permute.xlu1 %824 }
 0x116   : > { %v552_v5 = vsel %vm4737_vm12, %v546_v62, %v534_v3  ;;  %v569_v6 = vsel %vm4737_vm12, %v534_v3, %v546_v62  ;;  %v4840_v3 = vmov 0 }
 0x117   : > { %3235 = vmatprep.subr.msk.bf16.mxu1 %vm3849_vm15, %v552_v5  ;;  %v595_v7 = vsel %vm3853_vm2, %v569_v6, 0  ;;  %3231 = vmatmul.mubr.msk.bf16.gmra.mxu0 %vm4734_vm0, %v3436_v2  ;;  %vm3909_vm0 = vmand %vm327_vm7, %vm329_vm3  ;;  %vm4834_vm7 = vcmp.lt.s32.totalorder %v3722_v50, 8  ;;  %v4837_v2 = vmov 0 }
 0x118   : > { %770 = vmatpush1.bf16.msra.mxu1 %v595_v7  ;;  %931 = vmatprep.mubr.bf16.mxu0 %v4751_v9  ;;  %vm3923_vm3 = vmand %vm3909_vm0, %vm4735_vm9 }
 0x119   : > { %v817_v8 = vpop.permute.xlu0 %816  ;;  %v544_v10 = vpop.permute.xlu1 %543  ;;  %vm336_vm5 = vmand %vm334_vm10, %vm4834_vm7  ;;  %vm346_vm10 = vcmp.lt.s32.totalorder %v342_v46, 8  ;;  %vm4835_vm7 = vcmask 523264  }
 0x11a   : > { %v848_v12 = vsel %vm4736_vm4, %v817_v8, %v825_v4  ;;  %v831_v14 = vsel %vm4736_vm4, %v825_v4, %v817_v8  ;;  %vm1006_vm9 = vmpackc.low %vm336_vm5, %vm3923_vm3  ;;  %vm4836_vm5 = vcmp.ge.s32.totalorder %v3734_v56, 0 }
 0x11b   : > { %3247 = vmatprep.subr.msk.bf16.mxu0 %vm3873_vm6, %v831_v14  ;;  %v874_v15 = vsel %vm3869_vm11, %v848_v12, 0  ;;  %v1007_v42 = vsel %vm1006_vm9, 65537, %v4751_v9  ;;  %vm344_vm9 = vcmp.ge.s32.totalorder %v342_v46, 0  ;;  %v3439_v12 = vld [vmem:[%s4722_s1 + $0x8] sm:$0xff]   ;;  %v3442_v46 = vld [vmem:[%s4722_s1 + $0x40] sm:$0xff]  }
 0x11c   : > { %910 = vmatpush1.bf16.msra.mxu0 %v874_v15  ;;  %v1011_v53 = vrot.slane %v1007_v42, %v3717_v48  ;;  %v1015_v54 = vrot.slane %v1007_v42, %v3720_v49 }
 0x11d   : > { %v532_v18 = vpop.permute.xlu0 %531  ;;  %v823_v20 = vpop.permute.xlu1 %822 }
 0x11e   : > { %v551_v21 = vsel %vm4737_vm12, %v544_v10, %v532_v18  ;;  %v565_v23 = vsel %vm4737_vm12, %v532_v18, %v544_v10  ;;  %vm3973_vm8 = vcmp.ne.s16.totalorder %v1015_v54, 0 }
 0x11f   : > { %3236 = vmatprep.subr.msk.bf16.mxu1 %vm3849_vm15, %v551_v21  ;;  %v593_v26 = vsel %vm3853_vm2, %v565_v23, 0  ;;  %v4841_v3 = vsel %vm3973_vm8, 4294967295, %v4840_v3  ;;  %v3440_v21 = vld [vmem:[%s4722_s1 + $0x28] sm:$0xff]  }
 0x120   : > { %772 = vmatpush1.bf16.msra.mxu1 %v593_v26  ;;  %4842 = vst [vmem:[#allocation12_spill] sm:$0xff] %v4841_v3 }
 0x121   : > { %v815_v27 = vpop.permute.xlu0 %814  ;;  %v542_v29 = vpop.permute.xlu1 %541 }
 0x122   : > { %v844_v30 = vsel %vm4736_vm4, %v815_v27, %v823_v20  ;;  %v830_v32 = vsel %vm4736_vm4, %v823_v20, %v815_v27 }
 0x123   : > { %3248 = vmatprep.subr.msk.bf16.mxu0 %vm3873_vm6, %v830_v32  ;;  %v872_v35 = vsel %vm3869_vm11, %v844_v30, 0 }
 0x124   : > { %912 = vmatpush1.bf16.msra.mxu0 %v872_v35 }
 0x125   : > { %v530_v36 = vpop.permute.xlu0 %529  ;;  %v821_v37 = vpop.permute.xlu1 %820 }
 0x126   : > { %v550_v43 = vsel %vm4737_vm12, %v542_v29, %v530_v36  ;;  %v561_v44 = vsel %vm4737_vm12, %v530_v36, %v542_v29  ;;  %vm3969_vm12 = vcmp.ne.s16.totalorder %v1011_v53, 0 }
 0x127   : > { %3237 = vmatprep.subr.msk.bf16.mxu1 %vm3849_vm15, %v550_v43  ;;  %v591_v47 = vsel %vm3853_vm2, %v561_v44, 0  ;;  %v4838_v2 = vsel %vm3969_vm12, 4294967295, %v4837_v2  ;;  %v4873_v43 = vmov 0 }
 0x128   : > { %774 = vmatpush1.bf16.msra.mxu1 %v591_v47  ;;  %4839 = vst [vmem:[#allocation11_spill] sm:$0xff] %v4838_v2 }
 0x129   : > { %v813_v62 = vpop.permute.xlu0 %812  ;;  %v975_v63 = vpop.permute.xlu1 %974 }
 0x12a   : > { %v829_v40 = vsel %vm4736_vm4, %v821_v37, %v813_v62  ;;  %v840_v0 = vsel %vm4736_vm4, %v813_v62, %v821_v37  ;;  %vm338_vm4 = vmand %vm3899_vm1, %vm4836_vm5  ;;  %vm343_vm1 = vcmp.ge.s32.totalorder %v341_v61, 0  ;;  %vm345_vm5 = vcmp.lt.s32.totalorder %v341_v61, 8 }
 0x12b   : > { %v870_v1 = vsel %vm3869_vm11, %v840_v0, 0  ;;  %3249 = vmatprep.subr.msk.bf16.mxu0 %vm3873_vm6, %v829_v40  ;;  %3238 = vmatmul.mubr.msk.bf16.vlgmr.msra.gmra.mxu1 %vm4835_vm7, %v3437_v51  ;;  %vm4843_vm7 = vcmp.lt.s32.totalorder %v3746_v57, 8  ;;  %vm3989_vm6 = vmand %vm344_vm9, %vm346_vm10  ;;  %vm4848_vm11 = vcmask 7168   ;;  %vm4853_vm9 = vcmask 523264  }
 0x12c   : > { %914 = vmatpush1.bf16.msra.mxu0 %v870_v1  ;;  %801 = vmatprep.mubr.bf16.mxu1 %v4751_v9  ;;  %vm3982_vm3 = vmand %vm3909_vm0, %vm4843_vm7  ;;  %vm4850_vm0 = vcmp.lt.s32.totalorder %v3734_v56, 8  ;;  %v4877_v62 = vmov 0 }
 0x12d   : > { %v967_v5 = vpop.permute.xlu0 %966  ;;  %1137 = vmatprep.subr.bf16.mxu0 %v3565_v19  ;;  %v973_v6 = vpop.permute.xlu1 %972  ;;  %vm4849_vm15 = vmmov %vm4848_vm11 }
 0x12e   : > { %v980_v8 = vsel %vm4848_vm11, %v975_v63, %v967_v5  ;;  %v1000_v10 = vsel %vm4849_vm15, %v967_v5, %v975_v63  ;;  %vm3997_vm7 = vmand %vm338_vm4, %vm4850_vm0  ;;  %vm4856_vm15 = vcmp.ge.s32.totalorder %v3722_v50, 0  ;;  %vm4859_vm0 = vcmp.ge.s32.totalorder %v3725_v52, 0  ;;  %v3443_v5 = vld [vmem:[%s4722_s1 + $0x38] sm:$0xff]  }
 0x12f   : > { %v1024_v19 = vsel %vm3969_vm12, %v1000_v10, 0  ;;  %3258 = vmatprep.subr.msk.bf16.mxu1 %vm3973_vm8, %v980_v8  ;;  %3250 = vmatmul.mubr.msk.bf16.vlgmr.msra.gmra.mxu0 %vm4853_vm9, %v3438_v39  ;;  %vm4009_vm11 = vmand %vm343_vm1, %vm345_vm5  ;;  %vm4857_vm1 = vcmask 7168   ;;  %v4880_v63 = vmov 0 }
 0x130   : > { %1056 = vmatpush1.bf16.msra.mxu1 %v1024_v19  ;;  %1138 = vmatpush1.bf16.msra.mxu0 %v3555_v13  ;;  %vm350_vm4 = vmand %vm3989_vm6, %vm4856_vm15  ;;  %vm4862_vm15 = vcmask 523264  }
 0x131   : > { %v965_v15 = vpop.permute.xlu0 %964  ;;  %1139 = vmatprep.subr.bf16.mxu0 %v3573_v22  ;;  %v971_v17 = vpop.permute.xlu1 %970  ;;  %941 = vmatprep.mubr.bf16.mxu0 %v4751_v9  ;;  %vm1236_vm10 = vmpackc.low %vm3997_vm7, %vm3982_vm3  ;;  %vm4863_vm3 = vcmp.lt.s32.totalorder %v3722_v50, 8 }
 0x132   : > { %v979_v18 = vsel %vm4857_vm1, %v973_v6, %v965_v15  ;;  %vm4858_vm5 = vmmov %vm4857_vm1  ;;  %v1237_v26 = vsel %vm1236_vm10, 65537, %v4751_v9 }
 0x133   : > { %v996_v13 = vsel %vm4858_vm5, %v965_v15, %v973_v6  ;;  %vm4030_vm9 = vmand %vm4009_vm11, %vm4859_vm0  ;;  %3259 = vmatprep.subr.msk.bf16.mxu1 %vm3973_vm8, %v979_v18  ;;  %3239 = vmatmul.mubr.msk.bf16.gmra.mxu1 %vm4862_vm15, %v3439_v12  ;;  %v1245_v50 = vrot.slane %v1237_v26, %v3720_v49  ;;  %v3444_v6 = vld [vmem:[%s4722_s1 + $0x48] sm:$0xff]  }
 0x134   : > { %v1022_v22 = vsel %vm3969_vm12, %v996_v13, 0  ;;  %vm4044_vm7 = vmand %vm350_vm4, %vm4863_vm3  ;;  %1140 = vmatpush1.bf16.msra.mxu0 %v3561_v16  ;;  %1079 = vmatprep.mubr.bf16.mxu1 %v4751_v9 }
 0x135   : > { %1058 = vmatpush1.bf16.msra.mxu1 %v1022_v22  ;;  %v963_v23 = vpop.permute.xlu0 %962  ;;  %1141 = vmatprep.subr.bf16.mxu0 %v3585_v28  ;;  %v969_v24 = vpop.permute.xlu1 %968  ;;  %vm4866_vm5 = vmmov %vm4857_vm1  ;;  %v1241_v28 = vrot.slane %v1237_v26, %v3717_v48 }
 0x136   : > { %v978_v27 = vsel %vm4857_vm1, %v971_v17, %v963_v23  ;;  %v992_v29 = vsel %vm4866_vm5, %v963_v23, %v971_v17  ;;  %vm1384_vm4 = vmpackc.low %vm4044_vm7, %vm4030_vm9  ;;  %vm4083_vm7 = vcmp.ne.s16.totalorder %v1245_v50, 0  ;;  %vm4748_vm5 = vcmask 990208  }
 0x137   : > { %v1020_v16 = vsel %vm3969_vm12, %v992_v29, 0  ;;  %3260 = vmatprep.subr.msk.bf16.mxu1 %vm3973_vm8, %v978_v27  ;;  %vm4867_vm0 = vmmov %vm4862_vm15  ;;  %v1385_v35 = vsel %vm1384_vm4, 65537, %v4751_v9  ;;  %vm4745_vm15 = vcmask 1039360   ;;  %vm4079_vm3 = vcmp.ne.s16.totalorder %v1241_v28, 0 }
 0x138   : > { %3251 = vmatmul.mubr.msk.bf16.gmra.mxu0 %vm4867_vm0, %v3440_v21  ;;  %vm4868_vm10 = vmmov %vm4857_vm1  ;;  %v4874_v43 = vsel %vm4083_vm7, 4294967295, %v4873_v43  ;;  %v1389_v44 = vrot.slane %v1385_v35, %v3717_v48  ;;  %v1393_v47 = vrot.slane %v1385_v35, %v3720_v49 }
 0x139   : > { %1060 = vmatpush1.bf16.msra.mxu1 %v1020_v16  ;;  %1142 = vmatpush1.bf16.msra.mxu0 %v3577_v25  ;;  %v961_v30 = vpop.permute.xlu0 %960  ;;  %v1205_v32 = vpop.permute.xlu1 %1204  ;;  %vm4869_vm9 = vmmov %vm4857_vm1  ;;  %v3441_v25 = vld [vmem:[%s4722_s1 + $0x30] sm:$0xff]   ;;  %4875 = vst [vmem:[#allocation14_spill] sm:$0xff] %v4874_v43 }
 0x13a   : > { %1143 = vmatprep.subr.bf16.mxu0 %v3596_v33  ;;  %1161 = vmatprep.mubr.bf16.mxu0 %v4751_v9  ;;  %v977_v36 = vsel %vm4868_vm10, %v969_v24, %v961_v30  ;;  %v988_v37 = vsel %vm4869_vm9, %v961_v30, %v969_v24  ;;  %v4870_v33 = vmov 0  ;;  %vm4876_vm1 = vmmov %vm4867_vm0  ;;  %vm4099_vm4 = vcmp.ne.s16.totalorder %v1389_v44, 0 }
 0x13b   : > { %v1018_v42 = vsel %vm3969_vm12, %v988_v37, 0  ;;  %3261 = vmatprep.subr.msk.bf16.mxu1 %vm3973_vm8, %v977_v36  ;;  %v4871_v33 = vsel %vm4079_vm3, 4294967295, %v4870_v33  ;;  %v4878_v62 = vsel %vm4099_vm4, 4294967295, %v4877_v62  ;;  %vm4104_vm10 = vcmp.ne.s16.totalorder %v1393_v47, 0  ;;  %vm4883_vm9 = vmmov %vm4867_vm0  ;;  %v3445_v36 = vld [vmem:[%s4722_s1 + $0x50] sm:$0xff]  }
 0x13c   : > { %4872 = vst [vmem:[#allocation13_spill] sm:$0xff] %v4871_v33  ;;  %4879 = vst [vmem:[#allocation15_spill] sm:$0xff] %v4878_v62  ;;  %v4881_v63 = vsel %vm4104_vm10, 4294967295, %v4880_v63 }
 0x13d   : > { %1062 = vmatpush1.bf16.msra.mxu1 %v1018_v42  ;;  %1144 = vmatpush1.bf16.msra.mxu0 %v3589_v31  ;;  %v1203_v51 = vpop.permute.xlu0 %1202  ;;  %v1353_v53 = vpop.permute.xlu1 %1352  ;;  %4882 = vst [vmem:[#allocation16_spill] sm:$0xff] %v4881_v63 }
 0x13e   : > { %v1210_v31 = vsel %vm4745_vm15, %v1203_v51, %v1205_v32  ;;  %v1230_v54 = vsel %vm4745_vm15, %v1205_v32, %v1203_v51 }
 0x13f   : > { %v1254_v61 = vsel %vm4079_vm3, %v1210_v31, 0  ;;  %3278 = vmatprep.subr.msk.bf16.mxu1 %vm4083_vm7, %v1230_v54  ;;  %v3446_v31 = vld [vmem:[%s4722_s1 + $0x60] sm:$0xff]   ;;  %v4897_v54 = vmov 0 }
 0x140   : > { %3262 = vmatmul.mubr.msk.bf16.vlgmr.msra.gmra.mxu1 %vm4876_vm1, %v3441_v25  ;;  %3270 = vmatmul.mubr.msk.bf16.vlgmr.msra.gmra.mxu0 %vm4867_vm0, %v3442_v46  ;;  %vm4884_vm1 = vmmov %vm4867_vm0  ;;  %vm4885_vm0 = vcmp.ge.s32.totalorder %v3734_v56, 0 }
 0x141   : > { %1286 = vmatpush1.bf16.msra.mxu1 %v1254_v61  ;;  %v1351_v40 = vpop.permute.xlu0 %1350  ;;  %v1201_v0 = vpop.permute.xlu1 %1200  ;;  %1089 = vmatprep.mubr.bf16.mxu1 %v4751_v9  ;;  %v4900_v61 = vmov 0 }
 0x142   : > { %1171 = vmatprep.mubr.bf16.mxu0 %v4751_v9  ;;  %v1358_v1 = vsel %vm4748_vm5, %v1351_v40, %v1353_v53  ;;  %v1378_v39 = vsel %vm4748_vm5, %v1353_v53, %v1351_v40 }
 0x143   : > { %v1402_v4 = vsel %vm4099_vm4, %v1358_v1, 0  ;;  %3290 = vmatprep.subr.msk.bf16.mxu0 %vm4104_vm10, %v1378_v39 }
 0x144   : > { %1434 = vmatpush1.bf16.msra.mxu0 %v1402_v4 }
 0x145   : > { %v1199_v8 = vpop.permute.xlu0 %1198  ;;  %v1349_v10 = vpop.permute.xlu1 %1348 }
 0x146   : > { %v1209_v11 = vsel %vm4745_vm15, %v1199_v8, %v1201_v0  ;;  %v1226_v19 = vsel %vm4745_vm15, %v1201_v0, %v1199_v8  ;;  %v3447_v8 = vld [vmem:[%s4722_s1 + $0x58] sm:$0xff]  }
 0x147   : > { %v1252_v12 = vsel %vm4079_vm3, %v1209_v11, 0  ;;  %3279 = vmatprep.subr.msk.bf16.mxu1 %vm4083_vm7, %v1226_v19 }
 0x148   : > { %3263 = vmatmul.mubr.msk.bf16.gmra.mxu1 %vm4883_vm9, %v3443_v5  ;;  %3271 = vmatmul.mubr.msk.bf16.gmra.mxu0 %vm4884_vm1, %v3444_v6  ;;  %vm358_vm9 = vmand %vm3989_vm6, %vm4885_vm0 }
 0x149   : > { %1288 = vmatpush1.bf16.msra.mxu1 %v1252_v12  ;;  %v1347_v15 = vpop.permute.xlu0 %1346  ;;  %v1197_v17 = vpop.permute.xlu1 %1196  ;;  %1309 = vmatprep.mubr.bf16.mxu1 %v4751_v9  ;;  %vm1532_vm1 = vmpackc.low %vm3989_vm6, %vm4009_vm11  ;;  %vm4889_vm6 = vcmp.lt.s32.totalorder %v3734_v56, 8 }
 0x14a   : > { %1457 = vmatprep.mubr.bf16.mxu0 %v4751_v9  ;;  %v1357_v18 = vsel %vm4748_vm5, %v1347_v15, %v1349_v10  ;;  %v1374_v13 = vsel %vm4748_vm5, %v1349_v10, %v1347_v15  ;;  %vm4168_vm0 = vmand %vm358_vm9, %vm4889_vm6  ;;  %v1533_v14 = vsel %vm1532_vm1, 65537, %v4751_v9  ;;  %vm4896_vm1 = vcmask 523264  }
 0x14b   : > { %v1400_v20 = vsel %vm4099_vm4, %v1357_v18, 0  ;;  %3291 = vmatprep.subr.msk.bf16.mxu0 %vm4104_vm10, %v1374_v13  ;;  %v1537_v37 = vrot.slane %v1533_v14, %v3717_v48  ;;  %v1541_v42 = vrot.slane %v1533_v14, %v3720_v49  ;;  %vm4787_vm6 = vcmask 982016   ;;  %v3448_v18 = vld [vmem:[%s4722_s1 + $0x68] sm:$0xff]  }
 0x14c   : > { %1436 = vmatpush1.bf16.msra.mxu0 %v1400_v20  ;;  %v4907_v10 = vmov 0 }
 0x14d   : > { %v1195_v22 = vpop.permute.xlu0 %1194  ;;  %v1345_v21 = vpop.permute.xlu1 %1344 }
 0x14e   : > { %v1208_v52 = vsel %vm4745_vm15, %v1195_v22, %v1197_v17  ;;  %v1222_v23 = vsel %vm4745_vm15, %v1197_v17, %v1195_v22  ;;  %vm4886_vm15 = vcmp.lt.s32.totalorder %v3746_v57, 8 }
 0x14f   : > { %v1250_v24 = vsel %vm4079_vm3, %v1208_v52, 0  ;;  %3280 = vmatprep.subr.msk.bf16.mxu1 %vm4083_vm7, %v1222_v23  ;;  %vm4158_vm8 = vmand %vm4009_vm11, %vm4886_vm15  ;;  %vm4892_vm11 = vcmask 1039360  }
 0x150   : > { %1290 = vmatpush1.bf16.msra.mxu1 %v1250_v24  ;;  %vm4893_vm15 = vmmov %vm4892_vm11 }
 0x151   : > { %v1343_v26 = vpop.permute.xlu0 %1342  ;;  %v1193_v27 = vpop.permute.xlu1 %1192 }
 0x152   : > { %v1356_v29 = vsel %vm4748_vm5, %v1343_v26, %v1345_v21  ;;  %v1370_v16 = vsel %vm4748_vm5, %v1345_v21, %v1343_v26  ;;  %vm1680_vm5 = vmpackc.low %vm4168_vm0, %vm4158_vm8  ;;  %vm4894_vm8 = vcmask 990208   ;;  %vm4199_vm0 = vcmp.ne.s16.totalorder %v1537_v37, 0 }
 0x153   : > { %v1398_v50 = vsel %vm4099_vm4, %v1356_v29, 0  ;;  %3292 = vmatprep.subr.msk.bf16.mxu0 %vm4104_vm10, %v1370_v16  ;;  %v1681_v46 = vsel %vm1680_vm5, 65537, %v4751_v9  ;;  %vm4895_vm9 = vmmov %vm4894_vm8  ;;  %v4898_v54 = vsel %vm4199_vm0, 4294967295, %v4897_v54  ;;  %vm4203_vm5 = vcmp.ne.s16.totalorder %v1541_v42, 0 }
 0x154   : > { %1438 = vmatpush1.bf16.msra.mxu0 %v1398_v50  ;;  %4899 = vst [vmem:[#allocation17_spill] sm:$0xff] %v4898_v54  ;;  %v4901_v61 = vsel %vm4203_vm5, 4294967295, %v4900_v61  ;;  %v1685_v40 = vrot.slane %v1681_v46, %v3717_v48  ;;  %v1689_v0 = vrot.slane %v1681_v46, %v3720_v49  ;;  %v4904_v49 = vmov 0 }
 0x155   : > { %v1191_v57 = vpop.permute.xlu0 %1190  ;;  %v1341_v30 = vpop.permute.xlu1 %1340  ;;  %4902 = vst [vmem:[#allocation18_spill] sm:$0xff] %v4901_v61 }
 0x156   : > { %v1207_v32 = vsel %vm4892_vm11, %v1191_v57, %v1193_v27  ;;  %v1218_v35 = vsel %vm4893_vm15, %v1193_v27, %v1191_v57  ;;  %vm4903_vm11 = vmmov %vm4896_vm1  ;;  %vm4749_vm15 = vcmask 973824  }
 0x157   : > { %v1248_v56 = vsel %vm4079_vm3, %v1207_v32, 0  ;;  %3281 = vmatprep.subr.msk.bf16.mxu1 %vm4083_vm7, %v1218_v35 }
 0x158   : > { %1292 = vmatpush1.bf16.msra.mxu1 %v1248_v56 }
 0x159   : > { %v1339_v25 = vpop.permute.xlu0 %1338  ;;  %v1501_v44 = vpop.permute.xlu1 %1500 }
 0x15a   : > { %v1355_v47 = vsel %vm4894_vm8, %v1339_v25, %v1341_v30  ;;  %v1366_v51 = vsel %vm4895_vm9, %v1341_v30, %v1339_v25  ;;  %vm4220_vm8 = vcmp.ne.s16.totalorder %v1685_v40, 0  ;;  %vm4224_vm9 = vcmp.ne.s16.totalorder %v1689_v0, 0  ;;  %v3450_v40 = vld [vmem:[%s4722_s1 + $0x80] sm:$0xff]   ;;  %v3451_v0 = vld [vmem:[%s4722_s1 + $0x78] sm:$0xff]  }
 0x15b   : > { %v1396_v53 = vsel %vm4099_vm4, %v1355_v47, 0  ;;  %3282 = vmatmul.mubr.msk.bf16.vlgmr.msra.gmra.mxu1 %vm4896_vm1, %v3445_v36  ;;  %3293 = vmatprep.subr.msk.bf16.mxu0 %vm4104_vm10, %v1366_v51  ;;  %v4905_v49 = vsel %vm4220_vm8, 4294967295, %v4904_v49  ;;  %v4908_v10 = vsel %vm4224_vm9, 4294967295, %v4907_v10 }
 0x15c   : > { %1440 = vmatpush1.bf16.msra.mxu0 %v1396_v53  ;;  %1319 = vmatprep.mubr.bf16.mxu1 %v4751_v9  ;;  %4906 = vst [vmem:[#allocation19_spill] sm:$0xff] %v4905_v49  ;;  %4909 = vst [vmem:[#allocation20_spill] sm:$0xff] %v4908_v10 }
 0x15d   : > { %v1499_v1 = vpop.permute.xlu0 %1498  ;;  %v1649_v39 = vpop.permute.xlu1 %1648 }
 0x15e   : > { %v1506_v4 = vsel %vm4787_vm6, %v1499_v1, %v1501_v44  ;;  %v1526_v5 = vsel %vm4787_vm6, %v1501_v44, %v1499_v1  ;;  %v3449_v44 = vld [vmem:[%s4722_s1 + $0x70] sm:$0xff]   ;;  %v3452_v1 = vld [vmem:[%s4722_s1 + $0x88] sm:$0xff]  }
 0x15f   : > { %v1550_v6 = vsel %vm4199_vm0, %v1506_v4, 0  ;;  %3294 = vmatmul.mubr.msk.bf16.vlgmr.msra.gmra.mxu0 %vm4903_vm11, %v3446_v31  ;;  %3302 = vmatprep.subr.msk.bf16.mxu1 %vm4203_vm5, %v1526_v5  ;;  %vm4910_vm11 = vmmov %vm4896_vm1 }
 0x160   : > { %1582 = vmatpush1.bf16.msra.mxu1 %v1550_v6  ;;  %1467 = vmatprep.mubr.bf16.mxu0 %v4751_v9 }
 0x161   : > { %v1647_v11 = vpop.permute.xlu0 %1646  ;;  %v1497_v19 = vpop.permute.xlu1 %1496 }
 0x162   : > { %v1654_v12 = vsel %vm4749_vm15, %v1647_v11, %v1649_v39  ;;  %v1674_v15 = vsel %vm4749_vm15, %v1649_v39, %v1647_v11 }
 0x163   : > { %v1698_v17 = vsel %vm4220_vm8, %v1654_v12, 0  ;;  %3283 = vmatmul.mubr.msk.bf16.gmra.mxu1 %vm4896_vm1, %v3447_v8  ;;  %3314 = vmatprep.subr.msk.bf16.mxu0 %vm4224_vm9, %v1674_v15 }
 0x164   : > { %1730 = vmatpush1.bf16.msra.mxu0 %v1698_v17  ;;  %1605 = vmatprep.mubr.bf16.mxu1 %v4751_v9 }
 0x165   : > { %v1495_v13 = vpop.permute.xlu0 %1494  ;;  %v1645_v20 = vpop.permute.xlu1 %1644 }
 0x166   : > { %v1505_v22 = vsel %vm4787_vm6, %v1495_v13, %v1497_v19  ;;  %v1522_v21 = vsel %vm4787_vm6, %v1497_v19, %v1495_v13 }
 0x167   : > { %v1548_v52 = vsel %vm4199_vm0, %v1505_v22, 0  ;;  %3295 = vmatmul.mubr.msk.bf16.gmra.mxu0 %vm4910_vm11, %v3448_v18  ;;  %3303 = vmatprep.subr.msk.bf16.mxu1 %vm4203_vm5, %v1522_v21  ;;  %vm4911_vm11 = vmmov %vm4896_vm1 }
 0x168   : > { %1584 = vmatpush1.bf16.msra.mxu1 %v1548_v52  ;;  %1753 = vmatprep.mubr.bf16.mxu0 %v4751_v9 }
 0x169   : > { %v1643_v23 = vpop.permute.xlu0 %1642  ;;  %v1493_v24 = vpop.permute.xlu1 %1492 }
 0x16a   : > { %v1653_v26 = vsel %vm4749_vm15, %v1643_v23, %v1645_v20  ;;  %v1670_v27 = vsel %vm4749_vm15, %v1645_v20, %v1643_v23 }
 0x16b   : > { %v1696_v29 = vsel %vm4220_vm8, %v1653_v26, 0  ;;  %3315 = vmatprep.subr.msk.bf16.mxu0 %vm4224_vm9, %v1670_v27 }
 0x16c   : > { %1732 = vmatpush1.bf16.msra.mxu0 %v1696_v29 }
 0x16d   : > { %v1491_v16 = vpop.permute.xlu0 %1490  ;;  %v1641_v28 = vpop.permute.xlu1 %1640 }
 0x16e   : > { %v1504_v50 = vsel %vm4787_vm6, %v1491_v16, %v1493_v24  ;;  %v1518_v7 = vsel %vm4787_vm6, %v1493_v24, %v1491_v16 }
 0x16f   : > { %v1546_v57 = vsel %vm4199_vm0, %v1504_v50, 0  ;;  %3304 = vmatprep.subr.msk.bf16.mxu1 %vm4203_vm5, %v1518_v7 }
 0x170   : > { %1586 = vmatpush1.bf16.msra.mxu1 %v1546_v57 }
 0x171   : > { %v1639_v30 = vpop.permute.xlu0 %1638 }
 0x172   : > { %v1652_v14 = vsel %vm4749_vm15, %v1639_v30, %v1641_v28  ;;  %v1666_v32 = vsel %vm4749_vm15, %v1641_v28, %v1639_v30  ;;  %v1489_v56 = vpop.permute.xlu1 %1488 }
 0x173   : > { %v1694_v35 = vsel %vm4220_vm8, %v1652_v14, 0  ;;  %3316 = vmatprep.subr.msk.bf16.mxu0 %vm4224_vm9, %v1666_v32 }
 0x174   : > { %1734 = vmatpush1.bf16.msra.mxu0 %v1694_v35 }
 0x175   : > { %v1487_v36 = vpop.permute.xlu0 %1486 }
 0x176   : > { %v1503_v37 = vsel %vm4787_vm6, %v1487_v36, %v1489_v56  ;;  %v1514_v42 = vsel %vm4787_vm6, %v1489_v56, %v1487_v36  ;;  %v1637_v46 = vpop.permute.xlu1 %1636 }
 0x177   : > { %v1544_v25 = vsel %vm4199_vm0, %v1503_v37, 0  ;;  %3305 = vmatprep.subr.msk.bf16.mxu1 %vm4203_vm5, %v1514_v42 }
 0x178   : > { %1588 = vmatpush1.bf16.msra.mxu1 %v1544_v25 }
 0x179   : > { %v1635_v47 = vpop.permute.xlu0 %1634 }
 0x17a   : > { %v1651_v51 = vsel %vm4749_vm15, %v1635_v47, %v1637_v46  ;;  %v1662_v53 = vsel %vm4749_vm15, %v1637_v46, %v1635_v47  ;;  %vm4912_vm15 = vmmov %vm4896_vm1 }
 0x17b   : > { %v1692_v31 = vsel %vm4220_vm8, %v1651_v51, 0  ;;  %3306 = vmatmul.mubr.msk.bf16.vlgmr.msra.gmra.mxu1 %vm4896_vm1, %v3449_v44  ;;  %3317 = vmatprep.subr.msk.bf16.mxu0 %vm4224_vm9, %v1662_v53 }
 0x17c   : > { %1736 = vmatpush1.bf16.msra.mxu0 %v1692_v31  ;;  %1615 = vmatprep.mubr.bf16.mxu1 %v4751_v9 }
 0x17f   : > { %3318 = vmatmul.mubr.msk.bf16.vlgmr.msra.gmra.mxu0 %vm4911_vm11, %v3450_v40 }
 0x180   : > { %1763 = vmatprep.mubr.bf16.mxu0 %v4751_v9 }
 0x183   : > { %3307 = vmatmul.mubr.msk.bf16.gmra.mxu1 %vm4912_vm15, %v3451_v0  ;;  %vm4915_vm15 = vcmask 64512  }
 0x184   : > { %1924 = vmatprep.mubr.bf16.mxu1 %v4751_v9  ;;  %vm4916_vm11 = vmmov %vm4915_vm15 }
 0x187   : > { %3319 = vmatmul.mubr.msk.bf16.gmra.mxu0 %vm4896_vm1, %v3452_v1  ;;  %vm4919_vm1 = vmmov %vm4916_vm11 }
 0x188   : > { %2053 = vmatprep.mubr.bf16.mxu0 %v4751_v9  ;;  %vm4920_vm6 = vmmov %vm4919_vm1 }
 0x1cf   : > { %v724_v39 = vpop.f32.mrf.mxu0 }
 0x1d1   : > { %v726_v4 = vpop.f32.mrf.mxu0 }
 0x1d3   : > { %v728_v5 = vpop.f32.mrf.mxu0 }
 0x1d5   : > { %v730_v6 = vpop.f32.mrf.mxu0 }
 0x1d7   : > { %v4298_v8 = vpop.f32.mrf.mxu0 }
 0x1d9   : > { %v4300_v11 = vpop.f32.mrf.mxu0 }
 0x1db   : > { %v738_v19 = vpop.f32.mrf.mxu0 }
 0x1dd   : > { %v4302_v12 = vpop.f32.mrf.mxu0 }
 0x1eb   : > { %v793_v15 = vpop.f32.mrf.mxu1 }
 0x1ec   : > { %v794_v48 = vadd.f32 %v793_v15, %v724_v39 }
 0x1ed   : > { %v795_v17 = vpop.f32.mrf.mxu1 }
 0x1ee   : > { %v796_v54 = vadd.f32 %v795_v17, %v726_v4 }
 0x1ef   : > { %v933_v18 = vpop.f32.mrf.mxu0  ;;  %v797_v13 = vpop.f32.mrf.mxu1 }
 0x1f0   : > { %v952_v61 = vadd.f32 %v933_v18, %v794_v48  ;;  %v798_v62 = vadd.f32 %v797_v13, %v728_v5  ;;  %v4338_v18 = vpop.permute.xlu1 %1803 }
 0x1f1   : > { %v935_v20 = vpop.f32.mrf.mxu0  ;;  %v799_v22 = vpop.f32.mrf.mxu1 }
 0x1f2   : > { %v953_v43 = vadd.f32 %v935_v20, %v796_v54  ;;  %v800_v3 = vadd.f32 %v799_v22, %v730_v6 }
 0x1f3   : > { %v937_v21 = vpop.f32.mrf.mxu0  ;;  %v803_v52 = vpop.f32.mrf.mxu1 }
 0x1f4   : > { %v954_v2 = vadd.f32 %v937_v21, %v798_v62  ;;  %v804_v54 = vadd.f32 %v803_v52, %v4298_v8  ;;  %v4343_v21 = vpop.permute.xlu0 %1798 }
 0x1f5   : > { %v939_v23 = vpop.f32.mrf.mxu0  ;;  %v4304_v24 = vpop.f32.mrf.mxu1 }
 0x1f6   : > { %v955_v58 = vadd.f32 %v939_v23, %v800_v3 }
 0x1f7   : > { %v807_v27 = vpop.f32.mrf.mxu1 }
 0x1f8   : > { %v4306_v26 = vpop.f32.mrf.mxu0  ;;  %v808_v59 = vadd.f32 %v807_v27, %v738_v19 }
 0x1f9   : > { %v4310_v16 = vpop.f32.mrf.mxu1 }
 0x1fa   : > { %v4308_v29 = vpop.f32.mrf.mxu0 }
 0x1fc   : > { %v947_v28 = vpop.f32.mrf.mxu0 }
 0x1fd   : > { %v958_v20 = vadd.f32 %v947_v28, %v808_v59  ;;  %v806_v59 = vadd.f32 %v4304_v24, %v4300_v11  ;;  %v810_v28 = vadd.f32 %v4310_v16, %v4302_v12 }
 0x1fe   : > { %v4312_v50 = vpop.f32.mrf.mxu0 }
 0x1ff   : > { %v959_v11 = vadd.f32 %v4312_v50, %v810_v28 }
 0x200   : > { %v1081_v7 = vpop.f32.mrf.mxu1  ;;  %v1163_v30 = vpop.f32.mrf.mxu0 }
 0x201   : > { %v1100_v60 = vadd.f32 %v1081_v7, %v952_v61 }
 0x202   : > { %v1083_v57 = vpop.f32.mrf.mxu1  ;;  %v1165_v32 = vpop.f32.mrf.mxu0 }
 0x203   : > { %v1101_v41 = vadd.f32 %v1083_v57, %v953_v43  ;;  %v1182_v39 = vadd.f32 %v1163_v30, %v1100_v60  ;;  %v1789_v57 = vpop.permute.xlu1 %1788 }
 0x204   : > { %v1085_v14 = vpop.f32.mrf.mxu1  ;;  %v1167_v56 = vpop.f32.mrf.mxu0 }
 0x205   : > { %v1102_v15 = vadd.f32 %v1085_v14, %v954_v2  ;;  %v1183_v4 = vadd.f32 %v1165_v32, %v1101_v41 }
 0x206   : > { %v1087_v35 = vpop.f32.mrf.mxu1  ;;  %v1169_v37 = vpop.f32.mrf.mxu0 }
 0x207   : > { %v1103_v5 = vadd.f32 %v1087_v35, %v955_v58  ;;  %v1184_v61 = vadd.f32 %v1167_v56, %v1102_v15  ;;  %v956_v58 = vadd.f32 %v4306_v26, %v804_v54 }
 0x208   : > { %v4314_v36 = vpop.f32.mrf.mxu1  ;;  %v4318_v25 = vpop.f32.mrf.mxu0 }
 0x209   : > { %v1185_v2 = vadd.f32 %v1169_v37, %v1103_v5  ;;  %v1104_v26 = vadd.f32 %v4314_v36, %v956_v58 }
 0x20a   : > { %v4316_v42 = vpop.f32.mrf.mxu1  ;;  %v4320_v46 = vpop.f32.mrf.mxu0 }
 0x20b   : > { %4913 = vst [vmem:[#allocation21_spill] sm:$0xff] %v4320_v46  ;;  %v1186_v15 = vadd.f32 %v4318_v25, %v1104_v26 }
 0x20c   : > { %v1095_v44 = vpop.f32.mrf.mxu1  ;;  %v4324_v51 = vpop.f32.mrf.mxu0 }
 0x20d   : > { %v1106_v14 = vadd.f32 %v1095_v44, %v958_v20 }
 0x20e   : > { %v4322_v47 = vpop.f32.mrf.mxu1  ;;  %v4326_v31 = vpop.f32.mrf.mxu0 }
 0x20f   : > { %v1188_v16 = vadd.f32 %v4324_v51, %v1106_v14  ;;  %v1107_v36 = vadd.f32 %v4322_v47, %v959_v11 }
 0x211   : > { %v1189_v25 = vadd.f32 %v4326_v31, %v1107_v36 }
 0x21b   : > { %v1311_v53 = vpop.f32.mrf.mxu1 }
 0x21c   : > { %v1330_v17 = vadd.f32 %v1311_v53, %v1182_v39 }
 0x21d   : > { %v1313_v40 = vpop.f32.mrf.mxu1 }
 0x21e   : > { %v1331_v6 = vadd.f32 %v1313_v40, %v1183_v4  ;;  %v1794_v40 = vpop.permute.xlu0 %1793 }
 0x21f   : > { %v1459_v0 = vpop.f32.mrf.mxu0  ;;  %v1315_v1 = vpop.f32.mrf.mxu1 }
 0x220   : > { %v1478_v13 = vadd.f32 %v1459_v0, %v1330_v17  ;;  %v1332_v3 = vadd.f32 %v1315_v1, %v1184_v61  ;;  %v957_v1 = vadd.f32 %v4308_v29, %v806_v59 }
 0x221   : > { %v1461_v34 = vpop.f32.mrf.mxu0  ;;  %v1317_v9 = vpop.f32.mrf.mxu1 }
 0x222   : > { %v1479_v19 = vadd.f32 %v1461_v34, %v1331_v6  ;;  %v1333_v27 = vadd.f32 %v1317_v9, %v1185_v2  ;;  %v1105_v29 = vadd.f32 %v4316_v42, %v957_v1  ;;  %v4914_v42 = vld [vmem:[#allocation21_spill] sm:$0xff] }
 0x223   : > { %v1463_v45 = vpop.f32.mrf.mxu0  ;;  %v4328_v49 = vpop.f32.mrf.mxu1 }
 0x224   : > { %v1480_v8 = vadd.f32 %v1463_v45, %v1332_v3  ;;  %v1334_v50 = vadd.f32 %v4328_v49, %v1186_v15  ;;  %v1187_v49 = vadd.f32 %v4914_v42, %v1105_v29 }
 0x225   : > { %v1465_v10 = vpop.f32.mrf.mxu0  ;;  %v4330_v63 = vpop.f32.mrf.mxu1 }
 0x226   : > { %v1481_v32 = vadd.f32 %v1465_v10, %v1333_v27  ;;  %v1335_v31 = vadd.f32 %v4330_v63, %v1187_v49 }
 0x227   : > { %v4332_v33 = vpop.f32.mrf.mxu0  ;;  %v1325_v55 = vpop.f32.mrf.mxu1 }
 0x228   : > { %v1336_v5 = vadd.f32 %v1325_v55, %v1188_v16  ;;  %v1482_v47 = vadd.f32 %v4332_v33, %v1334_v50 }
 0x229   : > { %v4334_v38 = vpop.f32.mrf.mxu0  ;;  %v4336_v46 = vpop.f32.mrf.mxu1 }
 0x22a   : > { %v1483_v27 = vadd.f32 %v4334_v38, %v1335_v31 }
 0x22b   : > { %v1473_v48 = vpop.f32.mrf.mxu0 }
 0x22d   : > { %v4341_v43 = vpop.f32.mrf.mxu0 }
 0x23b   : > { %v1607_v62 = vpop.f32.mrf.mxu1 }
 0x23c   : > { %v1626_v22 = vadd.f32 %v1607_v62, %v1478_v13  ;;  %v1484_v13 = vadd.f32 %v1473_v48, %v1336_v5 }
 0x23d   : > { %v1609_v60 = vpop.f32.mrf.mxu1 }
 0x23e   : > { %v1627_v52 = vadd.f32 %v1609_v60, %v1479_v19  ;;  %v1337_v19 = vadd.f32 %v4336_v46, %v1189_v25 }
 0x23f   : > { %v1611_v41 = vpop.f32.mrf.mxu1  ;;  %v1755_v23 = vpop.f32.mrf.mxu0 }
 0x240   : > { %v1774_v7 = vadd.f32 %v1755_v23, %v1626_v22  ;;  %v1628_v35 = vadd.f32 %v1611_v41, %v1480_v8  ;;  %v1485_v33 = vadd.f32 %v4341_v43, %v1337_v19 }
 0x241   : > { %v1613_v30 = vpop.f32.mrf.mxu1  ;;  %v1757_v34 = vpop.f32.mrf.mxu0 }
 0x242   : > { %v1775_v56 = vadd.f32 %v1757_v34, %v1627_v52  ;;  %v1629_v45 = vadd.f32 %v1613_v30, %v1481_v32  ;;  %v1806_v53 = vadd.f32 %v1789_v57, %v1774_v7 }
 0x243   : > { %v1617_v37 = vpop.f32.mrf.mxu1  ;;  %v1759_v9 = vpop.f32.mrf.mxu0 }
 0x244   : > { %v1776_v0 = vadd.f32 %v1759_v9, %v1628_v35  ;;  %v1807_v44 = vadd.f32 %v1789_v57, %v1775_v56  ;;  %v1814_v17 = vmax.f32 %v1806_v53, 0.0  ;;  %v1630_v48 = vadd.f32 %v1617_v37, %v1482_v47 }
 0x245   : > { %v1619_v24 = vpop.f32.mrf.mxu1  ;;  %v1761_v12 = vpop.f32.mrf.mxu0  ;;  %v4928_v47 = vmov 0  }
 0x246   : > { %v1808_v10 = vadd.f32 %v1794_v40, %v1776_v0  ;;  %v1777_v39 = vadd.f32 %v1761_v12, %v1629_v45  ;;  %v1815_v51 = vmax.f32 %v1807_v44, 0.0  ;;  %v1631_v52 = vadd.f32 %v1619_v24, %v1483_v27  ;;  %v4917_v44 = vld [vmem:[#allocation6_spill] sm:$0xff] }
 0x247   : > { %v1765_v4 = vpop.f32.mrf.mxu0  ;;  %v1621_v61 = vpop.f32.mrf.mxu1 }
 0x248   : > { %v1816_v54 = vmax.f32 %v1808_v10, 0.0  ;;  %v1809_v62 = vadd.f32 %v1794_v40, %v1777_v39  ;;  %v1632_v3 = vadd.f32 %v1621_v61, %v1484_v13  ;;  %v1778_v41 = vadd.f32 %v1765_v4, %v1630_v48  ;;  %v4918_v39 = vld [vmem:[#allocation5_spill] sm:$0xff] }
 0x249   : > { %v1767_v6 = vpop.f32.mrf.mxu0  ;;  %v1623_v58 = vpop.f32.mrf.mxu1  ;;  %v4931_v48 = vld [vmem:[#allocation9_spill] sm:$0xff] }
 0x24a   : > { %v4358_v20 = vpack.c.bf16 %v1816_v54, %v1814_v17  ;;  %v1817_v60 = vmax.f32 %v1809_v62, 0.0  ;;  %v1633_v8 = vadd.f32 %v1623_v58, %v1485_v33  ;;  %v1810_v7 = vadd.f32 %v4343_v21, %v1778_v41  ;;  %v3453_v62 = vld [vmem:[%s4724_s3 + $0x8] sm:$0xff]   ;;  %v4933_v58 = vld [vmem:[#allocation10_spill] sm:$0xff] }
 0x24b   : > { %v1769_v2 = vpop.f32.mrf.mxu0  ;;  %v1779_v63 = vadd.f32 %v1767_v6, %v1631_v52  ;;  %v4923_v6 = vld [vmem:[#allocation8_spill] sm:$0xff]  ;;  %v3454_v33 = vld [vmem:[%s4724_s3] sm:$0xff]  }
 0x24c   : > { %v4362_v55 = vpack.c.bf16 %v1817_v60, %v1815_v51  ;;  %1860 = vrot.lane.b32.xlu0 %v4358_v20, %s3472_s9  ;;  %v1780_v22 = vadd.f32 %v1769_v2, %v1632_v3  ;;  %v1818_v59 = vmax.f32 %v1810_v7, 0.0  ;;  %v4924_v51 = vld [vmem:[#allocation7_spill] sm:$0xff] }
 0x24d   : > { %v1771_v23 = vpop.f32.mrf.mxu0  ;;  %v1811_v28 = vadd.f32 %v4343_v21, %v1779_v63  ;;  %v2536_v21 = vld [vmem:[%s4725_s4] sm:$0xff]  ;;  %v4941_v63 = vld [vmem:[#allocation12_spill] sm:$0xff] }
 0x24e   : > { %1856 = vrot.lane.b32.xlu1 %v4362_v55, %s3472_s9  ;;  %v1812_v46 = vadd.f32 %v4338_v18, %v1780_v22  ;;  %v1781_v57 = vadd.f32 %v1771_v23, %v1633_v8 }
 0x24f   : > { %v1819_v14 = vmax.f32 %v1811_v28, 0.0 }
 0x250   : > { %1834 = vrot.lane.b32.xlu0 %v4358_v20, %s3473_s10  ;;  %v1820_v43 = vmax.f32 %v1812_v46, 0.0  ;;  %v1813_v38 = vadd.f32 %v4338_v18, %v1781_v57  ;;  %v2537_v18 = vld [vmem:[%s4725_s4 + $0x8] sm:$0xff] }
 0x252   : > { %1828 = vrot.lane.b32.xlu1 %v4362_v55, %s3473_s10  ;;  %v4387_v30 = vpack.c.bf16 %v1820_v43, %v1818_v59  ;;  %v1821_v34 = vmax.f32 %v1813_v38, 0.0  ;;  %v3455_v59 = vld [vmem:[%s4724_s3 + $0x10] sm:$0xff]  }
 0x254   : > { %1990 = vrot.lane.b32.xlu0 %v4358_v20, %s3474_s11  ;;  %v4395_v32 = vpack.c.bf16 %v1821_v34, %v1819_v14 }
 0x256   : > { %1986 = vrot.lane.b32.xlu1 %v4362_v55, %s3474_s11 }
 0x258   : > { %2072 = vrot.lane.b32.xlu0 %v4358_v20, %s3475_s12 }
 0x25a   : > { %2068 = vrot.lane.b32.xlu1 %v4362_v55, %s3475_s12 }
 0x25c   : > { %1862 = vrot.lane.b32.xlu0 %v4387_v30, %s3472_s9 }
 0x25e   : > { %2212 = vrot.lane.b32.xlu1 %v4387_v30, %s3476_s13 }
 0x260   : > { %1836 = vrot.lane.b32.xlu0 %v4387_v30, %s3473_s10 }
 0x262   : > { %1858 = vrot.lane.b32.xlu1 %v4395_v32, %s3472_s9 }
 0x264   : > { %1992 = vrot.lane.b32.xlu0 %v4387_v30, %s3474_s11 }
 0x266   : > { %2294 = vrot.lane.b32.xlu1 %v4387_v30, %s3477_s14 }
 0x268   : > { %2074 = vrot.lane.b32.xlu0 %v4387_v30, %s3475_s12 }
 0x26a   : > { %1830 = vrot.lane.b32.xlu1 %v4395_v32, %s3473_s10 }
 0x26c   : > { %2210 = vrot.lane.b32.xlu0 %v4362_v55, %s3476_s13 }
 0x26e   : > { %1988 = vrot.lane.b32.xlu1 %v4395_v32, %s3474_s11 }
 0x270   : > { %2292 = vrot.lane.b32.xlu0 %v4362_v55, %s3477_s14 }
 0x272   : > { %2070 = vrot.lane.b32.xlu1 %v4395_v32, %s3475_s12 }
 0x274   : > { %2374 = vrot.lane.b32.xlu0 %v4362_v55, %s3478_s15 }
 0x276   : > { %2208 = vrot.lane.b32.xlu1 %v4358_v20, %s3476_s13 }
 0x278   : > { %2214 = vrot.lane.b32.xlu0 %v4395_v32, %s3476_s13 }
 0x27a   : > { %2290 = vrot.lane.b32.xlu1 %v4358_v20, %s3477_s14 }
 0x27c   : > { %2296 = vrot.lane.b32.xlu0 %v4395_v32, %s3477_s14 }
 0x27e   : > { %2376 = vrot.lane.b32.xlu1 %v4387_v30, %s3478_s15 }
 0x280   : > { %2378 = vrot.lane.b32.xlu0 %v4395_v32, %s3478_s15 }
 0x282   : > { %2458 = vrot.lane.b32.xlu1 %v4387_v30, %s3479_s16 }
 0x284   : > { %2460 = vrot.lane.b32.xlu0 %v4395_v32, %s3479_s16 }
 0x286   : > { %2372 = vrot.lane.b32.xlu1 %v4358_v20, %s3478_s15 }
 0x288   : > { %2456 = vrot.lane.b32.xlu0 %v4362_v55, %s3479_s16 }
 0x28a   : > { %2454 = vrot.lane.b32.xlu1 %v4358_v20, %s3479_s16 }
 0x28c   : > { %2545 = vperm.xlu0 %3417, %v2537_v18  }
 0x28e   : > { %2540 = vperm.xlu1 %3418, %v2536_v21   ;;  %v3456_v21 = vld [vmem:[%s4724_s3 + $0x18] sm:$0xff]  }
 0x2be   : > { %v1861_v35 = vpop.permute.xlu0 %1860 }
 0x2c0   : > { %v1857_v56 = vpop.permute.xlu1 %1856 }
 0x2c1   : > { %v1864_v36 = vsel %vm4919_vm1, %v1861_v35, %v1857_v56  ;;  %v1870_v4 = vsel %vm4920_vm6, %v1857_v56, %v1861_v35  ;;  %vm4925_vm1 = vnez %v4924_v51 }
 0x2c2   : > { %v1835_v26 = vpop.permute.xlu0 %1834  ;;  %v1876_v17 = vsel %vm3752_vm14, %v1870_v4, 0 }
 0x2c4   : > { %v1829_v37 = vpop.permute.xlu1 %1828 }
 0x2c6   : > { %v1991_v9 = vpop.permute.xlu0 %1990 }
 0x2c8   : > { %v1987_v45 = vpop.permute.xlu1 %1986 }
 0x2ca   : > { %v2073_v53 = vpop.permute.xlu0 %2072 }
 0x2cc   : > { %v2069_v40 = vpop.permute.xlu1 %2068 }
 0x2ce   : > { %v1863_v0 = vpop.permute.xlu0 %1862 }
 0x2d0   : > { %v4447_v1 = vpop.permute.xlu1 %2212 }
 0x2d2   : > { %v1837_v11 = vpop.permute.xlu0 %1836 }
 0x2d4   : > { %v1859_v24 = vpop.permute.xlu1 %1858 }
 0x2d5   : > { %v1865_v12 = vsel %vm4915_vm15, %v1863_v0, %v1859_v24  ;;  %v1874_v16 = vsel %vm4916_vm11, %v1859_v24, %v1863_v0  ;;  %vm4790_vm15 = vcmask 261120   ;;  %vm4921_vm11 = vcmask 72704  }
 0x2d6   : > { %v1878_v10 = vsel %vm3752_vm14, %v1874_v16, 0  ;;  %3323 = vmatprep.subr.msk.bf16.mxu1 %vm3748_vm13, %v1865_v12  ;;  %v1993_v15 = vpop.permute.xlu0 %1992  ;;  %vm4922_vm6 = vmmov %vm4921_vm11 }
 0x2d7   : > { %1905 = vmatpush1.bf16.msra.mxu1 %v1878_v10  ;;  %vm4927_vm14 = vmmov %vm4922_vm6 }
 0x2d8   : > { %v4457_v5 = vpop.permute.xlu1 %2294  ;;  %3324 = vmatprep.subr.msk.bf16.mxu1 %vm3748_vm13, %v1864_v36  ;;  %vm4926_vm13 = vmmov %vm4922_vm6  ;;  %v1844_v25 = vsel %vm4927_vm14, %v1829_v37, %v1835_v26 }
 0x2d9   : > { %v1838_v2 = vsel %vm4926_vm13, %v1835_v26, %v1829_v37  ;;  %v1850_v19 = vsel %vm3853_vm2, %v1844_v25, 0  ;;  %vm4934_vm13 = vnez %v4933_v58 }
 0x2da   : > { %v2075_v54 = vpop.permute.xlu0 %2074 }
 0x2db   : > { %1907 = vmatpush1.bf16.msra.mxu1 %v1876_v17 }
 0x2dc   : > { %v1831_v29 = vpop.permute.xlu1 %1830 }
 0x2dd   : > { %v1839_v50 = vsel %vm4921_vm11, %v1837_v11, %v1831_v29  ;;  %v1848_v61 = vsel %vm4922_vm6, %v1831_v29, %v1837_v11  ;;  %vm4929_vm11 = vcmask 56320   ;;  %v3386_v11 = vld [vmem:[%s4726_s5 + $0x6] sm:$0x1] }
 0x2de   : > { %v1852_v13 = vsel %vm3853_vm2, %v1848_v61, 0  ;;  %3325 = vmatmul.mubr.msk.bf16.vlgmr.msra.gmra.mxu1 %vm4790_vm15, %v3453_v62  ;;  %3327 = vmatprep.subr.msk.bf16.mxu1 %vm4925_vm1, %v1839_v50  ;;  %v2211_v60 = vpop.permute.xlu0 %2210  ;;  %vm4930_vm6 = vmmov %vm4929_vm11  ;;  %vm4932_vm15 = vnez %v4931_v48  ;;  %vm4940_vm2 = vcmask 261120  }
 0x2df   : > { %1956 = vmatpush1.bf16.msra.mxu1 %v1852_v13  ;;  %1975 = vmatprep.mubr.bf16.mxu1 %v4928_v47  ;;  %vm4935_vm14 = vmmov %vm4930_vm6  ;;  %v3459_v13 = vld [vmem:[%s4724_s3 + $0x30] sm:$0xff]  }
 0x2e0   : > { %v1989_v3 = vpop.permute.xlu1 %1988  ;;  %3328 = vmatprep.subr.msk.bf16.mxu1 %vm4925_vm1, %v1838_v2  ;;  %v1994_v41 = vsel %vm4935_vm14, %v1991_v9, %v1987_v45  ;;  %vm4936_vm1 = vmmov %vm4930_vm6 }
 0x2e1   : > { %v1995_v42 = vsel %vm4929_vm11, %v1993_v15, %v1989_v3  ;;  %v2004_v49 = vsel %vm4930_vm6, %v1989_v3, %v1993_v15  ;;  %v2000_v23 = vsel %vm4936_vm1, %v1987_v45, %v1991_v9  ;;  %vm4937_vm11 = vcmask 7168   ;;  %v3458_v15 = vld [vmem:[%s4724_s3 + $0x28] sm:$0xff]  }
 0x2e2   : > { %v2008_v22 = vsel %vm4932_vm15, %v2004_v49, 0  ;;  %3333 = vmatprep.subr.msk.bf16.mxu0 %vm4934_vm13, %v1995_v42  ;;  %v2293_v31 = vpop.permute.xlu0 %2292  ;;  %vm4938_vm6 = vmmov %vm4937_vm11  ;;  %v2006_v52 = vsel %vm4932_vm15, %v2000_v23, 0  ;;  %vm4942_vm1 = vnez %v4941_v63  ;;  %v4964_v3 = vld [vmem:[#allocation20_spill] sm:$0xff] }
 0x2e3   : > { %1958 = vmatpush1.bf16.msra.mxu1 %v1850_v19  ;;  %2034 = vmatpush1.bf16.msra.mxu0 %v2008_v22  ;;  %vm4943_vm14 = vmmov %vm4938_vm6  ;;  %v4966_v19 = vld [vmem:[#allocation19_spill] sm:$0xff] }
 0x2e4   : > { %v2071_v27 = vpop.permute.xlu1 %2070  ;;  %3334 = vmatprep.subr.msk.bf16.mxu0 %vm4934_vm13, %v1994_v41  ;;  %v2076_v38 = vsel %vm4943_vm14, %v2073_v53, %v2069_v40 }
 0x2e5   : > { %v2077_v8 = vsel %vm4937_vm11, %v2075_v54, %v2071_v27  ;;  %v2086_v46 = vsel %vm4938_vm6, %v2071_v27, %v2075_v54  ;;  %vm4944_vm11 = vmmov %vm4938_vm6  ;;  %vm4945_vm6 = vcmask 1039360   ;;  %v3389_v54 = vld [vmem:[%s4726_s5 + $0x7] sm:$0x1] }
 0x2e6   : > { %v2090_v57 = vsel %vm3969_vm12, %v2086_v46, 0  ;;  %3329 = vmatmul.mubr.msk.bf16.vlgmr.msra.gmra.mxu1 %vm4940_vm2, %v3454_v33  ;;  %3339 = vmatprep.subr.msk.bf16.mxu1 %vm4942_vm1, %v2077_v8  ;;  %v4502_v43 = vpop.permute.xlu0 %2374  ;;  %v2082_v28 = vsel %vm4944_vm11, %v2069_v40, %v2073_v53  ;;  %vm4946_vm14 = vmmov %vm4945_vm6  ;;  %v3460_v33 = vld [vmem:[%s4724_s3 + $0x38] sm:$0xff]  }
 0x2e7   : > { %2036 = vmatpush1.bf16.msra.mxu0 %v2006_v52  ;;  %2116 = vmatpush1.bf16.msra.mxu1 %v2090_v57  ;;  %v2088_v14 = vsel %vm3969_vm12, %v2082_v28, 0  ;;  %vm4948_vm11 = vmmov %vm4945_vm6  ;;  %v3461_v52 = vld [vmem:[%s4724_s3 + $0x40] sm:$0xff]  }
 0x2e8   : > { %v2209_v34 = vpop.permute.xlu1 %2208  ;;  %3340 = vmatprep.subr.msk.bf16.mxu1 %vm4942_vm1, %v2076_v38  ;;  %2173 = vmatprep.subr.bf16.mxu0 %v4395_v32 }
 0x2e9   : > { %2135 = vmatprep.mubr.bf16.mxu1 %v4928_v47  ;;  %v2216_v37 = vsel %vm4948_vm11, %v2209_v34, %v2211_v60  ;;  %v2222_v40 = vsel %vm4945_vm6, %v2211_v60, %v2209_v34 }
 0x2ea   : > { %3335 = vmatmul.mubr.msk.bf16.vlgmr.msra.gmra.mxu0 %vm4940_vm2, %v3455_v59  ;;  %v2215_v18 = vpop.permute.xlu0 %2214  ;;  %v2228_v24 = vsel %vm4079_vm3, %v2216_v37, 0 }
 0x2eb   : > { %v2217_v35 = vsel %vm4945_vm6, %v4447_v1, %v2215_v18  ;;  %v2226_v56 = vsel %vm4946_vm14, %v2215_v18, %v4447_v1  ;;  %2118 = vmatpush1.bf16.msra.mxu1 %v2088_v14  ;;  %2174 = vmatpush1.bf16.msra.mxu0 %v4387_v30  ;;  %v3457_v30 = vld [vmem:[%s4724_s3 + $0x20] sm:$0xff]   ;;  %vm4950_vm14 = vcmask 990208   ;;  %vm4957_vm6 = vcmask 982016  }
 0x2ec   : > { %v2291_v32 = vpop.permute.xlu1 %2290  ;;  %2175 = vmatprep.subr.bf16.mxu0 %v4362_v55  ;;  %3349 = vmatprep.subr.msk.bf16.mxu1 %vm4083_vm7, %v2226_v56  ;;  %v2230_v45 = vsel %vm4079_vm3, %v2217_v35, 0  ;;  %vm4951_vm1 = vmmov %vm4950_vm14 }
 0x2ed   : > { %2193 = vmatprep.mubr.bf16.mxu0 %v4928_v47  ;;  %vm4953_vm11 = vmmov %vm4951_vm1 }
 0x2ee   : > { %3341 = vmatmul.mubr.msk.bf16.vlgmr.msra.gmra.mxu1 %vm4940_vm2, %v3456_v21  ;;  %v2297_v53 = vpop.permute.xlu0 %2296  ;;  %v2298_v12 = vsel %vm4953_vm11, %v2291_v32, %v2293_v31 }
 0x2ef   : > { %v2299_v55 = vsel %vm4950_vm14, %v4457_v5, %v2297_v53  ;;  %v2308_v0 = vsel %vm4951_vm1, %v2297_v53, %v4457_v5  ;;  %2176 = vmatpush1.bf16.msra.mxu0 %v4358_v20  ;;  %2256 = vmatpush1.bf16.msra.mxu1 %v2230_v45  ;;  %vm4955_vm1 = vmmov %vm4940_vm2  ;;  %v2310_v62 = vsel %vm4099_vm4, %v2298_v12, 0 }
 0x2f0   : > { %v2377_v1 = vpop.permute.xlu1 %2376  ;;  %3350 = vmatprep.subr.msk.bf16.mxu1 %vm4083_vm7, %v2222_v40  ;;  %3355 = vmatprep.subr.msk.bf16.mxu0 %vm4104_vm10, %v2308_v0  ;;  %v2312_v10 = vsel %vm4099_vm4, %v2299_v55, 0  ;;  %vm4956_vm2 = vmmov %vm4953_vm11 }
 0x2f1   : > { %2275 = vmatprep.mubr.bf16.mxu1 %v4928_v47  ;;  %v2304_v36 = vsel %vm4956_vm2, %v2293_v31, %v2291_v32  ;;  %vm4958_vm14 = vmmov %vm4957_vm6 }
 0x2f2   : > { %3345 = vmatmul.mubr.msk.bf16.vlgmr.msra.gmra.mxu0 %vm4955_vm1, %v3457_v30  ;;  %v2379_v20 = vpop.permute.xlu0 %2378  ;;  %vm4961_vm11 = vmmov %vm4955_vm1  ;;  %vm4962_vm1 = vcmask 973824  }
 0x2f3   : > { %v2381_v4 = vsel %vm4957_vm6, %v2377_v1, %v2379_v20  ;;  %v2390_v5 = vsel %vm4958_vm14, %v2379_v20, %v2377_v1  ;;  %2258 = vmatpush1.bf16.msra.mxu1 %v2228_v24  ;;  %2338 = vmatpush1.bf16.msra.mxu0 %v2312_v10  ;;  %vm4963_vm2 = vmmov %vm4962_vm1 }
 0x2f4   : > { %v2459_v17 = vpop.permute.xlu1 %2458  ;;  %3356 = vmatprep.subr.msk.bf16.mxu0 %vm4104_vm10, %v2304_v36  ;;  %3361 = vmatprep.subr.msk.bf16.mxu1 %vm4203_vm5, %v2390_v5  ;;  %v2394_v50 = vsel %vm4199_vm0, %v2381_v4, 0  ;;  %vm4965_vm14 = vmmov %vm4957_vm6 }
 0x2f5   : > { %2357 = vmatprep.mubr.bf16.mxu0 %v4928_v47 }
 0x2f6   : > { %3351 = vmatmul.mubr.msk.bf16.vlgmr.msra.gmra.mxu1 %vm4961_vm11, %v3458_v15  ;;  %v2461_v61 = vpop.permute.xlu0 %2460 }
 0x2f7   : > { %v2463_v60 = vsel %vm4962_vm1, %v2459_v17, %v2461_v61  ;;  %v2472_v2 = vsel %vm4963_vm2, %v2461_v61, %v2459_v17  ;;  %2340 = vmatpush1.bf16.msra.mxu0 %v2310_v62  ;;  %2420 = vmatpush1.bf16.msra.mxu1 %v2394_v50  ;;  %vm4967_vm2 = vmmov %vm4962_vm1 }
 0x2f8   : > { %v2373_v25 = vpop.permute.xlu1 %2372  ;;  %3367 = vmatprep.subr.msk.bf16.mxu0 %vm4224_vm9, %v2472_v2  ;;  %2439 = vmatprep.mubr.bf16.mxu1 %v4928_v47  ;;  %v2476_v22 = vsel %vm4220_vm8, %v2463_v60, 0 }
 0x2f9   : > { %v2380_v42 = vsel %vm4957_vm6, %v2373_v25, %v4502_v43  ;;  %v2386_v49 = vsel %vm4965_vm14, %v4502_v43, %v2373_v25  ;;  %vm4968_vm6 = vmmov %vm4961_vm11 }
 0x2fa   : > { %v2392_v31 = vsel %vm4199_vm0, %v2380_v42, 0  ;;  %3357 = vmatmul.mubr.msk.bf16.vlgmr.msra.gmra.mxu0 %vm4961_vm11, %v3459_v13  ;;  %3362 = vmatprep.subr.msk.bf16.mxu1 %vm4203_vm5, %v2386_v49  ;;  %v2457_v41 = vpop.permute.xlu0 %2456  ;;  %vm4969_vm14 = vmmov %vm4968_vm6  ;;  %vm4970_vm11 = vcmask 64512  }
 0x2fb   : > { %2422 = vmatpush1.bf16.msra.mxu1 %v2392_v31  ;;  %2502 = vmatpush1.bf16.msra.mxu0 %v2476_v22 }
 0x2fc   : > { %v2455_v23 = vpop.permute.xlu1 %2454  ;;  %2521 = vmatprep.mubr.bf16.mxu0 %v4928_v47 }
 0x2fd   : > { %v2462_v27 = vsel %vm4962_vm1, %v2455_v23, %v2457_v41  ;;  %v2468_v8 = vsel %vm4967_vm2, %v2457_v41, %v2455_v23  ;;  %vm4971_vm1 = vmmov %vm4970_vm11  ;;  %vm4972_vm2 = vnez %v4917_v44 }
 0x2fe   : > { %v2474_v46 = vsel %vm4220_vm8, %v2462_v27, 0  ;;  %3363 = vmatmul.mubr.msk.bf16.vlgmr.msra.gmra.mxu1 %vm4968_vm6, %v3460_v33  ;;  %3368 = vmatprep.subr.msk.bf16.mxu0 %vm4224_vm9, %v2468_v8  ;;  %vm4973_vm6 = vnez %v4918_v39  ;;  %vm4974_vm9 = vcmask 72704   ;;  %v2572_v39 = vld [vmem:[%s4726_s5] sm:$0x1] }
 0x2ff   : > { %2504 = vmatpush1.bf16.msra.mxu0 %v2474_v46  ;;  %2623 = vmatprep.mubr.bf16.mxu1 %v4928_v47  ;;  %vm4975_vm8 = vmmov %vm4974_vm9 }
 0x302   : > { %3369 = vmatmul.mubr.msk.bf16.vlgmr.msra.gmra.mxu0 %vm4969_vm14, %v3461_v52  ;;  %vm2587_vm14 = vcmask 130048  }
 0x303   : > { %2667 = vmatprep.mubr.bf16.mxu0 %v4928_v47 }
 0x39e   : > { %v1926_v57 = vpop.f32.mrf.mxu1 }
 0x3a0   : > { %v1928_v43 = vpop.f32.mrf.mxu1 }
 0x3a2   : > { %v1930_v59 = vpop.f32.mrf.mxu1 }
 0x3a4   : > { %v1932_v38 = vpop.f32.mrf.mxu1 }
 0x3a6   : > { %v1977_v28 = vpop.f32.mrf.mxu1 }
 0x3a7   : > { %v1978_v0 = vadd.f32 %v1977_v28, %v1926_v57 }
 0x3a8   : > { %v1979_v34 = vpop.f32.mrf.mxu1 }
 0x3a9   : > { %v1980_v12 = vadd.f32 %v1979_v34, %v1928_v43 }
 0x3aa   : > { %v1981_v14 = vpop.f32.mrf.mxu1  ;;  %v2055_v18 = vpop.f32.mrf.mxu0 }
 0x3ab   : > { %v2064_v10 = vadd.f32 %v2055_v18, %v1978_v0  ;;  %v1982_v36 = vadd.f32 %v1981_v14, %v1930_v59 }
 0x3ac   : > { %v1983_v21 = vpop.f32.mrf.mxu1  ;;  %v2057_v35 = vpop.f32.mrf.mxu0 }
 0x3ad   : > { %v2065_v4 = vadd.f32 %v2057_v35, %v1980_v12  ;;  %v1984_v50 = vadd.f32 %v1983_v21, %v1932_v38  ;;  %v2546_v12 = vpop.permute.xlu0 %2545 }
 0x3ae   : > { %v2059_v56 = vpop.f32.mrf.mxu0  ;;  %v2137_v32 = vpop.f32.mrf.mxu1 }
 0x3af   : > { %v2146_v5 = vadd.f32 %v2137_v32, %v2064_v10  ;;  %v2066_v61 = vadd.f32 %v2059_v56, %v1982_v36 }
 0x3b0   : > { %v2061_v37 = vpop.f32.mrf.mxu0  ;;  %v2139_v45 = vpop.f32.mrf.mxu1 }
 0x3b1   : > { %v2147_v13 = vadd.f32 %v2139_v45, %v2065_v4  ;;  %v2067_v42 = vadd.f32 %v2061_v37, %v1984_v50 }
 0x3b2   : > { %v2141_v53 = vpop.f32.mrf.mxu1  ;;  %v2195_v30 = vpop.f32.mrf.mxu0 }
 0x3b3   : > { %v2204_v60 = vadd.f32 %v2195_v30, %v2146_v5  ;;  %v2148_v49 = vadd.f32 %v2141_v53, %v2066_v61 }
 0x3b4   : > { %v2143_v40 = vpop.f32.mrf.mxu1  ;;  %v2197_v55 = vpop.f32.mrf.mxu0 }
 0x3b5   : > { %v2205_v22 = vadd.f32 %v2197_v55, %v2147_v13  ;;  %v2149_v23 = vadd.f32 %v2143_v40, %v2067_v42  ;;  %v2541_v40 = vpop.permute.xlu1 %2540 }
 0x3b6   : > { %v2199_v1 = vpop.f32.mrf.mxu0  ;;  %v2277_v24 = vpop.f32.mrf.mxu1 }
 0x3b7   : > { %v2286_v31 = vadd.f32 %v2277_v24, %v2204_v60  ;;  %v2206_v27 = vadd.f32 %v2199_v1, %v2148_v49  ;;  %v3084_v60 = vld [vmem:[#allocation2] sm:$0x1] }
 0x3b8   : > { %v2201_v20 = vpop.f32.mrf.mxu0  ;;  %v2279_v15 = vpop.f32.mrf.mxu1 }
 0x3b9   : > { %v2287_v8 = vadd.f32 %v2279_v15, %v2205_v22  ;;  %v2207_v43 = vadd.f32 %v2201_v20, %v2149_v23 }
 0x3ba   : > { %v2281_v17 = vpop.f32.mrf.mxu1  ;;  %v2359_v62 = vpop.f32.mrf.mxu0 }
 0x3bb   : > { %v2368_v46 = vadd.f32 %v2359_v62, %v2286_v31  ;;  %v2288_v59 = vadd.f32 %v2281_v17, %v2206_v27 }
 0x3bc   : > { %v2283_v2 = vpop.f32.mrf.mxu1  ;;  %v2361_v25 = vpop.f32.mrf.mxu0 }
 0x3bd   : > { %v2369_v38 = vadd.f32 %v2361_v25, %v2287_v8  ;;  %v2289_v18 = vadd.f32 %v2283_v2, %v2207_v43  ;;  %v3375_v43 = vld [vmem:[%s4726_s5 + $0x2] sm:$0x1] }
 0x3be   : > { %v2363_v33 = vpop.f32.mrf.mxu0  ;;  %v2441_v41 = vpop.f32.mrf.mxu1 }
 0x3bf   : > { %v2450_v28 = vadd.f32 %v2441_v41, %v2368_v46  ;;  %v2370_v21 = vadd.f32 %v2363_v33, %v2288_v59  ;;  %v3370_v33 = vld [vmem:[%s4726_s5 + $0x1] sm:$0x1] }
 0x3c0   : > { %v2365_v52 = vpop.f32.mrf.mxu0  ;;  %v2443_v57 = vpop.f32.mrf.mxu1 }
 0x3c1   : > { %v2451_v35 = vadd.f32 %v2443_v57, %v2369_v38  ;;  %v2371_v45 = vadd.f32 %v2365_v52, %v2289_v18 }
 0x3c2   : > { %v2445_v34 = vpop.f32.mrf.mxu1  ;;  %v2523_v14 = vpop.f32.mrf.mxu0 }
 0x3c3   : > { %v2532_v56 = vadd.f32 %v2523_v14, %v2450_v28  ;;  %v2452_v53 = vadd.f32 %v2445_v34, %v2370_v21  ;;  %v3378_v34 = vld [vmem:[%s4726_s5 + $0x3] sm:$0x1] }
 0x3c4   : > { %v2447_v32 = vpop.f32.mrf.mxu1  ;;  %v2525_v37 = vpop.f32.mrf.mxu0 }
 0x3c5   : > { %v2533_v30 = vadd.f32 %v2525_v37, %v2451_v35  ;;  %v2548_v0 = vadd.f32 %v2541_v40, %v2532_v56  ;;  %v2453_v1 = vadd.f32 %v2447_v32, %v2371_v45  ;;  %v3381_v35 = vld [vmem:[%s4726_s5 + $0x4] sm:$0x1]  ;;  %v3383_v45 = vld [vmem:[%s4726_s5 + $0x5] sm:$0x1] }
 0x3c6   : > { %v2527_v55 = vpop.f32.mrf.mxu0 }
 0x3c7   : > { %v2534_v24 = vadd.f32 %v2527_v55, %v2452_v53  ;;  %v2549_v20 = vadd.f32 %v2541_v40, %v2533_v30  ;;  %v2552_v4 = vmax.f32 %v2548_v0, 0.0 }
 0x3c8   : > { %v2529_v10 = vpop.f32.mrf.mxu0 }
 0x3c9   : > { %v2550_v15 = vadd.f32 %v2546_v12, %v2534_v24  ;;  %v2535_v36 = vadd.f32 %v2529_v10, %v2453_v1  ;;  %v2553_v62 = vmax.f32 %v2549_v20, 0.0 }
 0x3cb   : > { %v2554_v5 = vmax.f32 %v2550_v15, 0.0  ;;  %v2551_v17 = vadd.f32 %v2546_v12, %v2535_v36  ;;  %v3392_v12 = vld [vmem:[%s4726_s5 + $0x8] sm:$0x1] }
 0x3cd   : > { %v2556_v50 = vpack.c.bf16 %v2554_v5, %v2552_v4  ;;  %v2555_v61 = vmax.f32 %v2551_v17, 0.0 }
 0x3cf   : > { %v2557_v13 = vpack.c.bf16 %v2555_v61, %v2553_v62  ;;  %2575 = vrot.lane.b32.xlu0 %v2556_v50, %s3472_s9 }
 0x3d1   : > { %2573 = vrot.lane.b32.xlu1 %v2557_v13, %s3472_s9 }
 0x3d3   : > { %2562 = vrot.lane.b32.xlu0 %v2556_v50, %s3473_s10 }
 0x3d5   : > { %2559 = vrot.lane.b32.xlu1 %v2557_v13, %s3473_s10 }
 0x3d7   : > { %2678 = vrot.lane.b32.xlu0 %v2556_v50, %s3474_s11 }
 0x3d9   : > { %2676 = vrot.lane.b32.xlu1 %v2557_v13, %s3474_s11 }
 0x3db   : > { %2738 = vrot.lane.b32.xlu0 %v2556_v50, %s3475_s12 }
 0x3dd   : > { %2736 = vrot.lane.b32.xlu1 %v2557_v13, %s3475_s12 }
 0x3df   : > { %2846 = vrot.lane.b32.xlu0 %v2557_v13, %s3476_s13 }
 0x3e1   : > { %2844 = vrot.lane.b32.xlu1 %v2556_v50, %s3476_s13 }
 0x3e3   : > { %2906 = vrot.lane.b32.xlu0 %v2557_v13, %s3477_s14 }
 0x3e5   : > { %2904 = vrot.lane.b32.xlu1 %v2556_v50, %s3477_s14 }
 0x3e7   : > { %2966 = vrot.lane.b32.xlu0 %v2557_v13, %s3478_s15 }
 0x3e9   : > { %2964 = vrot.lane.b32.xlu1 %v2556_v50, %s3478_s15 }
 0x3eb   : > { %3026 = vrot.lane.b32.xlu0 %v2557_v13, %s3479_s16 }
 0x3ed   : > { %3024 = vrot.lane.b32.xlu1 %v2556_v50, %s3479_s16 }
 0x3f1   : > { %3087 = vperm.xlu1 %3418, %v3084_v60  }
 0x441   : > { %v2576_v2 = vpop.permute.xlu0 %2575 }
 0x443   : > { %v2574_v25 = vpop.permute.xlu1 %2573 }
 0x444   : > { %v2577_v42 = vsel %vm4970_vm11, %v2576_v2, %v2574_v25  ;;  %v2581_v49 = vsel %vm4971_vm1, %v2574_v25, %v2576_v2  ;;  %vm4976_vm11 = vnez %v4923_v6  ;;  %vm4977_vm1 = vnez %v4924_v51 }
 0x445   : > { %v2583_v22 = vsel %vm4972_vm2, %v2581_v49, 0  ;;  %3371 = vmatprep.subr.msk.bf16.mxu1 %vm4973_vm6, %v2577_v42  ;;  %v2563_v31 = vpop.permute.xlu0 %2562  ;;  %vm4980_vm2 = vcmask 7168  }
 0x446   : > { %2606 = vmatpush1.bf16.msra.mxu1 %v2583_v22  ;;  %vm4981_vm6 = vmmov %vm4980_vm2 }
 0x447   : > { %v2560_v41 = vpop.permute.xlu1 %2559 }
 0x448   : > { %v2564_v23 = vsel %vm4974_vm9, %v2563_v31, %v2560_v41  ;;  %v2568_v27 = vsel %vm4975_vm8, %v2560_v41, %v2563_v31  ;;  %vm4978_vm9 = vcmask 56320  }
 0x449   : > { %v2570_v8 = vsel %vm4976_vm11, %v2568_v27, 0  ;;  %3372 = vmatmul.mubr.msk.bf16.vlgmr.msra.gmra.mxu1 %vm2587_vm14, %v3370_v33  ;;  %3373 = vmatprep.subr.msk.bf16.mxu0 %vm4977_vm1, %v2564_v23  ;;  %v2679_v44 = vpop.permute.xlu0 %2678  ;;  %vm4979_vm8 = vmmov %vm4978_vm9 }
 0x44a   : > { %2650 = vmatpush1.bf16.msra.mxu0 %v2570_v8  ;;  %2725 = vmatprep.mubr.bf16.mxu1 %v4928_v47 }
 0x44b   : > { %v2677_v46 = vpop.permute.xlu1 %2676 }
 0x44c   : > { %v2680_v52 = vsel %vm4978_vm9, %v2679_v44, %v2677_v46  ;;  %v2684_v57 = vsel %vm4979_vm8, %v2677_v46, %v2679_v44 }
 0x44d   : > { %v2686_v6 = vsel %vm4932_vm15, %v2684_v57, 0  ;;  %3374 = vmatmul.mubr.msk.bf16.vlgmr.msra.gmra.mxu0 %vm2587_vm14, %v2572_v39  ;;  %3376 = vmatprep.subr.msk.bf16.mxu1 %vm4934_vm13, %v2680_v52  ;;  %v2739_v51 = vpop.permute.xlu0 %2738  ;;  %vm4982_vm15 = vnez %v4941_v63  ;;  %vm4983_vm13 = vcmask 1039360  }
 0x44e   : > { %2708 = vmatpush1.bf16.msra.mxu1 %v2686_v6  ;;  %2785 = vmatprep.mubr.bf16.mxu0 %v4928_v47  ;;  %vm4984_vm11 = vmmov %vm4983_vm13 }
 0x44f   : > { %v2737_v59 = vpop.permute.xlu1 %2736  ;;  %2815 = vmatprep.subr.bf16.mxu1 %v2557_v13 }
 0x450   : > { %v2740_v38 = vsel %vm4980_vm2, %v2739_v51, %v2737_v59  ;;  %v2744_v48 = vsel %vm4981_vm6, %v2737_v59, %v2739_v51 }
 0x451   : > { %v2746_v28 = vsel %vm3969_vm12, %v2744_v48, 0  ;;  %3377 = vmatmul.mubr.msk.bf16.vlgmr.msra.gmra.mxu1 %vm2587_vm14, %v3375_v43  ;;  %3379 = vmatprep.subr.msk.bf16.mxu0 %vm4982_vm15, %v2740_v38  ;;  %v2847_v58 = vpop.permute.xlu0 %2846  ;;  %vm4985_vm12 = vcmask 990208  }
 0x452   : > { %2768 = vmatpush1.bf16.msra.mxu0 %v2746_v28  ;;  %2816 = vmatpush1.bf16.msra.mxu1 %v2556_v50  ;;  %vm4986_vm1 = vmmov %vm4985_vm12 }
 0x453   : > { %v2845_v14 = vpop.permute.xlu1 %2844  ;;  %2833 = vmatprep.mubr.bf16.mxu1 %v4928_v47 }
 0x454   : > { %v2848_v18 = vsel %vm4983_vm13, %v2845_v14, %v2847_v58  ;;  %v2852_v7 = vsel %vm4984_vm11, %v2847_v58, %v2845_v14 }
 0x455   : > { %v2854_v21 = vsel %vm4079_vm3, %v2848_v18, 0  ;;  %3380 = vmatmul.mubr.msk.bf16.vlgmr.msra.gmra.mxu0 %vm2587_vm14, %v3378_v34  ;;  %3384 = vmatprep.subr.msk.bf16.mxu0 %vm4083_vm7, %v2852_v7  ;;  %v2907_v63 = vpop.permute.xlu0 %2906  ;;  %vm4987_vm3 = vcmask 982016   ;;  %v3480_v34 = vmov 1966171168  }
 0x456   : > { %2876 = vmatpush1.bf16.msra.mxu0 %v2854_v21  ;;  %2893 = vmatprep.mubr.bf16.mxu0 %v4928_v47  ;;  %vm4988_vm7 = vmmov %vm4987_vm3  ;;  %v3100_v14 = vunpack.c.l.s4 %v3480_v34 }
 0x457   : > { %v2905_v56 = vpop.permute.xlu1 %2904 }
 0x458   : > { %v2908_v32 = vsel %vm4985_vm12, %v2905_v56, %v2907_v63  ;;  %v2912_v37 = vsel %vm4986_vm1, %v2907_v63, %v2905_v56 }
 0x459   : > { %v2914_v9 = vsel %vm4099_vm4, %v2908_v32, 0  ;;  %3382 = vmatmul.mubr.msk.bf16.vlgmr.msra.gmra.mxu1 %vm2587_vm14, %v3381_v35  ;;  %3387 = vmatprep.subr.msk.bf16.mxu1 %vm4104_vm10, %v2912_v37  ;;  %v2967_v26 = vpop.permute.xlu0 %2966  ;;  %vm4989_vm4 = vcmask 973824  }
 0x45a   : > { %2936 = vmatpush1.bf16.msra.mxu1 %v2914_v9  ;;  %2953 = vmatprep.mubr.bf16.mxu1 %v4928_v47  ;;  %vm4990_vm10 = vmmov %vm4989_vm4 }
 0x45b   : > { %v2965_v53 = vpop.permute.xlu1 %2964 }
 0x45c   : > { %v2968_v30 = vsel %vm4987_vm3, %v2965_v53, %v2967_v26  ;;  %v2972_v40 = vsel %vm4988_vm7, %v2967_v26, %v2965_v53  ;;  %v3101_v26 = vunpack.c.0.s8 %v3100_v14 }
 0x45d   : > { %v2974_v16 = vsel %vm4199_vm0, %v2968_v30, 0  ;;  %3385 = vmatmul.mubr.msk.bf16.vlgmr.msra.gmra.mxu0 %vm2587_vm14, %v3383_v45  ;;  %3390 = vmatprep.subr.msk.bf16.mxu0 %vm4203_vm5, %v2972_v40  ;;  %v3027_v55 = vpop.permute.xlu0 %3026  ;;  %vm4991_vm0 = vnez %v4966_v19  ;;  %vm4992_vm5 = vnez %v4964_v3  ;;  %v4993_v30 = vld [vmem:[#allocation4_spill] sm:$0xff] }
 0x45e   : > { %2996 = vmatpush1.bf16.msra.mxu0 %v2974_v16  ;;  %3013 = vmatprep.mubr.bf16.mxu0 %v4928_v47 }
 0x45f   : > { %v3025_v0 = vpop.permute.xlu1 %3024 }
 0x460   : > { %v3028_v1 = vsel %vm4989_vm4, %v3025_v0, %v3027_v55  ;;  %v3032_v24 = vsel %vm4990_vm10, %v3027_v55, %v3025_v0 }
 0x461   : > { %v3034_v29 = vsel %vm4991_vm0, %v3028_v1, 0  ;;  %3388 = vmatmul.mubr.msk.bf16.vlgmr.msra.gmra.mxu1 %vm2587_vm14, %v3386_v11  ;;  %3393 = vmatprep.subr.msk.bf16.mxu1 %vm4992_vm5, %v3032_v24  ;;  %v4994_v1 = vld [vmem:[#allocation3_spill] sm:$0xff] }
 0x462   : > { %3056 = vmatpush1.bf16.msra.mxu1 %v3034_v29  ;;  %3073 = vmatprep.mubr.bf16.mxu1 %v4928_v47  ;;  %v3104_v24 = vsub.s32 %v3101_v26, %v4994_v1 }
 0x465   : > { %3391 = vmatmul.mubr.msk.bf16.vlgmr.msra.gmra.mxu0 %vm2587_vm14, %v3389_v54 }
 0x469   : > { %3394 = vmatmul.mubr.msk.bf16.vlgmr.msra.gmra.mxu1 %vm2587_vm14, %v3392_v12 }
 0x46c   : > { %v3088_v21 = vpop.permute.xlu1 %3087 }
 0x46d   : > { %v3093_v40 = vrot.slane %v3088_v21, %v4993_v30 }
 0x509   : > { %v2625_v19 = vpop.f32.mrf.mxu1 }
 0x50b   : > { %v2627_v10 = vpop.f32.mrf.mxu1 }
 0x50d   : > { %v2629_v20 = vpop.f32.mrf.mxu1  ;;  %v2669_v3 = vpop.f32.mrf.mxu0 }
 0x50e   : > { %v2670_v49 = vadd.f32 %v2669_v3, %v2625_v19  ;;  %v4995_v19 = vlaneseq }
 0x50f   : > { %v2630_v15 = vpop.f32.mrf.mxu1  ;;  %v2671_v36 = vpop.f32.mrf.mxu0 }
 0x510   : > { %v2672_v33 = vadd.f32 %v2671_v36, %v2627_v10  ;;  %vm3116_vm14 = vcmp.lt.s32.totalorder %v4995_v19, 256 }
 0x511   : > { %v2673_v4 = vpop.f32.mrf.mxu0  ;;  %v2727_v5 = vpop.f32.mrf.mxu1 }
 0x512   : > { %v2734_v41 = vadd.f32 %v2727_v5, %v2670_v49 }
 0x513   : > { %v2674_v17 = vpop.f32.mrf.mxu0  ;;  %v2729_v62 = vpop.f32.mrf.mxu1 }
 0x514   : > { %v2735_v8 = vadd.f32 %v2729_v62, %v2672_v33 }
 0x515   : > { %v2731_v50 = vpop.f32.mrf.mxu1  ;;  %v2787_v47 = vpop.f32.mrf.mxu0 }
 0x516   : > { %v2794_v44 = vadd.f32 %v2787_v47, %v2734_v41 }
 0x517   : > { %v2732_v61 = vpop.f32.mrf.mxu1  ;;  %v2789_v13 = vpop.f32.mrf.mxu0 }
 0x518   : > { %v2795_v52 = vadd.f32 %v2789_v13, %v2735_v8 }
 0x519   : > { %v2791_v60 = vpop.f32.mrf.mxu0  ;;  %v2835_v2 = vpop.f32.mrf.mxu1 }
 0x51a   : > { %v2842_v57 = vadd.f32 %v2835_v2, %v2794_v44 }
 0x51b   : > { %v2792_v25 = vpop.f32.mrf.mxu0  ;;  %v2837_v42 = vpop.f32.mrf.mxu1 }
 0x51c   : > { %v2843_v43 = vadd.f32 %v2837_v42, %v2795_v52 }
 0x51d   : > { %v2839_v22 = vpop.f32.mrf.mxu1  ;;  %v2895_v31 = vpop.f32.mrf.mxu0 }
 0x51e   : > { %v2902_v59 = vadd.f32 %v2895_v31, %v2842_v57 }
 0x51f   : > { %v2840_v23 = vpop.f32.mrf.mxu1  ;;  %v2897_v27 = vpop.f32.mrf.mxu0 }
 0x520   : > { %v2903_v28 = vadd.f32 %v2897_v27, %v2843_v43 }
 0x521   : > { %v2899_v39 = vpop.f32.mrf.mxu0  ;;  %v2955_v46 = vpop.f32.mrf.mxu1 }
 0x522   : > { %v2962_v58 = vadd.f32 %v2955_v46, %v2902_v59 }
 0x523   : > { %v2900_v6 = vpop.f32.mrf.mxu0  ;;  %v2957_v51 = vpop.f32.mrf.mxu1 }
 0x524   : > { %v2963_v63 = vadd.f32 %v2957_v51, %v2903_v28 }
 0x525   : > { %v2959_v38 = vpop.f32.mrf.mxu1  ;;  %v3015_v48 = vpop.f32.mrf.mxu0 }
 0x526   : > { %v3022_v35 = vadd.f32 %v3015_v48, %v2962_v58 }
 0x527   : > { %v2960_v18 = vpop.f32.mrf.mxu1  ;;  %v3017_v7 = vpop.f32.mrf.mxu0 }
 0x528   : > { %v3023_v37 = vadd.f32 %v3017_v7, %v2963_v63 }
 0x529   : > { %v3075_v56 = vpop.f32.mrf.mxu1  ;;  %v3019_v32 = vpop.f32.mrf.mxu0 }
 0x52a   : > { %v3082_v9 = vadd.f32 %v3075_v56, %v3022_v35 }
 0x52b   : > { %v3077_v45 = vpop.f32.mrf.mxu1  ;;  %v3020_v53 = vpop.f32.mrf.mxu0 }
 0x52c   : > { %v3083_v16 = vadd.f32 %v3077_v45, %v3023_v37  ;;  %v3094_v55 = vadd.f32 %v3093_v40, %v3082_v9 }
 0x52d   : > { %v3079_v11 = vpop.f32.mrf.mxu1 }
 0x52e   : > { %v3095_v0 = vadd.f32 %v3093_v40, %v3083_v16 }
 0x52f   : > { %v3080_v29 = vpop.f32.mrf.mxu1 }
 0x530   : > { %v3098_v54 = vcombine.low %v3094_v55, %v3095_v0 }
 0x532   : > { %v3105_v12 = vrot.slane %v3098_v54, %v3104_v24 }
 0x534   : > { %v3112_v10 = vrot.slane %v3105_v12, %v3104_v24 }
 0x536   : > { %3118 = vst.msk [vmem:[%s278_s6] sm:$0x3] %vm3116_vm14, %v3112_v10 }
 0x537 PF: > { %s19_s26 = sadd.s32 1, %s3468_s26  }
 0x538   : > { %p16_p4 = scmp.ge.s32.totalorder %s19_s26, 4  }
 0x53a   :  { %18 = sbr.rel (!%p16_p4) target bundleno = 3 (0x3), region = 105 }

</bundles_post_ra>
